<compile_context>
chip_gen: v6e
topology: v6e:2x2x1
jax: 0.10.0
libtpu: 0.0.40
codegen_flags: <defaults>
</compile_context>

<pallas_src>
from functools import partial

import jax
import jax.numpy as jnp
from jax import lax
from jax.experimental import pallas as pl
from jax.experimental.pallas import tpu as pltpu


# ----------------------------------------------------------------------------
# Fused per-level kernel (grid over batch N)
# ----------------------------------------------------------------------------
def _make_fused_head_kernel(H, W, Cin, num_convs, num_groups, eps=1e-5):
    HW = H * W
    K3 = 3 * Cin
    cg = Cin // num_groups
    inv_cnt = 1.0 / float(HW * cg)
    HEAD_COUT = 8  # 4 regression + 1 center-ness + 3 zero-padding channels

    def kernel(x_hbm, cw_ref, cb_ref, gam_ref, bet_ref, M_ref, Mt_ref,
               headw_ref, headb_ref, reg_ref, ctr_ref, pad_ref, xbuf, dma_sem):
        n = pl.program_id(0)

        # Fetch this image straight from HBM (input is memory_space=pl.ANY, so no
        # double-buffered pipeline staging copy is allocated for it).
        cp = pltpu.make_async_copy(x_hbm.at[n], xbuf, dma_sem.at[0])
        cp.start()

        # Zero only the four halo strips (interior is fully overwritten each step;
        # doing it per step keeps it correct under megacore grid sharding).
        zrow = jnp.zeros((1, W + 2, Cin), jnp.bfloat16)
        zcol = jnp.zeros((H + 2, 1, Cin), jnp.bfloat16)
        pad_ref[0:1, :, :] = zrow
        pad_ref[H + 1:H + 2, :, :] = zrow
        pad_ref[:, 0:1, :] = zcol
        pad_ref[:, W + 1:W + 2, :] = zcol

        M = M_ref[...]     # (Cin, G) group membership, f32
        Mt = Mt_ref[...]   # (G, Cin)

        cp.wait()
        pad_ref[1:H + 1, 1:W + 1, :] = xbuf[...]   # bf16 interior

        def conv3x3(w_of_dy, cout):
            """3x3 / stride-1 conv: dx-im2col (K=3*Cin) + 3 bf16 MXU matmuls."""
            xp = pad_ref[...]                                    # (H+2, W+2, Cin) bf16
            xcat = jnp.concatenate(
                [xp[:, 0:W, :], xp[:, 1:W + 1, :], xp[:, 2:W + 2, :]],
                axis=-1)                                         # (H+2, W, 3*Cin) bf16
            acc = jnp.zeros((HW, cout), jnp.float32)
            for dy in range(3):
                acc = acc + jnp.dot(
                    xcat[dy:dy + H].reshape(HW, K3), w_of_dy(dy),
                    preferred_element_type=jnp.float32)
            return acc

        # ---- conv stack: (conv3x3 + GroupNorm(16) + ReLU) x num_convs ----------
        for l in range(num_convs):
            acc = conv3x3(lambda dy, l=l: cw_ref[l, dy], Cin) + cb_ref[l]   # (HW, Cin) f32

            # one-pass GroupNorm statistics (f32)
            s = jnp.sum(acc, axis=0, keepdims=True)                 # (1, Cin)
            sq = jnp.sum(acc * acc, axis=0, keepdims=True)          # (1, Cin)
            sum_g = jnp.dot(s, M, preferred_element_type=jnp.float32)      # (1, G)
            sumsq_g = jnp.dot(sq, M, preferred_element_type=jnp.float32)   # (1, G)
            mean_g = sum_g * inv_cnt
            var_g = jnp.maximum(sumsq_g * inv_cnt - mean_g * mean_g, 0.0)
            mean_c = jnp.dot(mean_g, Mt, preferred_element_type=jnp.float32)
            rstd_c = jnp.dot(lax.rsqrt(var_g + eps), Mt,
                             preferred_element_type=jnp.float32)   # (1, Cin)

            scale = rstd_c * gam_ref[l]                 # fold gamma into scale
            shift = bet_ref[l] - mean_c * scale         # fold beta/mean into shift
            h = jnp.maximum(acc * scale + shift, 0.0)
            # next layer's input: write back into the padded-scratch interior
            pad_ref[1:H + 1, 1:W + 1, :] = h.reshape(H, W, Cin).astype(jnp.bfloat16)

        # ---- merged regression (4) + center-ness (1) head (padded to 8) --------
        acc = conv3x3(lambda dy: headw_ref[dy], HEAD_COUT) + headb_ref[...]
        accT = jnp.transpose(acc, (1, 0))                           # (8, HW) lane-dense
        reg_ref[0] = jnp.maximum(accT[0:4, :], 0.0).astype(reg_ref.dtype)
        ctr_ref[0] = accT[4:5, :].astype(ctr_ref.dtype)

    return kernel


def _vmem_limit_bytes():
    """Raise the scoped-VMEM limit (16/32 MiB default) with per-generation headroom."""
    try:
        cap = int(pltpu.get_tpu_info().vmem_capacity_bytes)
    except Exception:
        cap = 64 * 1024 * 1024  # v7x per-core capacity = smallest generation
    return max(32 << 20, min(cap - (8 << 20), 110 << 20))


# ----------------------------------------------------------------------------
# Per-level wrapper (jit'ed so weight re-layout / constants constant-fold)
# ----------------------------------------------------------------------------
@partial(jax.jit, static_argnames=("num_groups",))
def fcos_head_level_pallas(x_nchw, params, num_groups=16):
    """One pyramid level: NCHW feature -> (N,4,H,W) regression, (N,1,H,W) center-ness."""
    N, Cin, H, W = x_nchw.shape
    L = len(params["convs"])
    HW = H * W
    G = num_groups
    K3 = 3 * Cin

    # channels on the 128-lane axis; fuse the layout change with the bf16 cast
    x_nhwc = jnp.transpose(x_nchw, (0, 2, 3, 1)).astype(jnp.bfloat16)

    def prep_w(w9, cout):
        # (9, Cin, Cout) -> (3 dy, 3*Cin, Cout) matching the dx-concat im2col layout
        return w9.reshape(3, 3, Cin, cout).reshape(3, K3, cout).astype(jnp.bfloat16)

    conv_w = jnp.stack([prep_w(p["w"], Cin) for p in params["convs"]])        # (L,3,3Cin,Cin) bf16
    conv_b = jnp.stack([p["b"].reshape(1, Cin) for p in params["convs"]])     # (L,1,Cin) f32
    conv_g = jnp.stack([p["gamma"].reshape(1, Cin) for p in params["convs"]])
    conv_bt = jnp.stack([p["beta"].reshape(1, Cin) for p in params["convs"]])

    # merge reg (4) + ctr (1) heads, pad to Cout=8 for aligned epilogue
    head_w5 = jnp.concatenate([params["reg_w"], params["ctr_w"]], axis=-1)    # (9,Cin,5)
    head_w = prep_w(jnp.pad(head_w5, ((0, 0), (0, 0), (0, 3))), 8)            # (3,3Cin,8) bf16
    head_b = jnp.pad(jnp.concatenate([params["reg_b"], params["ctr_b"]]),
                     (0, 3)).reshape(1, 8)

    # constant GroupNorm group-membership matrices
    cg = Cin // G
    M = (jnp.arange(Cin)[:, None] // cg == jnp.arange(G)[None, :]).astype(jnp.float32)
    Mt = jnp.transpose(M)

    kernel = _make_fused_head_kernel(H, W, Cin, L, G)

    reg_flat, ctr_flat = pl.pallas_call(
        kernel,
        out_shape=(
            jax.ShapeDtypeStruct((N, 4, HW), x_nchw.dtype),
            jax.ShapeDtypeStruct((N, 1, HW), x_nchw.dtype),
        ),
        grid_spec=pltpu.PrefetchScalarGridSpec(
            num_scalar_prefetch=0,
            grid=(N,),
            in_specs=[
                pl.BlockSpec(memory_space=pl.ANY),                        # x stays in HBM
                pl.BlockSpec((L, 3, K3, Cin), lambda n: (0, 0, 0, 0)),
                pl.BlockSpec((L, 1, Cin), lambda n: (0, 0, 0)),
                pl.BlockSpec((L, 1, Cin), lambda n: (0, 0, 0)),
                pl.BlockSpec((L, 1, Cin), lambda n: (0, 0, 0)),
                pl.BlockSpec((Cin, G), lambda n: (0, 0)),
                pl.BlockSpec((G, Cin), lambda n: (0, 0)),
                pl.BlockSpec((3, K3, 8), lambda n: (0, 0, 0)),
                pl.BlockSpec((1, 8), lambda n: (0, 0)),
            ],
            out_specs=[
                pl.BlockSpec((1, 4, HW), lambda n: (n, 0, 0)),
                pl.BlockSpec((1, 1, HW), lambda n: (n, 0, 0)),
            ],
            scratch_shapes=[
                pltpu.VMEM((H + 2, W + 2, Cin), jnp.bfloat16),   # padded activation
                pltpu.VMEM((H, W, Cin), jnp.bfloat16),           # DMA staging for x[n]
                pltpu.SemaphoreType.DMA((1,)),
            ],
        ),
        compiler_params=pltpu.CompilerParams(
            dimension_semantics=("parallel",),
            vmem_limit_bytes=_vmem_limit_bytes(),
        ),
    )(x_nhwc, conv_w, conv_b, conv_g, conv_bt, M, Mt, head_w, head_b)

    # flattened-NCHW -> NCHW is a free reshape (no transpose needed)
    return reg_flat.reshape(N, 4, H, W), ctr_flat.reshape(N, 1, H, W)


# ----------------------------------------------------------------------------
# Parameter init (matches FCOSRegressionHead.__init__ / init_weights)
# ----------------------------------------------------------------------------
def init_params(key, in_channels, num_convs=2):
    params = {"convs": []}
    for _ in range(num_convs):
        key, k = jax.random.split(key)
        w = 0.01 * jax.random.normal(k, (3, 3, in_channels, in_channels), jnp.float32)
        params["convs"].append(
            dict(
                w=w.reshape(9, in_channels, in_channels),
                b=jnp.zeros((in_channels,), jnp.float32),
                gamma=jnp.ones((in_channels,), jnp.float32),   # GroupNorm weight
                beta=jnp.zeros((in_channels,), jnp.float32),   # GroupNorm bias
            )
        )
    key, k = jax.random.split(key)
    params["reg_w"] = (0.01 * jax.random.normal(k, (3, 3, in_channels, 4), jnp.float32)
                       ).reshape(9, in_channels, 4)
    params["reg_b"] = jnp.zeros((4,), jnp.float32)
    key, k = jax.random.split(key)
    params["ctr_w"] = (0.01 * jax.random.normal(k, (3, 3, in_channels, 1), jnp.float32)
                       ).reshape(9, in_channels, 1)
    params["ctr_b"] = jnp.zeros((1,), jnp.float32)
    return params


# ----------------------------------------------------------------------------
# Forward pass: list of NCHW pyramid features -> (out_regress, out_centerness)
# ----------------------------------------------------------------------------
def fcos_regression_head_forward(features_nchw, params, num_groups=16):
    out_regress, out_centerness = [], []
    for feat in features_nchw:
        reg, ctr = fcos_head_level_pallas(feat, params, num_groups=num_groups)
        out_regress.append(reg)       # N x 4 x H x W
        out_centerness.append(ctr)    # N x 1 x H x W
    return out_regress, out_centerness


# ----------------------------------------------------------------------------
# Pure-JAX reference (f32, for correctness check)
# ----------------------------------------------------------------------------
def _ref_conv3x3(x_nchw, w9, b):
    Cin, Cout = w9.shape[1], w9.shape[2]
    w_oihw = jnp.transpose(w9.reshape(3, 3, Cin, Cout), (3, 2, 0, 1))
    y = lax.conv_general_dilated(
        x_nchw, w_oihw, (1, 1), ((1, 1), (1, 1)),
        dimension_numbers=("NCHW", "OIHW", "NCHW"))
    return y + b.reshape(1, Cout, 1, 1)


def _ref_groupnorm(x, gamma, beta, G=16, eps=1e-5):
    N, C, H, W = x.shape
    xg = x.reshape(N, G, C // G, H, W)
    mean = xg.mean(axis=(2, 3, 4), keepdims=True)
    var = ((xg - mean) ** 2).mean(axis=(2, 3, 4), keepdims=True)
    xn = (xg - mean) / jnp.sqrt(var + eps)
    return xn.reshape(N, C, H, W) * gamma.reshape(1, C, 1, 1) + beta.reshape(1, C, 1, 1)


def _ref_forward(features_nchw, params, num_groups=16):
    out_regress, out_centerness = [], []
    for feat in features_nchw:
        h = feat
        for lp in params["convs"]:
            h = _ref_conv3x3(h, lp["w"], lp["b"])
            h = _ref_groupnorm(h, lp["gamma"], lp["beta"], G=num_groups)
            h = jnp.maximum(h, 0.0)
        reg = jnp.maximum(_ref_conv3x3(h, params["reg_w"], params["reg_b"]), 0.0)
        ctr = _ref_conv3x3(h, params["ctr_w"], params["ctr_b"])
        out_regress.append(reg)
        out_centerness.append(ctr)
    return out_regress, out_centerness


if __name__ == "__main__":
    key = jax.random.PRNGKey(0)
    in_channels = 128   # divisible by 16 (GroupNorm(16, C)); lane-aligned im2col
    num_convs = 2

    key, kp = jax.random.split(key)
    params = init_params(kp, in_channels, num_convs)

    # Two pyramid levels, small shapes, batch=2 (NCHW, like PyTorch).
    key, k1, k2 = jax.random.split(key, 3)
    features = [
        jax.random.normal(k1, (2, in_channels, 16, 16), jnp.float32),
        jax.random.normal(k2, (2, in_channels, 8, 8), jnp.float32),
    ]

    out_regress, out_centerness = fcos_regression_head_forward(features, params)
    jax.block_until_ready(out_regress)
    jax.block_until_ready(out_centerness)

    # Sanity checks: shapes and numerics vs. f32 reference (kernel uses bf16 MXU
    # operands with f32 accumulation, so tolerance is looser than the f32 version).
    ref_regress, ref_centerness = _ref_forward(features, params)
    for lvl, feat in enumerate(features):
        n, _, h, w = feat.shape
        assert out_regress[lvl].shape == (n, 4, h, w)
        assert out_centerness[lvl].shape == (n, 1, h, w)
        assert jnp.max(jnp.abs(out_regress[lvl] - ref_regress[lvl])) < 3e-2
        assert jnp.max(jnp.abs(out_centerness[lvl] - ref_centerness[lvl])) < 3e-2

    print("KERNEL_OK")
</pallas_src>

<mosaic_0001>
module attributes {stable_mosaic.version = 11 : i64} {
  func.func @kernel(%arg0: i32, %arg1: memref<2x16x16x128xbf16, #tpu.memory_space<any>>, %arg2: memref<2x3x384x128xbf16, #tpu.memory_space<vmem>>, %arg3: memref<2x1x128xf32, #tpu.memory_space<vmem>>, %arg4: memref<2x1x128xf32, #tpu.memory_space<vmem>>, %arg5: memref<2x1x128xf32, #tpu.memory_space<vmem>>, %arg6: memref<128x16xf32, #tpu.memory_space<vmem>>, %arg7: memref<16x128xf32, #tpu.memory_space<vmem>>, %arg8: memref<3x384x8xbf16, #tpu.memory_space<vmem>>, %arg9: memref<1x8xf32, #tpu.memory_space<vmem>>, %arg10: memref<1x4x256xf32, #tpu.memory_space<vmem>>, %arg11: memref<1x1x256xf32, #tpu.memory_space<vmem>>, %arg12: memref<18x18x128xbf16, #tpu.memory_space<vmem>>, %arg13: memref<16x16x128xbf16, #tpu.memory_space<vmem>>, %arg14: memref<1x!tpu.dma_semaphore, #tpu.memory_space<semaphore_mem>>) attributes {dimension_semantics = [#tpu.dimension_semantics<parallel>], iteration_bounds = array<i64: 2>, scalar_prefetch = 0 : i64, scratch_operands = 3 : i64, tpu.core_type = #tpu.core_type<tc>, window_params = [{}, {pipeline_mode = #tpu.pipeline_mode<synchronous>, transform_indices = @transform_1, window_bounds = array<i64: 2, 3, 384, 128>}, {pipeline_mode = #tpu.pipeline_mode<synchronous>, transform_indices = @transform_2, window_bounds = array<i64: 2, 1, 128>}, {pipeline_mode = #tpu.pipeline_mode<synchronous>, transform_indices = @transform_3, window_bounds = array<i64: 2, 1, 128>}, {pipeline_mode = #tpu.pipeline_mode<synchronous>, transform_indices = @transform_4, window_bounds = array<i64: 2, 1, 128>}, {pipeline_mode = #tpu.pipeline_mode<synchronous>, transform_indices = @transform_5, window_bounds = array<i64: 128, 16>}, {pipeline_mode = #tpu.pipeline_mode<synchronous>, transform_indices = @transform_6, window_bounds = array<i64: 16, 128>}, {pipeline_mode = #tpu.pipeline_mode<synchronous>, transform_indices = @transform_7, window_bounds = array<i64: 3, 384, 8>}, {pipeline_mode = #tpu.pipeline_mode<synchronous>, transform_indices = @transform_8, window_bounds = array<i64: 1, 8>}, {transform_indices = @transform_9, window_bounds = array<i64: 1, 4, 256>}, {transform_indices = @transform_10, window_bounds = array<i64: 1, 1, 256>}]} {
    %c0_i32 = arith.constant 0 : i32
    %c0_i32_0 = arith.constant 0 : i32
    %c0_i32_1 = arith.constant 0 : i32
    %c0_i32_2 = arith.constant 0 : i32
    %0 = tpu.memref_slice %arg1[%arg0, %c0_i32_0, %c0_i32_1, %c0_i32_2] : memref<2x16x16x128xbf16, #tpu.memory_space<any>> -> memref<1x16x16x128xbf16, #tpu.memory_space<any>>
    %1 = tpu.memref_squeeze %0 : memref<1x16x16x128xbf16, #tpu.memory_space<any>> -> memref<16x16x128xbf16, #tpu.memory_space<any>>
    %2 = tpu.memref_slice %arg14[%c0_i32] : memref<1x!tpu.dma_semaphore, #tpu.memory_space<semaphore_mem>> -> memref<1x!tpu.dma_semaphore, #tpu.memory_space<semaphore_mem>>
    %3 = tpu.memref_squeeze %2 : memref<1x!tpu.dma_semaphore, #tpu.memory_space<semaphore_mem>> -> memref<!tpu.dma_semaphore, #tpu.memory_space<semaphore_mem>>
    tpu.enqueue_dma source(%1 : memref<16x16x128xbf16, #tpu.memory_space<any>>) target(%arg13 : memref<16x16x128xbf16, #tpu.memory_space<vmem>>) target_semaphore(%3 : memref<!tpu.dma_semaphore, #tpu.memory_space<semaphore_mem>>)
    %cst = arith.constant 0.000000e+00 : bf16
    %4 = vector.broadcast %cst : bf16 to vector<1x18x128xbf16>
    %cst_3 = arith.constant 0.000000e+00 : bf16
    %5 = vector.broadcast %cst_3 : bf16 to vector<18x1x128xbf16>
    %c0 = arith.constant 0 : index
    %c0_4 = arith.constant 0 : index
    %c0_5 = arith.constant 0 : index
    %6 = vector.load %arg12[%c0, %c0_4, %c0_5] : memref<18x18x128xbf16, #tpu.memory_space<vmem>>, vector<1x18x128xbf16>
    tpu.vector_store %arg12[%c0, %c0_4, %c0_5], %4 {strides = array<i32>} : memref<18x18x128xbf16, #tpu.memory_space<vmem>>, vector<1x18x128xbf16>,
    %c17 = arith.constant 17 : index
    %c0_6 = arith.constant 0 : index
    %c0_7 = arith.constant 0 : index
    %7 = vector.load %arg12[%c17, %c0_6, %c0_7] : memref<18x18x128xbf16, #tpu.memory_space<vmem>>, vector<1x18x128xbf16>
    tpu.vector_store %arg12[%c17, %c0_6, %c0_7], %4 {strides = array<i32>} : memref<18x18x128xbf16, #tpu.memory_space<vmem>>, vector<1x18x128xbf16>,
    %c0_8 = arith.constant 0 : index
    %c0_9 = arith.constant 0 : index
    %c0_10 = arith.constant 0 : index
    %8 = vector.load %arg12[%c0_8, %c0_9, %c0_10] : memref<18x18x128xbf16, #tpu.memory_space<vmem>>, vector<18x1x128xbf16>
    tpu.vector_store %arg12[%c0_8, %c0_9, %c0_10], %5 {strides = array<i32>} : memref<18x18x128xbf16, #tpu.memory_space<vmem>>, vector<18x1x128xbf16>,
    %c0_11 = arith.constant 0 : index
    %c17_12 = arith.constant 17 : index
    %c0_13 = arith.constant 0 : index
    %9 = vector.load %arg12[%c0_11, %c17_12, %c0_13] : memref<18x18x128xbf16, #tpu.memory_space<vmem>>, vector<18x1x128xbf16>
    tpu.vector_store %arg12[%c0_11, %c17_12, %c0_13], %5 {strides = array<i32>} : memref<18x18x128xbf16, #tpu.memory_space<vmem>>, vector<18x1x128xbf16>,
    %c0_14 = arith.constant 0 : index
    %c0_15 = arith.constant 0 : index
    %10 = vector.load %arg6[%c0_14, %c0_15] : memref<128x16xf32, #tpu.memory_space<vmem>>, vector<128x16xf32>
    %c0_16 = arith.constant 0 : index
    %c0_17 = arith.constant 0 : index
    %11 = vector.load %arg7[%c0_16, %c0_17] : memref<16x128xf32, #tpu.memory_space<vmem>>, vector<16x128xf32>
    %c0_i32_18 = arith.constant 0 : i32
    %c0_i32_19 = arith.constant 0 : i32
    %c0_i32_20 = arith.constant 0 : i32
    %c0_i32_21 = arith.constant 0 : i32
    %12 = tpu.memref_slice %arg1[%arg0, %c0_i32_19, %c0_i32_20, %c0_i32_21] : memref<2x16x16x128xbf16, #tpu.memory_space<any>> -> memref<1x16x16x128xbf16, #tpu.memory_space<any>>
    %13 = tpu.memref_squeeze %12 : memref<1x16x16x128xbf16, #tpu.memory_space<any>> -> memref<16x16x128xbf16, #tpu.memory_space<any>>
    %14 = tpu.memref_slice %arg14[%c0_i32_18] : memref<1x!tpu.dma_semaphore, #tpu.memory_space<semaphore_mem>> -> memref<1x!tpu.dma_semaphore, #tpu.memory_space<semaphore_mem>>
    %15 = tpu.memref_squeeze %14 : memref<1x!tpu.dma_semaphore, #tpu.memory_space<semaphore_mem>> -> memref<!tpu.dma_semaphore, #tpu.memory_space<semaphore_mem>>
    tpu.wait_dma2 semaphore(%15 : memref<!tpu.dma_semaphore, #tpu.memory_space<semaphore_mem>>) src(%13 : memref<16x16x128xbf16, #tpu.memory_space<any>>) dst(%arg13 : memref<16x16x128xbf16, #tpu.memory_space<vmem>>)
    %c0_22 = arith.constant 0 : index
    %c0_23 = arith.constant 0 : index
    %c0_24 = arith.constant 0 : index
    %16 = vector.load %arg13[%c0_22, %c0_23, %c0_24] : memref<16x16x128xbf16, #tpu.memory_space<vmem>>, vector<16x16x128xbf16>
    %c1 = arith.constant 1 : index
    %c1_25 = arith.constant 1 : index
    %c0_26 = arith.constant 0 : index
    %17 = vector.load %arg12[%c1, %c1_25, %c0_26] : memref<18x18x128xbf16, #tpu.memory_space<vmem>>, vector<16x16x128xbf16>
    tpu.vector_store %arg12[%c1, %c1_25, %c0_26], %16 {strides = array<i32>} : memref<18x18x128xbf16, #tpu.memory_space<vmem>>, vector<16x16x128xbf16>,
    %c0_27 = arith.constant 0 : index
    %c0_28 = arith.constant 0 : index
    %c0_29 = arith.constant 0 : index
    %18 = vector.load %arg12[%c0_27, %c0_28, %c0_29] : memref<18x18x128xbf16, #tpu.memory_space<vmem>>, vector<18x18x128xbf16>
    %19 = vector.extract_strided_slice %18 {offsets = [0, 0, 0], sizes = [18, 16, 128], strides = [1, 1, 1]} : vector<18x18x128xbf16> to vector<18x16x128xbf16>
    %20 = vector.extract_strided_slice %18 {offsets = [0, 1, 0], sizes = [18, 16, 128], strides = [1, 1, 1]} : vector<18x18x128xbf16> to vector<18x16x128xbf16>
    %21 = vector.extract_strided_slice %18 {offsets = [0, 2, 0], sizes = [18, 16, 128], strides = [1, 1, 1]} : vector<18x18x128xbf16> to vector<18x16x128xbf16>
    %22 = tpu.concatenate %19, %20, %21 in 2 : vector<18x16x128xbf16>, vector<18x16x128xbf16>, vector<18x16x128xbf16> -> vector<18x16x384xbf16>
    %cst_30 = arith.constant 0.000000e+00 : f32
    %23 = vector.broadcast %cst_30 : f32 to vector<256x128xf32>
    %24 = vector.extract_strided_slice %22 {offsets = [0, 0, 0], sizes = [16, 16, 384], strides = [1, 1, 1]} : vector<18x16x384xbf16> to vector<16x16x384xbf16>
    %25 = vector.shape_cast %24 : vector<16x16x384xbf16> to vector<256x384xbf16>
    %c0_31 = arith.constant 0 : index
    %c0_32 = arith.constant 0 : index
    %c0_33 = arith.constant 0 : index
    %c0_34 = arith.constant 0 : index
    %26 = vector.load %arg2[%c0_31, %c0_32, %c0_33, %c0_34] : memref<2x3x384x128xbf16, #tpu.memory_space<vmem>>, vector<1x1x384x128xbf16>
    %27 = vector.shape_cast %26 : vector<1x1x384x128xbf16> to vector<384x128xbf16>
    %cst_35 = arith.constant dense<0.000000e+00> : vector<256x128xf32>
    %28 = tpu.matmul %25, %27, %cst_35 {dimension_numbers = #tpu.dot_dimension_numbers<[1], [0], [0], [1], [0, 0, 1, 1], [], []>} : vector<256x384xbf16>, vector<384x128xbf16>, vector<256x128xf32> -> vector<256x128xf32>
    %29 = arith.addf %23, %28 : vector<256x128xf32>
    %30 = vector.extract_strided_slice %22 {offsets = [1, 0, 0], sizes = [16, 16, 384], strides = [1, 1, 1]} : vector<18x16x384xbf16> to vector<16x16x384xbf16>
    %31 = vector.shape_cast %30 : vector<16x16x384xbf16> to vector<256x384xbf16>
    %c0_36 = arith.constant 0 : index
    %c1_37 = arith.constant 1 : index
    %c0_38 = arith.constant 0 : index
    %c0_39 = arith.constant 0 : index
    %32 = vector.load %arg2[%c0_36, %c1_37, %c0_38, %c0_39] : memref<2x3x384x128xbf16, #tpu.memory_space<vmem>>, vector<1x1x384x128xbf16>
    %33 = vector.shape_cast %32 : vector<1x1x384x128xbf16> to vector<384x128xbf16>
    %cst_40 = arith.constant dense<0.000000e+00> : vector<256x128xf32>
    %34 = tpu.matmul %31, %33, %cst_40 {dimension_numbers = #tpu.dot_dimension_numbers<[1], [0], [0], [1], [0, 0, 1, 1], [], []>} : vector<256x384xbf16>, vector<384x128xbf16>, vector<256x128xf32> -> vector<256x128xf32>
    %35 = arith.addf %29, %34 : vector<256x128xf32>
    %36 = vector.extract_strided_slice %22 {offsets = [2, 0, 0], sizes = [16, 16, 384], strides = [1, 1, 1]} : vector<18x16x384xbf16> to vector<16x16x384xbf16>
    %37 = vector.shape_cast %36 : vector<16x16x384xbf16> to vector<256x384xbf16>
    %c0_41 = arith.constant 0 : index
    %c2 = arith.constant 2 : index
    %c0_42 = arith.constant 0 : index
    %c0_43 = arith.constant 0 : index
    %38 = vector.load %arg2[%c0_41, %c2, %c0_42, %c0_43] : memref<2x3x384x128xbf16, #tpu.memory_space<vmem>>, vector<1x1x384x128xbf16>
    %39 = vector.shape_cast %38 : vector<1x1x384x128xbf16> to vector<384x128xbf16>
    %cst_44 = arith.constant dense<0.000000e+00> : vector<256x128xf32>
    %40 = tpu.matmul %37, %39, %cst_44 {dimension_numbers = #tpu.dot_dimension_numbers<[1], [0], [0], [1], [0, 0, 1, 1], [], []>} : vector<256x384xbf16>, vector<384x128xbf16>, vector<256x128xf32> -> vector<256x128xf32>
    %41 = arith.addf %35, %40 : vector<256x128xf32>
    %c0_45 = arith.constant 0 : index
    %c0_46 = arith.constant 0 : index
    %c0_47 = arith.constant 0 : index
    %42 = vector.load %arg3[%c0_45, %c0_46, %c0_47] : memref<2x1x128xf32, #tpu.memory_space<vmem>>, vector<1x1x128xf32>
    %43 = vector.shape_cast %42 : vector<1x1x128xf32> to vector<1x128xf32>
    %44 = vector.broadcast %43 : vector<1x128xf32> to vector<256x128xf32>
    %45 = arith.addf %41, %44 : vector<256x128xf32>
    %cst_48 = arith.constant dense<0.000000e+00> : vector<128xf32>
    %46 = vector.multi_reduction <add>, %45, %cst_48 [0] : vector<256x128xf32> to vector<128xf32>
    %47 = vector.shape_cast %46 : vector<128xf32> to vector<1x128xf32>
    %48 = arith.mulf %45, %45 : vector<256x128xf32>
    %cst_49 = arith.constant dense<0.000000e+00> : vector<128xf32>
    %49 = vector.multi_reduction <add>, %48, %cst_49 [0] : vector<256x128xf32> to vector<128xf32>
    %50 = vector.shape_cast %49 : vector<128xf32> to vector<1x128xf32>
    %cst_50 = arith.constant dense<0.000000e+00> : vector<1x16xf32>
    %51 = tpu.matmul %47, %10, %cst_50 {dimension_numbers = #tpu.dot_dimension_numbers<[1], [0], [0], [1], [0, 0, 1, 1], [], []>} : vector<1x128xf32>, vector<128x16xf32>, vector<1x16xf32> -> vector<1x16xf32>
    %cst_51 = arith.constant dense<0.000000e+00> : vector<1x16xf32>
    %52 = tpu.matmul %50, %10, %cst_51 {dimension_numbers = #tpu.dot_dimension_numbers<[1], [0], [0], [1], [0, 0, 1, 1], [], []>} : vector<1x128xf32>, vector<128x16xf32>, vector<1x16xf32> -> vector<1x16xf32>
    %cst_52 = arith.constant 4.8828125E-4 : f32
    %53 = vector.broadcast %cst_52 : f32 to vector<1x16xf32>
    %54 = arith.mulf %51, %53 : vector<1x16xf32>
    %cst_53 = arith.constant 4.8828125E-4 : f32
    %55 = vector.broadcast %cst_53 : f32 to vector<1x16xf32>
    %56 = arith.mulf %52, %55 : vector<1x16xf32>
    %57 = arith.mulf %54, %54 : vector<1x16xf32>
    %58 = arith.subf %56, %57 : vector<1x16xf32>
    %cst_54 = arith.constant 0.000000e+00 : f32
    %59 = vector.broadcast %cst_54 : f32 to vector<1x16xf32>
    %60 = arith.maximumf %58, %59 : vector<1x16xf32>
    %cst_55 = arith.constant dense<0.000000e+00> : vector<1x128xf32>
    %61 = tpu.matmul %54, %11, %cst_55 {dimension_numbers = #tpu.dot_dimension_numbers<[1], [0], [0], [1], [0, 0, 1, 1], [], []>} : vector<1x16xf32>, vector<16x128xf32>, vector<1x128xf32> -> vector<1x128xf32>
    %cst_56 = arith.constant 9.99999974E-6 : f32
    %62 = vector.broadcast %cst_56 : f32 to vector<1x16xf32>
    %63 = arith.addf %60, %62 : vector<1x16xf32>
    %64 = math.rsqrt %63 : vector<1x16xf32>
    %cst_57 = arith.constant dense<0.000000e+00> : vector<1x128xf32>
    %65 = tpu.matmul %64, %11, %cst_57 {dimension_numbers = #tpu.dot_dimension_numbers<[1], [0], [0], [1], [0, 0, 1, 1], [], []>} : vector<1x16xf32>, vector<16x128xf32>, vector<1x128xf32> -> vector<1x128xf32>
    %c0_58 = arith.constant 0 : index
    %c0_59 = arith.constant 0 : index
    %c0_60 = arith.constant 0 : index
    %66 = vector.load %arg4[%c0_58, %c0_59, %c0_60] : memref<2x1x128xf32, #tpu.memory_space<vmem>>, vector<1x1x128xf32>
    %67 = vector.shape_cast %66 : vector<1x1x128xf32> to vector<1x128xf32>
    %68 = arith.mulf %65, %67 : vector<1x128xf32>
    %c0_61 = arith.constant 0 : index
    %c0_62 = arith.constant 0 : index
    %c0_63 = arith.constant 0 : index
    %69 = vector.load %arg5[%c0_61, %c0_62, %c0_63] : memref<2x1x128xf32, #tpu.memory_space<vmem>>, vector<1x1x128xf32>
    %70 = vector.shape_cast %69 : vector<1x1x128xf32> to vector<1x128xf32>
    %71 = arith.mulf %61, %68 : vector<1x128xf32>
    %72 = arith.subf %70, %71 : vector<1x128xf32>
    %73 = vector.broadcast %68 : vector<1x128xf32> to vector<256x128xf32>
    %74 = arith.mulf %45, %73 : vector<256x128xf32>
    %75 = vector.broadcast %72 : vector<1x128xf32> to vector<256x128xf32>
    %76 = arith.addf %74, %75 : vector<256x128xf32>
    %cst_64 = arith.constant 0.000000e+00 : f32
    %77 = vector.broadcast %cst_64 : f32 to vector<256x128xf32>
    %78 = arith.maximumf %76, %77 : vector<256x128xf32>
    %79 = vector.shape_cast %78 : vector<256x128xf32> to vector<16x16x128xf32>
    %80 = arith.truncf %79 : vector<16x16x128xf32> to vector<16x16x128xbf16>
    %c1_65 = arith.constant 1 : index
    %c1_66 = arith.constant 1 : index
    %c0_67 = arith.constant 0 : index
    %81 = vector.load %arg12[%c1_65, %c1_66, %c0_67] : memref<18x18x128xbf16, #tpu.memory_space<vmem>>, vector<16x16x128xbf16>
    tpu.vector_store %arg12[%c1_65, %c1_66, %c0_67], %80 {strides = array<i32>} : memref<18x18x128xbf16, #tpu.memory_space<vmem>>, vector<16x16x128xbf16>,
    %c0_68 = arith.constant 0 : index
    %c0_69 = arith.constant 0 : index
    %c0_70 = arith.constant 0 : index
    %82 = vector.load %arg12[%c0_68, %c0_69, %c0_70] : memref<18x18x128xbf16, #tpu.memory_space<vmem>>, vector<18x18x128xbf16>
    %83 = vector.extract_strided_slice %82 {offsets = [0, 0, 0], sizes = [18, 16, 128], strides = [1, 1, 1]} : vector<18x18x128xbf16> to vector<18x16x128xbf16>
    %84 = vector.extract_strided_slice %82 {offsets = [0, 1, 0], sizes = [18, 16, 128], strides = [1, 1, 1]} : vector<18x18x128xbf16> to vector<18x16x128xbf16>
    %85 = vector.extract_strided_slice %82 {offsets = [0, 2, 0], sizes = [18, 16, 128], strides = [1, 1, 1]} : vector<18x18x128xbf16> to vector<18x16x128xbf16>
    %86 = tpu.concatenate %83, %84, %85 in 2 : vector<18x16x128xbf16>, vector<18x16x128xbf16>, vector<18x16x128xbf16> -> vector<18x16x384xbf16>
    %cst_71 = arith.constant 0.000000e+00 : f32
    %87 = vector.broadcast %cst_71 : f32 to vector<256x128xf32>
    %88 = vector.extract_strided_slice %86 {offsets = [0, 0, 0], sizes = [16, 16, 384], strides = [1, 1, 1]} : vector<18x16x384xbf16> to vector<16x16x384xbf16>
    %89 = vector.shape_cast %88 : vector<16x16x384xbf16> to vector<256x384xbf16>
    %c1_72 = arith.constant 1 : index
    %c0_73 = arith.constant 0 : index
    %c0_74 = arith.constant 0 : index
    %c0_75 = arith.constant 0 : index
    %90 = vector.load %arg2[%c1_72, %c0_73, %c0_74, %c0_75] : memref<2x3x384x128xbf16, #tpu.memory_space<vmem>>, vector<1x1x384x128xbf16>
    %91 = vector.shape_cast %90 : vector<1x1x384x128xbf16> to vector<384x128xbf16>
    %cst_76 = arith.constant dense<0.000000e+00> : vector<256x128xf32>
    %92 = tpu.matmul %89, %91, %cst_76 {dimension_numbers = #tpu.dot_dimension_numbers<[1], [0], [0], [1], [0, 0, 1, 1], [], []>} : vector<256x384xbf16>, vector<384x128xbf16>, vector<256x128xf32> -> vector<256x128xf32>
    %93 = arith.addf %87, %92 : vector<256x128xf32>
    %94 = vector.extract_strided_slice %86 {offsets = [1, 0, 0], sizes = [16, 16, 384], strides = [1, 1, 1]} : vector<18x16x384xbf16> to vector<16x16x384xbf16>
    %95 = vector.shape_cast %94 : vector<16x16x384xbf16> to vector<256x384xbf16>
    %c1_77 = arith.constant 1 : index
    %c1_78 = arith.constant 1 : index
    %c0_79 = arith.constant 0 : index
    %c0_80 = arith.constant 0 : index
    %96 = vector.load %arg2[%c1_77, %c1_78, %c0_79, %c0_80] : memref<2x3x384x128xbf16, #tpu.memory_space<vmem>>, vector<1x1x384x128xbf16>
    %97 = vector.shape_cast %96 : vector<1x1x384x128xbf16> to vector<384x128xbf16>
    %cst_81 = arith.constant dense<0.000000e+00> : vector<256x128xf32>
    %98 = tpu.matmul %95, %97, %cst_81 {dimension_numbers = #tpu.dot_dimension_numbers<[1], [0], [0], [1], [0, 0, 1, 1], [], []>} : vector<256x384xbf16>, vector<384x128xbf16>, vector<256x128xf32> -> vector<256x128xf32>
    %99 = arith.addf %93, %98 : vector<256x128xf32>
    %100 = vector.extract_strided_slice %86 {offsets = [2, 0, 0], sizes = [16, 16, 384], strides = [1, 1, 1]} : vector<18x16x384xbf16> to vector<16x16x384xbf16>
    %101 = vector.shape_cast %100 : vector<16x16x384xbf16> to vector<256x384xbf16>
    %c1_82 = arith.constant 1 : index
    %c2_83 = arith.constant 2 : index
    %c0_84 = arith.constant 0 : index
    %c0_85 = arith.constant 0 : index
    %102 = vector.load %arg2[%c1_82, %c2_83, %c0_84, %c0_85] : memref<2x3x384x128xbf16, #tpu.memory_space<vmem>>, vector<1x1x384x128xbf16>
    %103 = vector.shape_cast %102 : vector<1x1x384x128xbf16> to vector<384x128xbf16>
    %cst_86 = arith.constant dense<0.000000e+00> : vector<256x128xf32>
    %104 = tpu.matmul %101, %103, %cst_86 {dimension_numbers = #tpu.dot_dimension_numbers<[1], [0], [0], [1], [0, 0, 1, 1], [], []>} : vector<256x384xbf16>, vector<384x128xbf16>, vector<256x128xf32> -> vector<256x128xf32>
    %105 = arith.addf %99, %104 : vector<256x128xf32>
    %c1_87 = arith.constant 1 : index
    %c0_88 = arith.constant 0 : index
    %c0_89 = arith.constant 0 : index
    %106 = vector.load %arg3[%c1_87, %c0_88, %c0_89] : memref<2x1x128xf32, #tpu.memory_space<vmem>>, vector<1x1x128xf32>
    %107 = vector.shape_cast %106 : vector<1x1x128xf32> to vector<1x128xf32>
    %108 = vector.broadcast %107 : vector<1x128xf32> to vector<256x128xf32>
    %109 = arith.addf %105, %108 : vector<256x128xf32>
    %cst_90 = arith.constant dense<0.000000e+00> : vector<128xf32>
    %110 = vector.multi_reduction <add>, %109, %cst_90 [0] : vector<256x128xf32> to vector<128xf32>
    %111 = vector.shape_cast %110 : vector<128xf32> to vector<1x128xf32>
    %112 = arith.mulf %109, %109 : vector<256x128xf32>
    %cst_91 = arith.constant dense<0.000000e+00> : vector<128xf32>
    %113 = vector.multi_reduction <add>, %112, %cst_91 [0] : vector<256x128xf32> to vector<128xf32>
    %114 = vector.shape_cast %113 : vector<128xf32> to vector<1x128xf32>
    %cst_92 = arith.constant dense<0.000000e+00> : vector<1x16xf32>
    %115 = tpu.matmul %111, %10, %cst_92 {dimension_numbers = #tpu.dot_dimension_numbers<[1], [0], [0], [1], [0, 0, 1, 1], [], []>} : vector<1x128xf32>, vector<128x16xf32>, vector<1x16xf32> -> vector<1x16xf32>
    %cst_93 = arith.constant dense<0.000000e+00> : vector<1x16xf32>
    %116 = tpu.matmul %114, %10, %cst_93 {dimension_numbers = #tpu.dot_dimension_numbers<[1], [0], [0], [1], [0, 0, 1, 1], [], []>} : vector<1x128xf32>, vector<128x16xf32>, vector<1x16xf32> -> vector<1x16xf32>
    %cst_94 = arith.constant 4.8828125E-4 : f32
    %117 = vector.broadcast %cst_94 : f32 to vector<1x16xf32>
    %118 = arith.mulf %115, %117 : vector<1x16xf32>
    %cst_95 = arith.constant 4.8828125E-4 : f32
    %119 = vector.broadcast %cst_95 : f32 to vector<1x16xf32>
    %120 = arith.mulf %116, %119 : vector<1x16xf32>
    %121 = arith.mulf %118, %118 : vector<1x16xf32>
    %122 = arith.subf %120, %121 : vector<1x16xf32>
    %cst_96 = arith.constant 0.000000e+00 : f32
    %123 = vector.broadcast %cst_96 : f32 to vector<1x16xf32>
    %124 = arith.maximumf %122, %123 : vector<1x16xf32>
    %cst_97 = arith.constant dense<0.000000e+00> : vector<1x128xf32>
    %125 = tpu.matmul %118, %11, %cst_97 {dimension_numbers = #tpu.dot_dimension_numbers<[1], [0], [0], [1], [0, 0, 1, 1], [], []>} : vector<1x16xf32>, vector<16x128xf32>, vector<1x128xf32> -> vector<1x128xf32>
    %cst_98 = arith.constant 9.99999974E-6 : f32
    %126 = vector.broadcast %cst_98 : f32 to vector<1x16xf32>
    %127 = arith.addf %124, %126 : vector<1x16xf32>
    %128 = math.rsqrt %127 : vector<1x16xf32>
    %cst_99 = arith.constant dense<0.000000e+00> : vector<1x128xf32>
    %129 = tpu.matmul %128, %11, %cst_99 {dimension_numbers = #tpu.dot_dimension_numbers<[1], [0], [0], [1], [0, 0, 1, 1], [], []>} : vector<1x16xf32>, vector<16x128xf32>, vector<1x128xf32> -> vector<1x128xf32>
    %c1_100 = arith.constant 1 : index
    %c0_101 = arith.constant 0 : index
    %c0_102 = arith.constant 0 : index
    %130 = vector.load %arg4[%c1_100, %c0_101, %c0_102] : memref<2x1x128xf32, #tpu.memory_space<vmem>>, vector<1x1x128xf32>
    %131 = vector.shape_cast %130 : vector<1x1x128xf32> to vector<1x128xf32>
    %132 = arith.mulf %129, %131 : vector<1x128xf32>
    %c1_103 = arith.constant 1 : index
    %c0_104 = arith.constant 0 : index
    %c0_105 = arith.constant 0 : index
    %133 = vector.load %arg5[%c1_103, %c0_104, %c0_105] : memref<2x1x128xf32, #tpu.memory_space<vmem>>, vector<1x1x128xf32>
    %134 = vector.shape_cast %133 : vector<1x1x128xf32> to vector<1x128xf32>
    %135 = arith.mulf %125, %132 : vector<1x128xf32>
    %136 = arith.subf %134, %135 : vector<1x128xf32>
    %137 = vector.broadcast %132 : vector<1x128xf32> to vector<256x128xf32>
    %138 = arith.mulf %109, %137 : vector<256x128xf32>
    %139 = vector.broadcast %136 : vector<1x128xf32> to vector<256x128xf32>
    %140 = arith.addf %138, %139 : vector<256x128xf32>
    %cst_106 = arith.constant 0.000000e+00 : f32
    %141 = vector.broadcast %cst_106 : f32 to vector<256x128xf32>
    %142 = arith.maximumf %140, %141 : vector<256x128xf32>
    %143 = vector.shape_cast %142 : vector<256x128xf32> to vector<16x16x128xf32>
    %144 = arith.truncf %143 : vector<16x16x128xf32> to vector<16x16x128xbf16>
    %c1_107 = arith.constant 1 : index
    %c1_108 = arith.constant 1 : index
    %c0_109 = arith.constant 0 : index
    %145 = vector.load %arg12[%c1_107, %c1_108, %c0_109] : memref<18x18x128xbf16, #tpu.memory_space<vmem>>, vector<16x16x128xbf16>
    tpu.vector_store %arg12[%c1_107, %c1_108, %c0_109], %144 {strides = array<i32>} : memref<18x18x128xbf16, #tpu.memory_space<vmem>>, vector<16x16x128xbf16>,
    %c0_110 = arith.constant 0 : index
    %c0_111 = arith.constant 0 : index
    %c0_112 = arith.constant 0 : index
    %146 = vector.load %arg12[%c0_110, %c0_111, %c0_112] : memref<18x18x128xbf16, #tpu.memory_space<vmem>>, vector<18x18x128xbf16>
    %147 = vector.extract_strided_slice %146 {offsets = [0, 0, 0], sizes = [18, 16, 128], strides = [1, 1, 1]} : vector<18x18x128xbf16> to vector<18x16x128xbf16>
    %148 = vector.extract_strided_slice %146 {offsets = [0, 1, 0], sizes = [18, 16, 128], strides = [1, 1, 1]} : vector<18x18x128xbf16> to vector<18x16x128xbf16>
    %149 = vector.extract_strided_slice %146 {offsets = [0, 2, 0], sizes = [18, 16, 128], strides = [1, 1, 1]} : vector<18x18x128xbf16> to vector<18x16x128xbf16>
    %150 = tpu.concatenate %147, %148, %149 in 2 : vector<18x16x128xbf16>, vector<18x16x128xbf16>, vector<18x16x128xbf16> -> vector<18x16x384xbf16>
    %cst_113 = arith.constant 0.000000e+00 : f32
    %151 = vector.broadcast %cst_113 : f32 to vector<256x8xf32>
    %152 = vector.extract_strided_slice %150 {offsets = [0, 0, 0], sizes = [16, 16, 384], strides = [1, 1, 1]} : vector<18x16x384xbf16> to vector<16x16x384xbf16>
    %153 = vector.shape_cast %152 : vector<16x16x384xbf16> to vector<256x384xbf16>
    %c0_114 = arith.constant 0 : index
    %c0_115 = arith.constant 0 : index
    %c0_116 = arith.constant 0 : index
    %154 = vector.load %arg8[%c0_114, %c0_115, %c0_116] : memref<3x384x8xbf16, #tpu.memory_space<vmem>>, vector<1x384x8xbf16>
    %155 = vector.shape_cast %154 : vector<1x384x8xbf16> to vector<384x8xbf16>
    %cst_117 = arith.constant dense<0.000000e+00> : vector<256x8xf32>
    %156 = tpu.matmul %153, %155, %cst_117 {dimension_numbers = #tpu.dot_dimension_numbers<[1], [0], [0], [1], [0, 0, 1, 1], [], []>} : vector<256x384xbf16>, vector<384x8xbf16>, vector<256x8xf32> -> vector<256x8xf32>
    %157 = arith.addf %151, %156 : vector<256x8xf32>
    %158 = vector.extract_strided_slice %150 {offsets = [1, 0, 0], sizes = [16, 16, 384], strides = [1, 1, 1]} : vector<18x16x384xbf16> to vector<16x16x384xbf16>
    %159 = vector.shape_cast %158 : vector<16x16x384xbf16> to vector<256x384xbf16>
    %c1_118 = arith.constant 1 : index
    %c0_119 = arith.constant 0 : index
    %c0_120 = arith.constant 0 : index
    %160 = vector.load %arg8[%c1_118, %c0_119, %c0_120] : memref<3x384x8xbf16, #tpu.memory_space<vmem>>, vector<1x384x8xbf16>
    %161 = vector.shape_cast %160 : vector<1x384x8xbf16> to vector<384x8xbf16>
    %cst_121 = arith.constant dense<0.000000e+00> : vector<256x8xf32>
    %162 = tpu.matmul %159, %161, %cst_121 {dimension_numbers = #tpu.dot_dimension_numbers<[1], [0], [0], [1], [0, 0, 1, 1], [], []>} : vector<256x384xbf16>, vector<384x8xbf16>, vector<256x8xf32> -> vector<256x8xf32>
    %163 = arith.addf %157, %162 : vector<256x8xf32>
    %164 = vector.extract_strided_slice %150 {offsets = [2, 0, 0], sizes = [16, 16, 384], strides = [1, 1, 1]} : vector<18x16x384xbf16> to vector<16x16x384xbf16>
    %165 = vector.shape_cast %164 : vector<16x16x384xbf16> to vector<256x384xbf16>
    %c2_122 = arith.constant 2 : index
    %c0_123 = arith.constant 0 : index
    %c0_124 = arith.constant 0 : index
    %166 = vector.load %arg8[%c2_122, %c0_123, %c0_124] : memref<3x384x8xbf16, #tpu.memory_space<vmem>>, vector<1x384x8xbf16>
    %167 = vector.shape_cast %166 : vector<1x384x8xbf16> to vector<384x8xbf16>
    %cst_125 = arith.constant dense<0.000000e+00> : vector<256x8xf32>
    %168 = tpu.matmul %165, %167, %cst_125 {dimension_numbers = #tpu.dot_dimension_numbers<[1], [0], [0], [1], [0, 0, 1, 1], [], []>} : vector<256x384xbf16>, vector<384x8xbf16>, vector<256x8xf32> -> vector<256x8xf32>
    %169 = arith.addf %163, %168 : vector<256x8xf32>
    %c0_126 = arith.constant 0 : index
    %c0_127 = arith.constant 0 : index
    %170 = vector.load %arg9[%c0_126, %c0_127] : memref<1x8xf32, #tpu.memory_space<vmem>>, vector<1x8xf32>
    %171 = vector.broadcast %170 : vector<1x8xf32> to vector<256x8xf32>
    %172 = arith.addf %169, %171 : vector<256x8xf32>
    %173 = tpu.transpose %172, [1, 0] : vector<256x8xf32> -> vector<8x256xf32>
    %174 = vector.extract_strided_slice %173 {offsets = [0, 0], sizes = [4, 256], strides = [1, 1]} : vector<8x256xf32> to vector<4x256xf32>
    %cst_128 = arith.constant 0.000000e+00 : f32
    %175 = vector.broadcast %cst_128 : f32 to vector<4x256xf32>
    %176 = arith.maximumf %174, %175 : vector<4x256xf32>
    %c0_129 = arith.constant 0 : index
    %c0_130 = arith.constant 0 : index
    %c0_131 = arith.constant 0 : index
    %177 = vector.load %arg10[%c0_129, %c0_130, %c0_131] : memref<1x4x256xf32, #tpu.memory_space<vmem>>, vector<1x4x256xf32>
    %178 = vector.shape_cast %177 : vector<1x4x256xf32> to vector<4x256xf32>
    %179 = vector.shape_cast %176 : vector<4x256xf32> to vector<1x4x256xf32>
    tpu.vector_store %arg10[%c0_129, %c0_130, %c0_131], %179 {strides = array<i32>} : memref<1x4x256xf32, #tpu.memory_space<vmem>>, vector<1x4x256xf32>,
    %180 = vector.extract_strided_slice %173 {offsets = [4, 0], sizes = [1, 256], strides = [1, 1]} : vector<8x256xf32> to vector<1x256xf32>
    %c0_132 = arith.constant 0 : index
    %c0_133 = arith.constant 0 : index
    %c0_134 = arith.constant 0 : index
    %181 = vector.load %arg11[%c0_132, %c0_133, %c0_134] : memref<1x1x256xf32, #tpu.memory_space<vmem>>, vector<1x1x256xf32>
    %182 = vector.shape_cast %181 : vector<1x1x256xf32> to vector<1x256xf32>
    %183 = vector.shape_cast %180 : vector<1x256xf32> to vector<1x1x256xf32>
    tpu.vector_store %arg11[%c0_132, %c0_133, %c0_134], %183 {strides = array<i32>} : memref<1x1x256xf32, #tpu.memory_space<vmem>>, vector<1x1x256xf32>,
    return
  }
  func.func @transform_1(%arg0: i32) -> (i32, i32, i32, i32) {
    %c0_i32 = arith.constant 0 : i32
    %c0_i32_0 = arith.constant 0 : i32
    %c0_i32_1 = arith.constant 0 : i32
    %c0_i32_2 = arith.constant 0 : i32
    %c0_i32_3 = arith.constant 0 : i32
    return %c0_i32, %c0_i32_0, %c0_i32_1, %c0_i32_2 : i32, i32, i32, i32
  }
  func.func @transform_2(%arg0: i32) -> (i32, i32, i32) {
    %c0_i32 = arith.constant 0 : i32
    %c0_i32_0 = arith.constant 0 : i32
    %c0_i32_1 = arith.constant 0 : i32
    %c0_i32_2 = arith.constant 0 : i32
    return %c0_i32, %c0_i32_0, %c0_i32_1 : i32, i32, i32
  }
  func.func @transform_3(%arg0: i32) -> (i32, i32, i32) {
    %c0_i32 = arith.constant 0 : i32
    %c0_i32_0 = arith.constant 0 : i32
    %c0_i32_1 = arith.constant 0 : i32
    %c0_i32_2 = arith.constant 0 : i32
    return %c0_i32, %c0_i32_0, %c0_i32_1 : i32, i32, i32
  }
  func.func @transform_4(%arg0: i32) -> (i32, i32, i32) {
    %c0_i32 = arith.constant 0 : i32
    %c0_i32_0 = arith.constant 0 : i32
    %c0_i32_1 = arith.constant 0 : i32
    %c0_i32_2 = arith.constant 0 : i32
    return %c0_i32, %c0_i32_0, %c0_i32_1 : i32, i32, i32
  }
  func.func @transform_5(%arg0: i32) -> (i32, i32) {
    %c0_i32 = arith.constant 0 : i32
    %c0_i32_0 = arith.constant 0 : i32
    %c0_i32_1 = arith.constant 0 : i32
    return %c0_i32, %c0_i32_0 : i32, i32
  }
  func.func @transform_6(%arg0: i32) -> (i32, i32) {
    %c0_i32 = arith.constant 0 : i32
    %c0_i32_0 = arith.constant 0 : i32
    %c0_i32_1 = arith.constant 0 : i32
    return %c0_i32, %c0_i32_0 : i32, i32
  }
  func.func @transform_7(%arg0: i32) -> (i32, i32, i32) {
    %c0_i32 = arith.constant 0 : i32
    %c0_i32_0 = arith.constant 0 : i32
    %c0_i32_1 = arith.constant 0 : i32
    %c0_i32_2 = arith.constant 0 : i32
    return %c0_i32, %c0_i32_0, %c0_i32_1 : i32, i32, i32
  }
  func.func @transform_8(%arg0: i32) -> (i32, i32) {
    %c0_i32 = arith.constant 0 : i32
    %c0_i32_0 = arith.constant 0 : i32
    %c0_i32_1 = arith.constant 0 : i32
    return %c0_i32, %c0_i32_0 : i32, i32
  }
  func.func @transform_9(%arg0: i32) -> (i32, i32, i32) {
    %c0_i32 = arith.constant 0 : i32
    %c0_i32_0 = arith.constant 0 : i32
    %c0_i32_1 = arith.constant 0 : i32
    return %arg0, %c0_i32, %c0_i32_0 : i32, i32, i32
  }
  func.func @transform_10(%arg0: i32) -> (i32, i32, i32) {
    %c0_i32 = arith.constant 0 : i32
    %c0_i32_0 = arith.constant 0 : i32
    %c0_i32_1 = arith.constant 0 : i32
    return %arg0, %c0_i32, %c0_i32_0 : i32, i32, i32
  }
}

</mosaic_0001>

<bundles_post_ra>
// kernel: fcos_head_level_pallas.1
= control target key start
LH: loop header
LB: loop body
LE: loop exit
PB: predicated region body
PF: predicated region fallthrough
CT: control target
= control target key end

     0   :  { %s12867_s13 = smov 0   ;;  %s17967_s0 = inlined_call_operand.vmem [shape: bf16[2,16,16,128], index: 0, kind: input, shape index: {}]   ;;  %s17968_s1 = inlined_call_operand.vmem [shape: bf16[2,3,384,128], index: 1, kind: input, shape index: {}]   ;;  %s17969_s2 = inlined_call_operand.vmem [shape: f32[2,1,128], index: 2, kind: input, shape index: {}]   ;;  %s17970_s3 = inlined_call_operand.vmem [shape: f32[2,1,128], index: 3, kind: input, shape index: {}]   ;;  %s17971_s4 = inlined_call_operand.vmem [shape: f32[2,1,128], index: 4, kind: input, shape index: {}]   ;;  %s17972_s5 = inlined_call_operand.vmem [shape: f32[128,16], index: 5, kind: input, shape index: {}]   ;;  %s17973_s6 = inlined_call_operand.vmem [shape: f32[16,128], index: 6, kind: input, shape index: {}]   ;;  %s17974_s7 = inlined_call_operand.vmem [shape: bf16[3,384,8], index: 7, kind: input, shape index: {}]   ;;  %s17975_s8 = inlined_call_operand.vmem [shape: f32[1,8], index: 8, kind: input, shape index: {}]   ;;  %s17976_s9 = inlined_call_operand.vmem [shape: f32[2,4,256], index: 9, kind: output, shape index: {0}]   ;;  %s17977_s10 = inlined_call_operand.vmem [shape: f32[2,1,256], index: 10, kind: output, shape index: {1}]  }
   0x1 LB: > { %s9692_s14 = sadd.s32 4294967295, %s12806_s13   ;;  %p9695_p0 = scmp.ge.s32.totalorder %s12806_s13, 1  ;;  %s12806_s13 = sphi %s12867_s13, %s21_s13  }
   0x2   : > { %p281_p1 = scmp.lt.s32.totalorder %s12806_s13, 3 }
   0x4   : > { %p282_p2 = pnand %p9695_p0, %p281_p1 }
   0x6   : > { %285 = sbr.rel (%p282_p2) target bundleno = 2909 (0xb5d), region = 52 }
   0xb   : > { %p316_p3 = scmp.lt.s32.totalorder %s9692_s14, 1  ;;  %s10439_s15 = sshll.u32 %s9692_s14, 7 }
   0xc   : > { %s12878_s18 = scalar_lea.vmem %s17967_s0, %s10439_s15 }
   0xd   : > { %s18292_s14 = smov (!%p316_p3, %s9692_s14), 1  ;;  %v362_v0 = vld [vmem:[%s12878_s18] sm:$0xff]  ;;  %v364_v1 = vld [vmem:[%s12878_s18 + $0x8] sm:$0xff]  ;;  %v366_v2 = vld [vmem:[%s12878_s18 + $0x10] sm:$0xff] }
   0xe   : > { %363 = vst [vmem:[#allocation3] sm:$0xff] %v362_v0  ;;  %365 = vst [vmem:[#allocation3 + $0x8] sm:$0xff] %v364_v1  ;;  %v368_v3 = vld [vmem:[%s12878_s18 + $0x18] sm:$0xff]  ;;  %v370_v4 = vld [vmem:[%s12878_s18 + $0x20] sm:$0xff]  ;;  %s10438_s19 = sshll.u32 %s18292_s14, 3  ;;  %s9698_s20 = sshll.u32 %s18292_s14, 1 }
   0xf   : > { %367 = vst [vmem:[#allocation3 + $0x10] sm:$0xff] %v366_v2  ;;  %v372_v5 = vld [vmem:[%s12878_s18 + $0x28] sm:$0xff]  ;;  %369 = vst [vmem:[#allocation3 + $0x18] sm:$0xff] %v368_v3  ;;  %v374_v6 = vld [vmem:[%s12878_s18 + $0x30] sm:$0xff]  ;;  %s12892_s23 = scalar_lea.vmem %s17976_s9, %s10438_s19  ;;  %s12897_s26 = scalar_lea.vmem %s17977_s10, %s9698_s20 }
  0x10   : > { %371 = vst [vmem:[#allocation3 + $0x20] sm:$0xff] %v370_v4  ;;  %373 = vst [vmem:[#allocation3 + $0x28] sm:$0xff] %v372_v5  ;;  %v376_v7 = vld [vmem:[%s12878_s18 + $0x38] sm:$0xff]  ;;  %v378_v8 = vld [vmem:[%s12878_s18 + $0x40] sm:$0xff] }
  0x11   : > { %375 = vst [vmem:[#allocation3 + $0x30] sm:$0xff] %v374_v6  ;;  %377 = vst [vmem:[#allocation3 + $0x38] sm:$0xff] %v376_v7  ;;  %v380_v9 = vld [vmem:[%s12878_s18 + $0x48] sm:$0xff]  ;;  %v382_v10 = vld [vmem:[%s12878_s18 + $0x50] sm:$0xff] }
  0x12   : > { %379 = vst [vmem:[#allocation3 + $0x40] sm:$0xff] %v378_v8  ;;  %v384_v11 = vld [vmem:[%s12878_s18 + $0x58] sm:$0xff]  ;;  %381 = vst [vmem:[#allocation3 + $0x48] sm:$0xff] %v380_v9  ;;  %v386_v12 = vld [vmem:[%s12878_s18 + $0x60] sm:$0xff] }
  0x13   : > { %383 = vst [vmem:[#allocation3 + $0x50] sm:$0xff] %v382_v10  ;;  %385 = vst [vmem:[#allocation3 + $0x58] sm:$0xff] %v384_v11  ;;  %v388_v13 = vld [vmem:[%s12878_s18 + $0x68] sm:$0xff]  ;;  %v390_v14 = vld [vmem:[%s12878_s18 + $0x70] sm:$0xff] }
  0x14   : > { %387 = vst [vmem:[#allocation3 + $0x60] sm:$0xff] %v386_v12  ;;  %389 = vst [vmem:[#allocation3 + $0x68] sm:$0xff] %v388_v13  ;;  %v392_v15 = vld [vmem:[%s12878_s18 + $0x78] sm:$0xff] }
  0x15   : > { %391 = vst [vmem:[#allocation3 + $0x70] sm:$0xff] %v390_v14  ;;  %393 = vst [vmem:[#allocation3 + $0x78] sm:$0xff] %v392_v15 }
  0x16   : > { %401 = vsyncadd [#allocation4], 2048  ;;  %v12909_v16 = vld [vmem:[%s17972_s5] sm:$0xff]  ;;  %v12914_v17 = vld [vmem:[%s17972_s5 + $0x8] sm:$0xff]  ;;  %v12808_v18 = vmov 0   ;;  %vm409_vm0 = vcmask 1040384  }
  0x17   : > { %18024 = vst [vmem:[#allocation7_spill] sm:$0xff] %v12909_v16  ;;  %18025 = vst [vmem:[#allocation8_spill] sm:$0xff] %v12914_v17  ;;  %v12919_v19 = vld [vmem:[%s17972_s5 + $0x10] sm:$0xff]  ;;  %v12924_v20 = vld [vmem:[%s17972_s5 + $0x18] sm:$0xff]  ;;  %vm410_vm1 = vsmask.f32 256 }
  0x18   : > { %402 = vst [vmem:[#allocation2] sm:$0xf] %v12808_v18  ;;  %403 = vst [vmem:[#allocation2 + $0x4] sm:$0xf] %v12808_v18  ;;  %v12929_v21 = vld [vmem:[%s17972_s5 + $0x20] sm:$0xff]  ;;  %v12934_v22 = vld [vmem:[%s17972_s5 + $0x28] sm:$0xff] }
  0x19   : > { %404 = vst [vmem:[#allocation2 + $0x8] sm:$0x1] %v12808_v18  ;;  %406 = vst [vmem:[#allocation2 + $0xcc] sm:$0xf] %v12808_v18  ;;  %v12939_v23 = vld [vmem:[%s17972_s5 + $0x30] sm:$0xff]  ;;  %v12944_v24 = vld [vmem:[%s17972_s5 + $0x38] sm:$0xff] }
  0x1a   : > { %407 = vst [vmem:[#allocation2 + $0xd0] sm:$0xf] %v12808_v18  ;;  %408 = vst [vmem:[#allocation2 + $0xd4] sm:$0x1] %v12808_v18  ;;  %v12949_v25 = vld [vmem:[%s17972_s5 + $0x40] sm:$0xff]  ;;  %v12954_v26 = vld [vmem:[%s17972_s5 + $0x48] sm:$0xff] }
  0x1b   : > { %18026 = vst [vmem:[#allocation9_spill] sm:$0xff] %v12919_v19  ;;  %18027 = vst [vmem:[#allocation10_spill] sm:$0xff] %v12924_v20  ;;  %v12959_v27 = vld [vmem:[%s17972_s5 + $0x50] sm:$0xff]  ;;  %v12964_v28 = vld [vmem:[%s17972_s5 + $0x58] sm:$0xff]  ;;  %v18042_v35 = vmov 0 }
  0x1c   : > { %18028 = vst [vmem:[#allocation11_spill] sm:$0xff] %v12929_v21  ;;  %18029 = vst [vmem:[#allocation12_spill] sm:$0xff] %v12934_v22  ;;  %v12969_v29 = vld [vmem:[%s17972_s5 + $0x60] sm:$0xff]  ;;  %v12974_v30 = vld [vmem:[%s17972_s5 + $0x68] sm:$0xff]  ;;  %vm466_vm3 = vsmask.f32 7938 }
  0x1d   : > { %18030 = vst [vmem:[#allocation13_spill] sm:$0xff] %v12939_v23  ;;  %18031 = vst [vmem:[#allocation14_spill] sm:$0xff] %v12944_v24  ;;  %v12979_v31 = vld [vmem:[%s17972_s5 + $0x70] sm:$0xff]  ;;  %v12984_v32 = vld [vmem:[%s17972_s5 + $0x78] sm:$0xff] }
  0x1e   : > { %18032 = vst [vmem:[#allocation15_spill] sm:$0xff] %v12949_v25  ;;  %18033 = vst [vmem:[#allocation16_spill] sm:$0xff] %v12954_v26  ;;  %v12989_v33 = vld [vmem:[%s17973_s6] sm:$0xff]  ;;  %v12994_v34 = vld [vmem:[%s17973_s6 + $0x8] sm:$0xff] }
  0x1f   : > { %18034 = vst [vmem:[#allocation17_spill] sm:$0xff] %v12959_v27  ;;  %18035 = vst [vmem:[#allocation18_spill] sm:$0xff] %v12964_v28  ;;  %v415_v36 = vld [vmem:[#allocation2 + $0xc] sm:$0x1]  ;;  %v418_v38 = vld [vmem:[#allocation2 + $0x18] sm:$0x1] }
  0x20   : > { %18036 = vst [vmem:[#allocation19_spill] sm:$0xff] %v12969_v29  ;;  %18037 = vst [vmem:[#allocation20_spill] sm:$0xff] %v12974_v30  ;;  %v421_v39 = vld [vmem:[#allocation2 + $0x24] sm:$0x1]  ;;  %v412_v40 = vld [vmem:[#allocation2] sm:$0x1] }
  0x21   : > { %18038 = vst [vmem:[#allocation21_spill] sm:$0xff] %v12979_v31  ;;  %18039 = vst [vmem:[#allocation22_spill] sm:$0xff] %v12984_v32  ;;  %v424_v43 = vld [vmem:[#allocation2 + $0x30] sm:$0x1]  ;;  %v427_v46 = vld [vmem:[#allocation2 + $0x3c] sm:$0x1] }
  0x22   : > { %18040 = vst [vmem:[#allocation23_spill] sm:$0xff] %v12989_v33  ;;  %18041 = vst [vmem:[#allocation24_spill] sm:$0xff] %v12994_v34  ;;  %v430_v47 = vld [vmem:[#allocation2 + $0x48] sm:$0x1]  ;;  %v433_v50 = vld [vmem:[#allocation2 + $0x54] sm:$0x1] }
  0x23   : > { %vm12998_vm2 = vmand %vm409_vm0, %vm410_vm1  ;;  %v436_v51 = vld [vmem:[#allocation2 + $0x60] sm:$0x1]  ;;  %v439_v54 = vld [vmem:[#allocation2 + $0x6c] sm:$0x1] }
  0x24   : > { %v18043_v35 = vsel %vm12998_vm2, 4294967295, %v18042_v35  ;;  %v416_v37 = vsel %vm12998_vm2, 0, %v415_v36  ;;  %v419_v41 = vsel %vm12998_vm2, 0, %v418_v38  ;;  %v422_v42 = vsel %vm12998_vm2, 0, %v421_v39  ;;  %v442_v55 = vld [vmem:[#allocation2 + $0x78] sm:$0x1]  ;;  %vm13030_vm4 = vmand %vm409_vm0, %vm466_vm3 }
  0x25   : > { %18044 = vst [vmem:[#allocation25_spill] sm:$0xff] %v18043_v35  ;;  %417 = vst [vmem:[#allocation2 + $0xc] sm:$0x1] %v416_v37  ;;  %v413_v44 = vsel %vm12998_vm2, 0, %v412_v40  ;;  %v425_v45 = vsel %vm12998_vm2, 0, %v424_v43  ;;  %v428_v48 = vsel %vm12998_vm2, 0, %v427_v46 }
  0x26   : > { %420 = vst [vmem:[#allocation2 + $0x18] sm:$0x1] %v419_v41  ;;  %423 = vst [vmem:[#allocation2 + $0x24] sm:$0x1] %v422_v42  ;;  %v431_v49 = vsel %vm12998_vm2, 0, %v430_v47  ;;  %v434_v52 = vsel %vm12998_vm2, 0, %v433_v50 }
  0x27   : > { %414 = vst [vmem:[#allocation2] sm:$0x1] %v413_v44  ;;  %426 = vst [vmem:[#allocation2 + $0x30] sm:$0x1] %v425_v45  ;;  %v437_v53 = vsel %vm12998_vm2, 0, %v436_v51  ;;  %v440_v56 = vsel %vm12998_vm2, 0, %v439_v54 }
  0x28   : > { %429 = vst [vmem:[#allocation2 + $0x3c] sm:$0x1] %v428_v48  ;;  %432 = vst [vmem:[#allocation2 + $0x48] sm:$0x1] %v431_v49  ;;  %v443_v57 = vsel %vm12998_vm2, 0, %v442_v55 }
  0x29   : > { %435 = vst [vmem:[#allocation2 + $0x54] sm:$0x1] %v434_v52  ;;  %438 = vst [vmem:[#allocation2 + $0x60] sm:$0x1] %v437_v53  ;;  %v445_v58 = vld [vmem:[#allocation2 + $0x84] sm:$0x1] }
  0x2a   : > { %v448_v59 = vld [vmem:[#allocation2 + $0x90] sm:$0x1]  ;;  %441 = vst [vmem:[#allocation2 + $0x6c] sm:$0x1] %v440_v56  ;;  %444 = vst [vmem:[#allocation2 + $0x78] sm:$0x1] %v443_v57 }
  0x2b   : > { %v446_v60 = vsel %vm12998_vm2, 0, %v445_v58  ;;  %v449_v61 = vsel %vm12998_vm2, 0, %v448_v59  ;;  %v451_v62 = vld [vmem:[#allocation2 + $0x9c] sm:$0x1]  ;;  %v454_v63 = vld [vmem:[#allocation2 + $0xa8] sm:$0x1] }
  0x2c   : > { %447 = vst [vmem:[#allocation2 + $0x84] sm:$0x1] %v446_v60  ;;  %450 = vst [vmem:[#allocation2 + $0x90] sm:$0x1] %v449_v61  ;;  %v452_v1 = vsel %vm12998_vm2, 0, %v451_v62  ;;  %v455_v2 = vsel %vm12998_vm2, 0, %v454_v63 }
  0x2d   : > { %v457_v3 = vld [vmem:[#allocation2 + $0xb4] sm:$0x1]  ;;  %v460_v4 = vld [vmem:[#allocation2 + $0xc0] sm:$0x1]  ;;  %453 = vst [vmem:[#allocation2 + $0x9c] sm:$0x1] %v452_v1 }
  0x2e   : > { %456 = vst [vmem:[#allocation2 + $0xa8] sm:$0x1] %v455_v2  ;;  %v458_v5 = vsel %vm12998_vm2, 0, %v457_v3  ;;  %v461_v6 = vsel %vm12998_vm2, 0, %v460_v4  ;;  %v463_v7 = vld [vmem:[#allocation2 + $0xcc] sm:$0x1] }
  0x2f   : > { %v468_v8 = vld [vmem:[#allocation2 + $0x8] sm:$0x1]  ;;  %459 = vst [vmem:[#allocation2 + $0xb4] sm:$0x1] %v458_v5  ;;  %462 = vst [vmem:[#allocation2 + $0xc0] sm:$0x1] %v461_v6 }
  0x30   : > { %v464_v9 = vsel %vm12998_vm2, 0, %v463_v7  ;;  %v469_v10 = vsel %vm13030_vm4, 0, %v468_v8  ;;  %v471_v11 = vld [vmem:[#allocation2 + $0x14] sm:$0x1]  ;;  %v474_v12 = vld [vmem:[#allocation2 + $0x20] sm:$0x1] }
  0x31   : > { %465 = vst [vmem:[#allocation2 + $0xcc] sm:$0x1] %v464_v9  ;;  %470 = vst [vmem:[#allocation2 + $0x8] sm:$0x1] %v469_v10  ;;  %v472_v13 = vsel %vm13030_vm4, 0, %v471_v11  ;;  %v475_v14 = vsel %vm13030_vm4, 0, %v474_v12 }
  0x32   : > { %v477_v15 = vld [vmem:[#allocation2 + $0x2c] sm:$0x1]  ;;  %v480_v18 = vld [vmem:[#allocation2 + $0x38] sm:$0x1]  ;;  %473 = vst [vmem:[#allocation2 + $0x14] sm:$0x1] %v472_v13 }
  0x33   : > { %476 = vst [vmem:[#allocation2 + $0x20] sm:$0x1] %v475_v14  ;;  %v478_v36 = vsel %vm13030_vm4, 0, %v477_v15  ;;  %v481_v37 = vsel %vm13030_vm4, 0, %v480_v18  ;;  %v483_v38 = vld [vmem:[#allocation2 + $0x44] sm:$0x1] }
  0x34   : > { %v486_v39 = vld [vmem:[#allocation2 + $0x50] sm:$0x1]  ;;  %479 = vst [vmem:[#allocation2 + $0x2c] sm:$0x1] %v478_v36  ;;  %482 = vst [vmem:[#allocation2 + $0x38] sm:$0x1] %v481_v37 }
  0x35   : > { %v484_v40 = vsel %vm13030_vm4, 0, %v483_v38  ;;  %v487_v41 = vsel %vm13030_vm4, 0, %v486_v39  ;;  %v489_v42 = vld [vmem:[#allocation2 + $0x5c] sm:$0x1]  ;;  %v492_v43 = vld [vmem:[#allocation2 + $0x68] sm:$0x1] }
  0x36   : > { %485 = vst [vmem:[#allocation2 + $0x44] sm:$0x1] %v484_v40  ;;  %488 = vst [vmem:[#allocation2 + $0x50] sm:$0x1] %v487_v41  ;;  %v490_v44 = vsel %vm13030_vm4, 0, %v489_v42  ;;  %v493_v45 = vsel %vm13030_vm4, 0, %v492_v43 }
  0x37   : > { %v495_v46 = vld [vmem:[#allocation2 + $0x74] sm:$0x1]  ;;  %v498_v47 = vld [vmem:[#allocation2 + $0x80] sm:$0x1]  ;;  %491 = vst [vmem:[#allocation2 + $0x5c] sm:$0x1] %v490_v44 }
  0x38   : > { %494 = vst [vmem:[#allocation2 + $0x68] sm:$0x1] %v493_v45  ;;  %v496_v48 = vsel %vm13030_vm4, 0, %v495_v46  ;;  %v499_v49 = vsel %vm13030_vm4, 0, %v498_v47  ;;  %v501_v50 = vld [vmem:[#allocation2 + $0x8c] sm:$0x1] }
  0x39   : > { %v504_v51 = vld [vmem:[#allocation2 + $0x98] sm:$0x1]  ;;  %497 = vst [vmem:[#allocation2 + $0x74] sm:$0x1] %v496_v48  ;;  %500 = vst [vmem:[#allocation2 + $0x80] sm:$0x1] %v499_v49 }
  0x3a   : > { %v502_v52 = vsel %vm13030_vm4, 0, %v501_v50  ;;  %v505_v53 = vsel %vm13030_vm4, 0, %v504_v51  ;;  %v507_v54 = vld [vmem:[#allocation2 + $0xa4] sm:$0x1]  ;;  %v510_v55 = vld [vmem:[#allocation2 + $0xb0] sm:$0x1] }
  0x3b   : > { %503 = vst [vmem:[#allocation2 + $0x8c] sm:$0x1] %v502_v52  ;;  %506 = vst [vmem:[#allocation2 + $0x98] sm:$0x1] %v505_v53  ;;  %v508_v56 = vsel %vm13030_vm4, 0, %v507_v54  ;;  %v511_v57 = vsel %vm13030_vm4, 0, %v510_v55 }
  0x3c   : > { %v513_v58 = vld [vmem:[#allocation2 + $0xbc] sm:$0x1]  ;;  %v516_v59 = vld [vmem:[#allocation2 + $0xc8] sm:$0x1]  ;;  %509 = vst [vmem:[#allocation2 + $0xa4] sm:$0x1] %v508_v56 }
  0x3d   : > { %512 = vst [vmem:[#allocation2 + $0xb0] sm:$0x1] %v511_v57  ;;  %v514_v60 = vsel %vm13030_vm4, 0, %v513_v58  ;;  %v517_v61 = vsel %vm13030_vm4, 0, %v516_v59  ;;  %v519_v62 = vld [vmem:[#allocation2 + $0xd4] sm:$0x1] }
  0x3e   : > { %515 = vst [vmem:[#allocation2 + $0xbc] sm:$0x1] %v514_v60  ;;  %518 = vst [vmem:[#allocation2 + $0xc8] sm:$0x1] %v517_v61  ;;  %v520_v63 = vsel %vm13030_vm4, 0, %v519_v62 }
  0x3f   : > { %521 = vst [vmem:[#allocation2 + $0xd4] sm:$0x1] %v520_v63 }
  0x40   : > { %12802 = dma.done.wait [#allocation4], 2048 }
  0x41   : > { %12803 = vsyncadd [#allocation4], 4294965248  ;;  %v12452_v1 = vld [vmem:[%s17968_s1 + $0x138] sm:$0xff]   ;;  %v12455_v0 = vld [vmem:[%s17968_s1 + $0x130] sm:$0xff]   ;;  %vm577_vm5 = vsmask.f32 4368 }
  0x42   : > { %v12453_v2 = vld [vmem:[%s17968_s1 + $0x178] sm:$0xff]   ;;  %10504 = vmatprep.subr.bf16.mxu0 %v12452_v1  ;;  %v12456_v4 = vld [vmem:[%s17968_s1 + $0x170] sm:$0xff]   ;;  %v12458_v6 = vld [vmem:[%s17968_s1 + $0x128] sm:$0xff]   ;;  %vm900_vm6 = vcmask 1043456   ;;  %v18047_v52 = vmov 0  ;;  %v18050_v58 = vmov 0 }
  0x43   : > { %v12454_v3 = vld [vmem:[%s17968_s1 + $0xf8] sm:$0xff]   ;;  %11808 = vmatprep.subr.bf16.mxu1 %v12453_v2  ;;  %v12457_v5 = vld [vmem:[%s17968_s1 + $0xf0] sm:$0xff]   ;;  %v12459_v7 = vld [vmem:[%s17968_s1 + $0x168] sm:$0xff]   ;;  %vm1230_vm9 = vsmask.f32 7424  ;;  %vm1465_vm10 = vcmask 1046528  }
  0x44   : > { %10505 = vmatpush3.bf16.msra.mxu0 %v12454_v3  ;;  %11809 = vmatpush3.bf16.msra.mxu1 %v12453_v2  ;;  %v12460_v8 = vld [vmem:[%s17968_s1 + $0xe8] sm:$0xff]   ;;  %v12461_v9 = vld [vmem:[%s17968_s1 + $0x120] sm:$0xff]   ;;  %v12464_v12 = vld [vmem:[%s17968_s1 + $0x118] sm:$0xff]   ;;  %vm12810_vm11 = vmmov 0   ;;  %vm3404_vm12 = vcmask 130048  }
  0x45   : > { %10506 = vmatprep.subr.bf16.mxu0 %v12455_v0  ;;  %11810 = vmatprep.subr.bf16.mxu1 %v12456_v4  ;;  %v12462_v10 = vld [vmem:[%s17968_s1 + $0x160] sm:$0xff]   ;;  %v12465_v13 = vld [vmem:[%s17968_s1 + $0x158] sm:$0xff]   ;;  %v12467_v15 = vld [vmem:[%s17968_s1 + $0x110] sm:$0xff]  }
  0x46   : > { %v12463_v11 = vld [vmem:[%s17968_s1 + $0xe0] sm:$0xff]   ;;  %v12466_v14 = vld [vmem:[%s17968_s1 + $0xd8] sm:$0xff]   ;;  %v12468_v18 = vld [vmem:[%s17968_s1 + $0x150] sm:$0xff]  }
  0x47   : > { %v12469_v36 = vld [vmem:[%s17968_s1 + $0xd0] sm:$0xff]   ;;  %v12470_v37 = vld [vmem:[%s17968_s1 + $0x108] sm:$0xff]   ;;  %v545_v40 = vld [vmem:[#allocation3] sm:$0xf] }
  0x48   : > { %10507 = vmatpush3.bf16.msra.mxu0 %v12457_v5  ;;  %11811 = vmatpush3.bf16.msra.mxu1 %v12456_v4  ;;  %v12471_v38 = vld [vmem:[%s17968_s1 + $0x148] sm:$0xff]   ;;  %v546_v41 = vld [vmem:[#allocation3 + $0x4] sm:$0xf]  ;;  %v12473_v42 = vld [vmem:[%s17968_s1 + $0x100] sm:$0xff]   ;;  %v580_v44 = vshrl.u32 %v545_v40, 16  ;;  %v583_v45 = vshll.u32 %v545_v40, 16 }
  0x49   : > { %10508 = vmatprep.subr.bf16.mxu0 %v12458_v6  ;;  %11812 = vmatprep.subr.bf16.mxu1 %v12459_v7  ;;  %v12472_v39 = vld [vmem:[%s17968_s1 + $0xc8] sm:$0xff]   ;;  %v12474_v43 = vld [vmem:[%s17968_s1 + $0x140] sm:$0xff]   ;;  %v588_v46 = vshrl.u32 %v546_v41, 16  ;;  %v591_v47 = vshll.u32 %v546_v41, 16  ;;  %vm13154_vm7 = vmor %vm410_vm1, %vm577_vm5 }
  0x4a   : > { %v12475_v48 = vld [vmem:[%s17968_s1 + $0xc0] sm:$0xff]   ;;  %v902_v49 = vld [vmem:[#allocation2 + $0xc] sm:$0xf]  ;;  %v18048_v52 = vsel %vm13154_vm7, 4294967295, %v18047_v52  ;;  %v582_v53 = vrot.slane %v580_v44, 7  ;;  %vm13160_vm8 = vmand %vm900_vm6, %vm466_vm3 }
  0x4b   : > { %v547_v50 = vld [vmem:[#allocation3 + $0x8] sm:$0xf]  ;;  %v548_v51 = vld [vmem:[#allocation3 + $0xc] sm:$0xf]  ;;  %18049 = vst [vmem:[#allocation26_spill] sm:$0xff] %v18048_v52  ;;  %v590_v54 = vrot.slane %v588_v46, 7 }
  0x4c   : > { %10509 = vmatpush3.bf16.msra.mxu0 %v12460_v8  ;;  %11813 = vmatpush3.bf16.msra.mxu1 %v12459_v7  ;;  %v906_v55 = vld [vmem:[#allocation2 + $0x14] sm:$0x1]  ;;  %v597_v56 = vshrl.u32 %v547_v50, 16  ;;  %v600_v57 = vshll.u32 %v547_v50, 16  ;;  %v18051_v58 = vsel %vm13160_vm8, 4294967295, %v18050_v58  ;;  %v605_v59 = vshrl.u32 %v548_v51, 16 }
  0x4d   : > { %10510 = vmatprep.subr.bf16.mxu0 %v12461_v9  ;;  %11814 = vmatprep.subr.bf16.mxu1 %v12462_v10  ;;  %18052 = vst [vmem:[#allocation27_spill] sm:$0xff] %v18051_v58  ;;  %v608_v60 = vshll.u32 %v548_v51, 16  ;;  %v585_v61 = vor.u32 %v583_v45, %v582_v53  ;;  %v586_v62 = vrot.slane %v582_v53, 4  ;;  %v593_v63 = vor.u32 %v591_v47, %v590_v54  ;;  %v909_v2 = vld [vmem:[#allocation2 + $0x18] sm:$0xf] }
  0x4e   : > { %v595_v1 = vrot.slane %v590_v54, 4  ;;  %v913_v3 = vld [vmem:[#allocation2 + $0x20] sm:$0x1]  ;;  %v12480_v0 = vld [vmem:[%s17968_s1 + $0x78] sm:$0xff]   ;;  %v599_v4 = vrot.slane %v597_v56, 7  ;;  %v607_v5 = vrot.slane %v605_v59, 7 }
  0x4f   : > { %v594_v6 = vsel %vm13154_vm7, %v586_v62, %v593_v63  ;;  %v903_v7 = vsel %vm13160_vm8, %v585_v61, %v902_v49  ;;  %v13176_v9 = vld [vmem:[%s17968_s1 + $0xb8] sm:$0xff]   ;;  %v552_v44 = vld [vmem:[#allocation3 + $0x1c] sm:$0xf]  ;;  %v920_v47 = vld [vmem:[#allocation2 + $0x2c] sm:$0x1] }
  0x50   : > { %10511 = vmatpush3.bf16.msra.mxu0 %v12463_v11  ;;  %11815 = vmatpush3.bf16.msra.mxu1 %v12462_v10  ;;  %v907_v8 = vsel %vm12998_vm2, %v595_v1, %v906_v55  ;;  %v549_v10 = vld [vmem:[#allocation3 + $0x10] sm:$0xf]  ;;  %904 = vst [vmem:[#allocation2 + $0xc] sm:$0xf] %v903_v7  ;;  %905 = vst [vmem:[#allocation2 + $0x10] sm:$0xf] %v594_v6  ;;  %v602_v11 = vor.u32 %v600_v57, %v599_v4 }
  0x51   : > { %10512 = vmatprep.subr.bf16.mxu0 %v12464_v12  ;;  %11816 = vmatprep.subr.bf16.mxu1 %v12465_v13  ;;  %908 = vst [vmem:[#allocation2 + $0x14] sm:$0x1] %v907_v8  ;;  %v603_v12 = vrot.slane %v599_v4, 4  ;;  %v639_v50 = vshrl.u32 %v552_v44, 16  ;;  %v642_v51 = vshll.u32 %v552_v44, 16 }
  0x52   : > { %v910_v40 = vsel %vm13160_vm8, %v602_v11, %v909_v2  ;;  %v927_v61 = vld [vmem:[#allocation2 + $0x38] sm:$0x1]  ;;  %v572_v20 = vld [vmem:[#allocation3 + $0x6c] sm:$0xf]  ;;  %v993_v21 = vld [vmem:[#allocation2 + $0xa8] sm:$0xf] }
  0x53   : > { %911 = vst [vmem:[#allocation2 + $0x18] sm:$0xf] %v910_v40  ;;  %v641_v59 = vrot.slane %v639_v50, 7  ;;  %v553_v62 = vld [vmem:[#allocation3 + $0x20] sm:$0xf] }
  0x54   : > { %10513 = vmatpush3.bf16.msra.mxu0 %v12466_v14  ;;  %11817 = vmatpush3.bf16.msra.mxu1 %v12465_v13  ;;  %v610_v13 = vor.u32 %v608_v60, %v607_v5  ;;  %v612_v14 = vrot.slane %v607_v5, 4  ;;  %v923_v60 = vld [vmem:[#allocation2 + $0x30] sm:$0xf]  ;;  %v648_v8 = vshrl.u32 %v553_v62, 16  ;;  %v12481_v50 = vld [vmem:[%s17968_s1 + $0x38] sm:$0xff]  }
  0x55   : > { %10514 = vmatprep.subr.bf16.mxu0 %v12467_v15  ;;  %11818 = vmatprep.subr.bf16.mxu1 %v12468_v18  ;;  %v550_v15 = vld [vmem:[#allocation3 + $0x14] sm:$0xf]  ;;  %v644_v6 = vor.u32 %v642_v51, %v641_v59  ;;  %v646_v7 = vrot.slane %v641_v59, 4  ;;  %v983_v19 = vld [vmem:[#allocation2 + $0x98] sm:$0x1] }
  0x56   : > { %v914_v41 = vsel %vm12998_vm2, %v612_v14, %v913_v3  ;;  %v575_v24 = vld [vmem:[#allocation3 + $0x78] sm:$0xf]  ;;  %v576_v25 = vld [vmem:[#allocation3 + $0x7c] sm:$0xf] }
  0x57   : > { %915 = vst [vmem:[#allocation2 + $0x20] sm:$0x1] %v914_v41  ;;  %v12476_v3 = vld [vmem:[#allocation2 + $0xc] sm:$0xff]   ;;  %v846_v29 = vshll.u32 %v576_v25, 16 }
  0x58   : > { %10515 = vmatpush3.bf16.msra.mxu0 %v12469_v36  ;;  %11819 = vmatpush3.bf16.msra.mxu1 %v12468_v18  ;;  %v614_v18 = vshrl.u32 %v549_v10, 16  ;;  %v617_v36 = vshll.u32 %v549_v10, 16  ;;  %v651_v10 = vshll.u32 %v553_v62, 16  ;;  %v1244_v11 = vshrl.u32 %v12476_v3, 16 }
  0x59   : > { %10516 = vmatprep.subr.bf16.mxu0 %v12470_v37  ;;  %11820 = vmatprep.subr.bf16.mxu1 %v12471_v38  ;;  %v622_v37 = vshrl.u32 %v550_v15, 16  ;;  %v1469_v14 = vrot.slane %v12476_v3, 1 }
  0x5a   : > { %v616_v45 = vrot.slane %v614_v18, 7 }
  0x5b   : > { %v624_v46 = vrot.slane %v622_v37, 7 }
  0x5c   : > { %10517 = vmatpush3.bf16.msra.mxu0 %v12472_v39  ;;  %11821 = vmatpush3.bf16.msra.mxu1 %v12471_v38  ;;  %v625_v38 = vshll.u32 %v550_v15, 16  ;;  %v611_v39 = vsel %vm13154_vm7, %v603_v12, %v610_v13  ;;  %v619_v53 = vor.u32 %v617_v36, %v616_v45  ;;  %v620_v54 = vrot.slane %v616_v45, 4 }
  0x5d   : > { %10518 = vmatprep.subr.bf16.mxu0 %v12473_v42  ;;  %11822 = vmatprep.subr.bf16.mxu1 %v12474_v43  ;;  %v916_v42 = vld [vmem:[#allocation2 + $0x24] sm:$0xf]  ;;  %912 = vst [vmem:[#allocation2 + $0x1c] sm:$0xf] %v611_v39  ;;  %v629_v56 = vrot.slane %v624_v46, 4  ;;  %v1246_v12 = vshll.u32 %v12476_v3, 16 }
  0x5e   : > { %v627_v55 = vor.u32 %v625_v38, %v624_v46  ;;  %v917_v1 = vsel %vm13160_vm8, %v619_v53, %v916_v42  ;;  %v928_v38 = vsel %vm12998_vm2, %v646_v7, %v927_v61  ;;  %v12479_v41 = vld [vmem:[#allocation2 + $0x20] ss:$0 sps:$4 sm:$0x11]   ;;  %v13199_v42 = vrot.slane %v648_v8, 7  ;;  %v12487_v53 = vld [vmem:[%s17968_s1 + $0x70] sm:$0xff]   ;;  %v12493_v7 = vld [vmem:[%s17968_s1 + $0x68] sm:$0xff]  }
  0x5f   : > { %v921_v2 = vsel %vm12998_vm2, %v629_v56, %v920_v47  ;;  %918 = vst [vmem:[#allocation2 + $0x24] sm:$0xf] %v917_v1  ;;  %v1248_v39 = vrot.slane %v1246_v12, 1  ;;  %929 = vst [vmem:[#allocation2 + $0x38] sm:$0x1] %v928_v38  ;;  %v1263_v51 = vshll.u32 %v12479_v41, 16 }
  0x60   : > { %10519 = vmatpush3.bf16.msra.mxu0 %v12475_v48  ;;  %11823 = vmatpush3.bf16.msra.mxu1 %v12474_v43  ;;  %v551_v43 = vld [vmem:[#allocation3 + $0x18] sm:$0xf]  ;;  %v628_v63 = vsel %vm13154_vm7, %v620_v54, %v627_v55  ;;  %922 = vst [vmem:[#allocation2 + $0x2c] sm:$0x1] %v921_v2  ;;  %v930_v47 = vld [vmem:[#allocation2 + $0x3c] sm:$0xf]  ;;  %v653_v55 = vor.u32 %v651_v10, %v13199_v42 }
  0x61   : > { %10640 = vmatprep.subr.bf16.mxu1 %v12480_v0  ;;  %11856 = vmatprep.subr.bf16.mxu0 %v13176_v9  ;;  %v631_v48 = vshrl.u32 %v551_v43, 16  ;;  %v634_v49 = vshll.u32 %v551_v43, 16  ;;  %v12477_v0 = vld [vmem:[#allocation2 + $0x14] ss:$0 sps:$4 sm:$0x11]   ;;  %v1265_v61 = vrot.slane %v1263_v51, 1 }
  0x62   : > { %919 = vst [vmem:[#allocation2 + $0x28] sm:$0xf] %v628_v63  ;;  %v1251_v13 = vshll.u32 %v12477_v0, 16  ;;  %v1470_v15 = vrot.slane %v12477_v0, 1  ;;  %v554_v54 = vld [vmem:[#allocation3 + $0x24] sm:$0xf]  ;;  %v931_v1 = vsel %vm13160_vm8, %v653_v55, %v930_v47 }
  0x63   : > { %v633_v57 = vrot.slane %v631_v48, 7  ;;  %v1249_v48 = vor.u32 %v1248_v39, %v1244_v11  ;;  %v12488_v63 = vld [vmem:[%s17968_s1 + $0x30] sm:$0xff]   ;;  %932 = vst [vmem:[#allocation2 + $0x3c] sm:$0xf] %v931_v1  ;;  %v654_v11 = vrot.slane %v13199_v42, 4  ;;  %v656_v12 = vshrl.u32 %v554_v54, 16 }
  0x64   : > { %v13191_v18 = vld [vmem:[#allocation2 + $0x18] sm:$0xff]   ;;  %v1253_v40 = vrot.slane %v1251_v13, 1  ;;  %v13202_v43 = vsel %vm1465_vm10, %v1469_v14, %v1470_v15  ;;  %v556_v13 = vld [vmem:[#allocation3 + $0x2c] sm:$0xf]  ;;  %v659_v42 = vshll.u32 %v554_v54, 16  ;;  %v12495_v51 = vld [vmem:[%s17968_s1 + $0xb0] sm:$0xff]  }
  0x65   : > { %v636_v4 = vor.u32 %v634_v49, %v633_v57  ;;  %v637_v5 = vrot.slane %v633_v57, 4  ;;  %v1472_v44 = vrot.slane %v13191_v18, 1  ;;  %v1256_v45 = vshrl.u32 %v13191_v18, 16  ;;  %11824 = vmatprep.mubr.bf16.mxu1 %v13202_v43  ;;  %v934_v39 = vld [vmem:[#allocation2 + $0x44] sm:$0x1] }
  0x66   : > { %v1258_v46 = vshll.u32 %v13191_v18, 16  ;;  %v1473_v49 = vrot.slane %v12479_v41, 1  ;;  %v13218_v59 = vsel %vm1230_vm9, %v1249_v48, %v1253_v40  ;;  %v12494_v40 = vld [vmem:[%s17968_s1 + $0x28] sm:$0xff]   ;;  %v658_v41 = vrot.slane %v656_v12, 7  ;;  %v12500_v54 = vld [vmem:[%s17968_s1 + $0x60] sm:$0xff]  }
  0x67   : > { %v645_v36 = vsel %vm13154_vm7, %v637_v5, %v644_v6  ;;  %v924_v37 = vsel %vm13160_vm8, %v636_v4, %v923_v60  ;;  %v12484_v62 = vld [vmem:[#allocation2 + $0x2c] ss:$0 sps:$4 sm:$0x11]   ;;  %1811 = vmatprep.mubr.bf16.mxu0 %v13218_v59  ;;  %v555_v6 = vld [vmem:[#allocation3 + $0x28] sm:$0xf] }
  0x68   : > { %925 = vst [vmem:[#allocation2 + $0x30] sm:$0xf] %v924_v37  ;;  %926 = vst [vmem:[#allocation2 + $0x34] sm:$0xf] %v645_v36  ;;  %v1260_v56 = vrot.slane %v1258_v46, 1  ;;  %v13221_v60 = vsel %vm1465_vm10, %v1472_v44, %v1473_v49  ;;  %1812 = vmatmul.mubr.bf16.vlgmr.msra.gmra.mxu0 %v12476_v3  ;;  %v1476_v8 = vrot.slane %v12484_v62, 1 }
  0x69   : > { %v13215_v57 = vld [vmem:[#allocation2 + $0x24] sm:$0xff]   ;;  %11825 = vmatmul.mubr.bf16.vlgmr.msra.gmra.mxu1 %v13221_v60  ;;  %v1275_v10 = vshll.u32 %v12484_v62, 16  ;;  %11857 = vmatpush3.bf16.msra.mxu0 %v13176_v9  ;;  %v12486_v3 = vld [vmem:[#allocation2 + $0x38] ss:$0 sps:$4 sm:$0x11]   ;;  %v665_v44 = vshrl.u32 %v555_v6, 16 }
  0x6a   : > { %v1261_v2 = vor.u32 %v1260_v56, %v1256_v45  ;;  %v1475_v0 = vrot.slane %v13215_v57, 1  ;;  %v1268_v4 = vshrl.u32 %v13215_v57, 16  ;;  %v1270_v5 = vshll.u32 %v13215_v57, 16  ;;  %10641 = vmatpush3.bf16.msra.mxu1 %v12481_v50  ;;  %v937_v50 = vld [vmem:[#allocation2 + $0x48] sm:$0xf]  ;;  %11858 = vmatprep.subr.bf16.mxu0 %v12495_v51 }
  0x6b   : > { %10642 = vmatprep.subr.bf16.mxu1 %v12487_v53  ;;  %v1277_v38 = vrot.slane %v1275_v10, 1  ;;  %v668_v45 = vshll.u32 %v555_v6, 16  ;;  %v1479_v47 = vrot.slane %v12486_v3, 1  ;;  %v673_v49 = vshrl.u32 %v556_v13, 16  ;;  %v941_v62 = vld [vmem:[#allocation2 + $0x50] sm:$0x1] }
  0x6c   : > { %v13239_v14 = vsel %vm1230_vm9, %v1261_v2, %v1265_v61  ;;  %v13243_v15 = vsel %vm1465_vm10, %v1475_v0, %v1476_v8  ;;  %v1272_v37 = vrot.slane %v1270_v5, 1  ;;  %v661_v53 = vor.u32 %v659_v42, %v658_v41 }
  0x6d   : > { %1819 = vmatprep.mubr.bf16.mxu0 %v13239_v14  ;;  %11828 = vmatprep.mubr.bf16.mxu1 %v13243_v15  ;;  %v663_v55 = vrot.slane %v658_v41, 4  ;;  %v667_v56 = vrot.slane %v665_v44, 7  ;;  %v676_v61 = vshll.u32 %v556_v13, 16  ;;  %v675_v2 = vrot.slane %v673_v49, 7 }
  0x6e   : > { %10643 = vmatpush3.bf16.msra.mxu1 %v12488_v63  ;;  %v1273_v48 = vor.u32 %v1272_v37, %v1268_v4  ;;  %v662_v4 = vsel %vm13154_vm7, %v654_v11, %v661_v53  ;;  %11859 = vmatpush3.bf16.msra.mxu0 %v12495_v51  ;;  %v1287_v13 = vshll.u32 %v12486_v3, 16  ;;  %v557_v37 = vld [vmem:[#allocation3 + $0x30] sm:$0xf]  ;;  %v12501_v11 = vld [vmem:[%s17968_s1 + $0x20] sm:$0xff]   ;;  %v560_v51 = vld [vmem:[#allocation3 + $0x3c] sm:$0xf] }
  0x6f   : > { %v13245_v36 = vld [vmem:[#allocation2 + $0x30] sm:$0xff]   ;;  %10644 = vmatprep.subr.bf16.mxu1 %v12493_v7  ;;  %v935_v5 = vsel %vm12998_vm2, %v663_v55, %v934_v39  ;;  %v670_v6 = vor.u32 %v668_v45, %v667_v56  ;;  %v671_v7 = vrot.slane %v667_v56, 4  ;;  %933 = vst [vmem:[#allocation2 + $0x40] sm:$0xf] %v662_v4  ;;  %v678_v8 = vor.u32 %v676_v61, %v675_v2  ;;  %v558_v39 = vld [vmem:[#allocation3 + $0x34] sm:$0xf] }
  0x70   : > { %v1478_v46 = vrot.slane %v13245_v36, 1  ;;  %v13262_v63 = vsel %vm1230_vm9, %v1273_v48, %v1277_v38  ;;  %v1280_v0 = vshrl.u32 %v13245_v36, 16  ;;  %1820 = vmatmul.mubr.bf16.gmra.mxu0 %v13191_v18  ;;  %936 = vst [vmem:[#allocation2 + $0x44] sm:$0x1] %v935_v5  ;;  %v680_v10 = vrot.slane %v675_v2, 4 }
  0x71   : > { %v1282_v12 = vshll.u32 %v13245_v36, 16  ;;  %1827 = vmatprep.mubr.bf16.mxu0 %v13262_v63  ;;  %v938_v38 = vsel %vm13160_vm8, %v670_v6, %v937_v50  ;;  %v682_v18 = vshrl.u32 %v557_v37, 16  ;;  %v685_v41 = vshll.u32 %v557_v37, 16  ;;  %v948_v56 = vld [vmem:[#allocation2 + $0x5c] sm:$0x1]  ;;  %v12513_v37 = vld [vmem:[%s17968_s1 + $0x50] sm:$0xff]  }
  0x72   : > { %v13259_v1 = vsel %vm1465_vm10, %v1478_v46, %v1479_v47  ;;  %10645 = vmatpush3.bf16.msra.mxu1 %v12494_v40  ;;  %v12506_v40 = vld [vmem:[%s17968_s1 + $0x58] sm:$0xff]   ;;  %v679_v3 = vsel %vm13154_vm7, %v671_v7, %v678_v8  ;;  %939 = vst [vmem:[#allocation2 + $0x48] sm:$0xf] %v938_v38  ;;  %v942_v42 = vsel %vm12998_vm2, %v680_v10, %v941_v62  ;;  %v1289_v45 = vrot.slane %v1287_v13, 1  ;;  %v944_v46 = vld [vmem:[#allocation2 + $0x54] sm:$0xf] }
  0x73   : > { %11829 = vmatmul.mubr.bf16.gmra.mxu1 %v13259_v1  ;;  %10646 = vmatprep.subr.bf16.mxu1 %v12500_v54  ;;  %v1284_v44 = vrot.slane %v1282_v12, 1  ;;  %v559_v47 = vld [vmem:[#allocation3 + $0x38] sm:$0xf]  ;;  %940 = vst [vmem:[#allocation2 + $0x4c] sm:$0xf] %v679_v3  ;;  %v684_v48 = vrot.slane %v682_v18, 7 }
  0x74   : > { %943 = vst [vmem:[#allocation2 + $0x50] sm:$0x1] %v942_v42  ;;  %v690_v49 = vshrl.u32 %v558_v39, 16  ;;  %v693_v50 = vshll.u32 %v558_v39, 16  ;;  %v699_v53 = vshrl.u32 %v559_v47, 16  ;;  %v702_v61 = vshll.u32 %v559_v47, 16 }
  0x75   : > { %v1285_v55 = vor.u32 %v1284_v44, %v1280_v0  ;;  %v707_v54 = vshrl.u32 %v560_v51, 16  ;;  %v710_v2 = vshll.u32 %v560_v51, 16  ;;  %v951_v4 = vld [vmem:[#allocation2 + $0x60] sm:$0xf]  ;;  %v12507_v62 = vld [vmem:[%s17968_s1 + $0x18] sm:$0xff]   ;;  %v687_v5 = vor.u32 %v685_v41, %v684_v48  ;;  %v13291_v0 = vld [vmem:[%s17968_s1 + $0xa8] sm:$0xff]  }
  0x76   : > { %10647 = vmatpush3.bf16.msra.mxu1 %v12501_v11  ;;  %v688_v6 = vrot.slane %v684_v48, 4  ;;  %v692_v7 = vrot.slane %v690_v49, 7  ;;  %v701_v8 = vrot.slane %v699_v53, 7  ;;  %v955_v10 = vld [vmem:[#allocation2 + $0x68] sm:$0x1]  ;;  %v13299_v11 = vld [vmem:[#allocation2 + $0x3c] sm:$0xff]   ;;  %11860 = vmatprep.subr.bf16.mxu0 %v13291_v0 }
  0x77   : > { %10648 = vmatprep.subr.bf16.mxu1 %v12506_v40  ;;  %v13294_v12 = vsel %vm1230_vm9, %v1285_v55, %v1289_v45  ;;  %v709_v13 = vrot.slane %v707_v54, 7  ;;  %v945_v18 = vsel %vm13160_vm8, %v687_v5, %v944_v46  ;;  %v12490_v40 = vld [vmem:[#allocation2 + $0x44] ss:$0 sps:$4 sm:$0x11]   ;;  %v12514_v45 = vld [vmem:[%s17968_s1 + $0x10] sm:$0xff]   ;;  %v1481_v47 = vrot.slane %v13299_v11, 1  ;;  %11861 = vmatpush3.bf16.msra.mxu0 %v13291_v0 }
  0x78   : > { %v695_v38 = vor.u32 %v693_v50, %v692_v7  ;;  %v697_v39 = vrot.slane %v692_v7, 4  ;;  %v704_v41 = vor.u32 %v702_v61, %v701_v8  ;;  %1828 = vmatmul.mubr.bf16.gmra.mxu0 %v13215_v57  ;;  %946 = vst [vmem:[#allocation2 + $0x54] sm:$0xf] %v945_v18  ;;  %v705_v3 = vrot.slane %v701_v8, 4  ;;  %v12519_v49 = vld [vmem:[%s17968_s1 + $0x48] sm:$0xff]  }
  0x79   : > { %v712_v42 = vor.u32 %v710_v2, %v709_v13  ;;  %v714_v44 = vrot.slane %v709_v13, 4  ;;  %1835 = vmatprep.mubr.bf16.mxu0 %v13294_v12  ;;  %v1482_v50 = vrot.slane %v12490_v40, 1  ;;  %v1292_v61 = vshrl.u32 %v13299_v11, 16  ;;  %v561_v5 = vld [vmem:[#allocation3 + $0x40] sm:$0xf] }
  0x7a   : > { %10649 = vmatpush3.bf16.msra.mxu1 %v12507_v62  ;;  %v696_v46 = vsel %vm13154_vm7, %v688_v6, %v695_v38  ;;  %v949_v48 = vsel %vm12998_vm2, %v697_v39, %v948_v56  ;;  %v952_v57 = vsel %vm13160_vm8, %v704_v41, %v951_v4  ;;  %v13320_v51 = vld [vmem:[#allocation2 + $0x48] sm:$0xff]   ;;  %v1294_v4 = vshll.u32 %v13299_v11, 16  ;;  %v562_v8 = vld [vmem:[#allocation3 + $0x44] sm:$0xf] }
  0x7b   : > { %947 = vst [vmem:[#allocation2 + $0x58] sm:$0xf] %v696_v46  ;;  %950 = vst [vmem:[#allocation2 + $0x5c] sm:$0x1] %v949_v48  ;;  %v713_v53 = vsel %vm13154_vm7, %v705_v3, %v712_v42  ;;  %v956_v55 = vsel %vm12998_vm2, %v714_v44, %v955_v10  ;;  %10650 = vmatprep.subr.bf16.mxu1 %v12513_v37  ;;  %v13330_v54 = vsel %vm1465_vm10, %v1481_v47, %v1482_v50  ;;  %v12520_v6 = vld [vmem:[%s17968_s1 + $0x8] sm:$0xff]  }
  0x7c   : > { %953 = vst [vmem:[#allocation2 + $0x60] sm:$0xf] %v952_v57  ;;  %v13326_v56 = vld [vmem:[#allocation2 + $0x50] ss:$0 sps:$4 sm:$0x11]   ;;  %v1484_v2 = vrot.slane %v13320_v51, 1  ;;  %11832 = vmatprep.mubr.bf16.mxu1 %v13330_v54 }
  0x7d   : > { %954 = vst [vmem:[#allocation2 + $0x64] sm:$0xf] %v713_v53  ;;  %957 = vst [vmem:[#allocation2 + $0x68] sm:$0x1] %v956_v55  ;;  %v1299_v62 = vshll.u32 %v12490_v40, 16  ;;  %v1485_v7 = vrot.slane %v13326_v56, 1 }
  0x7e   : > { %10651 = vmatpush3.bf16.msra.mxu1 %v12514_v45  ;;  %v716_v10 = vshrl.u32 %v561_v5, 16  ;;  %v719_v13 = vshll.u32 %v561_v5, 16  ;;  %v1304_v37 = vshrl.u32 %v13320_v51, 16  ;;  %v1296_v38 = vrot.slane %v1294_v4, 1  ;;  %v958_v42 = vld [vmem:[#allocation2 + $0x6c] sm:$0xf] }
  0x7f   : > { %10652 = vmatprep.subr.bf16.mxu1 %v12519_v49  ;;  %v1301_v39 = vrot.slane %v1299_v62, 1  ;;  %v724_v18 = vshrl.u32 %v562_v8, 16  ;;  %v727_v41 = vshll.u32 %v562_v8, 16  ;;  %v13341_v40 = vsel %vm1465_vm10, %v1484_v2, %v1485_v7  ;;  %v962_v46 = vld [vmem:[#allocation2 + $0x74] sm:$0x1] }
  0x80   : > { %v718_v3 = vrot.slane %v716_v10, 7  ;;  %v1306_v44 = vshll.u32 %v13320_v51, 16  ;;  %11833 = vmatmul.mubr.bf16.gmra.mxu1 %v13341_v40  ;;  %1836 = vmatmul.mubr.bf16.gmra.mxu0 %v13245_v36  ;;  %v1297_v45 = vor.u32 %v1296_v38, %v1292_v61  ;;  %v563_v48 = vld [vmem:[#allocation3 + $0x48] sm:$0xf]  ;;  %v564_v57 = vld [vmem:[#allocation3 + $0x4c] sm:$0xf] }
  0x81   : > { %v726_v47 = vrot.slane %v724_v18, 7  ;;  %v1311_v49 = vshll.u32 %v13326_v56, 16  ;;  %v741_v18 = vshrl.u32 %v564_v57, 16 }
  0x82   : > { %v13347_v50 = vld [vmem:[#allocation2 + $0x54] sm:$0xff]   ;;  %v721_v53 = vor.u32 %v719_v13, %v718_v3  ;;  %v722_v55 = vrot.slane %v718_v3, 4  ;;  %10653 = vmatpush3.bf16.msra.mxu1 %v12520_v6  ;;  %v13349_v2 = vld [vmem:[#allocation2 + $0x5c] ss:$0 sps:$4 sm:$0x11]   ;;  %v13354_v62 = vsel %vm1230_vm9, %v1297_v45, %v1301_v39  ;;  %v733_v13 = vshrl.u32 %v563_v48, 16 }
  0x83   : > { %v729_v36 = vor.u32 %v727_v41, %v726_v47  ;;  %v1487_v61 = vrot.slane %v13347_v50, 1  ;;  %1843 = vmatprep.mubr.bf16.mxu0 %v13354_v62  ;;  %v731_v5 = vrot.slane %v726_v47, 4  ;;  %v1488_v7 = vrot.slane %v13349_v2, 1  ;;  %v965_v3 = vld [vmem:[#allocation2 + $0x78] sm:$0xf] }
  0x84   : > { %v13351_v4 = vld [vmem:[#allocation2 + $0x60] sm:$0xff]   ;;  %v959_v56 = vsel %vm13160_vm8, %v721_v53, %v958_v42  ;;  %v13361_v8 = vld [vmem:[#allocation2 + $0x68] ss:$0 sps:$4 sm:$0x11]   ;;  %v736_v39 = vshll.u32 %v563_v48, 16  ;;  %v744_v41 = vshll.u32 %v564_v57, 16 }
  0x85   : > { %v1490_v6 = vrot.slane %v13351_v4, 1  ;;  %v730_v10 = vsel %vm13154_vm7, %v722_v55, %v729_v36  ;;  %960 = vst [vmem:[#allocation2 + $0x6c] sm:$0xf] %v959_v56  ;;  %v963_v38 = vsel %vm12998_vm2, %v731_v5, %v962_v46  ;;  %v13371_v42 = vld [vmem:[%s17968_s1 + $0xa0] sm:$0xff]   ;;  %v13374_v45 = vsel %vm1465_vm10, %v1487_v61, %v1488_v7 }
  0x86   : > { %961 = vst [vmem:[#allocation2 + $0x70] sm:$0xf] %v730_v10  ;;  %v1491_v47 = vrot.slane %v13361_v8, 1  ;;  %964 = vst [vmem:[#allocation2 + $0x74] sm:$0x1] %v963_v38  ;;  %v735_v53 = vrot.slane %v733_v13, 7  ;;  %11836 = vmatprep.mubr.bf16.mxu1 %v13374_v45  ;;  %11862 = vmatprep.subr.bf16.mxu0 %v13371_v42 }
  0x87   : > { %v969_v55 = vld [vmem:[#allocation2 + $0x80] sm:$0x1]  ;;  %v743_v46 = vrot.slane %v741_v18, 7  ;;  %v1308_v48 = vrot.slane %v1306_v44, 1  ;;  %v1313_v61 = vrot.slane %v1311_v49, 1  ;;  %11863 = vmatpush3.bf16.msra.mxu0 %v13371_v42 }
  0x88   : > { %v13380_v57 = vsel %vm1465_vm10, %v1490_v6, %v1491_v47  ;;  %1844 = vmatmul.mubr.bf16.gmra.mxu0 %v13299_v11  ;;  %v738_v36 = vor.u32 %v736_v39, %v735_v53  ;;  %v739_v5 = vrot.slane %v735_v53, 4  ;;  %v565_v13 = vld [vmem:[#allocation3 + $0x50] sm:$0xf]  ;;  %v566_v38 = vld [vmem:[#allocation3 + $0x54] sm:$0xf]  ;;  %v1316_v47 = vshrl.u32 %v13347_v50, 16 }
  0x89   : > { %11837 = vmatmul.mubr.bf16.gmra.mxu1 %v13380_v57  ;;  %v746_v56 = vor.u32 %v744_v41, %v743_v46  ;;  %v748_v7 = vrot.slane %v743_v46, 4  ;;  %v1309_v10 = vor.u32 %v1308_v48, %v1304_v37  ;;  %v750_v18 = vshrl.u32 %v565_v13, 16  ;;  %v972_v41 = vld [vmem:[#allocation2 + $0x84] sm:$0xf] }
  0x8a   : > { %v966_v44 = vsel %vm13160_vm8, %v738_v36, %v965_v3  ;;  %v753_v6 = vshll.u32 %v565_v13, 16  ;;  %v758_v39 = vshrl.u32 %v566_v38, 16  ;;  %v12526_v3 = vld [vmem:[%s17968_s1 + $0x40] sm:$0xff]   ;;  %v761_v48 = vshll.u32 %v566_v38, 16  ;;  %v976_v36 = vld [vmem:[#allocation2 + $0x8c] sm:$0x1] }
  0x8b   : > { %v747_v11 = vsel %vm13154_vm7, %v739_v5, %v746_v56  ;;  %967 = vst [vmem:[#allocation2 + $0x78] sm:$0xf] %v966_v44  ;;  %v970_v49 = vsel %vm12998_vm2, %v748_v7, %v969_v55  ;;  %v13393_v37 = vsel %vm1230_vm9, %v1309_v10, %v1313_v61  ;;  %v752_v46 = vrot.slane %v750_v18, 7  ;;  %10654 = vmatprep.subr.bf16.mxu1 %v12526_v3  ;;  %v567_v13 = vld [vmem:[#allocation3 + $0x58] sm:$0xf]  ;;  %v12527_v38 = vld [vmem:[%s17968_s1] sm:$0xff]  }
  0x8c   : > { %968 = vst [vmem:[#allocation2 + $0x7c] sm:$0xf] %v747_v11  ;;  %971 = vst [vmem:[#allocation2 + $0x80] sm:$0x1] %v970_v49  ;;  %1851 = vmatprep.mubr.bf16.mxu0 %v13393_v37  ;;  %v1318_v55 = vshll.u32 %v13347_v50, 16  ;;  %v760_v61 = vrot.slane %v758_v39, 7  ;;  %10655 = vmatpush3.bf16.msra.mxu1 %v12527_v38 }
  0x8d   : > { %v13398_v53 = vld [vmem:[#allocation2 + $0x6c] sm:$0xff]   ;;  %v13402_v5 = vld [vmem:[#allocation2 + $0x74] ss:$0 sps:$4 sm:$0x11]   ;;  %v755_v7 = vor.u32 %v753_v6, %v752_v46  ;;  %v756_v10 = vrot.slane %v752_v46, 4  ;;  %v767_v34 = vshrl.u32 %v567_v13, 16  ;;  %12408 = vmatprep.subr.bf16.mxu1 %v13176_v9 }
  0x8e   : > { %v1493_v56 = vrot.slane %v13398_v53, 1  ;;  %v568_v44 = vld [vmem:[#allocation3 + $0x5c] sm:$0xf]  ;;  %v1494_v11 = vrot.slane %v13402_v5, 1  ;;  %v763_v49 = vor.u32 %v761_v48, %v760_v61  ;;  %v765_v33 = vrot.slane %v760_v61, 4 }
  0x8f   : > { %v973_v18 = vsel %vm13160_vm8, %v755_v7, %v972_v41  ;;  %v770_v39 = vshll.u32 %v567_v13, 16  ;;  %v775_v3 = vshrl.u32 %v568_v44, 16  ;;  %v778_v6 = vshll.u32 %v568_v44, 16  ;;  %v979_v46 = vld [vmem:[#allocation2 + $0x90] sm:$0xf] }
  0x90   : > { %1852 = vmatmul.mubr.bf16.gmra.mxu0 %v13320_v51  ;;  %v13413_v16 = vsel %vm1465_vm10, %v1493_v56, %v1494_v11  ;;  %v764_v48 = vsel %vm13154_vm7, %v756_v10, %v763_v49  ;;  %974 = vst [vmem:[#allocation2 + $0x84] sm:$0xf] %v973_v18  ;;  %v977_v61 = vsel %vm12998_vm2, %v765_v33, %v976_v36  ;;  %v769_v17 = vrot.slane %v767_v34, 7  ;;  %v13422_v51 = vld [vmem:[%s17968_s1 + $0x98] sm:$0xff]  }
  0x91   : > { %11840 = vmatprep.mubr.bf16.mxu1 %v13413_v16  ;;  %975 = vst [vmem:[#allocation2 + $0x88] sm:$0xf] %v764_v48  ;;  %978 = vst [vmem:[#allocation2 + $0x8c] sm:$0x1] %v977_v61  ;;  %v777_v41 = vrot.slane %v775_v3, 7  ;;  %v1320_v56 = vrot.slane %v1318_v55, 1  ;;  %11864 = vmatprep.subr.bf16.mxu0 %v13422_v51 }
  0x92   : > { %v772_v10 = vor.u32 %v770_v39, %v769_v17  ;;  %v773_v33 = vrot.slane %v769_v17, 4  ;;  %11865 = vmatpush3.bf16.msra.mxu0 %v13422_v51  ;;  %v1323_v9 = vshll.u32 %v13349_v2, 16  ;;  %v569_v49 = vld [vmem:[#allocation3 + $0x60] sm:$0xf]  ;;  %v570_v38 = vld [vmem:[#allocation3 + $0x64] sm:$0xf] }
  0x93   : > { %v13426_v7 = vld [vmem:[#allocation2 + $0x78] sm:$0xff]   ;;  %v13429_v34 = vld [vmem:[#allocation2 + $0x80] ss:$0 sps:$4 sm:$0x11]   ;;  %v780_v36 = vor.u32 %v778_v6, %v777_v41  ;;  %v782_v13 = vrot.slane %v777_v41, 4  ;;  %v1321_v55 = vor.u32 %v1320_v56, %v1316_v47  ;;  %v784_v3 = vshrl.u32 %v569_v49, 16 }
  0x94   : > { %v1496_v44 = vrot.slane %v13426_v7, 1  ;;  %v980_v11 = vsel %vm13160_vm8, %v772_v10, %v979_v46  ;;  %v1497_v17 = vrot.slane %v13429_v34, 1  ;;  %v1325_v6 = vrot.slane %v1323_v9, 1  ;;  %v986_v61 = vld [vmem:[#allocation2 + $0x9c] sm:$0xf] }
  0x95   : > { %v781_v18 = vsel %vm13154_vm7, %v773_v33, %v780_v36  ;;  %981 = vst [vmem:[#allocation2 + $0x90] sm:$0xf] %v980_v11  ;;  %v984_v39 = vsel %vm12998_vm2, %v782_v13, %v983_v19  ;;  %v787_v48 = vshll.u32 %v569_v49, 16  ;;  %v792_v46 = vshrl.u32 %v570_v38, 16  ;;  %v571_v2 = vld [vmem:[#allocation3 + $0x68] sm:$0xf] }
  0x96   : > { %982 = vst [vmem:[#allocation2 + $0x94] sm:$0xf] %v781_v18  ;;  %985 = vst [vmem:[#allocation2 + $0x98] sm:$0x1] %v984_v39  ;;  %v795_v47 = vshll.u32 %v570_v38, 16  ;;  %v13442_v41 = vsel %vm1465_vm10, %v1496_v44, %v1497_v17  ;;  %v786_v56 = vrot.slane %v784_v3, 7  ;;  %v13448_v19 = vsel %vm1230_vm9, %v1321_v55, %v1325_v6 }
  0x97   : > { %v990_v10 = vld [vmem:[#allocation2 + $0xa4] sm:$0x1]  ;;  %v801_v33 = vshrl.u32 %v571_v2, 16  ;;  %11841 = vmatmul.mubr.bf16.gmra.mxu1 %v13442_v41  ;;  %v794_v13 = vrot.slane %v792_v46, 7  ;;  %1859 = vmatprep.mubr.bf16.mxu0 %v13448_v19  ;;  %v804_v38 = vshll.u32 %v571_v2, 16  ;;  %v809_v3 = vshrl.u32 %v572_v20, 16 }
  0x98   : > { %v13445_v36 = vld [vmem:[#allocation2 + $0x84] sm:$0xff]   ;;  %v13450_v11 = vld [vmem:[#allocation2 + $0x8c] ss:$0 sps:$4 sm:$0x11]   ;;  %v789_v9 = vor.u32 %v787_v48, %v786_v56  ;;  %v790_v49 = vrot.slane %v786_v56, 4  ;;  %1860 = vmatmul.mubr.bf16.gmra.mxu0 %v13347_v50  ;;  %v13458_v55 = vld [vmem:[%s17968_s1 + $0x90] sm:$0xff]  }
  0x99   : > { %v803_v44 = vrot.slane %v801_v33, 7  ;;  %v1499_v17 = vrot.slane %v13445_v36, 1  ;;  %v797_v18 = vor.u32 %v795_v47, %v794_v13  ;;  %v799_v39 = vrot.slane %v794_v13, 4  ;;  %v997_v56 = vld [vmem:[#allocation2 + $0xb0] sm:$0x1]  ;;  %11866 = vmatprep.subr.bf16.mxu0 %v13458_v55 }
  0x9a   : > { %v1500_v6 = vrot.slane %v13450_v11, 1  ;;  %v987_v48 = vsel %vm13160_vm8, %v789_v9, %v986_v61  ;;  %v811_v33 = vrot.slane %v809_v3, 7  ;;  %v812_v13 = vshll.u32 %v572_v20, 16  ;;  %11867 = vmatpush3.bf16.msra.mxu0 %v13458_v55  ;;  %v573_v3 = vld [vmem:[#allocation3 + $0x70] sm:$0xf] }
  0x9b   : > { %v806_v46 = vor.u32 %v804_v38, %v803_v44  ;;  %v807_v2 = vrot.slane %v803_v44, 4  ;;  %v798_v47 = vsel %vm13154_vm7, %v790_v49, %v797_v18  ;;  %988 = vst [vmem:[#allocation2 + $0x9c] sm:$0xf] %v987_v48  ;;  %v991_v50 = vsel %vm12998_vm2, %v799_v39, %v990_v10  ;;  %v574_v48 = vld [vmem:[#allocation3 + $0x74] sm:$0xf] }
  0x9c   : > { %v13469_v22 = vsel %vm1465_vm10, %v1499_v17, %v1500_v6  ;;  %989 = vst [vmem:[#allocation2 + $0xa0] sm:$0xf] %v798_v47  ;;  %992 = vst [vmem:[#allocation2 + $0xa4] sm:$0x1] %v991_v50  ;;  %v1328_v9 = vshrl.u32 %v13351_v4, 16  ;;  %v814_v20 = vor.u32 %v812_v13, %v811_v33  ;;  %v816_v49 = vrot.slane %v811_v33, 4 }
  0x9d   : > { %v13471_v23 = vld [vmem:[#allocation2 + $0x90] sm:$0xff]   ;;  %v994_v61 = vsel %vm13160_vm8, %v806_v46, %v993_v21  ;;  %11844 = vmatprep.mubr.bf16.mxu1 %v13469_v22  ;;  %v13478_v10 = vld [vmem:[#allocation2 + $0x98] ss:$0 sps:$4 sm:$0x11]   ;;  %v1330_v38 = vshll.u32 %v13351_v4, 16  ;;  %v1335_v39 = vshll.u32 %v13361_v8, 16 }
  0x9e   : > { %995 = vst [vmem:[#allocation2 + $0xa8] sm:$0xf] %v994_v61  ;;  %v1502_v44 = vrot.slane %v13471_v23, 1  ;;  %v1503_v17 = vrot.slane %v13478_v10, 1  ;;  %v815_v21 = vsel %vm13154_vm7, %v807_v2, %v814_v20  ;;  %v998_v18 = vsel %vm12998_vm2, %v816_v49, %v997_v56  ;;  %v1000_v20 = vld [vmem:[#allocation2 + $0xb4] sm:$0xf] }
  0x9f   : > { %996 = vst [vmem:[#allocation2 + $0xac] sm:$0xf] %v815_v21  ;;  %999 = vst [vmem:[#allocation2 + $0xb0] sm:$0x1] %v998_v18  ;;  %v1332_v6 = vrot.slane %v1330_v38, 1  ;;  %v818_v46 = vshrl.u32 %v573_v3, 16 }
  0xa0   : > { %v821_v47 = vshll.u32 %v573_v3, 16  ;;  %v1340_v50 = vshrl.u32 %v13398_v53, 16  ;;  %v13490_v33 = vsel %vm1465_vm10, %v1502_v44, %v1503_v17  ;;  %v1337_v13 = vrot.slane %v1335_v39, 1  ;;  %v13495_v8 = vld [vmem:[%s17968_s1 + $0x88] sm:$0xff]   ;;  %v1004_v38 = vld [vmem:[#allocation2 + $0xbc] sm:$0x1] }
  0xa1   : > { %v826_v61 = vshrl.u32 %v574_v48, 16  ;;  %v829_v2 = vshll.u32 %v574_v48, 16  ;;  %11845 = vmatmul.mubr.bf16.gmra.mxu1 %v13490_v33  ;;  %v1333_v56 = vor.u32 %v1332_v6, %v1328_v9  ;;  %v820_v49 = vrot.slane %v818_v46, 7  ;;  %11868 = vmatprep.subr.bf16.mxu0 %v13495_v8 }
  0xa2   : > { %v1342_v21 = vshll.u32 %v13398_v53, 16  ;;  %11869 = vmatpush3.bf16.msra.mxu0 %v13495_v8  ;;  %v1383_v32 = vshll.u32 %v13478_v10, 16 }
  0xa3   : > { %v13499_v18 = vld [vmem:[#allocation2 + $0x9c] sm:$0xff]   ;;  %v828_v44 = vrot.slane %v826_v61, 7  ;;  %v13502_v17 = vld [vmem:[#allocation2 + $0xa4] ss:$0 sps:$4 sm:$0x11]   ;;  %v13505_v39 = vsel %vm1230_vm9, %v1333_v56, %v1337_v13  ;;  %v823_v3 = vor.u32 %v821_v47, %v820_v49  ;;  %v824_v48 = vrot.slane %v820_v49, 4 }
  0xa4   : > { %v1505_v9 = vrot.slane %v13499_v18, 1  ;;  %1867 = vmatprep.mubr.bf16.mxu0 %v13505_v39  ;;  %v1506_v61 = vrot.slane %v13502_v17, 1  ;;  %v835_v13 = vshrl.u32 %v575_v24, 16  ;;  %v838_v47 = vshll.u32 %v575_v24, 16  ;;  %v13514_v56 = vld [vmem:[#allocation2] sm:$0xff]  }
  0xa5   : > { %v831_v6 = vor.u32 %v829_v2, %v828_v44  ;;  %v833_v46 = vrot.slane %v828_v44, 4  ;;  %v1001_v26 = vsel %vm13160_vm8, %v823_v3, %v1000_v20  ;;  %1868 = vmatmul.mubr.bf16.gmra.mxu0 %v13351_v4  ;;  %v13519_v49 = vld [vmem:[%s17968_s1 + $0x80] sm:$0xff]   ;;  %v843_v3 = vshrl.u32 %v576_v25, 16 }
  0xa6   : > { %v13521_v2 = vld [vmem:[#allocation2 + $0xa8] sm:$0xff]   ;;  %1002 = vst [vmem:[#allocation2 + $0xb4] sm:$0xf] %v1001_v26  ;;  %v1007_v4 = vld [vmem:[#allocation2 + $0xc0] sm:$0xf]  ;;  %v13528_v24 = vsel %vm1465_vm10, %v1505_v9, %v1506_v61  ;;  %v837_v28 = vrot.slane %v835_v13, 7  ;;  %11870 = vmatprep.subr.bf16.mxu0 %v13519_v49 }
  0xa7   : > { %v832_v44 = vsel %vm13154_vm7, %v824_v48, %v831_v6  ;;  %v1005_v20 = vsel %vm12998_vm2, %v833_v46, %v1004_v38  ;;  %v13530_v27 = vld [vmem:[#allocation2 + $0xb0] ss:$0 sps:$4 sm:$0x11]   ;;  %v1344_v30 = vrot.slane %v1342_v21, 1  ;;  %11848 = vmatprep.mubr.bf16.mxu1 %v13528_v24  ;;  %v1508_v26 = vrot.slane %v13521_v2, 1  ;;  %11871 = vmatpush3.bf16.msra.mxu0 %v13519_v49 }
  0xa8   : > { %1003 = vst [vmem:[#allocation2 + $0xb8] sm:$0xf] %v832_v44  ;;  %1006 = vst [vmem:[#allocation2 + $0xbc] sm:$0x1] %v1005_v20  ;;  %v845_v48 = vrot.slane %v843_v3, 7  ;;  %v1509_v9 = vrot.slane %v13530_v27, 1  ;;  %v840_v6 = vor.u32 %v838_v47, %v837_v28 }
  0xa9   : > { %v1011_v38 = vld [vmem:[#allocation2 + $0xc8] sm:$0x1]  ;;  %v841_v46 = vrot.slane %v837_v28, 4  ;;  %v1345_v20 = vor.u32 %v1344_v30, %v1340_v50  ;;  %v1347_v25 = vshll.u32 %v13402_v5, 16  ;;  %v1234_v3 = vshll.u32 %v13514_v56, 16 }
  0xaa   : > { %v848_v61 = vor.u32 %v846_v29, %v845_v48  ;;  %v850_v44 = vrot.slane %v845_v48, 4  ;;  %v13539_v21 = vsel %vm1465_vm10, %v1508_v26, %v1509_v9  ;;  %v1008_v13 = vsel %vm13160_vm8, %v840_v6, %v1007_v4  ;;  %v13549_v30 = vld [vmem:[#allocation2 + $0x8] ss:$0 sps:$4 sm:$0x11]  }
  0xab   : > { %11849 = vmatmul.mubr.bf16.gmra.mxu1 %v13539_v21  ;;  %1009 = vst [vmem:[#allocation2 + $0xc0] sm:$0xf] %v1008_v13  ;;  %v1349_v29 = vrot.slane %v1347_v25, 1  ;;  %v1232_v5 = vshrl.u32 %v13514_v56, 16  ;;  %v1236_v50 = vrot.slane %v1234_v3, 1  ;;  %v1352_v26 = vshrl.u32 %v13426_v7, 16 }
  0xac   : > { %v849_v31 = vsel %vm13154_vm7, %v841_v46, %v848_v61  ;;  %v1012_v28 = vsel %vm12998_vm2, %v850_v44, %v1011_v38  ;;  %v1239_v38 = vshll.u32 %v13549_v30, 16  ;;  %v1354_v9 = vshll.u32 %v13426_v7, 16 }
  0xad   : > { %1010 = vst [vmem:[#allocation2 + $0xc4] sm:$0xf] %v849_v31  ;;  %1013 = vst [vmem:[#allocation2 + $0xc8] sm:$0x1] %v1012_v28  ;;  %v13555_v4 = vsel %vm1230_vm9, %v1345_v20, %v1349_v29  ;;  %v1359_v31 = vshll.u32 %v13429_v34, 16  ;;  %v1364_v46 = vshrl.u32 %v13445_v36, 16 }
  0xae   : > { %1875 = vmatprep.mubr.bf16.mxu0 %v13555_v4  ;;  %v1366_v61 = vshll.u32 %v13445_v36, 16  ;;  %v1371_v44 = vshll.u32 %v13450_v11, 16  ;;  %v1356_v25 = vrot.slane %v1354_v9, 1  ;;  %v1378_v29 = vshll.u32 %v13471_v23, 16  ;;  %v12534_v34 = vld [vmem:[%s17968_s1 + $0x1f8] sm:$0xff]  }
  0xaf   : > { %v13552_v47 = vld [vmem:[#allocation2 + $0xb4] sm:$0xff]   ;;  %v13558_v48 = vld [vmem:[#allocation2 + $0xbc] ss:$0 sps:$4 sm:$0x11]   ;;  %1876 = vmatmul.mubr.bf16.gmra.mxu0 %v13398_v53  ;;  %v1361_v13 = vrot.slane %v1359_v31, 1  ;;  %v1237_v11 = vor.u32 %v1236_v50, %v1232_v5  ;;  %v1241_v52 = vrot.slane %v1239_v38, 1  ;;  %10776 = vmatprep.subr.bf16.mxu0 %v12534_v34 }
  0xb0   : > { %v1511_v6 = vrot.slane %v13552_v47, 1  ;;  %v1512_v20 = vrot.slane %v13558_v48, 1  ;;  %v1368_v3 = vrot.slane %v1366_v61, 1  ;;  %v1373_v28 = vrot.slane %v1371_v44, 1 }
  0xb1   : > { %v1357_v35 = vor.u32 %v1356_v25, %v1352_v26  ;;  %v1376_v44 = vshrl.u32 %v13471_v23, 16  ;;  %v1380_v5 = vrot.slane %v1378_v29, 1  ;;  %v1242_v38 = vsel %vm1230_vm9, %v1237_v11, %v1241_v52 }
  0xb2   : > { %v13575_v53 = vsel %vm1465_vm10, %v1511_v6, %v1512_v20  ;;  %v1369_v9 = vor.u32 %v1368_v3, %v1364_v46  ;;  %v1390_v10 = vshll.u32 %v13499_v18, 16  ;;  %v1385_v20 = vrot.slane %v1383_v32, 1  ;;  %v12780_v32 = vld [vmem:[%s17968_s1 + $0xb8] sm:$0xff]  }
  0xb3   : > { %11852 = vmatprep.mubr.bf16.mxu1 %v13575_v53  ;;  %v13583_v61 = vsel %vm1230_vm9, %v1357_v35, %v1361_v13  ;;  %v1381_v46 = vor.u32 %v1380_v5, %v1376_v44  ;;  %v1388_v25 = vshrl.u32 %v13499_v18, 16  ;;  %v1395_v3 = vshll.u32 %v13502_v17, 16  ;;  %v12781_v17 = vld [vmem:[%s17968_s1 + $0xb0] sm:$0xff]  }
  0xb4   : > { %v13578_v58 = vld [vmem:[#allocation2 + $0xc0] sm:$0xff]   ;;  %v13580_v31 = vld [vmem:[#allocation2 + $0xc8] ss:$0 sps:$4 sm:$0x11]   ;;  %1883 = vmatprep.mubr.bf16.mxu0 %v13583_v61  ;;  %v13590_v26 = vsel %vm1230_vm9, %v1369_v9, %v1373_v28  ;;  %v1392_v13 = vrot.slane %v1390_v10, 1  ;;  %v1402_v29 = vshll.u32 %v13521_v2, 16 }
  0xb5   : > { %v1514_v6 = vrot.slane %v13578_v58, 1  ;;  %v1515_v50 = vrot.slane %v13580_v31, 1  ;;  %v13604_v52 = vsel %vm1230_vm9, %v1381_v46, %v1385_v20  ;;  %v1397_v28 = vrot.slane %v1395_v3, 1  ;;  %v12782_v44 = vld [vmem:[#allocation2 + $0xc] sm:$0xff]  }
  0xb6   : > { %v1404_v11 = vrot.slane %v1402_v29, 1  ;;  %v1407_v9 = vshll.u32 %v13530_v27, 16  ;;  %v1419_v27 = vshll.u32 %v13558_v48, 16  ;;  %v1424_v20 = vshrl.u32 %v13578_v58, 16  ;;  %v13698_v29 = vld [vmem:[#allocation2 + $0x48] sm:$0xff]  }
  0xb7   : > { %1884 = vmatmul.mubr.bf16.gmra.mxu0 %v13426_v7  ;;  %v13596_v35 = vsel %vm1465_vm10, %v1514_v6, %v1515_v50  ;;  %v1393_v7 = vor.u32 %v1392_v13, %v1388_v25  ;;  %v1412_v50 = vshrl.u32 %v13552_v47, 16  ;;  %v1431_v13 = vshll.u32 %v13580_v31, 16 }
  0xb8   : > { %1891 = vmatprep.mubr.bf16.mxu0 %v13590_v26  ;;  %11853 = vmatmul.mubr.bf16.gmra.mxu1 %v13596_v35  ;;  %v1409_v5 = vrot.slane %v1407_v9, 1  ;;  %v1421_v46 = vrot.slane %v1419_v27, 1  ;;  %v1466_v3 = vrot.slane %v13514_v56, 1  ;;  %v1467_v31 = vrot.slane %v13549_v30, 1  ;;  %v13680_v30 = vld [vmem:[#allocation2 + $0x3c] sm:$0xff]  }
  0xb9   : > { %2277 = vmatprep.mubr.bf16.mxu1 %v1242_v38  ;;  %v13619_v34 = vsel %vm1230_vm9, %v1393_v7, %v1397_v28  ;;  %v13655_v7 = vld [vmem:[#allocation2 + $0x24] sm:$0xff]   ;;  %v12537_v28 = vld [vmem:[%s17968_s1 + $0x1b0] sm:$0xff]   ;;  %v12543_v9 = vld [vmem:[%s17968_s1 + $0x198] sm:$0xff]  }
  0xba   : > { %v12548_v27 = vld [vmem:[%s17968_s1 + $0x1c0] sm:$0xff]  }
  0xbf   : > { %1892 = vmatmul.mubr.bf16.gmra.mxu0 %v13445_v36  ;;  %v1400_v36 = vshrl.u32 %v13521_v2, 16 }
  0xc0   : > { %1899 = vmatprep.mubr.bf16.mxu0 %v13604_v52  ;;  %2278 = vmatmul.mubr.bf16.vlgmr.msra.gmra.mxu1 %v13514_v56 }
  0xc1   : > { %12416 = vmatpush3.bf16.msra.mxu1 %v12780_v32  ;;  %2285 = vmatprep.mubr.bf16.mxu1 %v13218_v59  ;;  %v1414_v59 = vshll.u32 %v13552_v47, 16  ;;  %v1405_v6 = vor.u32 %v1404_v11, %v1400_v36  ;;  %v12539_v32 = vld [vmem:[%s17968_s1 + $0x1a8] sm:$0xff]   ;;  %v12542_v36 = vld [vmem:[%s17968_s1 + $0x1d8] sm:$0xff]  }
  0xc2   : > { %12409 = vmatprep.subr.bf16.mxu1 %v12781_v17  ;;  %v13716_v11 = vld [vmem:[#allocation2 + $0x54] sm:$0xff]  }
  0xc3   : > { %v1416_v38 = vrot.slane %v1414_v59, 1  ;;  %v13633_v10 = vsel %vm1230_vm9, %v1405_v6, %v1409_v5  ;;  %v12544_v59 = vld [vmem:[%s17968_s1 + $0x1d0] sm:$0xff]   ;;  %v12546_v6 = vld [vmem:[%s17968_s1 + $0x1c8] sm:$0xff]   ;;  %v13734_v5 = vld [vmem:[#allocation2 + $0x60] sm:$0xff]  }
  0xc5   : > { %12417 = vmatpush3.bf16.msra.mxu1 %v12781_v17  ;;  %v1417_v48 = vor.u32 %v1416_v38, %v1412_v50  ;;  %v12541_v17 = vld [vmem:[%s17968_s1 + $0x1a0] sm:$0xff]   ;;  %v12547_v50 = vld [vmem:[%s17968_s1 + $0x188] sm:$0xff]  }
  0xc6   : > { %12410 = vmatprep.subr.bf16.mxu1 %v13291_v0  ;;  %v12549_v38 = vld [vmem:[%s17968_s1 + $0x180] sm:$0xff]  }
  0xc7   : > { %1900 = vmatmul.mubr.bf16.gmra.mxu0 %v13471_v23  ;;  %v1426_v23 = vshll.u32 %v13578_v58, 16 }
  0xc8   : > { %1907 = vmatprep.mubr.bf16.mxu0 %v13619_v34  ;;  %2286 = vmatmul.mubr.bf16.gmra.mxu1 %v12782_v44  ;;  %v12545_v44 = vld [vmem:[%s17968_s1 + $0x190] sm:$0xff]  }
  0xc9   : > { %2293 = vmatprep.mubr.bf16.mxu1 %v13239_v14  ;;  %12418 = vmatpush3.bf16.msra.mxu1 %v13291_v0  ;;  %v13640_v0 = vld [vmem:[#allocation2 + $0x18] sm:$0xff]   ;;  %v1428_v25 = vrot.slane %v1426_v23, 1  ;;  %v13749_v23 = vld [vmem:[#allocation2 + $0x6c] sm:$0xff]  }
  0xca   : > { %12411 = vmatprep.subr.bf16.mxu1 %v13371_v42 }
  0xcd   : > { %12419 = vmatpush3.bf16.msra.mxu1 %v13371_v42  ;;  %v13648_v42 = vsel %vm1230_vm9, %v1417_v48, %v1421_v46  ;;  %v13755_v46 = vld [vmem:[#allocation2 + $0x78] sm:$0xff]  }
  0xce   : > { %12412 = vmatprep.subr.bf16.mxu1 %v13422_v51 }
  0xcf   : > { %1908 = vmatmul.mubr.bf16.gmra.mxu0 %v13499_v18  ;;  %v1433_v18 = vrot.slane %v1431_v13, 1 }
  0xd0   : > { %1915 = vmatprep.mubr.bf16.mxu0 %v13633_v10  ;;  %2294 = vmatmul.mubr.bf16.gmra.mxu1 %v13640_v0 }
  0xd1   : > { %2301 = vmatprep.mubr.bf16.mxu1 %v13262_v63  ;;  %12420 = vmatpush3.bf16.msra.mxu1 %v13422_v51  ;;  %v1429_v51 = vor.u32 %v1428_v25, %v1424_v20 }
  0xd2   : > { %12413 = vmatprep.subr.bf16.mxu1 %v13458_v55 }
  0xd3   : > { %v13668_v56 = vsel %vm1230_vm9, %v1429_v51, %v1433_v18 }
  0xd5   : > { %12421 = vmatpush3.bf16.msra.mxu1 %v13458_v55  ;;  %v13664_v55 = vld [vmem:[%s17968_s1 + $0x238] sm:$0xff]  }
  0xd6   : > { %12414 = vmatprep.subr.bf16.mxu1 %v13495_v8 }
  0xd7   : > { %1916 = vmatmul.mubr.bf16.gmra.mxu0 %v13521_v2  ;;  %v13674_v2 = vld [vmem:[#allocation2 + $0x30] sm:$0xff]  }
  0xd8   : > { %1923 = vmatprep.mubr.bf16.mxu0 %v13648_v42  ;;  %2302 = vmatmul.mubr.bf16.gmra.mxu1 %v13655_v7 }
  0xd9   : > { %2309 = vmatprep.mubr.bf16.mxu1 %v13294_v12  ;;  %12422 = vmatpush3.bf16.msra.mxu1 %v13495_v8  ;;  %v1468_v8 = vsel %vm1465_vm10, %v1466_v3, %v1467_v31  ;;  %v13773_v3 = vld [vmem:[#allocation2 + $0x9c] sm:$0xff]  }
  0xda   : > { %12415 = vmatprep.subr.bf16.mxu1 %v13519_v49 }
  0xdd   : > { %12423 = vmatpush3.bf16.msra.mxu1 %v13519_v49  ;;  %v12535_v49 = vld [vmem:[%s17968_s1 + $0x1b8] sm:$0xff]  }
  0xde   : > { %11904 = vmatprep.subr.bf16.mxu1 %v13664_v55 }
  0xdf   : > { %1924 = vmatmul.mubr.bf16.gmra.mxu0 %v13552_v47  ;;  %v12536_v47 = vld [vmem:[%s17968_s1 + $0x1f0] sm:$0xff]  }
  0xe0   : > { %1931 = vmatprep.mubr.bf16.mxu0 %v13668_v56  ;;  %2310 = vmatmul.mubr.bf16.gmra.mxu1 %v13674_v2 }
  0xe1   : > { %2317 = vmatprep.mubr.bf16.mxu1 %v13354_v62 }
  0xe7   : > { %1932 = vmatmul.mubr.bf16.gmra.mxu0 %v13578_v58  ;;  %v12538_v58 = vld [vmem:[%s17968_s1 + $0x1e8] sm:$0xff]  }
  0xe8   : > { %11872 = vmatprep.mubr.bf16.mxu0 %v1468_v8  ;;  %2318 = vmatmul.mubr.bf16.gmra.mxu1 %v13680_v30 }
  0xe9   : > { %2325 = vmatprep.mubr.bf16.mxu1 %v13393_v37 }
  0xef   : > { %11873 = vmatmul.mubr.bf16.vlgmr.msra.gmra.mxu0 %v13202_v43  ;;  %v12540_v43 = vld [vmem:[%s17968_s1 + $0x1e0] sm:$0xff]  }
  0xf0   : > { %10777 = vmatpush3.bf16.msra.mxu0 %v12535_v49  ;;  %11876 = vmatprep.mubr.bf16.mxu0 %v13221_v60 }
  0xf1   : > { %2326 = vmatmul.mubr.bf16.gmra.mxu1 %v13698_v29  ;;  %10778 = vmatprep.subr.bf16.mxu0 %v12536_v47 }
  0xf2   : > { %2333 = vmatprep.mubr.bf16.mxu1 %v13448_v19 }
  0xf4   : > { %10779 = vmatpush3.bf16.msra.mxu0 %v12537_v28 }
  0xf5   : > { %10780 = vmatprep.subr.bf16.mxu0 %v12538_v58  ;;  %v13783_v58 = vld [vmem:[#allocation2 + $0xa8] sm:$0xff]  }
  0xf7   : > { %11877 = vmatmul.mubr.bf16.gmra.mxu0 %v13243_v15 }
  0xf8   : > { %10781 = vmatpush3.bf16.msra.mxu0 %v12539_v32  ;;  %11880 = vmatprep.mubr.bf16.mxu0 %v13259_v1 }
  0xf9   : > { %2334 = vmatmul.mubr.bf16.gmra.mxu1 %v13716_v11  ;;  %10782 = vmatprep.subr.bf16.mxu0 %v12540_v43 }
  0xfa   : > { %2341 = vmatprep.mubr.bf16.mxu1 %v13505_v39 }
  0xfc   : > { %10783 = vmatpush3.bf16.msra.mxu0 %v12541_v17 }
  0xfd   : > { %10784 = vmatprep.subr.bf16.mxu0 %v12542_v36 }
  0xff   : > { %11881 = vmatmul.mubr.bf16.gmra.mxu0 %v13330_v54 }
 0x100   : > { %10785 = vmatpush3.bf16.msra.mxu0 %v12543_v9  ;;  %11884 = vmatprep.mubr.bf16.mxu0 %v13341_v40 }
 0x101   : > { %2342 = vmatmul.mubr.bf16.gmra.mxu1 %v13734_v5  ;;  %10786 = vmatprep.subr.bf16.mxu0 %v12544_v59 }
 0x102   : > { %2349 = vmatprep.mubr.bf16.mxu1 %v13555_v4 }
 0x104   : > { %10787 = vmatpush3.bf16.msra.mxu0 %v12545_v44 }
 0x105   : > { %10788 = vmatprep.subr.bf16.mxu0 %v12546_v6 }
 0x107   : > { %11885 = vmatmul.mubr.bf16.gmra.mxu0 %v13374_v45 }
 0x108   : > { %10789 = vmatpush3.bf16.msra.mxu0 %v12547_v50  ;;  %2792 = vmatprep.mubr.bf16.mxu0 %v13239_v14  ;;  %v13761_v14 = vld [vmem:[#allocation2 + $0x84] sm:$0xff]   ;;  %v13793_v50 = vld [vmem:[#allocation2 + $0xb4] sm:$0xff]  }
 0x109   : > { %2350 = vmatmul.mubr.bf16.gmra.mxu1 %v13749_v23  ;;  %10790 = vmatprep.subr.bf16.mxu0 %v12548_v27 }
 0x10a   : > { %2357 = vmatprep.mubr.bf16.mxu1 %v13583_v61 }
 0x10c   : > { %10791 = vmatpush3.bf16.msra.mxu0 %v12549_v38 }
 0x10f   : > { %2793 = vmatmul.mubr.bf16.vlgmr.msra.gmra.mxu0 %v13640_v0 }
 0x110   : > { %2800 = vmatprep.mubr.bf16.mxu0 %v13262_v63  ;;  %v13767_v63 = vld [vmem:[#allocation2 + $0x90] sm:$0xff]  }
 0x111   : > { %2358 = vmatmul.mubr.bf16.gmra.mxu1 %v13755_v46 }
 0x112   : > { %2365 = vmatprep.mubr.bf16.mxu1 %v13590_v26 }
 0x117   : > { %2801 = vmatmul.mubr.bf16.gmra.mxu0 %v13655_v7 }
 0x118   : > { %2808 = vmatprep.mubr.bf16.mxu0 %v13294_v12 }
 0x119   : > { %2366 = vmatmul.mubr.bf16.gmra.mxu1 %v13761_v14 }
 0x11a   : > { %2373 = vmatprep.mubr.bf16.mxu1 %v13604_v52 }
 0x11f   : > { %2809 = vmatmul.mubr.bf16.gmra.mxu0 %v13674_v2 }
 0x120   : > { %2816 = vmatprep.mubr.bf16.mxu0 %v13354_v62 }
 0x121   : > { %2374 = vmatmul.mubr.bf16.gmra.mxu1 %v13767_v63 }
 0x122   : > { %2381 = vmatprep.mubr.bf16.mxu1 %v13619_v34 }
 0x127   : > { %2817 = vmatmul.mubr.bf16.gmra.mxu0 %v13680_v30 }
 0x128   : > { %v10520_v0 = vpop.f32.mrf.mxu0  ;;  %2824 = vmatprep.mubr.bf16.mxu0 %v13393_v37 }
 0x129   : > { %v11826_v20 = vpop.f32.mrf.mxu1  ;;  %2382 = vmatmul.mubr.bf16.gmra.mxu1 %v13773_v3 }
 0x12a   : > { %v10521_v12 = vpop.f32.mrf.mxu0  ;;  %2389 = vmatprep.mubr.bf16.mxu1 %v13633_v10 }
 0x12b   : > { %v1974_v48 = vpop.f32.mrf.mxu1  ;;  %v10522_v25 = vadd.f32 %v10521_v12, %v10520_v0 }
 0x12c   : > { %v10523_v18 = vpop.f32.mrf.mxu0 }
 0x12d   : > { %v11827_v13 = vpop.f32.mrf.mxu1  ;;  %v13776_v62 = vadd.f32 %v10522_v25, %v1974_v48 }
 0x12e   : > { %v10524_v51 = vpop.f32.mrf.mxu0 }
 0x12f   : > { %v1977_v7 = vpop.f32.mrf.mxu1  ;;  %v10525_v31 = vadd.f32 %v10524_v51, %v10523_v18  ;;  %2825 = vmatmul.mubr.bf16.gmra.mxu0 %v13698_v29 }
 0x130   : > { %v10526_v2 = vpop.f32.mrf.mxu0  ;;  %2832 = vmatprep.mubr.bf16.mxu0 %v13448_v19 }
 0x131   : > { %v13779_v49 = vadd.f32 %v10525_v31, %v1977_v7  ;;  %2390 = vmatmul.mubr.bf16.gmra.mxu1 %v13783_v58 }
 0x132   : > { %v10527_v30 = vpop.f32.mrf.mxu0  ;;  %2397 = vmatprep.mubr.bf16.mxu1 %v13648_v42 }
 0x133   : > { %v11830_v8 = vpop.f32.mrf.mxu1  ;;  %v10528_v37 = vadd.f32 %v10527_v30, %v10526_v2 }
 0x134   : > { %v10529_v28 = vpop.f32.mrf.mxu0 }
 0x135   : > { %v1990_v47 = vpop.f32.mrf.mxu1  ;;  %v13786_v32 = vadd.f32 %v11826_v20, %v10528_v37 }
 0x136   : > { %v10530_v43 = vpop.f32.mrf.mxu0 }
 0x137   : > { %v10531_v17 = vadd.f32 %v10530_v43, %v10529_v28  ;;  %v11831_v36 = vpop.f32.mrf.mxu1  ;;  %2833 = vmatmul.mubr.bf16.gmra.mxu0 %v13716_v11 }
 0x138   : > { %v10532_v9 = vpop.f32.mrf.mxu0  ;;  %2840 = vmatprep.mubr.bf16.mxu0 %v13505_v39  ;;  %v12551_v39 = vld [vmem:[%s17968_s1 + $0x230] sm:$0xff]  }
 0x139   : > { %v13789_v59 = vadd.f32 %v11827_v13, %v10531_v17  ;;  %v1993_v44 = vpop.f32.mrf.mxu1  ;;  %2398 = vmatmul.mubr.bf16.gmra.mxu1 %v13793_v50 }
 0x13a   : > { %v10533_v29 = vpop.f32.mrf.mxu0  ;;  %11888 = vmatprep.mubr.bf16.mxu1 %v13380_v57 }
 0x13b   : > { %v10534_v19 = vadd.f32 %v10533_v29, %v10532_v9  ;;  %v12554_v29 = vld [vmem:[%s17968_s1 + $0x218] sm:$0xff]  }
 0x13c   : > { %v10535_v6 = vpop.f32.mrf.mxu0 }
 0x13d   : > { %v13796_v27 = vadd.f32 %v10534_v19, %v1990_v47 }
 0x13e   : > { %v10536_v38 = vpop.f32.mrf.mxu0 }
 0x13f   : > { %v10537_v20 = vadd.f32 %v10536_v38, %v10535_v6  ;;  %2841 = vmatmul.mubr.bf16.gmra.mxu0 %v13734_v5  ;;  %v12552_v5 = vld [vmem:[%s17968_s1 + $0x228] sm:$0xff]   ;;  %v12555_v38 = vld [vmem:[%s17968_s1 + $0x210] sm:$0xff]  }
 0x140   : > { %v11834_v0 = vpop.f32.mrf.mxu1  ;;  %v10538_v48 = vpop.f32.mrf.mxu0  ;;  %2848 = vmatprep.mubr.bf16.mxu0 %v13555_v4 }
 0x141   : > { %v13799_v12 = vadd.f32 %v10537_v20, %v1993_v44  ;;  %11889 = vmatmul.mubr.bf16.vlgmr.msra.gmra.mxu1 %v13413_v16 }
 0x142   : > { %v2006_v11 = vpop.f32.mrf.mxu1  ;;  %v10539_v25 = vpop.f32.mrf.mxu0  ;;  %11905 = vmatpush3.bf16.msra.mxu1 %v13664_v55  ;;  %11892 = vmatprep.mubr.bf16.mxu1 %v13442_v41  ;;  %v12553_v55 = vld [vmem:[%s17968_s1 + $0x220] sm:$0xff]  }
 0x143   : > { %v10540_v13 = vadd.f32 %v10539_v25, %v10538_v48  ;;  %11906 = vmatprep.subr.bf16.mxu1 %v12551_v39 }
 0x144   : > { %v11835_v18 = vpop.f32.mrf.mxu1  ;;  %v10541_v7 = vpop.f32.mrf.mxu0 }
 0x145   : > { %v13807_v51 = vadd.f32 %v11830_v8, %v10540_v13  ;;  %v12556_v13 = vld [vmem:[%s17968_s1 + $0x208] sm:$0xff]  }
 0x146   : > { %v2009_v31 = vpop.f32.mrf.mxu1  ;;  %v10542_v2 = vpop.f32.mrf.mxu0  ;;  %11907 = vmatpush3.bf16.msra.mxu1 %v12551_v39 }
 0x147   : > { %v10543_v30 = vadd.f32 %v10542_v2, %v10541_v7  ;;  %11908 = vmatprep.subr.bf16.mxu1 %v12552_v5  ;;  %2849 = vmatmul.mubr.bf16.gmra.mxu0 %v13749_v23 }
 0x148   : > { %v10544_v37 = vpop.f32.mrf.mxu0  ;;  %2856 = vmatprep.mubr.bf16.mxu0 %v13583_v61 }
 0x149   : > { %v13814_v47 = vpop.f32.mrf.mxu1  ;;  %v13816_v4 = vadd.f32 %v11831_v36, %v10543_v30  ;;  %11893 = vmatmul.mubr.bf16.gmra.mxu1 %v13469_v22 }
 0x14a   : > { %v10545_v8 = vpop.f32.mrf.mxu0  ;;  %11909 = vmatpush3.bf16.msra.mxu1 %v12552_v5  ;;  %11896 = vmatprep.mubr.bf16.mxu1 %v13490_v33 }
 0x14b   : > { %v10546_v28 = vadd.f32 %v10545_v8, %v10544_v37  ;;  %v2022_v17 = vpop.f32.mrf.mxu1  ;;  %11910 = vmatprep.subr.bf16.mxu1 %v12553_v55 }
 0x14c   : > { %v10547_v43 = vpop.f32.mrf.mxu0 }
 0x14d   : > { %v13824_v9 = vadd.f32 %v10546_v28, %v2006_v11  ;;  %v13830_v44 = vpop.f32.mrf.mxu1 }
 0x14e   : > { %v10548_v36 = vpop.f32.mrf.mxu0  ;;  %11911 = vmatpush3.bf16.msra.mxu1 %v12553_v55 }
 0x14f   : > { %v10549_v19 = vadd.f32 %v10548_v36, %v10547_v43  ;;  %11912 = vmatprep.subr.bf16.mxu1 %v12554_v29  ;;  %2857 = vmatmul.mubr.bf16.gmra.mxu0 %v13755_v46  ;;  %v2025_v11 = vpop.f32.mrf.mxu1 }
 0x150   : > { %v10550_v23 = vpop.f32.mrf.mxu0  ;;  %2864 = vmatprep.mubr.bf16.mxu0 %v13590_v26  ;;  %v12557_v26 = vld [vmem:[%s17968_s1 + $0x200] sm:$0xff]  }
 0x151   : > { %v13832_v61 = vadd.f32 %v10549_v19, %v2009_v31  ;;  %11897 = vmatmul.mubr.bf16.gmra.mxu1 %v13528_v24 }
 0x152   : > { %v10551_v6 = vpop.f32.mrf.mxu0  ;;  %11913 = vmatpush3.bf16.msra.mxu1 %v12554_v29  ;;  %11900 = vmatprep.mubr.bf16.mxu1 %v13539_v21 }
 0x153   : > { %v10552_v20 = vadd.f32 %v10551_v6, %v10550_v23  ;;  %11914 = vmatprep.subr.bf16.mxu1 %v12555_v38 }
 0x154   : > { %v10553_v48 = vpop.f32.mrf.mxu0 }
 0x155   : > { %v13840_v25 = vadd.f32 %v11834_v0, %v10552_v20 }
 0x156   : > { %v10554_v39 = vpop.f32.mrf.mxu0  ;;  %11915 = vmatpush3.bf16.msra.mxu1 %v12555_v38 }
 0x157   : > { %v10555_v7 = vadd.f32 %v10554_v39, %v10553_v48  ;;  %v13846_v46 = vpop.f32.mrf.mxu1  ;;  %11916 = vmatprep.subr.bf16.mxu1 %v12556_v13  ;;  %2865 = vmatmul.mubr.bf16.gmra.mxu0 %v13761_v14 }
 0x158   : > { %v10556_v2 = vpop.f32.mrf.mxu0  ;;  %2872 = vmatprep.mubr.bf16.mxu0 %v13604_v52 }
 0x159   : > { %v13848_v31 = vadd.f32 %v11835_v18, %v10555_v7  ;;  %v2038_v0 = vpop.f32.mrf.mxu1  ;;  %11901 = vmatmul.mubr.bf16.gmra.mxu1 %v13575_v53 }
 0x15a   : > { %v10557_v30 = vpop.f32.mrf.mxu0  ;;  %11917 = vmatpush3.bf16.msra.mxu1 %v12556_v13  ;;  %11920 = vmatprep.mubr.bf16.mxu1 %v13221_v60 }
 0x15b   : > { %v13856_v5 = vpop.f32.mrf.mxu1  ;;  %v10558_v18 = vadd.f32 %v10557_v30, %v10556_v2  ;;  %11918 = vmatprep.subr.bf16.mxu1 %v12557_v26 }
 0x15c   : > { %v10559_v37 = vpop.f32.mrf.mxu0 }
 0x15d   : > { %v2041_v8 = vpop.f32.mrf.mxu1  ;;  %v13859_v55 = vadd.f32 %v10558_v18, %v2022_v17 }
 0x15e   : > { %v10560_v28 = vpop.f32.mrf.mxu0  ;;  %11919 = vmatpush3.bf16.msra.mxu1 %v12557_v26 }
 0x15f   : > { %v10561_v14 = vadd.f32 %v10560_v28, %v10559_v37  ;;  %2873 = vmatmul.mubr.bf16.gmra.mxu0 %v13767_v63 }
 0x160   : > { %2880 = vmatprep.mubr.bf16.mxu0 %v13619_v34 }
 0x161   : > { %v13862_v52 = vpop.f32.mrf.mxu1  ;;  %v13864_v43 = vadd.f32 %v10561_v14, %v2025_v11  ;;  %11921 = vmatmul.mubr.bf16.vlgmr.msra.gmra.mxu1 %v13243_v15 }
 0x162   : > { %11924 = vmatprep.mubr.bf16.mxu1 %v13259_v1 }
 0x163   : > { %v13869_v60 = vpop.f32.mrf.mxu1 }
 0x165   : > { %v13871_v36 = vpop.f32.mrf.mxu1  ;;  %v10562_v17 = vpop.f32.mrf.mxu0 }
 0x167   : > { %v10563_v29 = vpop.f32.mrf.mxu0  ;;  %v13873_v19 = vpop.f32.mrf.mxu1  ;;  %2881 = vmatmul.mubr.bf16.gmra.mxu0 %v13773_v3  ;;  %v13889_v3 = vld [vmem:[#allocation2 + $0xcc] sm:$0xff]  }
 0x168   : > { %v10564_v63 = vadd.f32 %v10563_v29, %v10562_v17  ;;  %2888 = vmatprep.mubr.bf16.mxu0 %v13633_v10  ;;  %v13896_v10 = vld [vmem:[#allocation2 + $0xd4] ss:$0 sps:$4 sm:$0x11]  }
 0x169   : > { %v10565_v23 = vpop.f32.mrf.mxu0  ;;  %11925 = vmatmul.mubr.bf16.gmra.mxu1 %v13330_v54 }
 0x16a   : > { %v13879_v15 = vadd.f32 %v13814_v47, %v10564_v63  ;;  %11928 = vmatprep.mubr.bf16.mxu1 %v13341_v40  ;;  %v1438_v47 = vshll.u32 %v13889_v3, 16 }
 0x16b   : > { %v10566_v1 = vpop.f32.mrf.mxu0  ;;  %v13882_v34 = vpop.f32.mrf.mxu1 }
 0x16c   : > { %v10567_v6 = vadd.f32 %v10566_v1, %v10565_v23  ;;  %v1440_v7 = vrot.slane %v1438_v47, 1  ;;  %v12797_v1 = vld [vmem:[#allocation2 + $0xc0] sm:$0xff]  }
 0x16d   : > { %v13884_v38 = vpop.f32.mrf.mxu1 }
 0x16e   : > { %v13887_v20 = vadd.f32 %v13830_v44, %v10567_v6 }
 0x16f   : > { %v10568_v48 = vpop.f32.mrf.mxu0  ;;  %2889 = vmatmul.mubr.bf16.gmra.mxu0 %v13783_v58  ;;  %v13894_v54 = vpop.f32.mrf.mxu1 }
 0x170   : > { %2896 = vmatprep.mubr.bf16.mxu0 %v13648_v42  ;;  %v1436_v42 = vshrl.u32 %v13889_v3, 16 }
 0x171   : > { %11929 = vmatmul.mubr.bf16.gmra.mxu1 %v13374_v45  ;;  %v10569_v40 = vpop.f32.mrf.mxu0  ;;  %v13902_v13 = vpop.f32.mrf.mxu1  ;;  %v1443_v45 = vshll.u32 %v13896_v10, 16 }
 0x172   : > { %11932 = vmatprep.mubr.bf16.mxu1 %v13380_v57  ;;  %v10570_v44 = vadd.f32 %v10569_v40, %v10568_v48  ;;  %v1441_v18 = vor.u32 %v1440_v7, %v1436_v42 }
 0x173   : > { %v10571_v11 = vpop.f32.mrf.mxu0  ;;  %v1445_v37 = vrot.slane %v1443_v45, 1 }
 0x174   : > { %v13900_v39 = vadd.f32 %v10570_v44, %v2038_v0 }
 0x175   : > { %v10572_v58 = vpop.f32.mrf.mxu0 }
 0x176   : > { %v10573_v26 = vadd.f32 %v10572_v58, %v10571_v11 }
 0x177   : > { %v10574_v2 = vpop.f32.mrf.mxu0  ;;  %2897 = vmatmul.mubr.bf16.gmra.mxu0 %v13793_v50 }
 0x178   : > { %v13907_v30 = vadd.f32 %v10573_v26, %v2041_v8  ;;  %2904 = vmatprep.mubr.bf16.mxu0 %v13668_v56  ;;  %v13910_v57 = vpop.f32.mrf.mxu1  ;;  %v1446_v56 = vsel %vm1230_vm9, %v1441_v18, %v1445_v37 }
 0x179   : > { %11933 = vmatmul.mubr.bf16.gmra.mxu1 %v13413_v16  ;;  %v10575_v0 = vpop.f32.mrf.mxu0 }
 0x17a   : > { %11936 = vmatprep.mubr.bf16.mxu1 %v13442_v41  ;;  %v10576_v28 = vadd.f32 %v10575_v0, %v10574_v2  ;;  %v13914_v14 = vpop.f32.mrf.mxu1 }
 0x17b   : > { %v10577_v17 = vpop.f32.mrf.mxu0 }
 0x17c   : > { %v13917_v29 = vadd.f32 %v13846_v46, %v10576_v28  ;;  %v13919_v50 = vpop.f32.mrf.mxu1 }
 0x17d   : > { %v10578_v8 = vpop.f32.mrf.mxu0 }
 0x17e   : > { %v10579_v63 = vadd.f32 %v10578_v8, %v10577_v17  ;;  %v13922_v23 = vpop.f32.mrf.mxu1 }
 0x17f   : > { %v10580_v16 = vpop.f32.mrf.mxu0  ;;  %2905 = vmatmul.mubr.bf16.gmra.mxu0 %v12797_v1 }
 0x180   : > { %v13925_v41 = vadd.f32 %v13856_v5, %v10579_v63  ;;  %2912 = vmatprep.mubr.bf16.mxu0 %v1446_v56  ;;  %v10656_v6 = vpop.f32.mrf.mxu1 }
 0x181   : > { %11937 = vmatmul.mubr.bf16.gmra.mxu1 %v13469_v22  ;;  %v10581_v46 = vpop.f32.mrf.mxu0 }
 0x182   : > { %11940 = vmatprep.mubr.bf16.mxu1 %v13490_v33  ;;  %v10582_v48 = vadd.f32 %v10581_v46, %v10580_v16  ;;  %v10657_v40 = vpop.f32.mrf.mxu1  ;;  %v1518_v46 = vrot.slane %v13896_v10, 1 }
 0x183   : > { %v10583_v47 = vpop.f32.mrf.mxu0  ;;  %v10658_v44 = vadd.f32 %v10657_v40, %v10656_v6 }
 0x184   : > { %v13930_v11 = vadd.f32 %v10582_v48, %v13869_v60  ;;  %v10659_v58 = vpop.f32.mrf.mxu1 }
 0x185   : > { %v10584_v42 = vpop.f32.mrf.mxu0  ;;  %v13933_v5 = vadd.f32 %v10658_v44, %v13776_v62 }
 0x186   : > { %v10585_v7 = vadd.f32 %v10584_v42, %v10583_v47  ;;  %v10660_v45 = vpop.f32.mrf.mxu1 }
 0x187   : > { %v10586_v26 = vpop.f32.mrf.mxu0  ;;  %2913 = vmatmul.mubr.bf16.gmra.mxu0 %v13889_v3  ;;  %v10661_v22 = vadd.f32 %v10660_v45, %v10659_v58 }
 0x188   : > { %v13937_v33 = vadd.f32 %v10585_v7, %v13873_v19  ;;  %v10662_v2 = vpop.f32.mrf.mxu1 }
 0x189   : > { %11941 = vmatmul.mubr.bf16.gmra.mxu1 %v13528_v24  ;;  %v10587_v0 = vpop.f32.mrf.mxu0  ;;  %v13942_v18 = vadd.f32 %v10661_v22, %v13779_v49 }
 0x18a   : > { %11944 = vmatprep.mubr.bf16.mxu1 %v13539_v21  ;;  %v10588_v60 = vadd.f32 %v10587_v0, %v10586_v26  ;;  %v10663_v62 = vpop.f32.mrf.mxu1 }
 0x18b   : > { %v10589_v37 = vpop.f32.mrf.mxu0  ;;  %v10664_v28 = vadd.f32 %v10663_v62, %v10662_v2 }
 0x18c   : > { %v13945_v17 = vadd.f32 %v13862_v52, %v10588_v60  ;;  %v10665_v8 = vpop.f32.mrf.mxu1  ;;  %v1517_v52 = vrot.slane %v13889_v3, 1 }
 0x18d   : > { %v10590_v56 = vpop.f32.mrf.mxu0  ;;  %v13948_v63 = vadd.f32 %v10664_v28, %v13786_v32 }
 0x18e   : > { %v10591_v19 = vadd.f32 %v10590_v56, %v10589_v37  ;;  %v10666_v24 = vpop.f32.mrf.mxu1 }
 0x18f   : > { %v10592_v16 = vpop.f32.mrf.mxu0  ;;  %v10667_v1 = vadd.f32 %v10666_v24, %v10665_v8 }
 0x190   : > { %v13951_v21 = vadd.f32 %v13871_v36, %v10591_v19  ;;  %v10668_v49 = vpop.f32.mrf.mxu1 }
 0x191   : > { %11945 = vmatmul.mubr.bf16.gmra.mxu1 %v13575_v53  ;;  %v10593_v6 = vpop.f32.mrf.mxu0  ;;  %v13958_v32 = vadd.f32 %v10667_v1, %v13789_v59  ;;  %v1519_v53 = vsel %vm1465_vm10, %v1517_v52, %v1518_v46 }
 0x192   : > { %11948 = vmatprep.mubr.bf16.mxu1 %v13596_v35  ;;  %v10594_v48 = vadd.f32 %v10593_v6, %v10592_v16  ;;  %v10669_v40 = vpop.f32.mrf.mxu1 }
 0x193   : > { %v10595_v47 = vpop.f32.mrf.mxu0  ;;  %v10670_v44 = vadd.f32 %v10669_v40, %v10668_v49 }
 0x194   : > { %v13961_v36 = vadd.f32 %v10594_v48, %v13884_v38  ;;  %v10671_v58 = vpop.f32.mrf.mxu1 }
 0x195   : > { %v10596_v42 = vpop.f32.mrf.mxu0  ;;  %v13965_v35 = vadd.f32 %v10670_v44, %v13796_v27 }
 0x196   : > { %v10597_v7 = vadd.f32 %v10596_v42, %v10595_v47  ;;  %v10672_v3 = vpop.f32.mrf.mxu1 }
 0x197   : > { %v10598_v10 = vpop.f32.mrf.mxu0  ;;  %v10673_v45 = vadd.f32 %v10672_v3, %v10671_v58 }
 0x198   : > { %v13968_v59 = vadd.f32 %v10597_v7, %v13902_v13  ;;  %v10674_v26 = vpop.f32.mrf.mxu1 }
 0x199   : > { %11949 = vmatmul.mubr.bf16.gmra.mxu1 %v1519_v53  ;;  %v10599_v22 = vpop.f32.mrf.mxu0  ;;  %v13971_v38 = vadd.f32 %v10673_v45, %v13799_v12 }
 0x19a   : > { %v10600_v2 = vadd.f32 %v10599_v22, %v10598_v10  ;;  %v10675_v0 = vpop.f32.mrf.mxu1 }
 0x19b   : > { %v10601_v60 = vpop.f32.mrf.mxu0  ;;  %v10676_v62 = vadd.f32 %v10675_v0, %v10674_v26 }
 0x19c   : > { %v13974_v37 = vadd.f32 %v13882_v34, %v10600_v2  ;;  %v10677_v27 = vpop.f32.mrf.mxu1 }
 0x19d   : > { %v10602_v28 = vpop.f32.mrf.mxu0  ;;  %v2304_v56 = vadd.f32 %v10676_v62, %v13807_v51 }
 0x19e   : > { %v10603_v8 = vadd.f32 %v10602_v28, %v10601_v60  ;;  %v10678_v13 = vpop.f32.mrf.mxu1 }
 0x19f   : > { %v10604_v19 = vpop.f32.mrf.mxu0  ;;  %v10679_v24 = vadd.f32 %v10678_v13, %v10677_v27 }
 0x1a0   : > { %v13978_v16 = vadd.f32 %v13894_v54, %v10603_v8  ;;  %v10680_v1 = vpop.f32.mrf.mxu1 }
 0x1a1   : > { %v10605_v12 = vpop.f32.mrf.mxu0  ;;  %v2307_v6 = vadd.f32 %v10679_v24, %v13816_v4 }
 0x1a2   : > { %v10606_v49 = vadd.f32 %v10605_v12, %v10604_v19  ;;  %v10681_v52 = vpop.f32.mrf.mxu1 }
 0x1a3   : > { %v10607_v46 = vpop.f32.mrf.mxu0  ;;  %v10682_v34 = vadd.f32 %v10681_v52, %v10680_v1 }
 0x1a4   : > { %v13982_v48 = vadd.f32 %v10606_v49, %v13914_v14  ;;  %v10683_v40 = vpop.f32.mrf.mxu1 }
 0x1a5   : > { %v10608_v47 = vpop.f32.mrf.mxu0  ;;  %v2312_v44 = vadd.f32 %v10682_v34, %v13824_v9 }
 0x1a6   : > { %v10609_v51 = vadd.f32 %v10608_v47, %v10607_v46  ;;  %v10684_v58 = vpop.f32.mrf.mxu1 }
 0x1a7   : > { %v10610_v42 = vpop.f32.mrf.mxu0  ;;  %v10685_v54 = vadd.f32 %v10684_v58, %v10683_v40 }
 0x1a8   : > { %v13986_v53 = vadd.f32 %v10609_v51, %v13922_v23  ;;  %v10686_v7 = vpop.f32.mrf.mxu1 }
 0x1a9   : > { %v10611_v3 = vpop.f32.mrf.mxu0  ;;  %v13989_v10 = vadd.f32 %v10685_v54, %v13832_v61 }
 0x1aa   : > { %v10612_v4 = vadd.f32 %v10611_v3, %v10610_v42  ;;  %v10687_v45 = vpop.f32.mrf.mxu1 }
 0x1ab   : > { %v10613_v14 = vpop.f32.mrf.mxu0  ;;  %v10688_v26 = vadd.f32 %v10687_v45, %v10686_v7 }
 0x1ac   : > { %v13992_v22 = vadd.f32 %v13910_v57, %v10612_v4  ;;  %v10689_v2 = vpop.f32.mrf.mxu1 }
 0x1ad   : > { %v10614_v9 = vpop.f32.mrf.mxu0  ;;  %v2320_v60 = vadd.f32 %v10688_v26, %v13840_v25 }
 0x1ae   : > { %v10615_v0 = vadd.f32 %v10614_v9, %v10613_v14  ;;  %v10690_v62 = vpop.f32.mrf.mxu1 }
 0x1af   : > { %v11874_v23 = vpop.f32.mrf.mxu0  ;;  %v10691_v27 = vadd.f32 %v10690_v62, %v10689_v2 }
 0x1b0   : > { %v13996_v28 = vadd.f32 %v13919_v50, %v10615_v0  ;;  %v13999_v61 = vadd.f32 %v11874_v23, %v13948_v63  ;;  %v18002_v23 = vmov 0.0  }
 0x1b1   : > { %v10692_v8 = vpop.f32.mrf.mxu1  ;;  %v2440_v13 = vpop.f32.mrf.mxu0  ;;  %v2323_v57 = vadd.f32 %v10691_v27, %v13848_v31  ;;  %11952 = vmatprep.subr.mxu1 %v18002_v23 }
 0x1b2   : > { %v14002_v19 = vadd.f32 %v2440_v13, %v13933_v5  ;;  %v18055_v13 = vld [vmem:[#allocation21_spill] sm:$0xff] }
 0x1b3   : > { %v10693_v24 = vpop.f32.mrf.mxu1  ;;  %v11875_v1 = vpop.f32.mrf.mxu0 }
 0x1b4   : > { %v10694_v12 = vadd.f32 %v10693_v24, %v10692_v8  ;;  %v14006_v25 = vadd.f32 %v11875_v1, %v13958_v32  ;;  %v18054_v8 = vld [vmem:[#allocation22_spill] sm:$0xff] }
 0x1b5   : > { %v10695_v49 = vpop.f32.mrf.mxu1  ;;  %v14008_v52 = vpop.f32.mrf.mxu0  ;;  %11953 = vmatpush3.msra.mxu1 %v18054_v8 }
 0x1b6   : > { %v2328_v50 = vadd.f32 %v10694_v12, %v13859_v55  ;;  %11954 = vmatprep.subr.mxu1 %v18002_v23 }
 0x1b7   : > { %v10696_v63 = vpop.f32.mrf.mxu1  ;;  %v11878_v46 = vpop.f32.mrf.mxu0  ;;  %11955 = vmatpush3.msra.mxu1 %v18055_v13 }
 0x1b8   : > { %v10697_v34 = vadd.f32 %v10696_v63, %v10695_v49  ;;  %v14011_v40 = vadd.f32 %v11878_v46, %v2304_v56  ;;  %11956 = vmatprep.subr.mxu1 %v18002_v23  ;;  %v18057_v49 = vld [vmem:[#allocation20_spill] sm:$0xff] }
 0x1b9   : > { %v10698_v5 = vpop.f32.mrf.mxu1  ;;  %v2456_v47 = vpop.f32.mrf.mxu0  ;;  %11957 = vmatpush3.msra.mxu1 %v18057_v49 }
 0x1ba   : > { %v14014_v31 = vadd.f32 %v2456_v47, %v13965_v35  ;;  %v14017_v51 = vadd.f32 %v10697_v34, %v13864_v43  ;;  %11958 = vmatprep.subr.mxu1 %v18002_v23 }
 0x1bb   : > { %v10699_v32 = vpop.f32.mrf.mxu1  ;;  %v11879_v58 = vpop.f32.mrf.mxu0 }
 0x1bc   : > { %18053 = vst [vmem:[#allocation28_spill] sm:$0xff] %v14017_v51  ;;  %v10700_v42 = vadd.f32 %v10699_v32, %v10698_v5  ;;  %v14019_v54 = vadd.f32 %v11879_v58, %v2307_v6  ;;  %v18060_v5 = vld [vmem:[#allocation19_spill] sm:$0xff] }
 0x1bd   : > { %v10701_v7 = vpop.f32.mrf.mxu1  ;;  %v14021_v55 = vpop.f32.mrf.mxu0  ;;  %11959 = vmatpush3.msra.mxu1 %v18060_v5 }
 0x1be   : > { %v2336_v3 = vadd.f32 %v10700_v42, %v13879_v15  ;;  %11960 = vmatprep.subr.mxu1 %v18002_v23 }
 0x1bf   : > { %v10702_v56 = vpop.f32.mrf.mxu1  ;;  %v11882_v4 = vpop.f32.mrf.mxu0 }
 0x1c0   : > { %v10703_v45 = vadd.f32 %v10702_v56, %v10701_v7  ;;  %v14024_v14 = vadd.f32 %v11882_v4, %v2320_v60  ;;  %v18063_v7 = vld [vmem:[#allocation18_spill] sm:$0xff]  ;;  %v18064_v56 = vld [vmem:[#allocation17_spill] sm:$0xff] }
 0x1c1   : > { %v10704_v35 = vpop.f32.mrf.mxu1  ;;  %v2472_v26 = vpop.f32.mrf.mxu0  ;;  %11961 = vmatpush3.msra.mxu1 %v18063_v7 }
 0x1c2   : > { %v14026_v2 = vadd.f32 %v2472_v26, %v2312_v44  ;;  %v2339_v43 = vadd.f32 %v10703_v45, %v13887_v20  ;;  %11962 = vmatprep.subr.mxu1 %v18002_v23  ;;  %v18065_v26 = vld [vmem:[#allocation16_spill] sm:$0xff] }
 0x1c3   : > { %v10705_v9 = vpop.f32.mrf.mxu1  ;;  %v11883_v0 = vpop.f32.mrf.mxu0  ;;  %11963 = vmatpush3.msra.mxu1 %v18064_v56 }
 0x1c4   : > { %v10706_v6 = vadd.f32 %v10705_v9, %v10704_v35  ;;  %v14029_v62 = vadd.f32 %v11883_v0, %v2323_v57  ;;  %11964 = vmatprep.subr.mxu1 %v18002_v23 }
 0x1c5   : > { %v10707_v15 = vpop.f32.mrf.mxu1  ;;  %v14032_v27 = vpop.f32.mrf.mxu0  ;;  %11965 = vmatpush3.msra.mxu1 %v18065_v26 }
 0x1c6   : > { %v14036_v60 = vadd.f32 %v10706_v6, %v13900_v39  ;;  %11966 = vmatprep.subr.mxu1 %v18002_v23  ;;  %v18066_v6 = vld [vmem:[#allocation15_spill] sm:$0xff] }
 0x1c7   : > { %v10708_v44 = vpop.f32.mrf.mxu1  ;;  %v11886_v20 = vpop.f32.mrf.mxu0  ;;  %11967 = vmatpush3.msra.mxu1 %v18066_v6 }
 0x1c8   : > { %v10709_v24 = vadd.f32 %v10708_v44, %v10707_v15  ;;  %v14040_v57 = vadd.f32 %v11886_v20, %v2336_v3  ;;  %11968 = vmatprep.subr.mxu1 %v18002_v23 }
 0x1c9   : > { %v10710_v1 = vpop.f32.mrf.mxu1  ;;  %v2488_v12 = vpop.f32.mrf.mxu0 }
 0x1ca   : > { %18056 = vst [vmem:[#allocation29_spill] sm:$0xff] %v14040_v57  ;;  %v14044_v63 = vadd.f32 %v2488_v12, %v2328_v50  ;;  %v14047_v39 = vadd.f32 %v10709_v24, %v13907_v30  ;;  %v18067_v24 = vld [vmem:[#allocation14_spill] sm:$0xff] }
 0x1cb   : > { %v10711_v46 = vpop.f32.mrf.mxu1  ;;  %v11887_v34 = vpop.f32.mrf.mxu0  ;;  %11969 = vmatpush3.msra.mxu1 %v18067_v24  ;;  %v18075_v24 = vld [vmem:[#allocation7_spill] sm:$0xff] }
 0x1cc   : > { %18058 = vst [vmem:[#allocation30_spill] sm:$0xff] %v14044_v63  ;;  %18059 = vst [vmem:[#allocation31_spill] sm:$0xff] %v14047_v39  ;;  %v10712_v47 = vadd.f32 %v10711_v46, %v10710_v1  ;;  %v14051_v32 = vadd.f32 %v11887_v34, %v2339_v43  ;;  %11970 = vmatprep.subr.mxu1 %v18002_v23  ;;  %v18068_v46 = vld [vmem:[#allocation13_spill] sm:$0xff] }
 0x1cd   : > { %v10713_v58 = vpop.f32.mrf.mxu1  ;;  %v14054_v42 = vpop.f32.mrf.mxu0  ;;  %11971 = vmatpush3.msra.mxu1 %v18068_v46 }
 0x1ce   : > { %18061 = vst [vmem:[#allocation32_spill] sm:$0xff] %v14051_v32  ;;  %18062 = vst [vmem:[#allocation33_spill] sm:$0xff] %v14054_v42  ;;  %v14058_v50 = vadd.f32 %v10712_v47, %v13917_v29  ;;  %11972 = vmatprep.subr.mxu1 %v18002_v23 }
 0x1cf   : > { %v10714_v30 = vpop.f32.mrf.mxu1  ;;  %v10792_v3 = vpop.f32.mrf.mxu0 }
 0x1d0   : > { %v10715_v4 = vadd.f32 %v10714_v30, %v10713_v58  ;;  %v18069_v30 = vld [vmem:[#allocation12_spill] sm:$0xff] }
 0x1d1   : > { %v10716_v45 = vpop.f32.mrf.mxu1  ;;  %v10793_v35 = vpop.f32.mrf.mxu0  ;;  %11973 = vmatpush3.msra.mxu1 %v18069_v30  ;;  %v18073_v30 = vld [vmem:[#allocation9_spill] sm:$0xff] }
 0x1d2   : > { %v14064_v43 = vadd.f32 %v10793_v35, %v10792_v3  ;;  %v14067_v9 = vadd.f32 %v10715_v4, %v13925_v41  ;;  %11974 = vmatprep.subr.mxu1 %v18002_v23 }
 0x1d3   : > { %v10717_v29 = vpop.f32.mrf.mxu1  ;;  %v14070_v0 = vpop.f32.mrf.mxu0 }
 0x1d4   : > { %v10718_v15 = vadd.f32 %v10717_v29, %v10716_v45  ;;  %v18071_v45 = vld [vmem:[#allocation11_spill] sm:$0xff] }
 0x1d5   : > { %v10719_v44 = vpop.f32.mrf.mxu1  ;;  %v14074_v20 = vpop.f32.mrf.mxu0  ;;  %11975 = vmatpush3.msra.mxu1 %v18071_v45  ;;  %v18074_v45 = vld [vmem:[#allocation8_spill] sm:$0xff] }
 0x1d6   : > { %v14078_v1 = vadd.f32 %v10718_v15, %v13930_v11  ;;  %11976 = vmatprep.subr.mxu1 %v18002_v23 }
 0x1d7   : > { %v10720_v41 = vpop.f32.mrf.mxu1  ;;  %v14081_v12 = vpop.f32.mrf.mxu0 }
 0x1d8   : > { %v10721_v34 = vadd.f32 %v10720_v41, %v10719_v44  ;;  %v18072_v44 = vld [vmem:[#allocation10_spill] sm:$0xff] }
 0x1d9   : > { %v10722_v47 = vpop.f32.mrf.mxu1  ;;  %v14085_v58 = vpop.f32.mrf.mxu0  ;;  %11977 = vmatpush3.msra.mxu1 %v18072_v44 }
 0x1da   : > { %v14089_v3 = vadd.f32 %v10721_v34, %v13937_v33  ;;  %11978 = vmatprep.subr.mxu1 %v18002_v23 }
 0x1db   : > { %v10723_v11 = vpop.f32.mrf.mxu1  ;;  %v14092_v4 = vpop.f32.mrf.mxu0  ;;  %11979 = vmatpush3.msra.mxu1 %v18073_v30 }
 0x1dc   : > { %18070 = vst [vmem:[#allocation34_spill] sm:$0xff] %v14089_v3  ;;  %v10724_v35 = vadd.f32 %v10723_v11, %v10722_v47  ;;  %11980 = vmatprep.subr.mxu1 %v18002_v23 }
 0x1dd   : > { %v10725_v29 = vpop.f32.mrf.mxu1  ;;  %v14096_v15 = vpop.f32.mrf.mxu0  ;;  %11981 = vmatpush3.msra.mxu1 %v18074_v45 }
 0x1de   : > { %v14100_v41 = vadd.f32 %v10724_v35, %v13945_v17  ;;  %11982 = vmatprep.subr.mxu1 %v18002_v23 }
 0x1df   : > { %v10726_v33 = vpop.f32.mrf.mxu1  ;;  %v14103_v34 = vpop.f32.mrf.mxu0  ;;  %11983 = vmatpush3.msra.mxu1 %v18075_v24 }
 0x1e0   : > { %v10727_v46 = vadd.f32 %v10726_v33, %v10725_v29  ;;  %11987 = vmatprep.subr.mxu1 %v18002_v23 }
 0x1e1   : > { %v10728_v47 = vpop.f32.mrf.mxu1  ;;  %v14107_v11 = vpop.f32.mrf.mxu0 }
 0x1e2   : > { %v14111_v44 = vadd.f32 %v10727_v46, %v13951_v21 }
 0x1e3   : > { %v10729_v17 = vpop.f32.mrf.mxu1  ;;  %v14114_v35 = vpop.f32.mrf.mxu0 }
 0x1e4   : > { %v10730_v6 = vadd.f32 %v10729_v17, %v10728_v47 }
 0x1e5   : > { %v10731_v29 = vpop.f32.mrf.mxu1  ;;  %v14118_v33 = vpop.f32.mrf.mxu0 }
 0x1e6   : > { %v14121_v30 = vadd.f32 %v10730_v6, %v13961_v36 }
 0x1e7   : > { %v10732_v45 = vpop.f32.mrf.mxu1  ;;  %v14123_v26 = vpop.f32.mrf.mxu0 }
 0x1e8   : > { %v10733_v21 = vadd.f32 %v10732_v45, %v10731_v29 }
 0x1e9   : > { %v10734_v46 = vpop.f32.mrf.mxu1  ;;  %v14125_v56 = vpop.f32.mrf.mxu0 }
 0x1ea   : > { %v14128_v7 = vadd.f32 %v10733_v21, %v13968_v59 }
 0x1eb   : > { %v10735_v24 = vpop.f32.mrf.mxu1  ;;  %v14130_v47 = vpop.f32.mrf.mxu0 }
 0x1ec   : > { %18076 = vst [vmem:[#allocation35_spill] sm:$0xff] %v14128_v7  ;;  %v10736_v17 = vadd.f32 %v10735_v24, %v10734_v46  ;;  %v18077_v24 = vmov 0.0  }
 0x1ed   : > { %v10737_v23 = vpop.f32.mrf.mxu1  ;;  %v14132_v5 = vpop.f32.mrf.mxu0  ;;  %11984 = vmatprep.mubr.msk.f32.mxu1 %vm12810_vm11, %v18077_v24 }
 0x1ee   : > { %v2384_v36 = vadd.f32 %v10736_v17, %v13974_v37 }
 0x1ef   : > { %v10738_v6 = vpop.f32.mrf.mxu1  ;;  %v14135_v49 = vpop.f32.mrf.mxu0 }
 0x1f0   : > { %v10739_v13 = vadd.f32 %v10738_v6, %v10737_v23 }
 0x1f1   : > { %v10740_v45 = vpop.f32.mrf.mxu1  ;;  %v14137_v29 = vpop.f32.mrf.mxu0 }
 0x1f2   : > { %v2387_v8 = vadd.f32 %v10739_v13, %v13978_v16 }
 0x1f3   : > { %v10741_v59 = vpop.f32.mrf.mxu1  ;;  %v14140_v21 = vpop.f32.mrf.mxu0 }
 0x1f4   : > { %v10742_v7 = vadd.f32 %v10741_v59, %v10740_v45 }
 0x1f5   : > { %v10743_v46 = vpop.f32.mrf.mxu1  ;;  %v14144_v3 = vpop.f32.mrf.mxu0 }
 0x1f6   : > { %v2392_v37 = vadd.f32 %v10742_v7, %v13982_v48 }
 0x1f7   : > { %v10744_v17 = vpop.f32.mrf.mxu1  ;;  %v14147_v23 = vpop.f32.mrf.mxu0 }
 0x1f8   : > { %v10745_v6 = vadd.f32 %v10744_v17, %v10743_v46 }
 0x1f9   : > { %v10746_v39 = vpop.f32.mrf.mxu1  ;;  %v14149_v32 = vpop.f32.mrf.mxu0 }
 0x1fa   : > { %v14152_v16 = vadd.f32 %v10745_v6, %v13986_v53 }
 0x1fb   : > { %v10747_v13 = vpop.f32.mrf.mxu1  ;;  %v14154_v45 = vpop.f32.mrf.mxu0 }
 0x1fc   : > { %18078 = vst [vmem:[#allocation36_spill] sm:$0xff] %v14152_v16  ;;  %v10748_v59 = vadd.f32 %v10747_v13, %v10746_v39 }
 0x1fd   : > { %v10749_v24 = vpop.f32.mrf.mxu1  ;;  %v14156_v57 = vpop.f32.mrf.mxu0 }
 0x1fe   : > { %v2400_v42 = vadd.f32 %v10748_v59, %v13992_v22 }
 0x1ff   : > { %v10750_v48 = vpop.f32.mrf.mxu1  ;;  %v14159_v7 = vpop.f32.mrf.mxu0 }
 0x200   : > { %v10751_v51 = vadd.f32 %v10750_v48, %v10749_v24 }
 0x201   : > { %v11890_v46 = vpop.f32.mrf.mxu1  ;;  %v14161_v17 = vpop.f32.mrf.mxu0 }
 0x202   : > { %v14164_v63 = vadd.f32 %v11890_v46, %v14058_v50  ;;  %v2403_v53 = vadd.f32 %v10751_v51, %v13996_v28 }
 0x203   : > { %v2504_v6 = vpop.f32.mrf.mxu1  ;;  %v14167_v16 = vpop.f32.mrf.mxu0 }
 0x204   : > { %18079 = vst [vmem:[#allocation37_spill] sm:$0xff] %v14164_v63  ;;  %v14170_v39 = vadd.f32 %v2504_v6, %v14036_v60 }
 0x205   : > { %v11891_v13 = vpop.f32.mrf.mxu1  ;;  %v14172_v22 = vpop.f32.mrf.mxu0 }
 0x206   : > { %18080 = vst [vmem:[#allocation38_spill] sm:$0xff] %v14170_v39  ;;  %18081 = vst [vmem:[#allocation39_spill] sm:$0xff] %v14172_v22  ;;  %v14175_v59 = vadd.f32 %v11891_v13, %v14067_v9 }
 0x207   : > { %v14177_v24 = vpop.f32.mrf.mxu1  ;;  %v14179_v48 = vpop.f32.mrf.mxu0 }
 0x208   : > { %18082 = vst [vmem:[#allocation40_spill] sm:$0xff] %v14175_v59  ;;  %18083 = vst [vmem:[#allocation41_spill] sm:$0xff] %v14177_v24 }
 0x209   : > { %v11894_v50 = vpop.f32.mrf.mxu1  ;;  %v14181_v46 = vpop.f32.mrf.mxu0 }
 0x20a   : > { %v14184_v28 = vadd.f32 %v11894_v50, %v14100_v41 }
 0x20b   : > { %v2520_v51 = vpop.f32.mrf.mxu1  ;;  %v14186_v63 = vpop.f32.mrf.mxu0 }
 0x20c   : > { %18084 = vst [vmem:[#allocation42_spill] sm:$0xff] %v14184_v28  ;;  %v14189_v60 = vadd.f32 %v2520_v51, %v14078_v1 }
 0x20d   : > { %v11895_v6 = vpop.f32.mrf.mxu1  ;;  %v14191_v39 = vpop.f32.mrf.mxu0 }
 0x20e   : > { %18085 = vst [vmem:[#allocation43_spill] sm:$0xff] %v14189_v60  ;;  %v14194_v9 = vadd.f32 %v11895_v6, %v14111_v44 }
 0x20f   : > { %v14196_v13 = vpop.f32.mrf.mxu1  ;;  %v14198_v59 = vpop.f32.mrf.mxu0 }
 0x210   : > { %18086 = vst [vmem:[#allocation44_spill] sm:$0xff] %v14194_v9  ;;  %18087 = vst [vmem:[#allocation45_spill] sm:$0xff] %v14196_v13 }
 0x211   : > { %18088 = vst [vmem:[#allocation46_spill] sm:$0xff] %v14198_v59  ;;  %v11898_v24 = vpop.f32.mrf.mxu1  ;;  %v14200_v22 = vpop.f32.mrf.mxu0 }
 0x212   : > { %v14202_v41 = vadd.f32 %v11898_v24, %v2384_v36 }
 0x213   : > { %v2536_v50 = vpop.f32.mrf.mxu1  ;;  %v14204_v28 = vpop.f32.mrf.mxu0 }
 0x214   : > { %18089 = vst [vmem:[#allocation47_spill] sm:$0xff] %v14202_v41  ;;  %18090 = vst [vmem:[#allocation48_spill] sm:$0xff] %v14204_v28  ;;  %v14207_v1 = vadd.f32 %v2536_v50, %v14121_v30 }
 0x215   : > { %v11899_v51 = vpop.f32.mrf.mxu1  ;;  %v14209_v60 = vpop.f32.mrf.mxu0 }
 0x216   : > { %18091 = vst [vmem:[#allocation49_spill] sm:$0xff] %v14207_v1  ;;  %v14211_v44 = vadd.f32 %v11899_v51, %v2387_v8 }
 0x217   : > { %v14213_v6 = vpop.f32.mrf.mxu1  ;;  %v14215_v9 = vpop.f32.mrf.mxu0 }
 0x218   : > { %18092 = vst [vmem:[#allocation50_spill] sm:$0xff] %v14211_v44  ;;  %18093 = vst [vmem:[#allocation51_spill] sm:$0xff] %v14213_v6 }
 0x219   : > { %v11902_v13 = vpop.f32.mrf.mxu1  ;;  %v14217_v59 = vpop.f32.mrf.mxu0 }
 0x21a   : > { %v14219_v36 = vadd.f32 %v11902_v13, %v2400_v42  ;;  %v10800_v42 = vadd.f32 %v14085_v58, %v14081_v12  ;;  %v2444_v58 = vadd.f32 %v14008_v52, %v13942_v18 }
 0x21b   : > { %v2552_v24 = vpop.f32.mrf.mxu1  ;;  %v14221_v41 = vpop.f32.mrf.mxu0 }
 0x21c   : > { %18094 = vst [vmem:[#allocation52_spill] sm:$0xff] %v14219_v36  ;;  %v14223_v28 = vadd.f32 %v2552_v24, %v2392_v37  ;;  %v10803_v37 = vadd.f32 %v14096_v15, %v14092_v4 }
 0x21d   : > { %v11903_v30 = vpop.f32.mrf.mxu1  ;;  %v14225_v50 = vpop.f32.mrf.mxu0 }
 0x21e   : > { %18095 = vst [vmem:[#allocation53_spill] sm:$0xff] %v14223_v28  ;;  %v14227_v1 = vadd.f32 %v11903_v30, %v2403_v53 }
 0x21f   : > { %v14229_v8 = vpop.f32.mrf.mxu1  ;;  %v14231_v51 = vpop.f32.mrf.mxu0 }
 0x220   : > { %18096 = vst [vmem:[#allocation54_spill] sm:$0xff] %v14227_v1  ;;  %18097 = vst [vmem:[#allocation55_spill] sm:$0xff] %v14229_v8  ;;  %v10797_v8 = vadd.f32 %v14074_v20, %v14070_v0  ;;  %v10806_v20 = vadd.f32 %v14107_v11, %v14103_v34 }
 0x221   : > { %18098 = vst [vmem:[#allocation56_spill] sm:$0xff] %v14231_v51  ;;  %v11922_v44 = vpop.f32.mrf.mxu1  ;;  %v14233_v6 = vpop.f32.mrf.mxu0 }
 0x222   : > { %18099 = vst [vmem:[#allocation57_spill] sm:$0xff] %v14233_v6  ;;  %v2964_v24 = vadd.f32 %v11922_v44, %v10800_v42 }
 0x223   : > { %v2955_v13 = vpop.f32.mrf.mxu1  ;;  %v14237_v36 = vpop.f32.mrf.mxu0 }
 0x224   : > { %v2956_v53 = vadd.f32 %v14064_v43, %v2955_v13  ;;  %v3084_v4 = vadd.f32 %v2964_v24, %v13999_v61  ;;  %v14255_v43 = vld [vmem:[%s17969_s2] ss:$0 sm:$0xff]  ;;  %v10812_v61 = vadd.f32 %v14125_v56, %v14123_v26 }
 0x225   : > { %v11923_v30 = vpop.f32.mrf.mxu1  ;;  %v14242_v1 = vpop.f32.mrf.mxu0 }
 0x226   : > { %v3082_v28 = vadd.f32 %v2956_v53, %v14002_v19  ;;  %v2967_v6 = vadd.f32 %v11923_v30, %v10803_v37  ;;  %v10815_v37 = vadd.f32 %v14132_v5, %v14130_v47  ;;  %v10809_v5 = vadd.f32 %v14118_v33, %v14114_v35 }
 0x227   : > { %v2958_v51 = vpop.f32.mrf.mxu1  ;;  %v14247_v12 = vpop.f32.mrf.mxu0 }
 0x228   : > { %v2959_v15 = vadd.f32 %v10797_v8, %v2958_v51  ;;  %v14258_v44 = vadd.f32 %v14255_v43, %v3082_v28  ;;  %v3085_v42 = vadd.f32 %v2967_v6, %v14006_v25  ;;  %v14270_v8 = vadd.f32 %v14255_v43, %v3084_v4 }
 0x229   : > { %v11926_v0 = vpop.f32.mrf.mxu1  ;;  %v14260_v19 = vpop.f32.mrf.mxu0 }
 0x22a   : > { %v3083_v18 = vadd.f32 %v2959_v15, %v2444_v58  ;;  %v3190_v25 = vmul.f32 %v14258_v44, %v14258_v44  ;;  %v2980_v34 = vadd.f32 %v11926_v0, %v10812_v61  ;;  %v14282_v56 = vadd.f32 %v14255_v43, %v3085_v42 }
 0x22b   : > { %v2971_v52 = vpop.f32.mrf.mxu1  ;;  %v14267_v13 = vpop.f32.mrf.mxu0  ;;  %v3192_v4 = vmul.f32 %v14270_v8, %v14270_v8  ;;  %v2460_v42 = vadd.f32 %v14021_v55, %v13971_v38 }
 0x22c   : > { %v14273_v28 = vadd.f32 %v14255_v43, %v3083_v18  ;;  %v2972_v51 = vadd.f32 %v10806_v20, %v2971_v52  ;;  %v3088_v35 = vadd.f32 %v2980_v34, %v14011_v40  ;;  %v10824_v52 = vadd.f32 %v14149_v32, %v14147_v23 }
 0x22d   : > { %v11927_v11 = vpop.f32.mrf.mxu1  ;;  %v14279_v6 = vpop.f32.mrf.mxu0  ;;  %v10827_v23 = vadd.f32 %v14156_v57, %v14154_v45 }
 0x22e   : > { %v3153_v26 = vadd.f32 %v14273_v28, %v14258_v44  ;;  %v3191_v24 = vmul.f32 %v14273_v28, %v14273_v28  ;;  %v3086_v53 = vadd.f32 %v2972_v51, %v14014_v31  ;;  %v2983_v47 = vadd.f32 %v11927_v11, %v10815_v37 }
 0x22f   : > { %v2974_v30 = vpop.f32.mrf.mxu1  ;;  %v14291_v58 = vpop.f32.mrf.mxu0  ;;  %v10818_v31 = vadd.f32 %v14137_v29, %v14135_v49  ;;  %v3193_v51 = vmul.f32 %v14282_v56, %v14282_v56 }
 0x230   : > { %v3154_v15 = vadd.f32 %v3153_v26, %v14270_v8  ;;  %v3222_v0 = vadd.f32 %v3191_v24, %v3190_v25  ;;  %v14297_v20 = vadd.f32 %v14255_v43, %v3086_v53  ;;  %v2975_v33 = vadd.f32 %v10809_v5, %v2974_v30 }
 0x231   : > { %v11930_v18 = vpop.f32.mrf.mxu1  ;;  %v14304_v61 = vpop.f32.mrf.mxu0  ;;  %v3089_v55 = vadd.f32 %v2983_v47, %v14019_v54  ;;  %v14320_v24 = vadd.f32 %v14255_v43, %v3088_v35  ;;  %v10821_v47 = vadd.f32 %v14144_v3, %v14140_v21  ;;  %v2476_v35 = vadd.f32 %v14032_v27, %v13989_v10 }
 0x232   : > { %v3223_v37 = vadd.f32 %v3222_v0, %v3192_v4  ;;  %v3155_v25 = vadd.f32 %v3154_v15, %v14282_v56  ;;  %v3194_v38 = vmul.f32 %v14297_v20, %v14297_v20  ;;  %v3087_v49 = vadd.f32 %v2975_v33, %v2460_v42 }
 0x233   : > { %v2987_v40 = vpop.f32.mrf.mxu1  ;;  %v14314_v29 = vpop.f32.mrf.mxu0  ;;  %v2996_v26 = vadd.f32 %v11930_v18, %v10824_v52  ;;  %v14331_v15 = vadd.f32 %v14255_v43, %v3089_v55  ;;  %v10836_v10 = vadd.f32 %v14181_v46, %v14179_v48 }
 0x234   : > { %v3156_v34 = vadd.f32 %v3155_v25, %v14297_v20  ;;  %v3224_v11 = vadd.f32 %v3223_v37, %v3193_v51  ;;  %v2988_v32 = vadd.f32 %v10818_v31, %v2987_v40  ;;  %v14323_v53 = vadd.f32 %v14255_v43, %v3087_v49 }
 0x235   : > { %v11931_v5 = vpop.f32.mrf.mxu1  ;;  %v14325_v54 = vpop.f32.mrf.mxu0  ;;  %v3092_v3 = vadd.f32 %v2996_v26, %v14024_v14  ;;  %v10830_v25 = vadd.f32 %v14161_v17, %v14159_v7  ;;  %v3197_v27 = vmul.f32 %v14331_v15, %v14331_v15 }
 0x236   : > { %v3225_v30 = vadd.f32 %v3224_v11, %v3194_v38  ;;  %v3090_v4 = vadd.f32 %v2988_v32, %v14026_v2  ;;  %v3157_v57 = vadd.f32 %v3156_v34, %v14323_v53  ;;  %v3195_v45 = vmul.f32 %v14323_v53, %v14323_v53 }
 0x237   : > { %v2999_v0 = vadd.f32 %v11931_v5, %v10827_v23  ;;  %v2990_v42 = vpop.f32.mrf.mxu1  ;;  %v14336_v31 = vpop.f32.mrf.mxu0  ;;  %v3196_v2 = vmul.f32 %v14320_v24, %v14320_v24  ;;  %v10839_v11 = vadd.f32 %v14191_v39, %v14186_v63  ;;  %v14362_v7 = vadd.f32 %v14255_v43, %v3092_v3 }
 0x238   : > { %v2991_v21 = vadd.f32 %v10821_v47, %v2990_v42  ;;  %v3158_v33 = vadd.f32 %v3157_v57, %v14320_v24  ;;  %v3226_v18 = vadd.f32 %v3225_v30, %v3195_v45  ;;  %v14345_v52 = vadd.f32 %v14255_v43, %v3090_v4  ;;  %v18100_v47 = vld [vmem:[#allocation39_spill] sm:$0xff]  ;;  %v18101_v30 = vld [vmem:[#allocation30_spill] sm:$0xff] }
 0x239   : > { %v11934_v51 = vpop.f32.mrf.mxu1  ;;  %v14347_v37 = vpop.f32.mrf.mxu0  ;;  %v3093_v49 = vadd.f32 %v2999_v0, %v14029_v62  ;;  %v10833_v63 = vadd.f32 %v18100_v47, %v14167_v16  ;;  %v3200_v16 = vmul.f32 %v14362_v7, %v14362_v7 }
 0x23a   : > { %v3091_v14 = vadd.f32 %v2991_v21, %v2476_v35  ;;  %v3227_v38 = vadd.f32 %v3226_v18, %v3196_v2  ;;  %v3159_v55 = vadd.f32 %v3158_v33, %v14331_v15  ;;  %v3198_v26 = vmul.f32 %v14345_v52, %v14345_v52  ;;  %v18102_v21 = vld [vmem:[#allocation28_spill] sm:$0xff]  ;;  %v18103_v2 = vld [vmem:[#allocation33_spill] sm:$0xff] }
 0x23b   : > { %v3003_v40 = vpop.f32.mrf.mxu1  ;;  %v14357_v34 = vpop.f32.mrf.mxu0  ;;  %v3012_v62 = vadd.f32 %v11934_v51, %v10836_v10  ;;  %v14378_v45 = vadd.f32 %v14255_v43, %v3093_v49  ;;  %v2492_v33 = vadd.f32 %v18103_v2, %v18102_v21  ;;  %v18104_v10 = vld [vmem:[#allocation29_spill] sm:$0xff] }
 0x23c   : > { %v14365_v17 = vadd.f32 %v14255_v43, %v3091_v14  ;;  %v3004_v48 = vadd.f32 %v10830_v25, %v3003_v40  ;;  %v3160_v46 = vadd.f32 %v3159_v55, %v14345_v52  ;;  %v3228_v32 = vadd.f32 %v3227_v38, %v3197_v27  ;;  %v18105_v55 = vld [vmem:[#allocation46_spill] sm:$0xff] }
 0x23d   : > { %v11935_v23 = vpop.f32.mrf.mxu1  ;;  %v14370_v5 = vpop.f32.mrf.mxu0  ;;  %v3096_v14 = vadd.f32 %v3012_v62, %v18104_v10  ;;  %v10842_v49 = vadd.f32 %v14200_v22, %v18105_v55  ;;  %v10848_v40 = vadd.f32 %v14217_v59, %v14215_v9  ;;  %v18106_v62 = vld [vmem:[#allocation32_spill] sm:$0xff]  ;;  %v18109_v10 = vld [vmem:[#allocation31_spill] sm:$0xff]  ;;  %v18111_v55 = vld [vmem:[#allocation37_spill] sm:$0xff] }
 0x23e   : > { %v3199_v39 = vmul.f32 %v14365_v17, %v14365_v17  ;;  %v3094_v4 = vadd.f32 %v3004_v48, %v18101_v30  ;;  %v3229_v57 = vadd.f32 %v3228_v32, %v3198_v26  ;;  %v3161_v0 = vadd.f32 %v3160_v46, %v14365_v17 }
 0x23f   : > { %v3015_v42 = vadd.f32 %v11935_v23, %v10839_v11  ;;  %v3006_v35 = vpop.f32.mrf.mxu1  ;;  %v14381_v3 = vpop.f32.mrf.mxu0  ;;  %v3201_v46 = vmul.f32 %v14378_v45, %v14378_v45  ;;  %v14408_v9 = vadd.f32 %v14255_v43, %v3096_v14  ;;  %v18110_v14 = vld [vmem:[#allocation41_spill] sm:$0xff] }
 0x240   : > { %v3007_v18 = vadd.f32 %v10833_v63, %v3006_v35  ;;  %v3162_v51 = vadd.f32 %v3161_v0, %v14362_v7  ;;  %v3230_v25 = vadd.f32 %v3229_v57, %v3199_v39  ;;  %v14390_v27 = vadd.f32 %v14255_v43, %v3094_v4 }
 0x241   : > { %v11938_v38 = vpop.f32.mrf.mxu1  ;;  %v14396_v48 = vpop.f32.mrf.mxu0  ;;  %v3097_v23 = vadd.f32 %v3015_v42, %v18106_v62  ;;  %v10851_v63 = vadd.f32 %v14225_v50, %v14221_v41  ;;  %v18107_v42 = vld [vmem:[#allocation48_spill] sm:$0xff]  ;;  %v18108_v50 = vld [vmem:[#allocation38_spill] sm:$0xff] }
 0x242   : > { %v3095_v11 = vadd.f32 %v3007_v18, %v2492_v33  ;;  %v3231_v26 = vadd.f32 %v3230_v25, %v3200_v16  ;;  %v3163_v32 = vadd.f32 %v3162_v51, %v14378_v45  ;;  %v3028_v39 = vadd.f32 %v11938_v38, %v10848_v40  ;;  %v18112_v62 = vld [vmem:[#allocation56_spill] sm:$0xff] }
 0x243   : > { %v3019_v47 = vpop.f32.mrf.mxu1  ;;  %v3202_v4 = vmul.f32 %v14390_v27, %v14390_v27  ;;  %v10845_v35 = vadd.f32 %v14209_v60, %v18107_v42  ;;  %v14418_v2 = vpop.f32.mrf.mxu0  ;;  %v14421_v16 = vadd.f32 %v14255_v43, %v3097_v23  ;;  %v2508_v38 = vadd.f32 %v18110_v14, %v18109_v10  ;;  %v18113_v23 = vld [vmem:[#allocation57_spill] sm:$0xff]  ;;  %v18115_v14 = vld [vmem:[#allocation43_spill] sm:$0xff] }
 0x244   : > { %v14405_v22 = vadd.f32 %v14255_v43, %v3095_v11  ;;  %v3020_v59 = vadd.f32 %v10842_v49, %v3019_v47  ;;  %v3164_v30 = vadd.f32 %v3163_v32, %v14390_v27  ;;  %v3232_v57 = vadd.f32 %v3231_v26, %v3201_v46 }
 0x245   : > { %v11939_v0 = vpop.f32.mrf.mxu1  ;;  %v3100_v60 = vadd.f32 %v3028_v39, %v18111_v55  ;;  %v3204_v40 = vmul.f32 %v14408_v9, %v14408_v9  ;;  %v10854_v47 = vadd.f32 %v18113_v23, %v18112_v62  ;;  %v3205_v39 = vmul.f32 %v14421_v16, %v14421_v16  ;;  %v18117_v62 = vld [vmem:[#allocation45_spill] sm:$0xff] }
 0x246   : > { %v3203_v41 = vmul.f32 %v14405_v22, %v14405_v22  ;;  %v3098_v21 = vadd.f32 %v3020_v59, %v18108_v50  ;;  %v3233_v33 = vadd.f32 %v3232_v57, %v3202_v4  ;;  %v3165_v18 = vadd.f32 %v3164_v30, %v14405_v22  ;;  %v14437_v30 = vpop.f32.mrf.mxu0 }
 0x247   : > { %v3031_v51 = vadd.f32 %v11939_v0, %v10851_v63  ;;  %v3022_v25 = vpop.f32.mrf.mxu1  ;;  %v10860_v63 = vadd.f32 %v14260_v19, %v14247_v12  ;;  %v18114_v0 = vld [vmem:[#allocation40_spill] sm:$0xff]  ;;  %v10857_v10 = vadd.f32 %v14242_v1, %v14237_v36  ;;  %v18118_v36 = vld [vmem:[#allocation42_spill] sm:$0xff] }
 0x248   : > { %v3023_v49 = vadd.f32 %v10845_v35, %v3022_v25  ;;  %v3166_v11 = vadd.f32 %v3165_v18, %v14408_v9  ;;  %v3234_v46 = vadd.f32 %v3233_v33, %v3203_v41  ;;  %v14431_v26 = vadd.f32 %v14255_v43, %v3098_v21  ;;  %v10882_v55 = vpop.f32.mrf.mxu0 }
 0x249   : > { %v11942_v32 = vpop.f32.mrf.mxu1  ;;  %v3101_v42 = vadd.f32 %v3031_v51, %v18114_v0  ;;  %v14444_v41 = vadd.f32 %v14255_v43, %v3100_v60  ;;  %v10863_v60 = vadd.f32 %v14279_v6, %v14267_v13 }
 0x24a   : > { %v3099_v59 = vadd.f32 %v3023_v49, %v2508_v38  ;;  %v3235_v4 = vadd.f32 %v3234_v46, %v3204_v40  ;;  %v3167_v57 = vadd.f32 %v3166_v11, %v14421_v16  ;;  %v3044_v21 = vadd.f32 %v11942_v32, %v10860_v63  ;;  %v18116_v32 = vld [vmem:[#allocation34_spill] sm:$0xff] }
 0x24b   : > { %v3035_v35 = vpop.f32.mrf.mxu1  ;;  %v3206_v33 = vmul.f32 %v14431_v26, %v14431_v26  ;;  %v14460_v40 = vadd.f32 %v14255_v43, %v3101_v42  ;;  %v2524_v23 = vadd.f32 %v18117_v62, %v18116_v32  ;;  %v3208_v1 = vmul.f32 %v14444_v41, %v14444_v41  ;;  %v10883_v42 = vpop.f32.mrf.mxu0 }
 0x24c   : > { %v14447_v50 = vadd.f32 %v14255_v43, %v3099_v59  ;;  %v3036_v12 = vadd.f32 %v10854_v47, %v3035_v35  ;;  %v3168_v19 = vadd.f32 %v3167_v57, %v14431_v26  ;;  %v3236_v18 = vadd.f32 %v3235_v4, %v3205_v39 }
 0x24d   : > { %v11943_v25 = vpop.f32.mrf.mxu1  ;;  %v3104_v47 = vadd.f32 %v3044_v21, %v18118_v36  ;;  %v10866_v57 = vadd.f32 %v14304_v61, %v14291_v58  ;;  %v3209_v35 = vmul.f32 %v14460_v40, %v14460_v40 }
 0x24e   : > { %v3207_v51 = vmul.f32 %v14447_v50, %v14447_v50  ;;  %v3102_v38 = vadd.f32 %v3036_v12, %v18115_v14  ;;  %v3237_v49 = vadd.f32 %v3236_v18, %v3206_v33  ;;  %v3169_v11 = vadd.f32 %v3168_v19, %v14447_v50  ;;  %v18119_v14 = vld [vmem:[#allocation44_spill] sm:$0xff] }
 0x24f   : > { %v3038_v46 = vpop.f32.mrf.mxu1  ;;  %v3047_v6 = vadd.f32 %v11943_v25, %v10863_v60  ;;  %v14478_v33 = vadd.f32 %v14255_v43, %v3104_v47  ;;  %v10872_v18 = vadd.f32 %v14347_v37, %v14336_v31  ;;  %v10885_v37 = vpop.f32.mrf.mxu0  ;;  %v18121_v47 = vld [vmem:[#allocation35_spill] sm:$0xff] }
 0x250   : > { %v3039_v63 = vadd.f32 %v10857_v10, %v3038_v46  ;;  %v3170_v59 = vadd.f32 %v3169_v11, %v14444_v41  ;;  %v3238_v39 = vadd.f32 %v3237_v49, %v3207_v51  ;;  %v14470_v13 = vadd.f32 %v14255_v43, %v3102_v38 }
 0x251   : > { %v11946_v4 = vpop.f32.mrf.mxu1  ;;  %v3105_v38 = vadd.f32 %v3047_v6, %v18119_v14  ;;  %v10869_v49 = vadd.f32 %v14325_v54, %v14314_v29  ;;  %v10875_v11 = vadd.f32 %v14370_v5, %v14357_v34  ;;  %v3212_v29 = vmul.f32 %v14478_v33, %v14478_v33 }
 0x252   : > { %v3103_v0 = vadd.f32 %v3039_v63, %v2524_v23  ;;  %v3239_v12 = vadd.f32 %v3238_v39, %v3208_v1  ;;  %v3171_v21 = vadd.f32 %v3170_v59, %v14460_v40  ;;  %v3210_v61 = vmul.f32 %v14470_v13, %v14470_v13  ;;  %v18120_v23 = vld [vmem:[#allocation49_spill] sm:$0xff]  ;;  %v18122_v63 = vld [vmem:[#allocation51_spill] sm:$0xff] }
 0x253   : > { %v3051_v19 = vpop.f32.mrf.mxu1  ;;  %v3060_v62 = vadd.f32 %v11946_v4, %v10872_v18  ;;  %v2540_v59 = vadd.f32 %v18122_v63, %v18121_v47  ;;  %v14502_v34 = vadd.f32 %v14255_v43, %v3105_v38  ;;  %v10878_v4 = vadd.f32 %v14396_v48, %v14381_v3  ;;  %v18124_v48 = vld [vmem:[#allocation50_spill] sm:$0xff]  ;;  %v18127_v47 = vld [vmem:[#allocation55_spill] sm:$0xff] }
 0x254   : > { %v14483_v25 = vadd.f32 %v14255_v43, %v3103_v0  ;;  %v3052_v10 = vadd.f32 %v10866_v57, %v3051_v19  ;;  %v3172_v58 = vadd.f32 %v3171_v21, %v14470_v13  ;;  %v3240_v51 = vadd.f32 %v3239_v12, %v3209_v35  ;;  %v10886_v12 = vpop.f32.mrf.mxu0  ;;  %v18123_v19 = vld [vmem:[#allocation47_spill] sm:$0xff] }
 0x255   : > { %v11947_v60 = vpop.f32.mrf.mxu1  ;;  %v10884_v35 = vadd.f32 %v10883_v42, %v10882_v55  ;;  %v3108_v18 = vadd.f32 %v3060_v62, %v18123_v19  ;;  %v3213_v38 = vmul.f32 %v14502_v34, %v14502_v34  ;;  %v18125_v62 = vld [vmem:[#allocation53_spill] sm:$0xff] }
 0x256   : > { %v3211_v31 = vmul.f32 %v14483_v25, %v14483_v25  ;;  %v3241_v46 = vadd.f32 %v3240_v51, %v3210_v61  ;;  %v3173_v32 = vadd.f32 %v3172_v58, %v14483_v25  ;;  %v3106_v1 = vadd.f32 %v3052_v10, %v18120_v23 }
 0x257   : > { %v3054_v36 = vpop.f32.mrf.mxu1  ;;  %v3063_v6 = vadd.f32 %v11947_v60, %v10875_v11  ;;  %v10887_v60 = vadd.f32 %v10886_v12, %v10885_v37 }
 0x258   : > { %v3055_v54 = vadd.f32 %v10869_v49, %v3054_v36  ;;  %v3174_v5 = vadd.f32 %v3173_v32, %v14478_v33  ;;  %v3242_v39 = vadd.f32 %v3241_v46, %v3211_v31  ;;  %v14509_v10 = vadd.f32 %v14255_v43, %v3106_v1  ;;  %v18126_v36 = vld [vmem:[#allocation36_spill] sm:$0xff] }
 0x259   : > { %v11950_v57 = vpop.f32.mrf.mxu1  ;;  %v3109_v55 = vadd.f32 %v3063_v6, %v18124_v48  ;;  %v10881_v49 = vadd.f32 %v14437_v30, %v14418_v2  ;;  %v14522_v31 = vadd.f32 %v14255_v43, %v3108_v18  ;;  %v2556_v63 = vadd.f32 %v18127_v47, %v18126_v36 }
 0x25a   : > { %v3107_v0 = vadd.f32 %v3055_v54, %v2540_v59  ;;  %v3243_v21 = vadd.f32 %v3242_v39, %v3212_v29  ;;  %v3175_v58 = vadd.f32 %v3174_v5, %v14502_v34  ;;  %v3076_v11 = vadd.f32 %v11950_v57, %v10884_v35  ;;  %v18128_v54 = vld [vmem:[#allocation52_spill] sm:$0xff] }
 0x25b   : > { %v3067_v61 = vpop.f32.mrf.mxu1  ;;  %v3214_v37 = vmul.f32 %v14509_v10, %v14509_v10  ;;  %v14531_v29 = vadd.f32 %v14255_v43, %v3109_v55 }
 0x25c   : > { %v14513_v51 = vadd.f32 %v14255_v43, %v3107_v0  ;;  %v3068_v14 = vadd.f32 %v10878_v4, %v3067_v61  ;;  %v3176_v3 = vadd.f32 %v3175_v58, %v14509_v10  ;;  %v3244_v46 = vadd.f32 %v3243_v21, %v3213_v38  ;;  %v18129_v21 = vld [vmem:[#allocation54_spill] sm:$0xff] }
 0x25d   : > { %v11951_v42 = vpop.f32.mrf.mxu1  ;;  %v3112_v5 = vadd.f32 %v3076_v11, %v18128_v54 }
 0x25e   : > { %v3177_v32 = vadd.f32 %v3176_v3, %v14513_v51  ;;  %v3110_v23 = vadd.f32 %v3068_v14, %v18125_v62  ;;  %v3079_v30 = vadd.f32 %v11951_v42, %v10887_v60  ;;  %v3245_v6 = vadd.f32 %v3244_v46, %v3214_v37 }
 0x25f   : > { %v3070_v1 = vpop.f32.mrf.mxu1  ;;  %v3215_v57 = vmul.f32 %v14513_v51, %v14513_v51  ;;  %v14547_v58 = vadd.f32 %v14255_v43, %v3112_v5  ;;  %v3216_v14 = vmul.f32 %v14522_v31, %v14522_v31  ;;  %v3217_v42 = vmul.f32 %v14531_v29, %v14531_v29  ;;  %v18133_v5 = vld [vmem:[#allocation20_spill] sm:$0xff] }
 0x260   : > { %v3071_v59 = vadd.f32 %v10881_v49, %v3070_v1  ;;  %v3178_v2 = vadd.f32 %v3177_v32, %v14522_v31  ;;  %v14538_v4 = vadd.f32 %v14255_v43, %v3110_v23  ;;  %v3113_v19 = vadd.f32 %v3079_v30, %v18129_v21  ;;  %v18132_v30 = vld [vmem:[#allocation21_spill] sm:$0xff]  ;;  %v18137_v21 = vld [vmem:[#allocation16_spill] sm:$0xff] }
 0x261   : > { %v3246_v18 = vadd.f32 %v3245_v6, %v3215_v57  ;;  %v18131_v37 = vmov 0.0   ;;  %v18134_v6 = vld [vmem:[#allocation19_spill] sm:$0xff]  ;;  %v18135_v57 = vld [vmem:[#allocation18_spill] sm:$0xff] }
 0x262   : > { %v3111_v39 = vadd.f32 %v3071_v59, %v2556_v63  ;;  %v3179_v0 = vadd.f32 %v3178_v2, %v14531_v29  ;;  %v14553_v38 = vadd.f32 %v14255_v43, %v3113_v19  ;;  %v3218_v46 = vmul.f32 %v14538_v4, %v14538_v4  ;;  %v18130_v59 = vld [vmem:[#allocation22_spill] sm:$0xff] }
 0x263   : > { %v3247_v48 = vadd.f32 %v3246_v18, %v3216_v14  ;;  %v3220_v63 = vmul.f32 %v14547_v58, %v14547_v58  ;;  %v18138_v18 = vld [vmem:[#allocation15_spill] sm:$0xff] }
 0x264   : > { %v14542_v35 = vadd.f32 %v14255_v43, %v3111_v39  ;;  %v3180_v12 = vadd.f32 %v3179_v0, %v14538_v4  ;;  %v3221_v54 = vmul.f32 %v14553_v38, %v14553_v38 }
 0x265   : > { %v3248_v49 = vadd.f32 %v3247_v48, %v3217_v42  ;;  %v18141_v48 = vld [vmem:[#allocation12_spill] sm:$0xff]  ;;  %v18142_v42 = vld [vmem:[#allocation11_spill] sm:$0xff] }
 0x266   : > { %v3181_v61 = vadd.f32 %v3180_v12, %v14542_v35  ;;  %v3219_v43 = vmul.f32 %v14542_v35, %v14542_v35  ;;  %v18136_v12 = vld [vmem:[#allocation17_spill] sm:$0xff] }
 0x267   : > { %v3249_v62 = vadd.f32 %v3248_v49, %v3218_v46  ;;  %v18145_v46 = vld [vmem:[#allocation8_spill] sm:$0xff] }
 0x268   : > { %v3182_v3 = vadd.f32 %v3181_v61, %v14547_v58  ;;  %v18139_v61 = vld [vmem:[#allocation14_spill] sm:$0xff] }
 0x269   : > { %v3250_v36 = vadd.f32 %v3249_v62, %v3219_v43  ;;  %v18146_v62 = vld [vmem:[#allocation7_spill] sm:$0xff] }
 0x26a   : > { %v3183_v55 = vadd.f32 %v3182_v3, %v14553_v38  ;;  %v18140_v3 = vld [vmem:[#allocation13_spill] sm:$0xff]  ;;  %v18148_v43 = vld [vmem:[#allocation23_spill] sm:$0xff] }
 0x26b   : > { %v3251_v2 = vadd.f32 %v3250_v36, %v3220_v63  ;;  %v12561_v36 = vld [vmem:[%s17968_s1 + $0x338] sm:$0xff]   ;;  %v12563_v63 = vld [vmem:[%s17968_s1 + $0x330] sm:$0xff]  }
 0x26c   : > { %v3184_v60 = vrot.slane %v3183_v55, 4 }
 0x26d   : > { %v3252_v39 = vadd.f32 %v3251_v2, %v3221_v54  ;;  %v12564_v2 = vld [vmem:[%s17968_s1 + $0x368] sm:$0xff]  }
 0x26e   : > { %v3185_v11 = vadd.f32 %v3184_v60, %v3183_v55  ;;  %v18143_v60 = vld [vmem:[#allocation10_spill] sm:$0xff]  ;;  %v12565_v54 = vld [vmem:[%s17968_s1 + $0x328] sm:$0xff]  }
 0x26f   : > { %v3253_v0 = vrot.slane %v3252_v39, 4 }
 0x270   : > { %v3186_v32 = vrot.slane %v3185_v11, 2 }
 0x271   : > { %v3254_v19 = vadd.f32 %v3253_v0, %v3252_v39 }
 0x272   : > { %v3187_v23 = vadd.f32 %v3186_v32, %v3185_v11  ;;  %v18144_v11 = vld [vmem:[#allocation9_spill] sm:$0xff] }
 0x273   : > { %v3255_v14 = vrot.slane %v3254_v19, 2 }
 0x274   : > { %v3188_v1 = vrot.slane %v3187_v23, 1 }
 0x275   : > { %v3256_v55 = vadd.f32 %v3255_v14, %v3254_v19 }
 0x276   : > { %v3189_v47 = vadd.f32 %v3188_v1, %v3187_v23  ;;  %v18147_v23 = vld [vmem:[#allocation24_spill] sm:$0xff]  ;;  %v12560_v1 = vld [vmem:[%s17968_s1 + $0x378] sm:$0xff]  }
 0x277   : > { %v3257_v49 = vrot.slane %v3256_v55, 1  ;;  %10952 = vmatprep.subr.bf16.mxu0 %v12560_v1 }
 0x278   : > { %11985 = vmatmul.mubr.f32.vlgmr.msra.gmra.mxu1 %v3189_v47  ;;  %v12562_v47 = vld [vmem:[%s17968_s1 + $0x370] sm:$0xff]   ;;  %10953 = vmatpush3.bf16.msra.mxu0 %v12561_v36 }
 0x279   : > { %11988 = vmatpush3.msra.mxu1 %v18130_v59  ;;  %12019 = vmatprep.mubr.msk.f32.mxu1 %vm12810_vm11, %v18131_v37  ;;  %v3258_v32 = vadd.f32 %v3257_v49, %v3256_v55 }
 0x27a   : > { %11989 = vmatprep.subr.mxu1 %v18131_v37  ;;  %10954 = vmatprep.subr.bf16.mxu0 %v12562_v47 }
 0x27b   : > { %11990 = vmatpush3.msra.mxu1 %v18132_v30  ;;  %v4136_v30 = vld [vmem:[#allocation2 + $0x6c] sm:$0xf] }
 0x27c   : > { %11991 = vmatprep.subr.mxu1 %v18131_v37  ;;  %10955 = vmatpush3.bf16.msra.mxu0 %v12563_v63 }
 0x27d   : > { %11992 = vmatpush3.msra.mxu1 %v18133_v5  ;;  %10956 = vmatprep.subr.bf16.mxu0 %v12564_v2  ;;  %v12566_v2 = vld [vmem:[%s17968_s1 + $0x360] sm:$0xff]  }
 0x27e   : > { %11993 = vmatprep.subr.mxu1 %v18131_v37 }
 0x27f   : > { %11994 = vmatpush3.msra.mxu1 %v18134_v6 }
 0x280   : > { %11995 = vmatprep.subr.mxu1 %v18131_v37  ;;  %10957 = vmatpush3.bf16.msra.mxu0 %v12565_v54  ;;  %v12567_v54 = vld [vmem:[%s17968_s1 + $0x320] sm:$0xff]  }
 0x281   : > { %11996 = vmatpush3.msra.mxu1 %v18135_v57  ;;  %10958 = vmatprep.subr.bf16.mxu0 %v12566_v2  ;;  %v12580_v2 = vld [vmem:[%s17968_s1 + $0x390] sm:$0xff]  }
 0x282   : > { %11997 = vmatprep.subr.mxu1 %v18131_v37 }
 0x283   : > { %11998 = vmatpush3.msra.mxu1 %v18136_v12  ;;  %v4108_v12 = vld [vmem:[#allocation2 + $0x3c] sm:$0xf] }
 0x284   : > { %11999 = vmatprep.subr.mxu1 %v18131_v37  ;;  %10959 = vmatpush3.bf16.msra.mxu0 %v12567_v54  ;;  %v12573_v54 = vld [vmem:[%s17968_s1 + $0x348] sm:$0xff]  }
 0x285   : > { %12000 = vmatpush3.msra.mxu1 %v18137_v21  ;;  %v4115_v21 = vld [vmem:[#allocation2 + $0x48] sm:$0xf] }
 0x286   : > { %12001 = vmatprep.subr.mxu1 %v18131_v37 }
 0x287   : > { %12002 = vmatpush3.msra.mxu1 %v18138_v18  ;;  %v4105_v18 = vld [vmem:[#allocation2 + $0x38] sm:$0x1] }
 0x288   : > { %12003 = vmatprep.subr.mxu1 %v18131_v37 }
 0x289   : > { %12004 = vmatpush3.msra.mxu1 %v18139_v61 }
 0x28a   : > { %12005 = vmatprep.subr.mxu1 %v18131_v37 }
 0x28b   : > { %12006 = vmatpush3.msra.mxu1 %v18140_v3  ;;  %v4098_v3 = vld [vmem:[#allocation2 + $0x2c] sm:$0x1] }
 0x28c   : > { %12007 = vmatprep.subr.mxu1 %v18131_v37 }
 0x28d   : > { %12008 = vmatpush3.msra.mxu1 %v18141_v48  ;;  %v4094_v48 = vld [vmem:[#allocation2 + $0x24] sm:$0xf] }
 0x28e   : > { %12009 = vmatprep.subr.mxu1 %v18131_v37 }
 0x28f   : > { %12010 = vmatpush3.msra.mxu1 %v18142_v42 }
 0x290   : > { %12011 = vmatprep.subr.mxu1 %v18131_v37 }
 0x291   : > { %12012 = vmatpush3.msra.mxu1 %v18143_v60 }
 0x292   : > { %12013 = vmatprep.subr.mxu1 %v18131_v37 }
 0x293   : > { %12014 = vmatpush3.msra.mxu1 %v18144_v11 }
 0x294   : > { %12015 = vmatprep.subr.mxu1 %v18131_v37 }
 0x295   : > { %12016 = vmatpush3.msra.mxu1 %v18145_v46 }
 0x296   : > { %12017 = vmatprep.subr.mxu1 %v18131_v37 }
 0x297   : > { %12018 = vmatpush3.msra.mxu1 %v18146_v62 }
 0x298   : > { %12020 = vmatmul.mubr.f32.vlgmr.msra.gmra.mxu1 %v3258_v32  ;;  %12022 = vmatprep.subr.mxu1 %v18131_v37 }
 0x299   : > { %12023 = vmatpush3.msra.mxu1 %v18147_v23  ;;  %12026 = vmatprep.mubr.msk.f32.mxu1 %vm12810_vm11, %v18131_v37 }
 0x29a   : > { %12024 = vmatprep.subr.mxu1 %v18131_v37 }
 0x29b   : > { %12025 = vmatpush3.msra.mxu1 %v18148_v43 }
 0x29c   : > { %12029 = vmatprep.subr.mxu1 %v18131_v37 }
 0x338   : > { %v3325_v39 = vpop.f32.mrf.mxu1 }
 0x339   : > { %v3399_v0 = vmul.f32 0.00048828125, %v3325_v39  ;;  %v12568_v39 = vld [vmem:[%s17968_s1 + $0x358] sm:$0xff]  }
 0x33a   : > { %v11986_v19 = vpop.f32.mrf.mxu1  ;;  %10960 = vmatprep.subr.bf16.mxu0 %v12568_v39  ;;  %v12575_v39 = vld [vmem:[%s17968_s1 + $0x308] sm:$0xff]  }
 0x33b   : > { %12027 = vmatmul.mubr.msk.f32.vlgmr.msra.gmra.mxu1 %vm3404_vm12, %v3399_v0  ;;  %v3401_v55 = vmul.f32 %v3399_v0, %v3399_v0  ;;  %v12569_v0 = vld [vmem:[%s17968_s1 + $0x318] sm:$0xff]   ;;  %v12570_v19 = vld [vmem:[%s17968_s1 + $0x350] sm:$0xff]  }
 0x33c   : > { %12030 = vmatpush3.msra.mxu1 %v18147_v23  ;;  %12033 = vmatprep.mubr.msk.f32.mxu1 %vm12810_vm11, %v18131_v37 }
 0x33d   : > { %12031 = vmatprep.subr.mxu1 %v18131_v37  ;;  %10961 = vmatpush3.bf16.msra.mxu0 %v12569_v0  ;;  %v12579_v0 = vld [vmem:[%s17968_s1 + $0x340] sm:$0xff]  }
 0x33e   : > { %12032 = vmatpush3.msra.mxu1 %v18148_v43  ;;  %10962 = vmatprep.subr.bf16.mxu0 %v12570_v19  ;;  %v12582_v19 = vld [vmem:[%s17968_s1 + $0x388] sm:$0xff]  }
 0x358   : > { %v3395_v14 = vpop.f32.mrf.mxu1 }
 0x359   : > { %v3400_v49 = vmul.f32 0.00048828125, %v3395_v14  ;;  %v12571_v14 = vld [vmem:[%s17968_s1 + $0x310] sm:$0xff]  }
 0x35a   : > { %v12021_v32 = vpop.f32.mrf.mxu1  ;;  %10963 = vmatpush3.bf16.msra.mxu0 %v12571_v14  ;;  %v12581_v14 = vld [vmem:[%s17968_s1 + $0x300] sm:$0xff]  }
 0x35b   : > { %v3402_v1 = vsub.f32 %v3400_v49, %v3401_v55  ;;  %v12572_v55 = vld [vmem:[%s17968_s1 + $0x3b8] sm:$0xff]   ;;  %v12574_v49 = vld [vmem:[%s17968_s1 + $0x3b0] sm:$0xff]   ;;  %10964 = vmatprep.subr.bf16.mxu0 %v12573_v54 }
 0x35c   : > { %12036 = vmatprep.subr.bf16.mxu1 %v12572_v55 }
 0x35d   : > { %v3403_v36 = vmax.f32 %v3402_v1, 0.0  ;;  %v12576_v1 = vld [vmem:[%s17968_s1 + $0x3a8] sm:$0xff]  }
 0x35e   : > { %10965 = vmatpush3.bf16.msra.mxu0 %v12575_v39 }
 0x35f   : > { %v3478_v47 = vadd.f32 1e-05, %v3403_v36  ;;  %10966 = vmatprep.subr.bf16.mxu0 %v12579_v0  ;;  %v3555_v0 = vld [vmem:[%s17971_s4] sm:$0x1] }
 0x361   : > { %12776 = vrsqrt.f32 %v3478_v47  ;;  %v12577_v47 = vld [vmem:[%s17968_s1 + $0x3a0] sm:$0xff]  }
 0x362   : > { %10967 = vmatpush3.bf16.msra.mxu0 %v12581_v14 }
 0x36e   : > { %v12777_v63 = vpop.eup %12776 }
 0x36f   : > { %12034 = vmatmul.mubr.msk.f32.vlgmr.msra.gmra.mxu1 %vm3404_vm12, %v12777_v63  ;;  %v12578_v63 = vld [vmem:[%s17968_s1 + $0x398] sm:$0xff]  }
 0x370   : > { %12037 = vmatpush3.bf16.msra.mxu1 %v12572_v55  ;;  %v12583_v55 = vld [vmem:[%s17968_s1 + $0x380] sm:$0xff]  }
 0x371   : > { %12038 = vmatprep.subr.bf16.mxu1 %v12574_v49 }
 0x374   : > { %12039 = vmatpush3.bf16.msra.mxu1 %v12574_v49  ;;  %v14689_v49 = vld [vmem:[%s17968_s1 + $0x2f8] sm:$0xff]  }
 0x375   : > { %12040 = vmatprep.subr.bf16.mxu1 %v12576_v1  ;;  %18149 = vst [vmem:[#allocation39_spill] sm:$0xff] %v14689_v49  ;;  %12084 = vmatprep.subr.bf16.mxu0 %v14689_v49  ;;  %v4140_v49 = vld [vmem:[#allocation2 + $0x74] sm:$0x1] }
 0x378   : > { %12041 = vmatpush3.bf16.msra.mxu1 %v12576_v1  ;;  %v18004_v1 = vlaneseq }
 0x379   : > { %12042 = vmatprep.subr.bf16.mxu1 %v12577_v47 }
 0x37c   : > { %12043 = vmatpush3.bf16.msra.mxu1 %v12577_v47  ;;  %v3553_v47 = vld [vmem:[%s17970_s3] sm:$0x1] }
 0x37d   : > { %12044 = vmatprep.subr.bf16.mxu1 %v12578_v63 }
 0x380   : > { %12045 = vmatpush3.bf16.msra.mxu1 %v12578_v63 }
 0x381   : > { %12046 = vmatprep.subr.bf16.mxu1 %v12580_v2 }
 0x384   : > { %12047 = vmatpush3.bf16.msra.mxu1 %v12580_v2  ;;  %v12606_v2 = vld [vmem:[%s17968_s1 + $0x2b8] sm:$0xff]  }
 0x385   : > { %12048 = vmatprep.subr.bf16.mxu1 %v12582_v19 }
 0x388   : > { %12049 = vmatpush3.bf16.msra.mxu1 %v12582_v19 }
 0x389   : > { %12050 = vmatprep.subr.bf16.mxu1 %v12583_v55 }
 0x38c   : > { %12051 = vmatpush3.bf16.msra.mxu1 %v12583_v55 }
 0x38d   : > { %11088 = vmatprep.subr.bf16.mxu1 %v12606_v2 }
 0x3fb   : > { %v3474_v32 = vpop.f32.mrf.mxu1 }
 0x3fd   : > { %v12028_v36 = vpop.f32.mrf.mxu1 }
 0x3fe   : > { %v14693_v36 = vshrl.u32 %v18004_v1, 7 }
 0x400   : > { %18150 = vst [vmem:[#allocation30_spill] sm:$0xff] %v14693_v36  ;;  %v14699_v63 = vsub.s32 0, %v14693_v36 }
 0x402   : > { %18151 = vst [vmem:[#allocation28_spill] sm:$0xff] %v14699_v63 }
 0x42f   : > { %v3549_v54 = vpop.f32.mrf.mxu1 }
 0x430   : > { %v3554_v39 = vmul.f32 %v3553_v47, %v3549_v54 }
 0x431   : > { %v12035_v19 = vpop.f32.mrf.mxu1 }
 0x432   : > { %v3556_v14 = vmul.f32 %v3554_v39, %v3474_v32  ;;  %v3561_v55 = vrot.slane %v3554_v39, %v14699_v63 }
 0x434   : > { %v3557_v1 = vsub.f32 %v3555_v0, %v3556_v14  ;;  %v3562_v43 = vmul.f32 %v3561_v55, %v14258_v44  ;;  %v3563_v36 = vmul.f32 %v3561_v55, %v14273_v28  ;;  %v3564_v23 = vmul.f32 %v3561_v55, %v14270_v8 }
 0x435   : > { %v3565_v62 = vmul.f32 %v3561_v55, %v14282_v56  ;;  %v3566_v47 = vmul.f32 %v3561_v55, %v14297_v20  ;;  %v3567_v2 = vmul.f32 %v3561_v55, %v14323_v53  ;;  %v3568_v54 = vmul.f32 %v3561_v55, %v14320_v24 }
 0x436   : > { %v3598_v19 = vrot.slane %v3557_v1, %v14699_v63  ;;  %v3569_v32 = vmul.f32 %v3561_v55, %v14331_v15  ;;  %v3570_v39 = vmul.f32 %v3561_v55, %v14345_v52  ;;  %v3571_v44 = vmul.f32 %v3561_v55, %v14365_v17 }
 0x437   : > { %v3572_v28 = vmul.f32 %v3561_v55, %v14362_v7  ;;  %v3573_v8 = vmul.f32 %v3561_v55, %v14378_v45  ;;  %v3574_v56 = vmul.f32 %v3561_v55, %v14390_v27  ;;  %v3575_v20 = vmul.f32 %v3561_v55, %v14405_v22 }
 0x438   : > { %v3576_v53 = vmul.f32 %v3561_v55, %v14408_v9  ;;  %v3577_v24 = vmul.f32 %v3561_v55, %v14421_v16  ;;  %v3578_v1 = vmul.f32 %v3561_v55, %v14431_v26  ;;  %v3579_v15 = vmul.f32 %v3561_v55, %v14447_v50 }
 0x439   : > { %v3580_v52 = vmul.f32 %v3561_v55, %v14444_v41  ;;  %v3581_v17 = vmul.f32 %v3561_v55, %v14460_v40  ;;  %v3582_v7 = vmul.f32 %v3561_v55, %v14470_v13  ;;  %v3583_v45 = vmul.f32 %v3561_v55, %v14483_v25 }
 0x43a   : > { %v3584_v27 = vmul.f32 %v3561_v55, %v14478_v33  ;;  %v3585_v22 = vmul.f32 %v3561_v55, %v14502_v34  ;;  %v3586_v9 = vmul.f32 %v3561_v55, %v14509_v10  ;;  %v3587_v16 = vmul.f32 %v3561_v55, %v14513_v51 }
 0x43b   : > { %v3588_v26 = vmul.f32 %v3561_v55, %v14522_v31  ;;  %v3589_v50 = vmul.f32 %v3561_v55, %v14531_v29  ;;  %v3590_v41 = vmul.f32 %v3561_v55, %v14538_v4  ;;  %v3591_v40 = vmul.f32 %v3561_v55, %v14542_v35 }
 0x43c   : > { %v3592_v13 = vmul.f32 %v3561_v55, %v14547_v58  ;;  %v3593_v25 = vmul.f32 %v3561_v55, %v14553_v38  ;;  %v14741_v0 = vadd.f32 %v3598_v19, %v3562_v43  ;;  %v14743_v33 = vadd.f32 %v3598_v19, %v3563_v36 }
 0x43d   : > { %v14745_v34 = vadd.f32 %v3598_v19, %v3564_v23  ;;  %v14747_v10 = vadd.f32 %v3598_v19, %v3565_v62  ;;  %v14749_v51 = vadd.f32 %v3598_v19, %v3566_v47  ;;  %v14751_v31 = vadd.f32 %v3598_v19, %v3567_v2 }
 0x43e   : > { %v14753_v29 = vadd.f32 %v3598_v19, %v3568_v54  ;;  %v14755_v4 = vadd.f32 %v3598_v19, %v3569_v32  ;;  %v14757_v35 = vadd.f32 %v3598_v19, %v3570_v39  ;;  %v14759_v58 = vadd.f32 %v3598_v19, %v3571_v44 }
 0x43f   : > { %v14761_v38 = vadd.f32 %v3598_v19, %v3572_v28  ;;  %v14763_v43 = vadd.f32 %v3598_v19, %v3573_v8  ;;  %v14765_v23 = vadd.f32 %v3598_v19, %v3574_v56  ;;  %v14767_v62 = vadd.f32 %v3598_v19, %v3575_v20 }
 0x440   : > { %v14769_v36 = vadd.f32 %v3598_v19, %v3576_v53  ;;  %v14771_v14 = vadd.f32 %v3598_v19, %v3577_v24  ;;  %v14773_v55 = vadd.f32 %v3598_v19, %v3578_v1  ;;  %v14775_v47 = vadd.f32 %v3598_v19, %v3579_v15 }
 0x441   : > { %v14777_v2 = vadd.f32 %v3598_v19, %v3580_v52  ;;  %v14779_v54 = vadd.f32 %v3598_v19, %v3581_v17  ;;  %v14781_v32 = vadd.f32 %v3598_v19, %v3582_v7  ;;  %v14783_v39 = vadd.f32 %v3598_v19, %v3583_v45 }
 0x442   : > { %v14785_v44 = vadd.f32 %v3598_v19, %v3584_v27  ;;  %v14787_v28 = vadd.f32 %v3598_v19, %v3585_v22  ;;  %v14789_v8 = vadd.f32 %v3598_v19, %v3586_v9  ;;  %v14791_v56 = vadd.f32 %v3598_v19, %v3587_v16 }
 0x443   : > { %v14793_v20 = vadd.f32 %v3598_v19, %v3588_v26  ;;  %v14795_v53 = vadd.f32 %v3598_v19, %v3589_v50  ;;  %v14797_v24 = vadd.f32 %v3598_v19, %v3590_v41  ;;  %v14799_v1 = vadd.f32 %v3598_v19, %v3591_v40 }
 0x444   : > { %v14801_v15 = vadd.f32 %v3598_v19, %v3592_v13  ;;  %v14803_v52 = vadd.f32 %v3598_v19, %v3593_v25  ;;  %v3632_v17 = vmax.f32 %v14741_v0, 0.0  ;;  %v3633_v7 = vmax.f32 %v14743_v33, 0.0 }
 0x445   : > { %v3634_v45 = vmax.f32 %v14745_v34, 0.0  ;;  %v3635_v27 = vmax.f32 %v14747_v10, 0.0  ;;  %v3636_v22 = vmax.f32 %v14749_v51, 0.0  ;;  %v3637_v9 = vmax.f32 %v14751_v31, 0.0 }
 0x446   : > { %v3638_v16 = vmax.f32 %v14753_v29, 0.0  ;;  %v3639_v26 = vmax.f32 %v14755_v4, 0.0  ;;  %v3640_v50 = vmax.f32 %v14757_v35, 0.0  ;;  %v3641_v19 = vmax.f32 %v14759_v58, 0.0 }
 0x447   : > { %v3642_v41 = vmax.f32 %v14761_v38, 0.0  ;;  %v3643_v40 = vmax.f32 %v14763_v43, 0.0  ;;  %v3644_v13 = vmax.f32 %v14765_v23, 0.0  ;;  %v3645_v25 = vmax.f32 %v14767_v62, 0.0 }
 0x448   : > { %v3646_v0 = vmax.f32 %v14769_v36, 0.0  ;;  %v3647_v33 = vmax.f32 %v14771_v14, 0.0  ;;  %v3648_v34 = vmax.f32 %v14773_v55, 0.0  ;;  %v3649_v10 = vmax.f32 %v14775_v47, 0.0 }
 0x449   : > { %v3650_v51 = vmax.f32 %v14777_v2, 0.0  ;;  %v3651_v31 = vmax.f32 %v14779_v54, 0.0  ;;  %v3652_v29 = vmax.f32 %v14781_v32, 0.0  ;;  %v3653_v4 = vmax.f32 %v14783_v39, 0.0 }
 0x44a   : > { %v3654_v35 = vmax.f32 %v14785_v44, 0.0  ;;  %v3655_v58 = vmax.f32 %v14787_v28, 0.0  ;;  %v3656_v38 = vmax.f32 %v14789_v8, 0.0  ;;  %v3657_v43 = vmax.f32 %v14791_v56, 0.0 }
 0x44b   : > { %v3658_v23 = vmax.f32 %v14793_v20, 0.0  ;;  %v3659_v62 = vmax.f32 %v14795_v53, 0.0  ;;  %v3660_v36 = vmax.f32 %v14797_v24, 0.0  ;;  %v3661_v14 = vmax.f32 %v14799_v1, 0.0 }
 0x44c   : > { %v3662_v55 = vmax.f32 %v14801_v15, 0.0  ;;  %v3663_v47 = vmax.f32 %v14803_v52, 0.0  ;;  %v10440_v2 = vpack.c.bf16 %v3632_v17, %v3632_v17  ;;  %v10441_v54 = vpack.c.bf16 %v3633_v7, %v3633_v7 }
 0x44d   : > { %v10442_v32 = vpack.c.bf16 %v3634_v45, %v3634_v45  ;;  %v10443_v39 = vpack.c.bf16 %v3635_v27, %v3635_v27  ;;  %v10444_v44 = vpack.c.bf16 %v3636_v22, %v3636_v22  ;;  %v14837_v28 = vpack.c.bf16 %v3637_v9, %v3637_v9 }
 0x44e   : > { %v14839_v8 = vpack.c.bf16 %v3638_v16, %v3638_v16  ;;  %v14841_v56 = vpack.c.bf16 %v3639_v26, %v3639_v26  ;;  %v14843_v20 = vpack.c.bf16 %v3640_v50, %v3640_v50  ;;  %v14845_v53 = vpack.c.bf16 %v3641_v19, %v3641_v19 }
 0x44f   : > { %v14847_v24 = vpack.c.bf16 %v3642_v41, %v3642_v41  ;;  %v14849_v1 = vpack.c.bf16 %v3643_v40, %v3643_v40  ;;  %v14851_v15 = vpack.c.bf16 %v3644_v13, %v3644_v13  ;;  %v14853_v52 = vpack.c.bf16 %v3645_v25, %v3645_v25 }
 0x450   : > { %v14855_v17 = vpack.c.bf16 %v3646_v0, %v3646_v0  ;;  %v14857_v7 = vpack.c.bf16 %v3647_v33, %v3647_v33  ;;  %v14859_v45 = vpack.c.bf16 %v3648_v34, %v3648_v34  ;;  %v14861_v27 = vpack.c.bf16 %v3649_v10, %v3649_v10 }
 0x451   : > { %v14863_v22 = vpack.c.bf16 %v3650_v51, %v3650_v51  ;;  %v14865_v9 = vpack.c.bf16 %v3651_v31, %v3651_v31  ;;  %v14867_v16 = vpack.c.bf16 %v3652_v29, %v3652_v29  ;;  %v14869_v26 = vpack.c.bf16 %v3653_v4, %v3653_v4 }
 0x452   : > { %v14871_v50 = vpack.c.bf16 %v3654_v35, %v3654_v35  ;;  %v14873_v19 = vpack.c.bf16 %v3655_v58, %v3655_v58  ;;  %v14875_v41 = vpack.c.bf16 %v3656_v38, %v3656_v38  ;;  %v14877_v40 = vpack.c.bf16 %v3657_v43, %v3657_v43 }
 0x453   : > { %v14879_v13 = vpack.c.bf16 %v3658_v23, %v3658_v23  ;;  %v14881_v25 = vpack.c.bf16 %v3659_v62, %v3659_v62  ;;  %v14883_v0 = vpack.c.bf16 %v3660_v36, %v3660_v36  ;;  %v14885_v33 = vpack.c.bf16 %v3661_v14, %v3661_v14 }
 0x454   : > { %v14887_v34 = vpack.c.bf16 %v3662_v55, %v3662_v55  ;;  %v14889_v10 = vpack.c.bf16 %v3663_v47, %v3663_v47  ;;  %v3761_v51 = vshrl.u32 %v10440_v2, 16  ;;  %v3764_v31 = vshll.u32 %v10440_v2, 16 }
 0x455   : > { %v3769_v29 = vshrl.u32 %v10441_v54, 16  ;;  %v3772_v4 = vshll.u32 %v10441_v54, 16  ;;  %v3778_v35 = vshrl.u32 %v10442_v32, 16  ;;  %v3781_v58 = vshll.u32 %v10442_v32, 16 }
 0x456   : > { %v3763_v38 = vrot.slane %v3761_v51, 7  ;;  %v3786_v43 = vshrl.u32 %v10443_v39, 16  ;;  %v3789_v23 = vshll.u32 %v10443_v39, 16  ;;  %v3795_v63 = vshrl.u32 %v10444_v44, 16 }
 0x457   : > { %v14891_v62 = vrot.slane %v3769_v29, 7  ;;  %v3780_v36 = vrot.slane %v3778_v35, 7  ;;  %v3798_v46 = vshll.u32 %v10444_v44, 16  ;;  %v3803_v14 = vshrl.u32 %v14837_v28, 16 }
 0x458   : > { %v14894_v55 = vor.u32 %v3764_v31, %v3763_v38  ;;  %v3767_v47 = vrot.slane %v3763_v38, 4  ;;  %v14896_v11 = vrot.slane %v3786_v43, 7  ;;  %v3797_v2 = vrot.slane %v3795_v63, 7 }
 0x459   : > { %v3774_v54 = vor.u32 %v3772_v4, %v14891_v62  ;;  %v14900_v51 = vor.u32 %v3781_v58, %v3780_v36  ;;  %v3784_v39 = vrot.slane %v3780_v36, 4  ;;  %v14908_v43 = vrot.slane %v3803_v14, 7 }
 0x45a   : > { %v3791_v29 = vor.u32 %v3789_v23, %v14896_v11  ;;  %v14904_v44 = vor.u32 %v3798_v46, %v3797_v2  ;;  %v3801_v60 = vrot.slane %v3797_v2, 4  ;;  %v3806_v63 = vshll.u32 %v14837_v28, 16 }
 0x45b   : > { %v3775_v38 = vsel %vm13154_vm7, %v3767_v47, %v3774_v54  ;;  %v3812_v4 = vshrl.u32 %v14839_v8, 16  ;;  %v3815_v36 = vshll.u32 %v14839_v8, 16  ;;  %v3820_v23 = vshrl.u32 %v14841_v56, 16 }
 0x45c   : > { %v3792_v58 = vsel %vm13154_vm7, %v3784_v39, %v3791_v29  ;;  %v3823_v46 = vshll.u32 %v14841_v56, 16  ;;  %4083 = vst [vmem:[#allocation2 + $0x10] sm:$0xf] %v3775_v38  ;;  %v3808_v2 = vor.u32 %v3806_v63, %v14908_v43  ;;  %v3829_v54 = vshrl.u32 %v14843_v20, 16 }
 0x45d   : > { %v3814_v14 = vrot.slane %v3812_v4, 7  ;;  %4090 = vst [vmem:[#allocation2 + $0x1c] sm:$0xf] %v3792_v58  ;;  %v14920_v28 = vrot.slane %v3820_v23, 7  ;;  %v3832_v35 = vshll.u32 %v14843_v20, 16  ;;  %v3837_v39 = vshrl.u32 %v14845_v53, 16 }
 0x45e   : > { %v3840_v8 = vshll.u32 %v14845_v53, 16  ;;  %v3809_v56 = vsel %vm13154_vm7, %v3801_v60, %v3808_v2  ;;  %v3831_v63 = vrot.slane %v3829_v54, 7  ;;  %v3846_v23 = vshrl.u32 %v14847_v24, 16 }
 0x45f   : > { %v14927_v29 = vor.u32 %v3815_v36, %v3814_v14  ;;  %v3818_v38 = vrot.slane %v3814_v14, 4  ;;  %v3825_v4 = vor.u32 %v3823_v46, %v14920_v28  ;;  %v14931_v58 = vrot.slane %v3837_v39, 7  ;;  %4097 = vst [vmem:[#allocation2 + $0x28] sm:$0xf] %v3809_v56 }
 0x460   : > { %v14934_v20 = vor.u32 %v3832_v35, %v3831_v63  ;;  %v3835_v32 = vrot.slane %v3831_v63, 4  ;;  %v3849_v53 = vshll.u32 %v14847_v24, 16  ;;  %v3854_v60 = vshrl.u32 %v14849_v1, 16 }
 0x461   : > { %v3826_v36 = vsel %vm13154_vm7, %v3818_v38, %v3825_v4  ;;  %v3842_v2 = vor.u32 %v3840_v8, %v14931_v58  ;;  %v3848_v14 = vrot.slane %v3846_v23, 7  ;;  %v3857_v39 = vshll.u32 %v14849_v1, 16 }
 0x462   : > { %v14942_v54 = vrot.slane %v3854_v60, 7  ;;  %v3863_v35 = vshrl.u32 %v14851_v15, 16  ;;  %v3866_v56 = vshll.u32 %v14851_v15, 16  ;;  %4104 = vst [vmem:[#allocation2 + $0x34] sm:$0xf] %v3826_v36  ;;  %v3871_v8 = vshrl.u32 %v14853_v52, 16 }
 0x463   : > { %v3843_v24 = vsel %vm13154_vm7, %v3835_v32, %v3842_v2  ;;  %v14949_v63 = vor.u32 %v3849_v53, %v3848_v14  ;;  %v3852_v38 = vrot.slane %v3848_v14, 4  ;;  %v3874_v1 = vshll.u32 %v14853_v52, 16 }
 0x464   : > { %v3859_v4 = vor.u32 %v3857_v39, %v14942_v54  ;;  %v3865_v60 = vrot.slane %v3863_v35, 7  ;;  %4111 = vst [vmem:[#allocation2 + $0x40] sm:$0xf] %v3843_v24  ;;  %v14955_v46 = vrot.slane %v3871_v8, 7  ;;  %v3880_v15 = vshrl.u32 %v14855_v17, 16 }
 0x465   : > { %v3883_v36 = vshll.u32 %v14855_v17, 16  ;;  %v3888_v32 = vshrl.u32 %v14857_v7, 16  ;;  %v3891_v39 = vshll.u32 %v14857_v7, 16  ;;  %v3897_v17 = vshrl.u32 %v14859_v45, 16 }
 0x466   : > { %v3860_v53 = vsel %vm13154_vm7, %v3852_v38, %v3859_v4  ;;  %v14962_v2 = vor.u32 %v3866_v56, %v3865_v60  ;;  %v3869_v14 = vrot.slane %v3865_v60, 4  ;;  %v3876_v35 = vor.u32 %v3874_v1, %v14955_v46 }
 0x467   : > { %v3882_v24 = vrot.slane %v3880_v15, 7  ;;  %v14967_v8 = vrot.slane %v3888_v32, 7  ;;  %4118 = vst [vmem:[#allocation2 + $0x4c] sm:$0xf] %v3860_v53  ;;  %v3900_v23 = vshll.u32 %v14859_v45, 16  ;;  %v3905_v47 = vshrl.u32 %v14861_v27, 16 }
 0x468   : > { %v3908_v56 = vshll.u32 %v14861_v27, 16  ;;  %v3877_v38 = vsel %vm13154_vm7, %v3869_v14, %v3876_v35  ;;  %v3899_v15 = vrot.slane %v3897_v17, 7  ;;  %v3914_v53 = vshrl.u32 %v14863_v22, 16 }
 0x469   : > { %v14975_v7 = vor.u32 %v3883_v36, %v3882_v24  ;;  %v3886_v4 = vrot.slane %v3882_v24, 4  ;;  %v3893_v60 = vor.u32 %v3891_v39, %v14967_v8  ;;  %v14979_v32 = vrot.slane %v3905_v47, 7  ;;  %4125 = vst [vmem:[#allocation2 + $0x58] sm:$0xf] %v3877_v38 }
 0x46a   : > { %v3917_v27 = vshll.u32 %v14863_v22, 16  ;;  %v3922_v14 = vshrl.u32 %v14865_v9, 16  ;;  %v3925_v36 = vshll.u32 %v14865_v9, 16  ;;  %v14987_v35 = vor.u32 %v3900_v23, %v3899_v15 }
 0x46b   : > { %v3894_v45 = vsel %vm13154_vm7, %v3886_v4, %v3893_v60  ;;  %v3903_v39 = vrot.slane %v3899_v15, 4  ;;  %v3910_v24 = vor.u32 %v3908_v56, %v14979_v32  ;;  %v3916_v17 = vrot.slane %v3914_v53, 7 }
 0x46c   : > { %4132 = vst [vmem:[#allocation2 + $0x64] sm:$0xf] %v3894_v45  ;;  %v14991_v1 = vrot.slane %v3922_v14, 7  ;;  %v3931_v38 = vshrl.u32 %v14867_v16, 16  ;;  %v3934_v4 = vshll.u32 %v14867_v16, 16  ;;  %v3939_v9 = vshrl.u32 %v14869_v26, 16 }
 0x46d   : > { %v3911_v22 = vsel %vm13154_vm7, %v3903_v39, %v3910_v24  ;;  %v3942_v23 = vshll.u32 %v14869_v26, 16  ;;  %v3948_v60 = vshrl.u32 %v14871_v50, 16  ;;  %v15000_v56 = vor.u32 %v3917_v27, %v3916_v17 }
 0x46e   : > { %v3920_v15 = vrot.slane %v3916_v17, 4  ;;  %v3927_v53 = vor.u32 %v3925_v36, %v14991_v1  ;;  %4139 = vst [vmem:[#allocation2 + $0x70] sm:$0xf] %v3911_v22  ;;  %v3933_v14 = vrot.slane %v3931_v38, 7  ;;  %v15004_v47 = vrot.slane %v3939_v9, 7 }
 0x46f   : > { %v3950_v16 = vrot.slane %v3948_v60, 7  ;;  %v3951_v39 = vshll.u32 %v14871_v50, 16  ;;  %v3956_v26 = vshrl.u32 %v14873_v19, 16  ;;  %v3959_v27 = vshll.u32 %v14873_v19, 16  ;;  %v4080_v38 = vld [vmem:[#allocation2 + $0xc] sm:$0xf] }
 0x470   : > { %v3928_v24 = vsel %vm13154_vm7, %v3920_v15, %v3927_v53  ;;  %v3965_v17 = vshrl.u32 %v14875_v41, 16  ;;  %v15012_v52 = vor.u32 %v3934_v4, %v3933_v14  ;;  %v3937_v36 = vrot.slane %v3933_v14, 4 }
 0x471   : > { %v3944_v22 = vor.u32 %v3942_v23, %v15004_v47  ;;  %4146 = vst [vmem:[#allocation2 + $0x7c] sm:$0xf] %v3928_v24  ;;  %v15016_v9 = vor.u32 %v3951_v39, %v3950_v16  ;;  %v3954_v50 = vrot.slane %v3950_v16, 4  ;;  %v15018_v60 = vrot.slane %v3956_v26, 7 }
 0x472   : > { %v3967_v15 = vrot.slane %v3965_v17, 7  ;;  %v3968_v19 = vshll.u32 %v14875_v41, 16  ;;  %v3973_v4 = vshrl.u32 %v14877_v40, 16  ;;  %v3976_v14 = vshll.u32 %v14877_v40, 16 }
 0x473   : > { %v3945_v53 = vsel %vm13154_vm7, %v3937_v36, %v3944_v22  ;;  %v3961_v23 = vor.u32 %v3959_v27, %v15018_v60  ;;  %v3982_v39 = vshrl.u32 %v14879_v13, 16  ;;  %v3985_v17 = vshll.u32 %v14879_v13, 16  ;;  %v4087_v13 = vld [vmem:[#allocation2 + $0x18] sm:$0xf] }
 0x474   : > { %v3971_v24 = vrot.slane %v3967_v15, 4  ;;  %4153 = vst [vmem:[#allocation2 + $0x88] sm:$0xf] %v3945_v53  ;;  %v15028_v16 = vor.u32 %v3968_v19, %v3967_v15  ;;  %v15030_v26 = vrot.slane %v3973_v4, 7  ;;  %v3990_v41 = vshrl.u32 %v14881_v25, 16 }
 0x475   : > { %v3962_v36 = vsel %vm13154_vm7, %v3954_v50, %v3961_v23  ;;  %v3984_v40 = vrot.slane %v3982_v39, 7  ;;  %v3993_v27 = vshll.u32 %v14881_v25, 16  ;;  %v3999_v22 = vshrl.u32 %v14883_v0, 16  ;;  %v4091_v4 = vld [vmem:[#allocation2 + $0x20] sm:$0x1] }
 0x476   : > { %v3978_v45 = vor.u32 %v3976_v14, %v15030_v26  ;;  %v15040_v53 = vrot.slane %v3990_v41, 7  ;;  %v4002_v19 = vshll.u32 %v14883_v0, 16  ;;  %4160 = vst [vmem:[#allocation2 + $0x94] sm:$0xf] %v3962_v36  ;;  %v4007_v25 = vshrl.u32 %v14885_v33, 16 }
 0x477   : > { %v15043_v42 = vor.u32 %v3985_v17, %v3984_v40  ;;  %v3988_v50 = vrot.slane %v3984_v40, 4  ;;  %v4001_v23 = vrot.slane %v3999_v22, 7  ;;  %v4084_v39 = vld [vmem:[#allocation2 + $0x14] sm:$0x1]  ;;  %v4010_v0 = vshll.u32 %v14885_v33, 16 }
 0x478   : > { %v3979_v14 = vsel %vm13154_vm7, %v3971_v24, %v3978_v45  ;;  %v3995_v15 = vor.u32 %v3993_v27, %v15040_v53  ;;  %v4101_v36 = vld [vmem:[#allocation2 + $0x30] sm:$0xf]  ;;  %v15053_v40 = vrot.slane %v4007_v25, 7  ;;  %v4016_v22 = vshrl.u32 %v14887_v34, 16  ;;  %v4112_v41 = vld [vmem:[#allocation2 + $0x44] sm:$0x1] }
 0x479   : > { %v15051_v61 = vor.u32 %v4002_v19, %v4001_v23  ;;  %v4005_v17 = vrot.slane %v4001_v23, 4  ;;  %4167 = vst [vmem:[#allocation2 + $0xa0] sm:$0xf] %v3979_v14  ;;  %v4019_v24 = vshll.u32 %v14887_v34, 16  ;;  %v4024_v33 = vshrl.u32 %v14889_v10, 16 }
 0x47a   : > { %v3996_v45 = vsel %vm13154_vm7, %v3988_v50, %v3995_v15  ;;  %v4027_v27 = vshll.u32 %v14889_v10, 16  ;;  %v4119_v19 = vld [vmem:[#allocation2 + $0x50] sm:$0x1]  ;;  %v4122_v23 = vld [vmem:[#allocation2 + $0x54] sm:$0xf]  ;;  %v4012_v25 = vor.u32 %v4010_v0, %v15053_v40  ;;  %v4018_v14 = vrot.slane %v4016_v22, 7 }
 0x47b   : > { %v4081_v5 = vsel %vm13160_vm8, %v14894_v55, %v4080_v38  ;;  %4174 = vst [vmem:[#allocation2 + $0xac] sm:$0xf] %v3996_v45  ;;  %v4129_v15 = vld [vmem:[#allocation2 + $0x60] sm:$0xf]  ;;  %v4133_v50 = vld [vmem:[#allocation2 + $0x68] sm:$0x1]  ;;  %v4088_v22 = vsel %vm13160_vm8, %v14900_v51, %v4087_v13  ;;  %v4095_v51 = vsel %vm13160_vm8, %v14904_v44, %v4094_v48 }
 0x47c   : > { %v4126_v34 = vld [vmem:[#allocation2 + $0x5c] sm:$0x1]  ;;  %v15066_v59 = vrot.slane %v4024_v33, 7  ;;  %4082 = vst [vmem:[#allocation2 + $0xc] sm:$0xf] %v4081_v5  ;;  %v18154_v10 = vrot.slane %v14891_v62, 4  ;;  %v4013_v5 = vsel %vm13154_vm7, %v4005_v17, %v4012_v25  ;;  %v15081_v33 = vor.u32 %v4019_v24, %v4018_v14 }
 0x47d   : > { %v18156_v57 = vrot.slane %v14896_v11, 4  ;;  %v4143_v38 = vld [vmem:[#allocation2 + $0x78] sm:$0xf]  ;;  %v4147_v45 = vld [vmem:[#allocation2 + $0x80] sm:$0x1]  ;;  %v4022_v62 = vrot.slane %v4018_v14, 4  ;;  %v4102_v24 = vsel %vm13160_vm8, %v14927_v29, %v4101_v36  ;;  %v4116_v36 = vsel %vm13160_vm8, %v14949_v63, %v4115_v21 }
 0x47e   : > { %v4085_v0 = vsel %vm12998_vm2, %v18154_v10, %v4084_v39  ;;  %4089 = vst [vmem:[#allocation2 + $0x18] sm:$0xf] %v4088_v22  ;;  %v4157_v11 = vld [vmem:[#allocation2 + $0x90] sm:$0xf]  ;;  %v4150_v13 = vld [vmem:[#allocation2 + $0x84] sm:$0xf] }
 0x47f   : > { %v4092_v55 = vsel %vm12998_vm2, %v18156_v57, %v4091_v4  ;;  %4086 = vst [vmem:[#allocation2 + $0x14] sm:$0x1] %v4085_v0  ;;  %v4029_v57 = vor.u32 %v4027_v27, %v15066_v59  ;;  %v4031_v4 = vrot.slane %v15066_v59, 4  ;;  %4096 = vst [vmem:[#allocation2 + $0x24] sm:$0xf] %v4095_v51  ;;  %v18157_v39 = vrot.slane %v14908_v43, 4 }
 0x480   : > { %4093 = vst [vmem:[#allocation2 + $0x20] sm:$0x1] %v4092_v55  ;;  %4181 = vst [vmem:[#allocation2 + $0xb8] sm:$0xf] %v4013_v5  ;;  %v4161_v25 = vld [vmem:[#allocation2 + $0x98] sm:$0x1]  ;;  %v4109_v43 = vsel %vm13160_vm8, %v14934_v20, %v4108_v12 }
 0x481   : > { %v4099_v17 = vsel %vm12998_vm2, %v18157_v39, %v4098_v3  ;;  %v4154_v14 = vld [vmem:[#allocation2 + $0x8c] sm:$0x1]  ;;  %v4171_v48 = vld [vmem:[#allocation2 + $0xa8] sm:$0xf]  ;;  %4103 = vst [vmem:[#allocation2 + $0x30] sm:$0xf] %v4102_v24 }
 0x482   : > { %4100 = vst [vmem:[#allocation2 + $0x2c] sm:$0x1] %v4099_v17  ;;  %v18158_v44 = vrot.slane %v14920_v28, 4  ;;  %v18159_v3 = vrot.slane %v14931_v58, 4  ;;  %v4164_v10 = vld [vmem:[#allocation2 + $0x9c] sm:$0xf]  ;;  %v4030_v28 = vsel %vm13154_vm7, %v4022_v62, %v4029_v57  ;;  %v4123_v58 = vsel %vm13160_vm8, %v14962_v2, %v4122_v23 }
 0x483   : > { %v4168_v0 = vld [vmem:[#allocation2 + $0xa4] sm:$0x1]  ;;  %4110 = vst [vmem:[#allocation2 + $0x3c] sm:$0xf] %v4109_v43  ;;  %4117 = vst [vmem:[#allocation2 + $0x48] sm:$0xf] %v4116_v36 }
 0x484   : > { %v4106_v27 = vsel %vm12998_vm2, %v18158_v44, %v4105_v18  ;;  %v4113_v29 = vsel %vm12998_vm2, %v18159_v3, %v4112_v41  ;;  %v18160_v12 = vrot.slane %v14942_v54, 4  ;;  %v18161_v21 = vrot.slane %v14955_v46, 4  ;;  %v4175_v63 = vld [vmem:[#allocation2 + $0xb0] sm:$0x1]  ;;  %v4178_v41 = vld [vmem:[#allocation2 + $0xb4] sm:$0xf] }
 0x485   : > { %4107 = vst [vmem:[#allocation2 + $0x38] sm:$0x1] %v4106_v27  ;;  %4114 = vst [vmem:[#allocation2 + $0x44] sm:$0x1] %v4113_v29  ;;  %v4182_v22 = vld [vmem:[#allocation2 + $0xbc] sm:$0x1]  ;;  %v4130_v54 = vsel %vm13160_vm8, %v14975_v7, %v4129_v15  ;;  %v4137_v46 = vsel %vm13160_vm8, %v14987_v35, %v4136_v30 }
 0x486   : > { %v4120_v18 = vsel %vm12998_vm2, %v18160_v12, %v4119_v19  ;;  %v4127_v20 = vsel %vm12998_vm2, %v18161_v21, %v4126_v34  ;;  %4124 = vst [vmem:[#allocation2 + $0x54] sm:$0xf] %v4123_v58  ;;  %v18162_v19 = vrot.slane %v14967_v8, 4  ;;  %v18163_v23 = vrot.slane %v14979_v32, 4  ;;  %4188 = vst [vmem:[#allocation2 + $0xc4] sm:$0xf] %v4030_v28 }
 0x487   : > { %4121 = vst [vmem:[#allocation2 + $0x50] sm:$0x1] %v4120_v18  ;;  %4128 = vst [vmem:[#allocation2 + $0x5c] sm:$0x1] %v4127_v20  ;;  %v4185_v55 = vld [vmem:[#allocation2 + $0xc0] sm:$0xf]  ;;  %v4144_v8 = vsel %vm13160_vm8, %v15000_v56, %v4143_v38 }
 0x488   : > { %v4134_v2 = vsel %vm12998_vm2, %v18162_v19, %v4133_v50  ;;  %v4141_v34 = vsel %vm12998_vm2, %v18163_v23, %v4140_v49  ;;  %v4189_v5 = vld [vmem:[#allocation2 + $0xc8] sm:$0x1]  ;;  %4131 = vst [vmem:[#allocation2 + $0x60] sm:$0xf] %v4130_v54  ;;  %4138 = vst [vmem:[#allocation2 + $0x6c] sm:$0xf] %v4137_v46  ;;  %v4151_v49 = vsel %vm13160_vm8, %v15012_v52, %v4150_v13 }
 0x489   : > { %4135 = vst [vmem:[#allocation2 + $0x68] sm:$0x1] %v4134_v2  ;;  %4142 = vst [vmem:[#allocation2 + $0x74] sm:$0x1] %v4141_v34  ;;  %v18164_v7 = vrot.slane %v14991_v1, 4  ;;  %v18165_v32 = vrot.slane %v15004_v47, 4  ;;  %v4158_v1 = vsel %vm13160_vm8, %v15016_v9, %v4157_v11  ;;  %v4165_v52 = vsel %vm13160_vm8, %v15028_v16, %v4164_v10 }
 0x48a   : > { %4145 = vst [vmem:[#allocation2 + $0x78] sm:$0xf] %v4144_v8  ;;  %4152 = vst [vmem:[#allocation2 + $0x84] sm:$0xf] %v4151_v49  ;;  %v18166_v56 = vrot.slane %v15018_v60, 4  ;;  %v18167_v47 = vrot.slane %v15030_v26, 4  ;;  %v4172_v9 = vsel %vm13160_vm8, %v15043_v42, %v4171_v48  ;;  %v4179_v26 = vsel %vm13160_vm8, %v15051_v61, %v4178_v41 }
 0x48b   : > { %v4148_v30 = vsel %vm12998_vm2, %v18164_v7, %v4147_v45  ;;  %v4155_v35 = vsel %vm12998_vm2, %v18165_v32, %v4154_v14  ;;  %v15164_v38 = vld [vmem:[#allocation2 + $0xc] sm:$0xff]   ;;  %4159 = vst [vmem:[#allocation2 + $0x90] sm:$0xf] %v4158_v1  ;;  %4166 = vst [vmem:[#allocation2 + $0x9c] sm:$0xf] %v4165_v52  ;;  %v18168_v60 = vrot.slane %v15040_v53, 4  ;;  %v4186_v42 = vsel %vm13160_vm8, %v15081_v33, %v4185_v55 }
 0x48c   : > { %4149 = vst [vmem:[#allocation2 + $0x80] sm:$0x1] %v4148_v30  ;;  %4156 = vst [vmem:[#allocation2 + $0x8c] sm:$0x1] %v4155_v35  ;;  %v4162_v15 = vsel %vm12998_vm2, %v18166_v56, %v4161_v25  ;;  %v4169_v50 = vsel %vm12998_vm2, %v18167_v47, %v4168_v0  ;;  %v18169_v45 = vrot.slane %v15053_v40, 4  ;;  %v15180_v11 = vld [vmem:[#allocation2 + $0x18] sm:$0xff]   ;;  %v4190_v61 = vsel %vm12998_vm2, %v4031_v4, %v4189_v5 }
 0x48d   : > { %4163 = vst [vmem:[#allocation2 + $0x98] sm:$0x1] %v4162_v15  ;;  %4170 = vst [vmem:[#allocation2 + $0xa4] sm:$0x1] %v4169_v50  ;;  %v4176_v16 = vsel %vm12998_vm2, %v18168_v60, %v4175_v63  ;;  %v4645_v53 = vrot.slane %v15164_v38, 1  ;;  %v15190_v40 = vld [vmem:[#allocation2 + $0x24] sm:$0xff]  }
 0x48e   : > { %v4183_v62 = vsel %vm12998_vm2, %v18169_v45, %v4182_v22  ;;  %v12585_v51 = vld [vmem:[#allocation2 + $0x14] ss:$0 sps:$4 sm:$0x11]   ;;  %4173 = vst [vmem:[#allocation2 + $0xa8] sm:$0xf] %v4172_v9  ;;  %v4648_v39 = vrot.slane %v15180_v11, 1 }
 0x48f   : > { %4177 = vst [vmem:[#allocation2 + $0xb0] sm:$0x1] %v4176_v16  ;;  %4180 = vst [vmem:[#allocation2 + $0xb4] sm:$0xf] %v4179_v26  ;;  %v4646_v13 = vrot.slane %v12585_v51, 1  ;;  %v12609_v17 = vld [vmem:[%s17968_s1 + $0x278] sm:$0xff]  }
 0x490   : > { %4184 = vst [vmem:[#allocation2 + $0xbc] sm:$0x1] %v4183_v62  ;;  %4187 = vst [vmem:[#allocation2 + $0xc0] sm:$0xf] %v4186_v42  ;;  %v4423_v33 = vshll.u32 %v15164_v38, 16  ;;  %v12610_v59 = vld [vmem:[%s17968_s1 + $0x2b0] sm:$0xff]  }
 0x491   : > { %4191 = vst [vmem:[#allocation2 + $0xc8] sm:$0x1] %v4190_v61  ;;  %v12587_v57 = vld [vmem:[#allocation2 + $0x20] ss:$0 sps:$4 sm:$0x11]   ;;  %v15201_v4 = vsel %vm1465_vm10, %v4645_v53, %v4646_v13  ;;  %v4651_v14 = vrot.slane %v15190_v40, 1 }
 0x492   : > { %v4649_v24 = vrot.slane %v12587_v57, 1  ;;  %v12589_v25 = vld [vmem:[#allocation2 + $0x2c] ss:$0 sps:$4 sm:$0x11]   ;;  %v4428_v48 = vshll.u32 %v12585_v51, 16  ;;  %12052 = vmatprep.mubr.bf16.mxu1 %v15201_v4  ;;  %v4421_v44 = vshrl.u32 %v15164_v38, 16 }
 0x493   : > { %v4425_v27 = vrot.slane %v4423_v33, 1  ;;  %v4435_v43 = vshll.u32 %v15180_v11, 16  ;;  %v4440_v3 = vshll.u32 %v12587_v57, 16  ;;  %v4652_v36 = vrot.slane %v12589_v25, 1  ;;  %v15210_v10 = vld [vmem:[#allocation2 + $0x30] sm:$0xff]   ;;  %v15222_v63 = vld [vmem:[#allocation2 + $0x3c] sm:$0xff]  }
 0x494   : > { %v15208_v29 = vsel %vm1465_vm10, %v4648_v39, %v4649_v24  ;;  %v4430_v28 = vrot.slane %v4428_v48, 1  ;;  %v4433_v12 = vshrl.u32 %v15180_v11, 16  ;;  %v15214_v58 = vld [vmem:[#allocation2 + $0x38] ss:$0 sps:$4 sm:$0x11]   ;;  %v12599_v21 = vld [vmem:[%s17968_s1 + $0x2f0] sm:$0xff]  }
 0x495   : > { %12053 = vmatmul.mubr.bf16.vlgmr.msra.gmra.mxu1 %v15208_v29  ;;  %v4426_v0 = vor.u32 %v4425_v27, %v4421_v44  ;;  %v4437_v18 = vrot.slane %v4435_v43, 1  ;;  %v15220_v20 = vsel %vm1465_vm10, %v4651_v14, %v4652_v36  ;;  %v15224_v41 = vld [vmem:[#allocation2 + $0x44] ss:$0 sps:$4 sm:$0x11]   ;;  %v4442_v19 = vrot.slane %v4440_v3, 1  ;;  %v12612_v2 = vld [vmem:[%s17968_s1 + $0x270] sm:$0xff]  }
 0x496   : > { %11089 = vmatpush3.bf16.msra.mxu1 %v12609_v17  ;;  %12056 = vmatprep.mubr.bf16.mxu1 %v15220_v20  ;;  %v4654_v46 = vrot.slane %v15210_v10, 1  ;;  %v4655_v23 = vrot.slane %v15214_v58, 1  ;;  %v4447_v34 = vshll.u32 %v15190_v40, 16  ;;  %v12615_v55 = vld [vmem:[%s17968_s1 + $0x2a8] sm:$0xff]   ;;  %v4657_v8 = vrot.slane %v15222_v63, 1  ;;  %v18170_v30 = vld [vmem:[#allocation39_spill] sm:$0xff] }
 0x497   : > { %v15228_v22 = vsel %vm1230_vm9, %v4426_v0, %v4430_v28  ;;  %v4438_v54 = vor.u32 %v4437_v18, %v4433_v12  ;;  %11090 = vmatprep.subr.bf16.mxu1 %v12610_v59  ;;  %v4658_v7 = vrot.slane %v15224_v41, 1  ;;  %v12611_v32 = vld [vmem:[%s17968_s1 + $0x2e8] sm:$0xff]   ;;  %v4445_v1 = vshrl.u32 %v15190_v40, 16  ;;  %v15255_v15 = vld [vmem:[#allocation2 + $0x50] ss:$0 sps:$4 sm:$0x11]  }
 0x498   : > { %4988 = vmatprep.mubr.bf16.mxu0 %v15228_v22  ;;  %v4449_v49 = vrot.slane %v4447_v34, 1  ;;  %v12618_v35 = vld [vmem:[%s17968_s1 + $0x268] sm:$0xff]   ;;  %v4452_v56 = vshll.u32 %v12589_v25, 16  ;;  %v12619_v52 = vld [vmem:[%s17968_s1 + $0x2a0] sm:$0xff]   ;;  %v15261_v47 = vsel %vm1465_vm10, %v4654_v46, %v4655_v23  ;;  %v15269_v16 = vld [vmem:[#allocation2 + $0x54] sm:$0xff]   ;;  %v4459_v45 = vshll.u32 %v15210_v10, 16 }
 0x499   : > { %4989 = vmatmul.mubr.bf16.vlgmr.msra.gmra.mxu0 %v15164_v38  ;;  %v15242_v5 = vsel %vm1230_vm9, %v4438_v54, %v4442_v19  ;;  %v15263_v50 = vld [vmem:[#allocation2 + $0x48] sm:$0xff]   ;;  %v15267_v9 = vsel %vm1465_vm10, %v4657_v8, %v4658_v7  ;;  %v15271_v26 = vld [vmem:[#allocation2 + $0x5c] ss:$0 sps:$4 sm:$0x11]   ;;  %v12620_v51 = vld [vmem:[%s17968_s1 + $0x260] sm:$0xff]   ;;  %v4661_v13 = vrot.slane %v15255_v15, 1 }
 0x49a   : > { %4996 = vmatprep.mubr.bf16.mxu0 %v15242_v5  ;;  %12085 = vmatpush3.bf16.msra.mxu0 %v18170_v30  ;;  %v4450_v60 = vor.u32 %v4449_v49, %v4445_v1  ;;  %v4454_v62 = vrot.slane %v4452_v56, 1  ;;  %v12623_v42 = vld [vmem:[%s17968_s1 + $0x298] sm:$0xff]   ;;  %v12628_v61 = vld [vmem:[%s17968_s1 + $0x2e0] sm:$0xff]   ;;  %v4660_v53 = vrot.slane %v15263_v50, 1  ;;  %v4663_v39 = vrot.slane %v15269_v16, 1  ;;  %v12627_v24 = vld [vmem:[%s17968_s1 + $0x290] sm:$0xff]  }
 0x49b   : > { %12086 = vmatprep.subr.bf16.mxu0 %v12599_v21  ;;  %11091 = vmatpush3.bf16.msra.mxu1 %v12612_v2  ;;  %v4664_v17 = vrot.slane %v15271_v26, 1  ;;  %v4461_v33 = vrot.slane %v4459_v45, 1  ;;  %v12626_v59 = vld [vmem:[%s17968_s1 + $0x258] sm:$0xff]   ;;  %v4457_v25 = vshrl.u32 %v15210_v10, 16  ;;  %v4464_v14 = vshll.u32 %v15214_v58, 16  ;;  %v15309_v43 = vld [vmem:[#allocation2 + $0x60] sm:$0xff]  }
 0x49c   : > { %11092 = vmatprep.subr.bf16.mxu1 %v12615_v55  ;;  %v15288_v57 = vsel %vm1230_vm9, %v4450_v60, %v4454_v62  ;;  %v15301_v48 = vld [vmem:[#allocation2 + $0x68] ss:$0 sps:$4 sm:$0x11]   ;;  %v12638_v44 = vld [vmem:[%s17968_s1 + $0x2d8] sm:$0xff]   ;;  %v15307_v27 = vsel %vm1465_vm10, %v4660_v53, %v4661_v13  ;;  %v15315_v0 = vld [vmem:[#allocation2 + $0x6c] sm:$0xff]   ;;  %v4471_v12 = vshll.u32 %v15222_v63, 16 }
 0x49d   : > { %12057 = vmatmul.mubr.bf16.gmra.mxu1 %v15261_v47  ;;  %v15313_v3 = vsel %vm1465_vm10, %v4663_v39, %v4664_v17  ;;  %v4462_v36 = vor.u32 %v4461_v33, %v4457_v25  ;;  %v15317_v28 = vld [vmem:[#allocation2 + $0x74] ss:$0 sps:$4 sm:$0x11]   ;;  %v4466_v18 = vrot.slane %v4464_v14, 1  ;;  %v4666_v54 = vrot.slane %v15309_v43, 1  ;;  %v12632_v2 = vld [vmem:[%s17968_s1 + $0x288] sm:$0xff]  }
 0x49e   : > { %12060 = vmatprep.mubr.bf16.mxu1 %v15267_v9  ;;  %12087 = vmatpush3.bf16.msra.mxu0 %v12599_v21  ;;  %v12629_v58 = vld [vmem:[%s17968_s1 + $0x250] sm:$0xff]   ;;  %v4667_v19 = vrot.slane %v15301_v48, 1  ;;  %v4669_v23 = vrot.slane %v15315_v0, 1  ;;  %v4670_v34 = vrot.slane %v15317_v28, 1  ;;  %v4473_v55 = vrot.slane %v4471_v12, 1  ;;  %v12633_v8 = vld [vmem:[%s17968_s1 + $0x248] sm:$0xff]  }
 0x49f   : > { %12088 = vmatprep.subr.bf16.mxu0 %v12611_v32  ;;  %11093 = vmatpush3.bf16.msra.mxu1 %v12618_v35  ;;  %v12639_v21 = vld [vmem:[%s17968_s1 + $0x2d0] sm:$0xff]   ;;  %v15334_v46 = vsel %vm1230_vm9, %v4462_v36, %v4466_v18  ;;  %v15342_v7 = vld [vmem:[#allocation2 + $0x80] ss:$0 sps:$4 sm:$0x11]   ;;  %v12640_v49 = vld [vmem:[%s17968_s1 + $0x2c8] sm:$0xff]   ;;  %v4476_v35 = vshll.u32 %v15224_v41, 16 }
 0x4a0   : > { %11094 = vmatprep.subr.bf16.mxu1 %v12619_v52  ;;  %v12634_v30 = vld [vmem:[%s17968_s1 + $0x280] sm:$0xff]   ;;  %v15353_v1 = vsel %vm1465_vm10, %v4666_v54, %v4667_v19  ;;  %v15355_v56 = vld [vmem:[#allocation2 + $0x78] sm:$0xff]   ;;  %v15359_v60 = vld [vmem:[#allocation2 + $0x8c] ss:$0 sps:$4 sm:$0x11]   ;;  %v4483_v45 = vshll.u32 %v15263_v50, 16  ;;  %v15364_v62 = vsel %vm1465_vm10, %v4669_v23, %v4670_v34 }
 0x4a1   : > { %4997 = vmatmul.mubr.bf16.gmra.mxu0 %v15180_v11  ;;  %v15357_v52 = vld [vmem:[#allocation2 + $0x84] sm:$0xff]   ;;  %v4672_v53 = vrot.slane %v15355_v56, 1  ;;  %v4673_v13 = vrot.slane %v15342_v7, 1  ;;  %v15378_v39 = vld [vmem:[%s17968_s1 + $0x478] sm:$0xff]   ;;  %v4481_v25 = vshrl.u32 %v15263_v50, 16  ;;  %v4488_v14 = vshll.u32 %v15255_v15, 16 }
 0x4a2   : > { %5004 = vmatprep.mubr.bf16.mxu0 %v15288_v57  ;;  %12089 = vmatpush3.bf16.msra.mxu0 %v12611_v32  ;;  %v4469_v32 = vshrl.u32 %v15222_v63, 16  ;;  %v4675_v33 = vrot.slane %v15357_v52, 1  ;;  %v15395_v12 = vld [vmem:[#allocation2 + $0x90] sm:$0xff]   ;;  %v15397_v18 = vld [vmem:[#allocation2 + $0x98] ss:$0 sps:$4 sm:$0x11]  }
 0x4a3   : > { %11095 = vmatpush3.bf16.msra.mxu1 %v12620_v51  ;;  %12090 = vmatprep.subr.bf16.mxu0 %v12628_v61  ;;  %v4478_v51 = vrot.slane %v4476_v35, 1  ;;  %v15393_v36 = vsel %vm1465_vm10, %v4672_v53, %v4673_v13  ;;  %v15406_v54 = vld [vmem:[#allocation2 + $0xa4] ss:$0 sps:$4 sm:$0x11]   ;;  %v4495_v19 = vshll.u32 %v15269_v16, 16  ;;  %v4678_v23 = vrot.slane %v15395_v12, 1 }
 0x4a4   : > { %11096 = vmatprep.subr.bf16.mxu1 %v12623_v42  ;;  %v4474_v41 = vor.u32 %v4473_v55, %v4469_v32  ;;  %v12635_v42 = vld [vmem:[%s17968_s1 + $0x240] sm:$0xff]   ;;  %v4679_v34 = vrot.slane %v15397_v18, 1  ;;  %v4493_v32 = vshrl.u32 %v15269_v16, 16  ;;  %v4500_v35 = vshll.u32 %v15271_v26, 16  ;;  %v15428_v53 = vld [vmem:[#allocation2 + $0xb4] sm:$0xff]  }
 0x4a5   : > { %12061 = vmatmul.mubr.bf16.gmra.mxu1 %v15307_v27  ;;  %v4507_v26 = vshll.u32 %v15309_v43, 16 }
 0x4a6   : > { %12064 = vmatprep.mubr.bf16.mxu1 %v15313_v3  ;;  %12091 = vmatpush3.bf16.msra.mxu0 %v12628_v61  ;;  %v12641_v61 = vld [vmem:[%s17968_s1 + $0x2c0] sm:$0xff]   ;;  %v15382_v17 = vsel %vm1230_vm9, %v4474_v41, %v4478_v51  ;;  %v12637_v41 = vld [vmem:[#allocation2 + $0x8] ss:$0 sps:$4 sm:$0x11]   ;;  %v15422_v51 = vsel %vm1465_vm10, %v4678_v23, %v4679_v34 }
 0x4a7   : > { %11097 = vmatpush3.bf16.msra.mxu1 %v12626_v59  ;;  %12092 = vmatprep.subr.bf16.mxu0 %v12638_v44  ;;  %v4676_v59 = vrot.slane %v15359_v60, 1  ;;  %v4416_v6 = vshll.u32 %v12637_v41, 16 }
 0x4a8   : > { %11098 = vmatprep.subr.bf16.mxu1 %v12627_v24  ;;  %v4485_v24 = vrot.slane %v4483_v45, 1  ;;  %v12636_v45 = vld [vmem:[#allocation2] sm:$0xff]  }
 0x4a9   : > { %5005 = vmatmul.mubr.bf16.gmra.mxu0 %v15190_v40 }
 0x4aa   : > { %5012 = vmatprep.mubr.bf16.mxu0 %v15334_v46  ;;  %12093 = vmatpush3.bf16.msra.mxu0 %v12638_v44  ;;  %v12643_v44 = vld [vmem:[%s17968_s1 + $0x438] sm:$0xff]   ;;  %v4486_v15 = vor.u32 %v4485_v24, %v4481_v25  ;;  %v4642_v24 = vrot.slane %v12636_v45, 1  ;;  %v4502_v25 = vrot.slane %v4500_v35, 1  ;;  %v4409_v35 = vshrl.u32 %v12636_v45, 16 }
 0x4ab   : > { %11099 = vmatpush3.bf16.msra.mxu1 %v12629_v58  ;;  %12094 = vmatprep.subr.bf16.mxu0 %v12639_v21  ;;  %v15402_v58 = vsel %vm1465_vm10, %v4675_v33, %v4676_v59  ;;  %v15434_v59 = vld [vmem:[#allocation2 + $0xbc] ss:$0 sps:$4 sm:$0x11]  }
 0x4ac   : > { %11100 = vmatprep.subr.bf16.mxu1 %v12632_v2  ;;  %v4490_v2 = vrot.slane %v4488_v14, 1  ;;  %v4411_v14 = vshll.u32 %v12636_v45, 16  ;;  %v4688_v34 = vrot.slane %v15434_v59, 1 }
 0x4ad   : > { %12065 = vmatmul.mubr.bf16.gmra.mxu1 %v15353_v1 }
 0x4ae   : > { %12068 = vmatprep.mubr.bf16.mxu1 %v15364_v62  ;;  %12095 = vmatpush3.bf16.msra.mxu0 %v12639_v21  ;;  %v15404_v21 = vld [vmem:[#allocation2 + $0x9c] sm:$0xff]   ;;  %v15414_v55 = vsel %vm1230_vm9, %v4486_v15, %v4490_v2  ;;  %v4687_v2 = vrot.slane %v15428_v53, 1  ;;  %v4413_v37 = vrot.slane %v4411_v14, 1 }
 0x4af   : > { %11101 = vmatpush3.bf16.msra.mxu1 %v12633_v8  ;;  %12096 = vmatprep.subr.bf16.mxu0 %v12640_v49  ;;  %v4681_v8 = vrot.slane %v15404_v21, 1 }
 0x4b0   : > { %11102 = vmatprep.subr.bf16.mxu1 %v12634_v30  ;;  %v4682_v30 = vrot.slane %v15406_v54, 1  ;;  %v4414_v14 = vor.u32 %v4413_v37, %v4409_v35 }
 0x4b1   : > { %5013 = vmatmul.mubr.bf16.gmra.mxu0 %v15210_v10 }
 0x4b2   : > { %5020 = vmatprep.mubr.bf16.mxu0 %v15382_v17  ;;  %12097 = vmatpush3.bf16.msra.mxu0 %v12640_v49  ;;  %v4497_v49 = vrot.slane %v4495_v19, 1  ;;  %v15432_v13 = vsel %vm1465_vm10, %v4681_v8, %v4682_v30  ;;  %v4509_v8 = vrot.slane %v4507_v26, 1  ;;  %v15461_v26 = vsel %vm1465_vm10, %v4687_v2, %v4688_v34 }
 0x4b3   : > { %11103 = vmatpush3.bf16.msra.mxu1 %v12635_v42  ;;  %12098 = vmatprep.subr.bf16.mxu0 %v12641_v61  ;;  %v15424_v42 = vld [vmem:[#allocation2 + $0xa8] sm:$0xff]   ;;  %18171 = vst [vmem:[#allocation33_spill] sm:$0xff] %v15432_v13  ;;  %v4517_v2 = vshrl.u32 %v15315_v0, 16  ;;  %v4524_v34 = vshll.u32 %v15317_v28, 16  ;;  %v4529_v28 = vshrl.u32 %v15355_v56, 16 }
 0x4b4   : > { %12132 = vmatprep.subr.bf16.mxu1 %v15378_v39  ;;  %v4498_v33 = vor.u32 %v4497_v49, %v4493_v32  ;;  %v4684_v15 = vrot.slane %v15424_v42, 1  ;;  %v4505_v49 = vshrl.u32 %v15309_v43, 16  ;;  %v4512_v32 = vshll.u32 %v15301_v48, 16 }
 0x4b5   : > { %12069 = vmatmul.mubr.bf16.gmra.mxu1 %v15393_v36 }
 0x4b6   : > { %12072 = vmatprep.mubr.bf16.mxu1 %v15402_v58  ;;  %12099 = vmatpush3.bf16.msra.mxu0 %v12641_v61  ;;  %v15426_v61 = vld [vmem:[#allocation2 + $0xb0] ss:$0 sps:$4 sm:$0x11]   ;;  %v15443_v23 = vsel %vm1230_vm9, %v4498_v33, %v4502_v25  ;;  %v15455_v33 = vld [vmem:[#allocation2 + $0xc0] sm:$0xff]   ;;  %v4514_v48 = vrot.slane %v4512_v32, 1  ;;  %v4526_v32 = vrot.slane %v4524_v34, 1 }
 0x4b7   : > { %11224 = vmatprep.subr.bf16.mxu0 %v12643_v44  ;;  %v4643_v44 = vrot.slane %v12637_v41, 1  ;;  %v4685_v19 = vrot.slane %v15426_v61, 1  ;;  %v15457_v25 = vld [vmem:[#allocation2 + $0xc8] ss:$0 sps:$4 sm:$0x11]   ;;  %v4418_v41 = vrot.slane %v4416_v6, 1 }
 0x4b8   : > { %v4555_v34 = vshll.u32 %v15395_v12, 16 }
 0x4b9   : > { %5021 = vmatmul.mubr.bf16.gmra.mxu0 %v15222_v63  ;;  %v15447_v30 = vsel %vm1465_vm10, %v4642_v24, %v4643_v44  ;;  %v15453_v31 = vsel %vm1465_vm10, %v4684_v15, %v4685_v19  ;;  %v4510_v24 = vor.u32 %v4509_v8, %v4505_v49  ;;  %v4519_v44 = vshll.u32 %v15315_v0, 16 }
 0x4ba   : > { %5028 = vmatprep.mubr.bf16.mxu0 %v15414_v55  ;;  %18172 = vst [vmem:[#allocation29_spill] sm:$0xff] %v15453_v31  ;;  %v4690_v15 = vrot.slane %v15455_v33, 1  ;;  %v4691_v19 = vrot.slane %v15457_v25, 1  ;;  %v4419_v8 = vsel %vm1230_vm9, %v4414_v14, %v4418_v41  ;;  %v4531_v49 = vshll.u32 %v15355_v56, 16 }
 0x4bb   : > { %v4543_v14 = vshll.u32 %v15357_v52, 16 }
 0x4bc   : > { %v15476_v37 = vsel %vm1465_vm10, %v4690_v15, %v4691_v19  ;;  %v12652_v15 = vld [vmem:[%s17968_s1 + $0x468] sm:$0xff]  }
 0x4bd   : > { %12073 = vmatmul.mubr.bf16.gmra.mxu1 %v15422_v51  ;;  %v4545_v19 = vrot.slane %v4543_v14, 1 }
 0x4be   : > { %12076 = vmatprep.mubr.bf16.mxu1 %v15432_v13  ;;  %v15469_v13 = vsel %vm1230_vm9, %v4510_v24, %v4514_v48  ;;  %v4533_v24 = vrot.slane %v4531_v49, 1  ;;  %v4557_v49 = vrot.slane %v4555_v34, 1  ;;  %v4577_v34 = vshrl.u32 %v15424_v42, 16 }
 0x4c0   : > { %v4534_v48 = vor.u32 %v4533_v24, %v4529_v28  ;;  %v12660_v24 = vld [vmem:[%s17968_s1 + $0x450] sm:$0xff]  }
 0x4c1   : > { %5029 = vmatmul.mubr.bf16.gmra.mxu0 %v15263_v50 }
 0x4c2   : > { %5036 = vmatprep.mubr.bf16.mxu0 %v15443_v23 }
 0x4c5   : > { %12077 = vmatmul.mubr.bf16.gmra.mxu1 %v15453_v31  ;;  %v4521_v31 = vrot.slane %v4519_v44, 1  ;;  %v4536_v44 = vshll.u32 %v15342_v7, 16 }
 0x4c6   : > { %12080 = vmatprep.mubr.bf16.mxu1 %v15461_v26 }
 0x4c7   : > { %v4522_v6 = vor.u32 %v4521_v31, %v4517_v2  ;;  %v12647_v31 = vld [vmem:[%s17968_s1 + $0x470] sm:$0xff]   ;;  %v4538_v41 = vrot.slane %v4536_v44, 1  ;;  %v4567_v44 = vshll.u32 %v15404_v21, 16 }
 0x4c9   : > { %5037 = vmatmul.mubr.bf16.gmra.mxu0 %v15269_v16  ;;  %v15482_v35 = vsel %vm1230_vm9, %v4522_v6, %v4526_v32  ;;  %v15498_v7 = vsel %vm1230_vm9, %v4534_v48, %v4538_v41  ;;  %v12658_v6 = vld [vmem:[%s17968_s1 + $0x458] sm:$0xff]   ;;  %v4560_v32 = vshll.u32 %v15397_v18, 16  ;;  %v12662_v48 = vld [vmem:[%s17968_s1 + $0x448] sm:$0xff]   ;;  %v4569_v14 = vrot.slane %v4567_v44, 1 }
 0x4ca   : > { %5044 = vmatprep.mubr.bf16.mxu0 %v15469_v13  ;;  %v4565_v41 = vshrl.u32 %v15404_v21, 16  ;;  %v4596_v44 = vshll.u32 %v15434_v59, 16  ;;  %v4608_v59 = vshll.u32 %v15457_v25, 16  ;;  %v12644_v25 = vld [vmem:[%s17968_s1 + $0x3f8] sm:$0xff]  }
 0x4cd   : > { %12081 = vmatmul.mubr.bf16.gmra.mxu1 %v15476_v37 }
 0x4ce   : > { %5454 = vmatprep.mubr.bf16.mxu1 %v4419_v8 }
 0x4d1   : > { %5045 = vmatmul.mubr.bf16.gmra.mxu0 %v15309_v43 }
 0x4d2   : > { %5052 = vmatprep.mubr.bf16.mxu0 %v15482_v35 }
 0x4d5   : > { %5455 = vmatmul.mubr.bf16.vlgmr.msra.gmra.mxu1 %v12636_v45  ;;  %v4541_v45 = vshrl.u32 %v15357_v52, 16 }
 0x4d6   : > { %5462 = vmatprep.mubr.bf16.mxu1 %v15228_v22  ;;  %12133 = vmatpush3.bf16.msra.mxu1 %v15378_v39  ;;  %v4548_v22 = vshll.u32 %v15359_v60, 16  ;;  %v12656_v39 = vld [vmem:[%s17968_s1 + $0x460] sm:$0xff]  }
 0x4d7   : > { %12134 = vmatprep.subr.bf16.mxu1 %v12647_v31  ;;  %v4546_v2 = vor.u32 %v4545_v19, %v4541_v45  ;;  %v12664_v19 = vld [vmem:[%s17968_s1 + $0x440] sm:$0xff]   ;;  %v4570_v45 = vor.u32 %v4569_v14, %v4565_v41  ;;  %v4598_v14 = vrot.slane %v4596_v44, 1  ;;  %v12659_v44 = vld [vmem:[%s17968_s1 + $0x408] sm:$0xff]  }
 0x4d8   : > { %v4550_v8 = vrot.slane %v4548_v22, 1  ;;  %v4579_v22 = vshll.u32 %v15424_v42, 16 }
 0x4d9   : > { %5053 = vmatmul.mubr.bf16.gmra.mxu0 %v15315_v0 }
 0x4da   : > { %5060 = vmatprep.mubr.bf16.mxu0 %v15498_v7  ;;  %12135 = vmatpush3.bf16.msra.mxu1 %v12647_v31  ;;  %v15514_v60 = vsel %vm1230_vm9, %v4546_v2, %v4550_v8  ;;  %v4562_v31 = vrot.slane %v4560_v32, 1  ;;  %v4584_v8 = vshll.u32 %v15426_v61, 16  ;;  %v4589_v61 = vshrl.u32 %v15428_v53, 16 }
 0x4db   : > { %12136 = vmatprep.subr.bf16.mxu1 %v12652_v15 }
 0x4dc   : > { %v4586_v32 = vrot.slane %v4584_v8, 1  ;;  %v12650_v8 = vld [vmem:[%s17968_s1 + $0x420] sm:$0xff]  }
 0x4dd   : > { %5463 = vmatmul.mubr.bf16.gmra.mxu1 %v15164_v38  ;;  %v4553_v38 = vshrl.u32 %v15395_v12, 16 }
 0x4de   : > { %5470 = vmatprep.mubr.bf16.mxu1 %v15242_v5  ;;  %12137 = vmatpush3.bf16.msra.mxu1 %v12652_v15  ;;  %v4572_v15 = vshll.u32 %v15406_v54, 16  ;;  %v4581_v54 = vrot.slane %v4579_v22, 1  ;;  %v4610_v22 = vrot.slane %v4608_v59, 1 }
 0x4df   : > { %12138 = vmatprep.subr.bf16.mxu1 %v12656_v39  ;;  %v4558_v28 = vor.u32 %v4557_v49, %v4553_v38  ;;  %v4591_v38 = vshll.u32 %v15428_v53, 16 }
 0x4e0   : > { %v4582_v49 = vor.u32 %v4581_v54, %v4577_v34  ;;  %v12645_v54 = vld [vmem:[%s17968_s1 + $0x430] sm:$0xff]   ;;  %v12648_v34 = vld [vmem:[%s17968_s1 + $0x428] sm:$0xff]  }
 0x4e1   : > { %5061 = vmatmul.mubr.bf16.gmra.mxu0 %v15355_v56  ;;  %v15530_v18 = vsel %vm1230_vm9, %v4558_v28, %v4562_v31  ;;  %v4593_v28 = vrot.slane %v4591_v38, 1  ;;  %v12653_v38 = vld [vmem:[%s17968_s1 + $0x418] sm:$0xff]  }
 0x4e2   : > { %5068 = vmatprep.mubr.bf16.mxu0 %v15514_v60  ;;  %12139 = vmatpush3.bf16.msra.mxu1 %v12656_v39  ;;  %v4574_v39 = vrot.slane %v4572_v15, 1 }
 0x4e3   : > { %12140 = vmatprep.subr.bf16.mxu1 %v12658_v6  ;;  %v4594_v31 = vor.u32 %v4593_v28, %v4589_v61  ;;  %v12655_v28 = vld [vmem:[%s17968_s1 + $0x410] sm:$0xff]  }
 0x4e4   : > { %v15543_v2 = vsel %vm1230_vm9, %v4570_v45, %v4574_v39  ;;  %v12657_v61 = vld [vmem:[%s17968_s1 + $0x3d0] sm:$0xff]  }
 0x4e5   : > { %5471 = vmatmul.mubr.bf16.gmra.mxu1 %v15180_v11  ;;  %v15564_v41 = vsel %vm1230_vm9, %v4594_v31, %v4598_v14  ;;  %v12661_v31 = vld [vmem:[%s17968_s1 + $0x3c8] sm:$0xff]   ;;  %v12665_v14 = vld [vmem:[%s17968_s1 + $0x3c0] sm:$0xff]  }
 0x4e6   : > { %5478 = vmatprep.mubr.bf16.mxu1 %v15288_v57  ;;  %12141 = vmatpush3.bf16.msra.mxu1 %v12658_v6  ;;  %v18173_v6 = vmov 0.0  }
 0x4e7   : > { %12142 = vmatprep.subr.bf16.mxu1 %v12660_v24 }
 0x4e9   : > { %5069 = vmatmul.mubr.bf16.gmra.mxu0 %v15357_v52 }
 0x4ea   : > { %5076 = vmatprep.mubr.bf16.mxu0 %v15530_v18  ;;  %12143 = vmatpush3.bf16.msra.mxu1 %v12660_v24  ;;  %v15554_v24 = vsel %vm1230_vm9, %v4582_v49, %v4586_v32  ;;  %v12651_v49 = vld [vmem:[%s17968_s1 + $0x3e0] sm:$0xff]   ;;  %v12654_v32 = vld [vmem:[%s17968_s1 + $0x3d8] sm:$0xff]  }
 0x4eb   : > { %12144 = vmatprep.subr.bf16.mxu1 %v12662_v48 }
 0x4ed   : > { %5479 = vmatmul.mubr.bf16.gmra.mxu1 %v15190_v40 }
 0x4ee   : > { %5486 = vmatprep.mubr.bf16.mxu1 %v15334_v46  ;;  %12145 = vmatpush3.bf16.msra.mxu1 %v12662_v48  ;;  %v4603_v48 = vshll.u32 %v15455_v33, 16 }
 0x4ef   : > { %12146 = vmatprep.subr.bf16.mxu1 %v12664_v19 }
 0x4f0   : > { %v4605_v15 = vrot.slane %v4603_v48, 1  ;;  %v12663_v48 = vld [vmem:[%s17968_s1 + $0x400] sm:$0xff]  }
 0x4f1   : > { %5077 = vmatmul.mubr.bf16.gmra.mxu0 %v15395_v12 }
 0x4f2   : > { %5084 = vmatprep.mubr.bf16.mxu0 %v15543_v2  ;;  %12147 = vmatpush3.bf16.msra.mxu1 %v12664_v19  ;;  %v4601_v19 = vshrl.u32 %v15455_v33, 16 }
 0x4f3   : > { %12180 = vmatprep.subr.mxu1 %v18173_v6 }
 0x4f4   : > { %v4606_v45 = vor.u32 %v4605_v15, %v4601_v19  ;;  %v18174_v15 = vld [vmem:[#allocation33_spill] sm:$0xff] }
 0x4f5   : > { %5487 = vmatmul.mubr.bf16.gmra.mxu1 %v15210_v10  ;;  %v18175_v19 = vld [vmem:[#allocation29_spill] sm:$0xff] }
 0x4f6   : > { %5494 = vmatprep.mubr.bf16.mxu1 %v15382_v17  ;;  %v15573_v39 = vsel %vm1230_vm9, %v4606_v45, %v4610_v22  ;;  %v18176_v45 = vld [vmem:[#allocation22_spill] sm:$0xff] }
 0x4f9   : > { %5085 = vmatmul.mubr.bf16.gmra.mxu0 %v15404_v21 }
 0x4fa   : > { %5092 = vmatprep.mubr.bf16.mxu0 %v15554_v24 }
 0x4fd   : > { %5495 = vmatmul.mubr.bf16.gmra.mxu1 %v15222_v63 }
 0x4fe   : > { %5502 = vmatprep.mubr.bf16.mxu1 %v15414_v55 }
 0x501   : > { %5093 = vmatmul.mubr.bf16.gmra.mxu0 %v15424_v42 }
 0x502   : > { %5100 = vmatprep.mubr.bf16.mxu0 %v15564_v41 }
 0x505   : > { %5503 = vmatmul.mubr.bf16.gmra.mxu1 %v15263_v50 }
 0x506   : > { %5510 = vmatprep.mubr.bf16.mxu1 %v15443_v23 }
 0x509   : > { %5101 = vmatmul.mubr.bf16.gmra.mxu0 %v15428_v53 }
 0x50a   : > { %5108 = vmatprep.mubr.bf16.mxu0 %v15573_v39 }
 0x50d   : > { %5511 = vmatmul.mubr.bf16.gmra.mxu1 %v15269_v16 }
 0x50e   : > { %5518 = vmatprep.mubr.bf16.mxu1 %v15469_v13 }
 0x511   : > { %5109 = vmatmul.mubr.bf16.gmra.mxu0 %v15455_v33 }
 0x512   : > { %12100 = vmatprep.mubr.bf16.mxu0 %v15447_v30  ;;  %v12646_v30 = vld [vmem:[%s17968_s1 + $0x3f0] sm:$0xff]  }
 0x515   : > { %5519 = vmatmul.mubr.bf16.gmra.mxu1 %v15309_v43 }
 0x516   : > { %5526 = vmatprep.mubr.bf16.mxu1 %v15482_v35 }
 0x519   : > { %12101 = vmatmul.mubr.bf16.vlgmr.msra.gmra.mxu0 %v15201_v4  ;;  %v12649_v4 = vld [vmem:[%s17968_s1 + $0x3e8] sm:$0xff]  }
 0x51a   : > { %12104 = vmatprep.mubr.bf16.mxu0 %v15208_v29  ;;  %11225 = vmatpush3.bf16.msra.mxu0 %v12644_v25  ;;  %v18177_v25 = vld [vmem:[#allocation21_spill] sm:$0xff] }
 0x51b   : > { %11226 = vmatprep.subr.bf16.mxu0 %v12645_v54 }
 0x51d   : > { %5527 = vmatmul.mubr.bf16.gmra.mxu1 %v15315_v0 }
 0x51e   : > { %5534 = vmatprep.mubr.bf16.mxu1 %v15498_v7  ;;  %11227 = vmatpush3.bf16.msra.mxu0 %v12646_v30 }
 0x51f   : > { %11228 = vmatprep.subr.bf16.mxu0 %v12648_v34  ;;  %v18179_v34 = vld [vmem:[#allocation19_spill] sm:$0xff] }
 0x521   : > { %12105 = vmatmul.mubr.bf16.gmra.mxu0 %v15220_v20 }
 0x522   : > { %12108 = vmatprep.mubr.bf16.mxu0 %v15261_v47  ;;  %11229 = vmatpush3.bf16.msra.mxu0 %v12649_v4 }
 0x523   : > { %11230 = vmatprep.subr.bf16.mxu0 %v12650_v8 }
 0x525   : > { %5535 = vmatmul.mubr.bf16.gmra.mxu1 %v15355_v56 }
 0x526   : > { %5542 = vmatprep.mubr.bf16.mxu1 %v15514_v60  ;;  %11231 = vmatpush3.bf16.msra.mxu0 %v12651_v49 }
 0x527   : > { %11232 = vmatprep.subr.bf16.mxu0 %v12653_v38 }
 0x529   : > { %12109 = vmatmul.mubr.bf16.gmra.mxu0 %v15267_v9 }
 0x52a   : > { %12112 = vmatprep.mubr.bf16.mxu0 %v15307_v27  ;;  %11233 = vmatpush3.bf16.msra.mxu0 %v12654_v32 }
 0x52b   : > { %11234 = vmatprep.subr.bf16.mxu0 %v12655_v28  ;;  %v18181_v28 = vld [vmem:[#allocation17_spill] sm:$0xff] }
 0x52d   : > { %5543 = vmatmul.mubr.bf16.gmra.mxu1 %v15357_v52 }
 0x52e   : > { %5550 = vmatprep.mubr.bf16.mxu1 %v15530_v18  ;;  %11235 = vmatpush3.bf16.msra.mxu0 %v12657_v61 }
 0x52f   : > { %11236 = vmatprep.subr.bf16.mxu0 %v12659_v44 }
 0x531   : > { %12113 = vmatmul.mubr.bf16.gmra.mxu0 %v15313_v3 }
 0x532   : > { %12116 = vmatprep.mubr.bf16.mxu0 %v15353_v1  ;;  %11237 = vmatpush3.bf16.msra.mxu0 %v12661_v31 }
 0x533   : > { %11238 = vmatprep.subr.bf16.mxu0 %v12663_v48 }
 0x535   : > { %5551 = vmatmul.mubr.bf16.gmra.mxu1 %v15395_v12 }
 0x536   : > { %5558 = vmatprep.mubr.bf16.mxu1 %v15543_v2  ;;  %11239 = vmatpush3.bf16.msra.mxu0 %v12665_v14 }
 0x539   : > { %12117 = vmatmul.mubr.bf16.gmra.mxu0 %v15364_v62 }
 0x53a   : > { %12120 = vmatprep.mubr.bf16.mxu0 %v15393_v36 }
 0x53d   : > { %5559 = vmatmul.mubr.bf16.gmra.mxu1 %v15404_v21 }
 0x53e   : > { %5566 = vmatprep.mubr.bf16.mxu1 %v15554_v24 }
 0x541   : > { %12121 = vmatmul.mubr.bf16.gmra.mxu0 %v15402_v58 }
 0x542   : > { %12124 = vmatprep.mubr.bf16.mxu0 %v15422_v51 }
 0x545   : > { %5567 = vmatmul.mubr.bf16.gmra.mxu1 %v15424_v42 }
 0x546   : > { %5574 = vmatprep.mubr.bf16.mxu1 %v15564_v41 }
 0x549   : > { %12125 = vmatmul.mubr.bf16.gmra.mxu0 %v18174_v15 }
 0x54a   : > { %12128 = vmatprep.mubr.bf16.mxu0 %v18175_v19 }
 0x54d   : > { %5575 = vmatmul.mubr.bf16.gmra.mxu1 %v15428_v53 }
 0x54e   : > { %12148 = vmatprep.mubr.bf16.mxu1 %v15208_v29  ;;  %v18178_v29 = vld [vmem:[#allocation20_spill] sm:$0xff] }
 0x551   : > { %12129 = vmatmul.mubr.bf16.gmra.mxu0 %v15461_v26 }
 0x552   : > { %5969 = vmatprep.mubr.bf16.mxu0 %v15242_v5 }
 0x555   : > { %v12054_v59 = vpop.f32.mrf.mxu1  ;;  %12149 = vmatmul.mubr.bf16.vlgmr.msra.gmra.mxu1 %v15220_v20 }
 0x556   : > { %12152 = vmatprep.mubr.bf16.mxu1 %v15261_v47  ;;  %12181 = vmatpush3.msra.mxu1 %v18176_v45 }
 0x557   : > { %v5151_v22 = vpop.f32.mrf.mxu1  ;;  %12182 = vmatprep.subr.mxu1 %v18173_v6 }
 0x558   : > { %12183 = vmatpush3.msra.mxu1 %v18177_v25 }
 0x559   : > { %v10968_v54 = vpop.f32.mrf.mxu0  ;;  %v12055_v30 = vpop.f32.mrf.mxu1  ;;  %5970 = vmatmul.mubr.bf16.vlgmr.msra.gmra.mxu0 %v15180_v11  ;;  %12184 = vmatprep.subr.mxu1 %v18173_v6 }
 0x55a   : > { %5977 = vmatprep.mubr.bf16.mxu0 %v15288_v57  ;;  %12185 = vmatpush3.msra.mxu1 %v18178_v29  ;;  %v18180_v57 = vld [vmem:[#allocation18_spill] sm:$0xff] }
 0x55b   : > { %v10969_v20 = vpop.f32.mrf.mxu0  ;;  %v5154_v5 = vpop.f32.mrf.mxu1  ;;  %12186 = vmatprep.subr.mxu1 %v18173_v6 }
 0x55c   : > { %v10970_v47 = vadd.f32 %v10969_v20, %v10968_v54  ;;  %12187 = vmatpush3.msra.mxu1 %v18179_v34 }
 0x55d   : > { %v10971_v4 = vpop.f32.mrf.mxu0  ;;  %v15668_v8 = vpop.f32.mrf.mxu1  ;;  %12153 = vmatmul.mubr.bf16.gmra.mxu1 %v15267_v9  ;;  %12188 = vmatprep.subr.mxu1 %v18173_v6 }
 0x55e   : > { %v15672_v11 = vadd.f32 %v10970_v47, %v5151_v22  ;;  %12156 = vmatprep.mubr.bf16.mxu1 %v15307_v27  ;;  %12189 = vmatpush3.msra.mxu1 %v18180_v57  ;;  %v18182_v27 = vld [vmem:[#allocation16_spill] sm:$0xff]  ;;  %v18183_v22 = vld [vmem:[#allocation15_spill] sm:$0xff] }
 0x55f   : > { %v10972_v49 = vpop.f32.mrf.mxu0  ;;  %v5167_v38 = vpop.f32.mrf.mxu1  ;;  %12190 = vmatprep.subr.mxu1 %v18173_v6 }
 0x560   : > { %v10973_v32 = vadd.f32 %v10972_v49, %v10971_v4  ;;  %12191 = vmatpush3.msra.mxu1 %v18181_v28  ;;  %v18185_v49 = vld [vmem:[#allocation13_spill] sm:$0xff] }
 0x561   : > { %v10974_v61 = vpop.f32.mrf.mxu0  ;;  %v15678_v44 = vpop.f32.mrf.mxu1  ;;  %5978 = vmatmul.mubr.bf16.gmra.mxu0 %v15190_v40  ;;  %12192 = vmatprep.subr.mxu1 %v18173_v6 }
 0x562   : > { %v15682_v9 = vadd.f32 %v10973_v32, %v5154_v5  ;;  %5985 = vmatprep.mubr.bf16.mxu0 %v15334_v46  ;;  %12193 = vmatpush3.msra.mxu1 %v18182_v27  ;;  %v18184_v46 = vld [vmem:[#allocation14_spill] sm:$0xff] }
 0x563   : > { %v10975_v31 = vpop.f32.mrf.mxu0  ;;  %v5170_v48 = vpop.f32.mrf.mxu1  ;;  %12194 = vmatprep.subr.mxu1 %v18173_v6 }
 0x564   : > { %v10976_v14 = vadd.f32 %v10975_v31, %v10974_v61  ;;  %12195 = vmatpush3.msra.mxu1 %v18183_v22 }
 0x565   : > { %v10977_v54 = vpop.f32.mrf.mxu0  ;;  %v15688_v20 = vpop.f32.mrf.mxu1  ;;  %12157 = vmatmul.mubr.bf16.gmra.mxu1 %v15313_v3  ;;  %12196 = vmatprep.subr.mxu1 %v18173_v6 }
 0x566   : > { %v15692_v40 = vadd.f32 %v12054_v59, %v10976_v14  ;;  %12160 = vmatprep.mubr.bf16.mxu1 %v15353_v1  ;;  %12197 = vmatpush3.msra.mxu1 %v18184_v46  ;;  %v18186_v1 = vld [vmem:[#allocation12_spill] sm:$0xff] }
 0x567   : > { %v10978_v5 = vpop.f32.mrf.mxu0  ;;  %v5183_v47 = vpop.f32.mrf.mxu1  ;;  %12198 = vmatprep.subr.mxu1 %v18173_v6 }
 0x568   : > { %v10979_v4 = vadd.f32 %v10978_v5, %v10977_v54  ;;  %12199 = vmatpush3.msra.mxu1 %v18185_v49  ;;  %v18187_v54 = vld [vmem:[#allocation11_spill] sm:$0xff] }
 0x569   : > { %v10980_v32 = vpop.f32.mrf.mxu0  ;;  %v15698_v61 = vpop.f32.mrf.mxu1  ;;  %5986 = vmatmul.mubr.bf16.gmra.mxu0 %v15210_v10  ;;  %12200 = vmatprep.subr.mxu1 %v18173_v6 }
 0x56a   : > { %v15702_v3 = vadd.f32 %v12055_v30, %v10979_v4  ;;  %5993 = vmatprep.mubr.bf16.mxu0 %v15382_v17  ;;  %12201 = vmatpush3.msra.mxu1 %v18186_v1  ;;  %v18188_v17 = vld [vmem:[#allocation10_spill] sm:$0xff] }
 0x56b   : > { %v10981_v59 = vpop.f32.mrf.mxu0  ;;  %v5186_v31 = vpop.f32.mrf.mxu1  ;;  %12202 = vmatprep.subr.mxu1 %v18173_v6 }
 0x56c   : > { %v10982_v14 = vadd.f32 %v10981_v59, %v10980_v32  ;;  %12203 = vmatpush3.msra.mxu1 %v18187_v54  ;;  %v18189_v59 = vld [vmem:[#allocation9_spill] sm:$0xff] }
 0x56d   : > { %v10983_v5 = vpop.f32.mrf.mxu0  ;;  %v15708_v49 = vpop.f32.mrf.mxu1  ;;  %12161 = vmatmul.mubr.bf16.gmra.mxu1 %v15364_v62  ;;  %12204 = vmatprep.subr.mxu1 %v18173_v6 }
 0x56e   : > { %v15712_v10 = vadd.f32 %v10982_v14, %v5167_v38  ;;  %12164 = vmatprep.mubr.bf16.mxu1 %v15393_v36  ;;  %12205 = vmatpush3.msra.mxu1 %v18188_v17  ;;  %v18190_v36 = vld [vmem:[#allocation8_spill] sm:$0xff] }
 0x56f   : > { %v10984_v30 = vpop.f32.mrf.mxu0  ;;  %v15716_v4 = vpop.f32.mrf.mxu1  ;;  %12206 = vmatprep.subr.mxu1 %v18173_v6 }
 0x570   : > { %v10985_v32 = vadd.f32 %v10984_v30, %v10983_v5  ;;  %12207 = vmatpush3.msra.mxu1 %v18189_v59  ;;  %v18191_v30 = vld [vmem:[#allocation7_spill] sm:$0xff] }
 0x571   : > { %v10986_v54 = vpop.f32.mrf.mxu0  ;;  %v15720_v1 = vpop.f32.mrf.mxu1  ;;  %5994 = vmatmul.mubr.bf16.gmra.mxu0 %v15222_v63  ;;  %12208 = vmatprep.subr.mxu1 %v18173_v6 }
 0x572   : > { %v15724_v62 = vadd.f32 %v10985_v32, %v5170_v48  ;;  %6001 = vmatprep.mubr.bf16.mxu0 %v15414_v55  ;;  %12209 = vmatpush3.msra.mxu1 %v18190_v36 }
 0x573   : > { %v10987_v38 = vpop.f32.mrf.mxu0  ;;  %v15728_v14 = vpop.f32.mrf.mxu1  ;;  %12210 = vmatprep.subr.mxu1 %v18173_v6 }
 0x574   : > { %v10988_v5 = vadd.f32 %v10987_v38, %v10986_v54  ;;  %12211 = vmatpush3.msra.mxu1 %v18191_v30 }
 0x575   : > { %v10989_v59 = vpop.f32.mrf.mxu0  ;;  %v15732_v17 = vpop.f32.mrf.mxu1  ;;  %12165 = vmatmul.mubr.bf16.gmra.mxu1 %v15402_v58  ;;  %12215 = vmatprep.subr.mxu1 %v18173_v6 }
 0x576   : > { %v15737_v63 = vadd.f32 %v15668_v8, %v10988_v5  ;;  %12168 = vmatprep.mubr.bf16.mxu1 %v15422_v51 }
 0x577   : > { %v10990_v55 = vpop.f32.mrf.mxu0  ;;  %v15740_v48 = vpop.f32.mrf.mxu1 }
 0x578   : > { %v10991_v32 = vadd.f32 %v10990_v55, %v10989_v59 }
 0x579   : > { %v10992_v36 = vpop.f32.mrf.mxu0  ;;  %v15742_v54 = vpop.f32.mrf.mxu1  ;;  %6002 = vmatmul.mubr.bf16.gmra.mxu0 %v15263_v50 }
 0x57a   : > { %v15746_v38 = vadd.f32 %v15678_v44, %v10991_v32  ;;  %6009 = vmatprep.mubr.bf16.mxu0 %v15443_v23 }
 0x57b   : > { %v10993_v58 = vpop.f32.mrf.mxu0  ;;  %v15749_v30 = vpop.f32.mrf.mxu1 }
 0x57c   : > { %v10994_v8 = vadd.f32 %v10993_v58, %v10992_v36  ;;  %v15765_v36 = vld [vmem:[#allocation2 + $0xcc] sm:$0xff]  }
 0x57d   : > { %v10995_v5 = vpop.f32.mrf.mxu0  ;;  %v15751_v51 = vpop.f32.mrf.mxu1  ;;  %12169 = vmatmul.mubr.bf16.gmra.mxu1 %v18174_v15  ;;  %v15767_v15 = vld [vmem:[#allocation2 + $0xd4] ss:$0 sps:$4 sm:$0x11]  }
 0x57e   : > { %v15754_v59 = vadd.f32 %v10994_v8, %v5183_v47  ;;  %12172 = vmatprep.mubr.bf16.mxu1 %v18175_v19 }
 0x57f   : > { %v10996_v55 = vpop.f32.mrf.mxu0  ;;  %v15757_v50 = vpop.f32.mrf.mxu1 }
 0x580   : > { %v10997_v44 = vadd.f32 %v10996_v55, %v10995_v5 }
 0x581   : > { %v10998_v32 = vpop.f32.mrf.mxu0  ;;  %v15759_v46 = vpop.f32.mrf.mxu1  ;;  %6010 = vmatmul.mubr.bf16.gmra.mxu0 %v15269_v16  ;;  %v4693_v16 = vrot.slane %v15765_v36, 1 }
 0x582   : > { %v15762_v23 = vadd.f32 %v10997_v44, %v5186_v31  ;;  %6017 = vmatprep.mubr.bf16.mxu0 %v15469_v13  ;;  %v4694_v13 = vrot.slane %v15767_v15, 1 }
 0x583   : > { %v10999_v47 = vpop.f32.mrf.mxu0  ;;  %v15769_v58 = vpop.f32.mrf.mxu1 }
 0x584   : > { %v11000_v19 = vadd.f32 %v10999_v47, %v10998_v32 }
 0x585   : > { %v11001_v8 = vpop.f32.mrf.mxu0  ;;  %v15771_v22 = vpop.f32.mrf.mxu1  ;;  %12173 = vmatmul.mubr.bf16.gmra.mxu1 %v15461_v26 }
 0x586   : > { %v15775_v5 = vadd.f32 %v15688_v20, %v11000_v19  ;;  %12176 = vmatprep.mubr.bf16.mxu1 %v15476_v37  ;;  %v4695_v37 = vsel %vm1465_vm10, %v4693_v16, %v4694_v13 }
 0x587   : > { %v11002_v31 = vpop.f32.mrf.mxu0  ;;  %v15780_v55 = vpop.f32.mrf.mxu1 }
 0x588   : > { %v11003_v44 = vadd.f32 %v11002_v31, %v11001_v8 }
 0x589   : > { %v11004_v27 = vpop.f32.mrf.mxu0  ;;  %v15782_v32 = vpop.f32.mrf.mxu1  ;;  %6018 = vmatmul.mubr.bf16.gmra.mxu0 %v15309_v43 }
 0x58a   : > { %v15786_v26 = vadd.f32 %v15698_v61, %v11003_v44  ;;  %6025 = vmatprep.mubr.bf16.mxu0 %v15482_v35 }
 0x58b   : > { %v11005_v20 = vpop.f32.mrf.mxu0  ;;  %v15790_v47 = vpop.f32.mrf.mxu1 }
 0x58c   : > { %v11006_v19 = vadd.f32 %v11005_v20, %v11004_v27 }
 0x58d   : > { %v11007_v28 = vpop.f32.mrf.mxu0  ;;  %v15792_v57 = vpop.f32.mrf.mxu1  ;;  %12177 = vmatmul.mubr.bf16.gmra.mxu1 %v4695_v37 }
 0x58e   : > { %v15795_v8 = vadd.f32 %v11006_v19, %v15716_v4  ;;  %12212 = vmatprep.mubr.msk.f32.mxu1 %vm12810_vm11, %v18173_v6 }
 0x58f   : > { %v11008_v43 = vpop.f32.mrf.mxu0  ;;  %v15799_v61 = vpop.f32.mrf.mxu1 }
 0x590   : > { %v11009_v35 = vadd.f32 %v11008_v43, %v11007_v28 }
 0x591   : > { %v11010_v31 = vpop.f32.mrf.mxu0  ;;  %v15801_v16 = vpop.f32.mrf.mxu1  ;;  %6026 = vmatmul.mubr.bf16.gmra.mxu0 %v15315_v0 }
 0x592   : > { %v15805_v27 = vadd.f32 %v11009_v35, %v15728_v14  ;;  %6033 = vmatprep.mubr.bf16.mxu0 %v15498_v7 }
 0x593   : > { %v11011_v13 = vpop.f32.mrf.mxu0  ;;  %v15808_v4 = vpop.f32.mrf.mxu1 }
 0x594   : > { %v11012_v44 = vadd.f32 %v11011_v13, %v11010_v31 }
 0x595   : > { %v11013_v37 = vpop.f32.mrf.mxu0  ;;  %v11104_v20 = vpop.f32.mrf.mxu1 }
 0x596   : > { %v15811_v19 = vadd.f32 %v15708_v49, %v11012_v44 }
 0x597   : > { %v11014_v28 = vpop.f32.mrf.mxu0  ;;  %v11105_v43 = vpop.f32.mrf.mxu1 }
 0x598   : > { %v11015_v34 = vadd.f32 %v11014_v28, %v11013_v37  ;;  %v11106_v29 = vadd.f32 %v11105_v43, %v11104_v20 }
 0x599   : > { %v11016_v25 = vpop.f32.mrf.mxu0  ;;  %v11107_v0 = vpop.f32.mrf.mxu1  ;;  %6034 = vmatmul.mubr.bf16.gmra.mxu0 %v15355_v56 }
 0x59a   : > { %v15815_v14 = vadd.f32 %v15720_v1, %v11015_v34  ;;  %6041 = vmatprep.mubr.bf16.mxu0 %v15514_v60  ;;  %v15819_v7 = vadd.f32 %v11106_v29, %v15672_v11 }
 0x59b   : > { %v11017_v35 = vpop.f32.mrf.mxu0  ;;  %v11108_v31 = vpop.f32.mrf.mxu1 }
 0x59c   : > { %v15821_v49 = vadd.f32 %v11017_v35, %v11016_v25  ;;  %v11109_v13 = vadd.f32 %v11108_v31, %v11107_v0 }
 0x59d   : > { %v11019_v44 = vpop.f32.mrf.mxu0  ;;  %v11110_v37 = vpop.f32.mrf.mxu1 }
 0x59e   : > { %v15824_v20 = vadd.f32 %v11109_v13, %v15682_v9 }
 0x59f   : > { %v11020_v28 = vpop.f32.mrf.mxu0  ;;  %v11111_v56 = vpop.f32.mrf.mxu1 }
 0x5a0   : > { %v15826_v43 = vadd.f32 %v11020_v28, %v11019_v44  ;;  %v11112_v34 = vadd.f32 %v11111_v56, %v11110_v37 }
 0x5a1   : > { %v11022_v1 = vpop.f32.mrf.mxu0  ;;  %v11113_v60 = vpop.f32.mrf.mxu1  ;;  %6042 = vmatmul.mubr.bf16.gmra.mxu0 %v15357_v52 }
 0x5a2   : > { %6049 = vmatprep.mubr.bf16.mxu0 %v15530_v18  ;;  %v15831_v25 = vadd.f32 %v11112_v34, %v15692_v40 }
 0x5a3   : > { %v11023_v29 = vpop.f32.mrf.mxu0  ;;  %v11114_v11 = vpop.f32.mrf.mxu1 }
 0x5a4   : > { %v11024_v0 = vadd.f32 %v11023_v29, %v11022_v1  ;;  %v11115_v35 = vadd.f32 %v11114_v11, %v11113_v60 }
 0x5a5   : > { %v11025_v9 = vpop.f32.mrf.mxu0  ;;  %v11116_v31 = vpop.f32.mrf.mxu1 }
 0x5a6   : > { %v15834_v13 = vadd.f32 %v15732_v17, %v11024_v0  ;;  %v15837_v44 = vadd.f32 %v11115_v35, %v15702_v3 }
 0x5a7   : > { %v11026_v37 = vpop.f32.mrf.mxu0  ;;  %v11117_v28 = vpop.f32.mrf.mxu1 }
 0x5a8   : > { %v11027_v52 = vadd.f32 %v11026_v37, %v11025_v9  ;;  %v11118_v56 = vadd.f32 %v11117_v28, %v11116_v31 }
 0x5a9   : > { %v11028_v18 = vpop.f32.mrf.mxu0  ;;  %v11119_v6 = vpop.f32.mrf.mxu1  ;;  %6050 = vmatmul.mubr.bf16.gmra.mxu0 %v15395_v12 }
 0x5aa   : > { %v15841_v40 = vadd.f32 %v15742_v54, %v11027_v52  ;;  %6057 = vmatprep.mubr.bf16.mxu0 %v15543_v2  ;;  %v15845_v34 = vadd.f32 %v11118_v56, %v15712_v10 }
 0x5ab   : > { %v11029_v17 = vpop.f32.mrf.mxu0  ;;  %v11120_v1 = vpop.f32.mrf.mxu1 }
 0x5ac   : > { %v15847_v3 = vadd.f32 %v11029_v17, %v11028_v18  ;;  %v11121_v60 = vadd.f32 %v11120_v1, %v11119_v6 }
 0x5ad   : > { %v11031_v29 = vpop.f32.mrf.mxu0  ;;  %v11122_v11 = vpop.f32.mrf.mxu1 }
 0x5ae   : > { %v15850_v0 = vadd.f32 %v11121_v60, %v15724_v62 }
 0x5af   : > { %v11032_v35 = vpop.f32.mrf.mxu0  ;;  %v11123_v12 = vpop.f32.mrf.mxu1 }
 0x5b0   : > { %v15852_v9 = vadd.f32 %v11032_v35, %v11031_v29  ;;  %v11124_v54 = vadd.f32 %v11123_v12, %v11122_v11 }
 0x5b1   : > { %v11034_v31 = vpop.f32.mrf.mxu0  ;;  %v11125_v2 = vpop.f32.mrf.mxu1  ;;  %6058 = vmatmul.mubr.bf16.gmra.mxu0 %v15404_v21 }
 0x5b2   : > { %6065 = vmatprep.mubr.bf16.mxu0 %v15554_v24  ;;  %v15857_v10 = vadd.f32 %v11124_v54, %v15737_v63 }
 0x5b3   : > { %v11035_v6 = vpop.f32.mrf.mxu0  ;;  %v11126_v37 = vpop.f32.mrf.mxu1 }
 0x5b4   : > { %v11036_v28 = vadd.f32 %v11035_v6, %v11034_v31  ;;  %v11127_v52 = vadd.f32 %v11126_v37, %v11125_v2 }
 0x5b5   : > { %v11037_v62 = vpop.f32.mrf.mxu0  ;;  %v11128_v56 = vpop.f32.mrf.mxu1 }
 0x5b6   : > { %v15860_v18 = vadd.f32 %v15751_v51, %v11036_v28  ;;  %v15863_v17 = vadd.f32 %v11127_v52, %v15746_v38  ;;  %v4615_v38 = vshll.u32 %v15765_v36, 16  ;;  %v4620_v52 = vshll.u32 %v15767_v15, 16 }
 0x5b7   : > { %v11038_v1 = vpop.f32.mrf.mxu0  ;;  %v11129_v60 = vpop.f32.mrf.mxu1 }
 0x5b8   : > { %v11039_v21 = vadd.f32 %v11038_v1, %v11037_v62  ;;  %v11130_v29 = vadd.f32 %v11129_v60, %v11128_v56  ;;  %v4617_v28 = vrot.slane %v4615_v38, 1 }
 0x5b9   : > { %v11040_v24 = vpop.f32.mrf.mxu0  ;;  %v11131_v11 = vpop.f32.mrf.mxu1  ;;  %6066 = vmatmul.mubr.bf16.gmra.mxu0 %v15424_v42 }
 0x5ba   : > { %v15867_v63 = vadd.f32 %v15759_v46, %v11039_v21  ;;  %6073 = vmatprep.mubr.bf16.mxu0 %v15564_v41  ;;  %v15871_v35 = vadd.f32 %v11130_v29, %v15754_v59  ;;  %v4613_v59 = vshrl.u32 %v15765_v36, 16  ;;  %v4622_v29 = vrot.slane %v4620_v52, 1 }
 0x5bb   : > { %v11041_v51 = vpop.f32.mrf.mxu0  ;;  %v11132_v12 = vpop.f32.mrf.mxu1 }
 0x5bc   : > { %v11042_v54 = vadd.f32 %v11041_v51, %v11040_v24  ;;  %v11133_v31 = vadd.f32 %v11132_v12, %v11131_v11  ;;  %v4618_v21 = vor.u32 %v4617_v28, %v4613_v59 }
 0x5bd   : > { %v15874_v2 = vpop.f32.mrf.mxu0  ;;  %v11134_v6 = vpop.f32.mrf.mxu1 }
 0x5be   : > { %v15877_v37 = vadd.f32 %v11042_v54, %v15780_v55  ;;  %v15880_v42 = vadd.f32 %v11133_v31, %v15762_v23 }
 0x5bf   : > { %v15882_v46 = vpop.f32.mrf.mxu0  ;;  %v11135_v41 = vpop.f32.mrf.mxu1 }
 0x5c0   : > { %v11136_v62 = vadd.f32 %v11135_v41, %v11134_v6 }
 0x5c1   : > { %v11046_v56 = vpop.f32.mrf.mxu0  ;;  %v11137_v1 = vpop.f32.mrf.mxu1  ;;  %6074 = vmatmul.mubr.bf16.gmra.mxu0 %v15428_v53 }
 0x5c2   : > { %6081 = vmatprep.mubr.bf16.mxu0 %v15573_v39  ;;  %v15889_v55 = vadd.f32 %v11136_v62, %v15775_v5  ;;  %v4623_v39 = vsel %vm1230_vm9, %v4618_v21, %v4622_v29 }
 0x5c3   : > { %v11047_v23 = vpop.f32.mrf.mxu0  ;;  %v11138_v60 = vpop.f32.mrf.mxu1 }
 0x5c4   : > { %v11048_v24 = vadd.f32 %v11047_v23, %v11046_v56  ;;  %v11139_v11 = vadd.f32 %v11138_v60, %v11137_v1 }
 0x5c5   : > { %v11049_v51 = vpop.f32.mrf.mxu0  ;;  %v11140_v12 = vpop.f32.mrf.mxu1 }
 0x5c6   : > { %v15892_v15 = vadd.f32 %v15771_v22, %v11048_v24  ;;  %v15895_v38 = vadd.f32 %v11139_v11, %v15786_v26 }
 0x5c7   : > { %v11050_v53 = vpop.f32.mrf.mxu0  ;;  %v11141_v54 = vpop.f32.mrf.mxu1 }
 0x5c8   : > { %v11051_v5 = vadd.f32 %v11050_v53, %v11049_v51  ;;  %v11142_v31 = vadd.f32 %v11141_v54, %v11140_v12 }
 0x5c9   : > { %v11052_v6 = vpop.f32.mrf.mxu0  ;;  %v11143_v41 = vpop.f32.mrf.mxu1  ;;  %6082 = vmatmul.mubr.bf16.gmra.mxu0 %v15455_v33 }
 0x5ca   : > { %v15900_v59 = vadd.f32 %v15782_v32, %v11051_v5  ;;  %6089 = vmatprep.mubr.bf16.mxu0 %v4623_v39  ;;  %v15903_v22 = vadd.f32 %v11142_v31, %v15795_v8  ;;  %v5216_v31 = vadd.f32 %v15821_v49, %v15740_v48 }
 0x5cb   : > { %v11053_v28 = vpop.f32.mrf.mxu0  ;;  %v11144_v26 = vpop.f32.mrf.mxu1 }
 0x5cc   : > { %v11054_v52 = vadd.f32 %v11053_v28, %v11052_v6  ;;  %v11145_v62 = vadd.f32 %v11144_v26, %v11143_v41 }
 0x5cd   : > { %v15905_v56 = vpop.f32.mrf.mxu0  ;;  %v11146_v1 = vpop.f32.mrf.mxu1 }
 0x5ce   : > { %v15908_v23 = vadd.f32 %v11054_v52, %v15799_v61  ;;  %v15911_v60 = vadd.f32 %v11145_v62, %v15805_v27 }
 0x5cf   : > { %v15913_v33 = vpop.f32.mrf.mxu0  ;;  %v11147_v32 = vpop.f32.mrf.mxu1 }
 0x5d0   : > { %18192 = vst [vmem:[#allocation46_spill] sm:$0xff] %v15911_v60  ;;  %v11148_v21 = vadd.f32 %v11147_v32, %v11146_v1 }
 0x5d1   : > { %v11058_v29 = vpop.f32.mrf.mxu0  ;;  %v11149_v8 = vpop.f32.mrf.mxu1  ;;  %6090 = vmatmul.mubr.bf16.gmra.mxu0 %v15765_v36 }
 0x5d2   : > { %v5513_v24 = vadd.f32 %v11148_v21, %v15811_v19 }
 0x5d3   : > { %v11059_v11 = vpop.f32.mrf.mxu0  ;;  %v11150_v51 = vpop.f32.mrf.mxu1 }
 0x5d4   : > { %v15917_v12 = vadd.f32 %v11059_v11, %v11058_v29  ;;  %v11151_v53 = vadd.f32 %v11150_v51, %v11149_v8 }
 0x5d5   : > { %v15919_v61 = vpop.f32.mrf.mxu0  ;;  %v11152_v54 = vpop.f32.mrf.mxu1 }
 0x5d6   : > { %v15922_v27 = vadd.f32 %v11151_v53, %v15815_v14  ;;  %v5219_v14 = vadd.f32 %v15826_v43, %v15749_v30 }
 0x5d7   : > { %v15924_v39 = vpop.f32.mrf.mxu0  ;;  %v11153_v5 = vpop.f32.mrf.mxu1 }
 0x5d8   : > { %v11154_v36 = vadd.f32 %v11153_v5, %v11152_v54 }
 0x5d9   : > { %v11155_v6 = vpop.f32.mrf.mxu1  ;;  %v12102_v19 = vpop.f32.mrf.mxu0 }
 0x5da   : > { %v15929_v41 = vadd.f32 %v12102_v19, %v15831_v25  ;;  %v15931_v28 = vadd.f32 %v11154_v36, %v5216_v31 }
 0x5db   : > { %v11156_v26 = vpop.f32.mrf.mxu1  ;;  %v5617_v52 = vpop.f32.mrf.mxu0 }
 0x5dc   : > { %v11157_v62 = vadd.f32 %v11156_v26, %v11155_v6  ;;  %v15936_v1 = vadd.f32 %v5617_v52, %v15819_v7 }
 0x5dd   : > { %v11158_v32 = vpop.f32.mrf.mxu1  ;;  %v12103_v21 = vpop.f32.mrf.mxu0 }
 0x5de   : > { %v15939_v48 = vadd.f32 %v12103_v21, %v15837_v44  ;;  %v15941_v49 = vadd.f32 %v11157_v62, %v5219_v14 }
 0x5df   : > { %v11159_v25 = vpop.f32.mrf.mxu1  ;;  %v15943_v29 = vpop.f32.mrf.mxu0 }
 0x5e0   : > { %18193 = vst [vmem:[#allocation32_spill] sm:$0xff] %v15941_v49  ;;  %v11160_v8 = vadd.f32 %v11159_v25, %v11158_v32 }
 0x5e1   : > { %v11161_v11 = vpop.f32.mrf.mxu1  ;;  %v12106_v51 = vpop.f32.mrf.mxu0 }
 0x5e2   : > { %v15946_v53 = vadd.f32 %v12106_v51, %v15857_v10  ;;  %v5529_v30 = vadd.f32 %v11160_v8, %v15834_v13  ;;  %v5232_v10 = vadd.f32 %v15847_v3, %v15757_v50 }
 0x5e3   : > { %v11162_v7 = vpop.f32.mrf.mxu1  ;;  %v5633_v43 = vpop.f32.mrf.mxu0 }
 0x5e4   : > { %v11163_v54 = vadd.f32 %v11162_v7, %v11161_v11  ;;  %v15950_v5 = vadd.f32 %v5633_v43, %v15845_v34 }
 0x5e5   : > { %v11164_v44 = vpop.f32.mrf.mxu1  ;;  %v12107_v31 = vpop.f32.mrf.mxu0 }
 0x5e6   : > { %v15953_v36 = vadd.f32 %v12107_v31, %v15863_v17  ;;  %v5532_v6 = vadd.f32 %v11163_v54, %v15841_v40  ;;  %v5235_v17 = vadd.f32 %v15852_v9, %v15769_v58 }
 0x5e7   : > { %v11165_v19 = vpop.f32.mrf.mxu1  ;;  %v15956_v26 = vpop.f32.mrf.mxu0 }
 0x5e8   : > { %v11166_v13 = vadd.f32 %v11165_v19, %v11164_v44 }
 0x5e9   : > { %v11167_v52 = vpop.f32.mrf.mxu1  ;;  %v12110_v14 = vpop.f32.mrf.mxu0 }
 0x5ea   : > { %v15961_v62 = vadd.f32 %v12110_v14, %v15889_v55  ;;  %v5537_v34 = vadd.f32 %v11166_v13, %v5232_v10 }
 0x5eb   : > { %v11168_v32 = vpop.f32.mrf.mxu1  ;;  %v5649_v21 = vpop.f32.mrf.mxu0 }
 0x5ec   : > { %v11169_v25 = vadd.f32 %v11168_v32, %v11167_v52  ;;  %v15966_v40 = vadd.f32 %v5649_v21, %v15871_v35 }
 0x5ed   : > { %v11170_v8 = vpop.f32.mrf.mxu1  ;;  %v12111_v11 = vpop.f32.mrf.mxu0 }
 0x5ee   : > { %v15969_v50 = vadd.f32 %v12111_v11, %v15895_v38  ;;  %v15971_v3 = vadd.f32 %v11169_v25, %v5235_v17 }
 0x5ef   : > { %v11171_v51 = vpop.f32.mrf.mxu1  ;;  %v15973_v55 = vpop.f32.mrf.mxu0 }
 0x5f0   : > { %18194 = vst [vmem:[#allocation48_spill] sm:$0xff] %v15969_v50  ;;  %18195 = vst [vmem:[#allocation38_spill] sm:$0xff] %v15971_v3  ;;  %v11172_v7 = vadd.f32 %v11171_v51, %v11170_v8 }
 0x5f1   : > { %v11173_v43 = vpop.f32.mrf.mxu1  ;;  %v12114_v54 = vpop.f32.mrf.mxu0 }
 0x5f2   : > { %v15975_v44 = vadd.f32 %v12114_v54, %v5513_v24  ;;  %v5545_v58 = vadd.f32 %v11172_v7, %v15860_v18  ;;  %v11045_v24 = vadd.f32 %v15882_v46, %v15874_v2 }
 0x5f3   : > { %v11174_v9 = vpop.f32.mrf.mxu1  ;;  %v5665_v35 = vpop.f32.mrf.mxu0 }
 0x5f4   : > { %18196 = vst [vmem:[#allocation31_spill] sm:$0xff] %v15975_v44  ;;  %v11175_v31 = vadd.f32 %v11174_v9, %v11173_v43  ;;  %v15979_v19 = vadd.f32 %v5665_v35, %v15903_v22 }
 0x5f5   : > { %v11176_v38 = vpop.f32.mrf.mxu1  ;;  %v12115_v10 = vpop.f32.mrf.mxu0 }
 0x5f6   : > { %18197 = vst [vmem:[#allocation41_spill] sm:$0xff] %v15979_v19  ;;  %v15982_v13 = vadd.f32 %v12115_v10, %v15922_v27  ;;  %v5548_v52 = vadd.f32 %v11175_v31, %v15867_v63  ;;  %v5251_v27 = vadd.f32 %v11045_v24, %v15790_v47 }
 0x5f7   : > { %v11177_v14 = vpop.f32.mrf.mxu1  ;;  %v15985_v32 = vpop.f32.mrf.mxu0 }
 0x5f8   : > { %18198 = vst [vmem:[#allocation37_spill] sm:$0xff] %v15982_v13  ;;  %18199 = vst [vmem:[#allocation56_spill] sm:$0xff] %v15985_v32  ;;  %v11178_v18 = vadd.f32 %v11177_v14, %v11176_v38  ;;  %v5621_v32 = vadd.f32 %v15943_v29, %v15824_v20  ;;  %v16094_v20 = vld [vmem:[%s17969_s2 + $0x1] ss:$0 sm:$0xff] }
 0x5f9   : > { %v11179_v21 = vpop.f32.mrf.mxu1  ;;  %v12118_v17 = vpop.f32.mrf.mxu0 }
 0x5fa   : > { %v15989_v25 = vadd.f32 %v12118_v17, %v5529_v30  ;;  %v5553_v22 = vadd.f32 %v11178_v18, %v15877_v37 }
 0x5fb   : > { %v11180_v8 = vpop.f32.mrf.mxu1  ;;  %v5681_v11 = vpop.f32.mrf.mxu0 }
 0x5fc   : > { %18200 = vst [vmem:[#allocation57_spill] sm:$0xff] %v15989_v25  ;;  %v11181_v51 = vadd.f32 %v11180_v8, %v11179_v21  ;;  %v15994_v63 = vadd.f32 %v5681_v11, %v15931_v28 }
 0x5fd   : > { %v11182_v7 = vpop.f32.mrf.mxu1  ;;  %v12119_v43 = vpop.f32.mrf.mxu0 }
 0x5fe   : > { %18201 = vst [vmem:[#allocation40_spill] sm:$0xff] %v15994_v63  ;;  %v15996_v54 = vadd.f32 %v12119_v43, %v5532_v6  ;;  %v15998_v2 = vadd.f32 %v11181_v51, %v5251_v27 }
 0x5ff   : > { %v11183_v46 = vpop.f32.mrf.mxu1  ;;  %v16000_v9 = vpop.f32.mrf.mxu0 }
 0x600   : > { %18202 = vst [vmem:[#allocation43_spill] sm:$0xff] %v15996_v54  ;;  %18203 = vst [vmem:[#allocation34_spill] sm:$0xff] %v15998_v2  ;;  %v11184_v30 = vadd.f32 %v11183_v46, %v11182_v7 }
 0x601   : > { %18204 = vst [vmem:[#allocation45_spill] sm:$0xff] %v16000_v9  ;;  %v11185_v35 = vpop.f32.mrf.mxu1  ;;  %v12122_v37 = vpop.f32.mrf.mxu0 }
 0x602   : > { %v16002_v31 = vadd.f32 %v12122_v37, %v5545_v58  ;;  %v5561_v47 = vadd.f32 %v11184_v30, %v15892_v15  ;;  %v11057_v58 = vadd.f32 %v15913_v33, %v15905_v56 }
 0x603   : > { %v11186_v38 = vpop.f32.mrf.mxu1  ;;  %v5697_v10 = vpop.f32.mrf.mxu0 }
 0x604   : > { %18205 = vst [vmem:[#allocation42_spill] sm:$0xff] %v16002_v31  ;;  %v11187_v28 = vadd.f32 %v11186_v38, %v11185_v35  ;;  %v16005_v14 = vadd.f32 %v5697_v10, %v5537_v34 }
 0x605   : > { %v11188_v24 = vpop.f32.mrf.mxu1  ;;  %v12123_v6 = vpop.f32.mrf.mxu0 }
 0x606   : > { %18206 = vst [vmem:[#allocation44_spill] sm:$0xff] %v16005_v14  ;;  %v16007_v18 = vadd.f32 %v12123_v6, %v5548_v52  ;;  %v5564_v21 = vadd.f32 %v11187_v28, %v15900_v59  ;;  %v5267_v52 = vadd.f32 %v11057_v58, %v15808_v4 }
 0x607   : > { %v11189_v17 = vpop.f32.mrf.mxu1  ;;  %v16010_v8 = vpop.f32.mrf.mxu0 }
 0x608   : > { %18207 = vst [vmem:[#allocation49_spill] sm:$0xff] %v16007_v18  ;;  %18208 = vst [vmem:[#allocation35_spill] sm:$0xff] %v16010_v8  ;;  %v11190_v11 = vadd.f32 %v11189_v17, %v11188_v24 }
 0x609   : > { %v11191_v27 = vpop.f32.mrf.mxu1  ;;  %v12126_v15 = vpop.f32.mrf.mxu0 }
 0x60a   : > { %v16014_v51 = vadd.f32 %v12126_v15, %v5561_v47  ;;  %v5569_v34 = vadd.f32 %v11190_v11, %v15908_v23  ;;  %v5272_v47 = vadd.f32 %v15792_v57, %v15917_v12  ;;  %v11063_v23 = vadd.f32 %v15924_v39, %v15919_v61 }
 0x60b   : > { %v11192_v7 = vpop.f32.mrf.mxu1  ;;  %v5713_v43 = vpop.f32.mrf.mxu0 }
 0x60c   : > { %18209 = vst [vmem:[#allocation51_spill] sm:$0xff] %v16014_v51  ;;  %v11193_v46 = vadd.f32 %v11192_v7, %v11191_v27  ;;  %v16018_v30 = vadd.f32 %v5713_v43, %v5553_v22 }
 0x60d   : > { %v11194_v59 = vpop.f32.mrf.mxu1  ;;  %v12127_v35 = vpop.f32.mrf.mxu0 }
 0x60e   : > { %18210 = vst [vmem:[#allocation47_spill] sm:$0xff] %v16018_v30  ;;  %v16020_v37 = vadd.f32 %v12127_v35, %v5564_v21  ;;  %v16022_v38 = vadd.f32 %v11193_v46, %v5267_v52  ;;  %v5275_v21 = vadd.f32 %v15801_v16, %v11063_v23 }
 0x60f   : > { %v11195_v56 = vpop.f32.mrf.mxu1  ;;  %v16024_v33 = vpop.f32.mrf.mxu0 }
 0x610   : > { %18211 = vst [vmem:[#allocation50_spill] sm:$0xff] %v16020_v37  ;;  %18212 = vst [vmem:[#allocation53_spill] sm:$0xff] %v16022_v38  ;;  %v11196_v10 = vadd.f32 %v11195_v56, %v11194_v59 }
 0x611   : > { %18213 = vst [vmem:[#allocation36_spill] sm:$0xff] %v16024_v33  ;;  %v11197_v4 = vpop.f32.mrf.mxu1  ;;  %v12130_v28 = vpop.f32.mrf.mxu0 }
 0x612   : > { %v5577_v22 = vadd.f32 %v11196_v10, %v5272_v47 }
 0x613   : > { %v11198_v24 = vpop.f32.mrf.mxu1  ;;  %v5729_v6 = vpop.f32.mrf.mxu0 }
 0x614   : > { %v16031_v17 = vadd.f32 %v12130_v28, %v5577_v22  ;;  %v11199_v58 = vadd.f32 %v11198_v24, %v11197_v4  ;;  %v16033_v11 = vadd.f32 %v5729_v6, %v5569_v34 }
 0x615   : > { %v12131_v27 = vpop.f32.mrf.mxu0  ;;  %v12150_v7 = vpop.f32.mrf.mxu1 }
 0x616   : > { %18214 = vst [vmem:[#allocation55_spill] sm:$0xff] %v16031_v17  ;;  %18215 = vst [vmem:[#allocation52_spill] sm:$0xff] %v16033_v11  ;;  %v5580_v15 = vadd.f32 %v11199_v58, %v5275_v21 }
 0x617   : > { %v16035_v57 = vpop.f32.mrf.mxu0  ;;  %v6132_v39 = vpop.f32.mrf.mxu1 }
 0x618   : > { %18216 = vst [vmem:[#allocation54_spill] sm:$0xff] %v16035_v57  ;;  %v16037_v12 = vadd.f32 %v12131_v27, %v5580_v15 }
 0x619   : > { %v11240_v61 = vpop.f32.mrf.mxu0  ;;  %v12151_v35 = vpop.f32.mrf.mxu1 }
 0x61a   : > { %18217 = vst [vmem:[#allocation39_spill] sm:$0xff] %v16037_v12 }
 0x61b   : > { %v11241_v43 = vpop.f32.mrf.mxu0  ;;  %v6135_v47 = vpop.f32.mrf.mxu1 }
 0x61c   : > { %v11242_v52 = vadd.f32 %v11241_v43, %v11240_v61 }
 0x61d   : > { %v11243_v46 = vpop.f32.mrf.mxu0  ;;  %v16042_v4 = vpop.f32.mrf.mxu1 }
 0x61e   : > { %v6133_v59 = vadd.f32 %v11242_v52, %v6132_v39 }
 0x61f   : > { %v11244_v16 = vpop.f32.mrf.mxu0  ;;  %v6148_v24 = vpop.f32.mrf.mxu1 }
 0x620   : > { %v16040_v56 = vadd.f32 %v6133_v59, %v15936_v1  ;;  %v11245_v25 = vadd.f32 %v11244_v16, %v11243_v46 }
 0x621   : > { %v11246_v34 = vpop.f32.mrf.mxu0  ;;  %v16044_v58 = vpop.f32.mrf.mxu1 }
 0x622   : > { %v6136_v44 = vadd.f32 %v11245_v25, %v6135_v47 }
 0x623   : > { %v11247_v23 = vpop.f32.mrf.mxu0  ;;  %v6151_v61 = vpop.f32.mrf.mxu1 }
 0x624   : > { %v11248_v9 = vadd.f32 %v11247_v23, %v11246_v34  ;;  %v6260_v46 = vadd.f32 %v6136_v44, %v5621_v32 }
 0x625   : > { %v11249_v10 = vpop.f32.mrf.mxu0  ;;  %v16046_v1 = vpop.f32.mrf.mxu1 }
 0x626   : > { %v6141_v60 = vadd.f32 %v12150_v7, %v11248_v9  ;;  %v16097_v9 = vadd.f32 %v16094_v20, %v6260_v46  ;;  %v5653_v46 = vadd.f32 %v15973_v55, %v15880_v42 }
 0x627   : > { %v11250_v28 = vpop.f32.mrf.mxu0  ;;  %v16048_v45 = vpop.f32.mrf.mxu1 }
 0x629   : > { %v11252_v22 = vpop.f32.mrf.mxu0  ;;  %v16050_v11 = vpop.f32.mrf.mxu1 }
 0x62b   : > { %v11253_v6 = vpop.f32.mrf.mxu0  ;;  %v16052_v37 = vpop.f32.mrf.mxu1 }
 0x62c   : > { %v11254_v50 = vadd.f32 %v11253_v6, %v11252_v22 }
 0x62d   : > { %v11255_v21 = vpop.f32.mrf.mxu0  ;;  %v16056_v33 = vpop.f32.mrf.mxu1 }
 0x62e   : > { %18218 = vst [vmem:[#allocation33_spill] sm:$0xff] %v16056_v33  ;;  %v11251_v33 = vadd.f32 %v11250_v28, %v11249_v10  ;;  %v6149_v25 = vadd.f32 %v11254_v50, %v6148_v24  ;;  %v16106_v50 = vadd.f32 %v16094_v20, %v16040_v56 }
 0x62f   : > { %v11256_v27 = vpop.f32.mrf.mxu0  ;;  %v16060_v31 = vpop.f32.mrf.mxu1 }
 0x630   : > { %18219 = vst [vmem:[#allocation29_spill] sm:$0xff] %v16060_v31  ;;  %v6144_v16 = vadd.f32 %v12151_v35, %v11251_v33  ;;  %v11257_v34 = vadd.f32 %v11256_v27, %v11255_v21  ;;  %v6263_v35 = vadd.f32 %v6149_v25, %v15950_v5  ;;  %v6331_v6 = vadd.f32 %v16097_v9, %v16106_v50 }
 0x631   : > { %v11258_v15 = vpop.f32.mrf.mxu0  ;;  %v16066_v3 = vpop.f32.mrf.mxu1 }
 0x632   : > { %18220 = vst [vmem:[#allocation58_spill] sm:$0xff] %v16066_v3  ;;  %v6262_v44 = vadd.f32 %v6144_v16, %v15939_v48  ;;  %v6152_v32 = vadd.f32 %v11257_v34, %v6151_v61  ;;  %v16127_v27 = vadd.f32 %v16094_v20, %v6263_v35 }
 0x633   : > { %v11259_v39 = vpop.f32.mrf.mxu0  ;;  %v16072_v49 = vpop.f32.mrf.mxu1 }
 0x634   : > { %18221 = vst [vmem:[#allocation59_spill] sm:$0xff] %v16072_v49  ;;  %v6261_v49 = vadd.f32 %v6141_v60, %v15929_v41  ;;  %v11260_v29 = vadd.f32 %v11259_v39, %v11258_v15  ;;  %v5637_v41 = vadd.f32 %v15956_v26, %v15850_v0  ;;  %v16120_v0 = vadd.f32 %v16094_v20, %v6262_v44 }
 0x635   : > { %v11261_v43 = vpop.f32.mrf.mxu0  ;;  %v16080_v3 = vpop.f32.mrf.mxu1 }
 0x636   : > { %v16109_v7 = vadd.f32 %v16094_v20, %v6261_v49  ;;  %v6157_v48 = vadd.f32 %v16042_v4, %v11260_v29  ;;  %v6264_v26 = vadd.f32 %v6152_v32, %v5637_v41 }
 0x637   : > { %v11262_v52 = vpop.f32.mrf.mxu0  ;;  %v16087_v47 = vpop.f32.mrf.mxu1 }
 0x638   : > { %v11263_v60 = vadd.f32 %v11262_v52, %v11261_v43  ;;  %v6332_v5 = vadd.f32 %v6331_v6, %v16109_v7  ;;  %v6265_v4 = vadd.f32 %v6157_v48, %v15946_v53  ;;  %v16135_v52 = vadd.f32 %v16094_v20, %v6264_v26 }
 0x639   : > { %v11264_v59 = vpop.f32.mrf.mxu0  ;;  %v16112_v28 = vpop.f32.mrf.mxu1 }
 0x63a   : > { %v6160_v49 = vadd.f32 %v16044_v58, %v11263_v60  ;;  %v6333_v43 = vadd.f32 %v6332_v5, %v16120_v0 }
 0x63b   : > { %v11265_v12 = vpop.f32.mrf.mxu0  ;;  %v16129_v15 = vpop.f32.mrf.mxu1  ;;  %v18224_v48 = vld [vmem:[#allocation59_spill] sm:$0xff] }
 0x63c   : > { %v11266_v24 = vadd.f32 %v11265_v12, %v11264_v59  ;;  %v6334_v53 = vadd.f32 %v6333_v43, %v16127_v27 }
 0x63d   : > { %v11267_v17 = vpop.f32.mrf.mxu0 }
 0x63e   : > { %v6165_v61 = vadd.f32 %v11266_v24, %v16048_v45  ;;  %v16145_v45 = vpop.f32.mrf.mxu1 }
 0x63f   : > { %v11268_v57 = vpop.f32.mrf.mxu0 }
 0x640   : > { %v11269_v21 = vadd.f32 %v11268_v57, %v11267_v17  ;;  %v6266_v17 = vadd.f32 %v6160_v49, %v15953_v36  ;;  %v6267_v16 = vadd.f32 %v6165_v61, %v15966_v40  ;;  %v16161_v29 = vpop.f32.mrf.mxu1  ;;  %v18225_v49 = vld [vmem:[#allocation46_spill] sm:$0xff] }
 0x641   : > { %v11270_v38 = vpop.f32.mrf.mxu0 }
 0x642   : > { %v6168_v57 = vadd.f32 %v11269_v21, %v16052_v37  ;;  %v16156_v42 = vadd.f32 %v16094_v20, %v6266_v17  ;;  %v16165_v44 = vadd.f32 %v16094_v20, %v6267_v16  ;;  %v16177_v6 = vpop.f32.mrf.mxu1  ;;  %v18226_v21 = vld [vmem:[#allocation56_spill] sm:$0xff]  ;;  %v18229_v16 = vld [vmem:[#allocation58_spill] sm:$0xff] }
 0x643   : > { %v11271_v51 = vpop.f32.mrf.mxu0  ;;  %v5669_v5 = vadd.f32 %v18226_v21, %v18225_v49 }
 0x644   : > { %v11272_v39 = vadd.f32 %v11271_v51, %v11270_v38  ;;  %v16148_v38 = vadd.f32 %v16094_v20, %v6265_v4  ;;  %v6268_v55 = vadd.f32 %v6168_v57, %v5653_v46  ;;  %v18227_v4 = vld [vmem:[#allocation41_spill] sm:$0xff] }
 0x645   : > { %v16054_v30 = vpop.f32.mrf.mxu0 }
 0x646   : > { %v6173_v34 = vadd.f32 %v16046_v1, %v11272_v39  ;;  %v18228_v39 = vld [vmem:[#allocation33_spill] sm:$0xff] }
 0x647   : > { %v11274_v2 = vpop.f32.mrf.mxu0 }
 0x648   : > { %v11275_v59 = vadd.f32 %v11274_v2, %v16054_v30  ;;  %v6335_v2 = vadd.f32 %v6334_v53, %v16135_v52  ;;  %v6215_v53 = vpop.f32.mrf.mxu1 }
 0x649   : > { %v16058_v18 = vpop.f32.mrf.mxu0 }
 0x64a   : > { %v6176_v37 = vadd.f32 %v16050_v11, %v11275_v59  ;;  %v6336_v1 = vadd.f32 %v6335_v2, %v16148_v38 }
 0x64b   : > { %v16062_v14 = vpop.f32.mrf.mxu0 }
 0x64c   : > { %v11278_v36 = vadd.f32 %v16062_v14, %v16058_v18  ;;  %v6269_v14 = vadd.f32 %v6173_v34, %v15961_v62  ;;  %v18222_v18 = vld [vmem:[#allocation29_spill] sm:$0xff]  ;;  %v6337_v11 = vadd.f32 %v6336_v1, %v16156_v42 }
 0x64d   : > { %v16064_v8 = vpop.f32.mrf.mxu0 }
 0x64e   : > { %v6181_v32 = vadd.f32 %v11278_v36, %v18222_v18 }
 0x64f   : > { %v16068_v54 = vpop.f32.mrf.mxu0 }
 0x650   : > { %v11281_v25 = vadd.f32 %v16068_v54, %v16064_v8  ;;  %v16173_v54 = vadd.f32 %v16094_v20, %v6268_v55  ;;  %v18223_v8 = vld [vmem:[#allocation48_spill] sm:$0xff]  ;;  %v6271_v61 = vadd.f32 %v6181_v32, %v18227_v4 }
 0x651   : > { %v16070_v63 = vpop.f32.mrf.mxu0  ;;  %v6270_v35 = vadd.f32 %v6176_v37, %v18223_v8  ;;  %v16217_v8 = vpop.f32.mrf.mxu1 }
 0x652   : > { %v6184_v24 = vadd.f32 %v11281_v25, %v18224_v48  ;;  %v16206_v37 = vadd.f32 %v16094_v20, %v6271_v61  ;;  %v18230_v25 = vld [vmem:[#allocation31_spill] sm:$0xff]  ;;  %v18234_v61 = vld [vmem:[#allocation40_spill] sm:$0xff] }
 0x653   : > { %v16074_v13 = vpop.f32.mrf.mxu0  ;;  %v16195_v59 = vadd.f32 %v16094_v20, %v6270_v35  ;;  %v18231_v35 = vld [vmem:[#allocation37_spill] sm:$0xff] }
 0x654   : > { %v11284_v60 = vadd.f32 %v16074_v13, %v16070_v63  ;;  %v6338_v13 = vadd.f32 %v6337_v11, %v16165_v44  ;;  %v16185_v63 = vadd.f32 %v16094_v20, %v6269_v14  ;;  %v6272_v46 = vadd.f32 %v6184_v24, %v5669_v5 }
 0x655   : > { %v16076_v19 = vpop.f32.mrf.mxu0  ;;  %v6372_v5 = vmul.f32 %v16127_v27, %v16127_v27 }
 0x656   : > { %v6189_v43 = vadd.f32 %v18228_v39, %v11284_v60  ;;  %v16215_v11 = vadd.f32 %v16094_v20, %v6272_v46 }
 0x657   : > { %v16082_v31 = vpop.f32.mrf.mxu0 }
 0x658   : > { %v11287_v62 = vadd.f32 %v16082_v31, %v16076_v19  ;;  %v6369_v19 = vmul.f32 %v16097_v9, %v16097_v9  ;;  %v6339_v31 = vadd.f32 %v6338_v13, %v16173_v54  ;;  %v6273_v1 = vadd.f32 %v6189_v43, %v18230_v25 }
 0x659   : > { %v16084_v23 = vpop.f32.mrf.mxu0 }
 0x65a   : > { %v6192_v34 = vadd.f32 %v18229_v16, %v11287_v62  ;;  %v6340_v55 = vadd.f32 %v6339_v31, %v16185_v63  ;;  %v16228_v4 = vadd.f32 %v16094_v20, %v6273_v1  ;;  %v6228_v31 = vpop.f32.mrf.mxu1 }
 0x65b   : > { %v16089_v10 = vpop.f32.mrf.mxu0 }
 0x65c   : > { %v11290_v17 = vadd.f32 %v16089_v10, %v16084_v23  ;;  %v6368_v23 = vmul.f32 %v16106_v50, %v16106_v50  ;;  %v6370_v10 = vmul.f32 %v16109_v7, %v16109_v7  ;;  %v6341_v60 = vadd.f32 %v6340_v55, %v16195_v59  ;;  %v18235_v55 = vld [vmem:[#allocation57_spill] sm:$0xff] }
 0x65d   : > { %v16100_v33 = vpop.f32.mrf.mxu0  ;;  %v6274_v48 = vadd.f32 %v6192_v34, %v18231_v35 }
 0x65e   : > { %v6197_v14 = vadd.f32 %v11290_v17, %v16087_v47  ;;  %v6342_v13 = vadd.f32 %v6341_v60, %v16206_v37  ;;  %v18236_v60 = vld [vmem:[#allocation43_spill] sm:$0xff] }
 0x65f   : > { %v16114_v22 = vpop.f32.mrf.mxu0  ;;  %v16236_v46 = vadd.f32 %v16094_v20, %v6274_v48 }
 0x660   : > { %v11293_v36 = vadd.f32 %v16114_v22, %v16100_v33  ;;  %v6400_v33 = vadd.f32 %v6369_v19, %v6368_v23  ;;  %v6371_v22 = vmul.f32 %v16120_v0, %v16120_v0  ;;  %v6275_v39 = vadd.f32 %v6197_v14, %v18234_v61 }
 0x661   : > { %v16122_v56 = vpop.f32.mrf.mxu0  ;;  %v6343_v19 = vadd.f32 %v6342_v13, %v16215_v11 }
 0x662   : > { %v6200_v24 = vadd.f32 %v11293_v36, %v16129_v15  ;;  %v6401_v21 = vadd.f32 %v6400_v33, %v6370_v10 }
 0x663   : > { %v11295_v12 = vpop.f32.mrf.mxu0 }
 0x664   : > { %v11296_v18 = vadd.f32 %v11295_v12, %v16122_v56  ;;  %v18232_v56 = vld [vmem:[#allocation32_spill] sm:$0xff]  ;;  %v18233_v12 = vld [vmem:[#allocation45_spill] sm:$0xff] }
 0x665   : > { %v16137_v58 = vpop.f32.mrf.mxu0  ;;  %v5685_v49 = vadd.f32 %v18233_v12, %v18232_v56  ;;  %v18238_v56 = vld [vmem:[#allocation35_spill] sm:$0xff] }
 0x666   : > { %v6205_v43 = vadd.f32 %v16080_v3, %v11296_v18  ;;  %v6374_v3 = vmul.f32 %v16148_v38, %v16148_v38 }
 0x667   : > { %v11298_v51 = vpop.f32.mrf.mxu0  ;;  %v6276_v16 = vadd.f32 %v6200_v24, %v5685_v49 }
 0x668   : > { %v11299_v47 = vadd.f32 %v11298_v51, %v16137_v58  ;;  %v6402_v58 = vadd.f32 %v6401_v21, %v6371_v22  ;;  %v6373_v51 = vmul.f32 %v16135_v52, %v16135_v52  ;;  %v6277_v25 = vadd.f32 %v6205_v43, %v18235_v55 }
 0x669   : > { %v11300_v30 = vpop.f32.mrf.mxu0  ;;  %v16251_v22 = vadd.f32 %v16094_v20, %v6276_v16  ;;  %v6376_v21 = vmul.f32 %v16165_v44, %v16165_v44 }
 0x66a   : > { %v6208_v34 = vadd.f32 %v16112_v28, %v11299_v47  ;;  %v6403_v10 = vadd.f32 %v6402_v58, %v6372_v5  ;;  %v6375_v28 = vmul.f32 %v16156_v42, %v16156_v42  ;;  %v18237_v47 = vld [vmem:[#allocation38_spill] sm:$0xff]  ;;  %v18239_v5 = vld [vmem:[#allocation44_spill] sm:$0xff] }
 0x66b   : > { %v11301_v40 = vpop.f32.mrf.mxu0  ;;  %v5701_v12 = vadd.f32 %v18238_v56, %v18237_v47  ;;  %v6380_v47 = vmul.f32 %v16206_v37, %v16206_v37 }
 0x66c   : > { %v11302_v15 = vadd.f32 %v11301_v40, %v11300_v30  ;;  %v6344_v30 = vadd.f32 %v6343_v19, %v16228_v4  ;;  %v16243_v40 = vadd.f32 %v16094_v20, %v6275_v39  ;;  %v6404_v18 = vadd.f32 %v6403_v10, %v6373_v51 }
 0x66d   : > { %v11303_v41 = vpop.f32.mrf.mxu0  ;;  %v6278_v35 = vadd.f32 %v6208_v34, %v18236_v60  ;;  %v6378_v10 = vmul.f32 %v16185_v63, %v16185_v63 }
 0x66e   : > { %v6213_v1 = vadd.f32 %v11302_v15, %v16161_v29  ;;  %v6345_v33 = vadd.f32 %v6344_v30, %v16236_v46  ;;  %v6405_v29 = vadd.f32 %v6404_v18, %v6374_v3  ;;  %v6377_v15 = vmul.f32 %v16173_v54, %v16173_v54  ;;  %v18240_v30 = vld [vmem:[#allocation42_spill] sm:$0xff] }
 0x66f   : > { %v11304_v26 = vpop.f32.mrf.mxu0 }
 0x670   : > { %v11305_v36 = vadd.f32 %v11304_v26, %v11303_v41  ;;  %v12175_v26 = vpop.f32.mrf.mxu1  ;;  %v6279_v13 = vadd.f32 %v6213_v1, %v18239_v5  ;;  %v6406_v39 = vadd.f32 %v6405_v29, %v6375_v28  ;;  %v18242_v29 = vld [vmem:[#allocation34_spill] sm:$0xff]  ;;  %v18244_v5 = vld [vmem:[#allocation47_spill] sm:$0xff] }
 0x671   : > { %v11306_v57 = vpop.f32.mrf.mxu0 }
 0x672   : > { %v6216_v48 = vadd.f32 %v11305_v36, %v6215_v53  ;;  %v6231_v58 = vpop.f32.mrf.mxu1  ;;  %v6407_v36 = vadd.f32 %v6406_v39, %v6376_v21 }
 0x673   : > { %v11307_v2 = vpop.f32.mrf.mxu0 }
 0x674   : > { %v11308_v41 = vadd.f32 %v11307_v2, %v11306_v57  ;;  %v6346_v57 = vadd.f32 %v6345_v33, %v16243_v40  ;;  %v16260_v2 = vadd.f32 %v16094_v20, %v6277_v25  ;;  %v6280_v51 = vadd.f32 %v6216_v48, %v5701_v12  ;;  %v16277_v3 = vpop.f32.mrf.mxu1  ;;  %v18241_v33 = vld [vmem:[#allocation49_spill] sm:$0xff] }
 0x675   : > { %v11309_v32 = vpop.f32.mrf.mxu0  ;;  %v6408_v18 = vadd.f32 %v6407_v36, %v6377_v15 }
 0x676   : > { %v6221_v53 = vadd.f32 %v16145_v45, %v11308_v41  ;;  %v16284_v28 = vadd.f32 %v16094_v20, %v6280_v51  ;;  %v6244_v12 = vpop.f32.mrf.mxu1 }
 0x677   : > { %v11310_v62 = vpop.f32.mrf.mxu0 }
 0x678   : > { %v11311_v49 = vadd.f32 %v11310_v62, %v11309_v32  ;;  %v6347_v32 = vadd.f32 %v6346_v57, %v16251_v22  ;;  %v16268_v62 = vadd.f32 %v16094_v20, %v6278_v35  ;;  %v6281_v55 = vadd.f32 %v6221_v53, %v18240_v30 }
 0x679   : > { %v11312_v17 = vpop.f32.mrf.mxu0  ;;  %v6381_v53 = vmul.f32 %v16215_v11, %v16215_v11 }
 0x67a   : > { %v6224_v16 = vadd.f32 %v16177_v6, %v11311_v49  ;;  %v6348_v45 = vadd.f32 %v6347_v32, %v16260_v2  ;;  %v6379_v6 = vmul.f32 %v16195_v59, %v16195_v59  ;;  %v18243_v49 = vld [vmem:[#allocation36_spill] sm:$0xff]  ;;  %v16293_v57 = vadd.f32 %v16094_v20, %v6281_v55 }
 0x67b   : > { %v11313_v23 = vpop.f32.mrf.mxu0  ;;  %v5717_v21 = vadd.f32 %v18243_v49, %v18242_v29  ;;  %v18249_v49 = vld [vmem:[#allocation52_spill] sm:$0xff] }
 0x67c   : > { %v11314_v43 = vadd.f32 %v11313_v23, %v11312_v17  ;;  %v16275_v17 = vadd.f32 %v16094_v20, %v6279_v13  ;;  %v6282_v60 = vadd.f32 %v6224_v16, %v18241_v33 }
 0x67d   : > { %v11315_v14 = vpop.f32.mrf.mxu0 }
 0x67e   : > { %v6229_v25 = vadd.f32 %v11314_v43, %v6228_v31 }
 0x67f   : > { %v11316_v24 = vpop.f32.mrf.mxu0 }
 0x680   : > { %v11317_v34 = vadd.f32 %v11316_v24, %v11315_v14  ;;  %v6349_v14 = vadd.f32 %v6348_v45, %v16268_v62  ;;  %v6409_v24 = vadd.f32 %v6408_v18, %v6378_v10  ;;  %v6283_v13 = vadd.f32 %v6229_v25, %v18244_v5  ;;  %v12179_v10 = vpop.f32.mrf.mxu1 }
 0x681   : > { %v11318_v61 = vpop.f32.mrf.mxu0 }
 0x682   : > { %v6232_v35 = vadd.f32 %v11317_v34, %v6231_v58  ;;  %v6350_v31 = vadd.f32 %v6349_v14, %v16275_v17  ;;  %v6410_v39 = vadd.f32 %v6409_v24, %v6379_v6  ;;  %v16301_v58 = vadd.f32 %v16094_v20, %v6282_v60  ;;  %v18246_v14 = vld [vmem:[#allocation50_spill] sm:$0xff]  ;;  %v18247_v60 = vld [vmem:[#allocation53_spill] sm:$0xff] }
 0x683   : > { %v11319_v19 = vpop.f32.mrf.mxu0  ;;  %v6382_v34 = vmul.f32 %v16228_v4, %v16228_v4  ;;  %v16307_v45 = vadd.f32 %v16094_v20, %v6283_v13 }
 0x684   : > { %v11320_v1 = vadd.f32 %v11319_v19, %v11318_v61  ;;  %v6351_v43 = vadd.f32 %v6350_v31, %v16284_v28  ;;  %v6284_v32 = vadd.f32 %v6232_v35, %v5717_v21  ;;  %v6411_v16 = vadd.f32 %v6410_v39, %v6380_v47  ;;  %v18248_v35 = vld [vmem:[#allocation54_spill] sm:$0xff]  ;;  %v6247_v31 = vpop.f32.mrf.mxu1 }
 0x685   : > { %v11321_v23 = vpop.f32.mrf.mxu0  ;;  %v6384_v47 = vmul.f32 %v16243_v40, %v16243_v40 }
 0x686   : > { %v6237_v61 = vadd.f32 %v16217_v8, %v11320_v1  ;;  %v6352_v8 = vadd.f32 %v6351_v43, %v16293_v57  ;;  %v6412_v25 = vadd.f32 %v6411_v16, %v6381_v53  ;;  %v6383_v1 = vmul.f32 %v16236_v46, %v16236_v46 }
 0x687   : > { %v11322_v41 = vpop.f32.mrf.mxu0  ;;  %v16314_v6 = vadd.f32 %v16094_v20, %v6284_v32 }
 0x688   : > { %v11323_v48 = vadd.f32 %v11322_v41, %v11321_v23  ;;  %v18245_v23 = vld [vmem:[#allocation51_spill] sm:$0xff]  ;;  %v6353_v18 = vadd.f32 %v6352_v8, %v16301_v58  ;;  %v6413_v24 = vadd.f32 %v6412_v25, %v6382_v34 }
 0x689   : > { %v11324_v56 = vpop.f32.mrf.mxu0  ;;  %v6285_v30 = vadd.f32 %v6237_v61, %v18245_v23  ;;  %v6385_v61 = vmul.f32 %v16251_v22, %v16251_v22 }
 0x68a   : > { %v6240_v51 = vadd.f32 %v12175_v26, %v11323_v48  ;;  %v5733_v48 = vadd.f32 %v18248_v35, %v18247_v60  ;;  %v6414_v13 = vadd.f32 %v6413_v24, %v6383_v1  ;;  %v6389_v24 = vmul.f32 %v16284_v28, %v16284_v28 }
 0x68b   : > { %v11325_v15 = vpop.f32.mrf.mxu0  ;;  %v16323_v29 = vadd.f32 %v16094_v20, %v6285_v30  ;;  %v6387_v30 = vmul.f32 %v16268_v62, %v16268_v62 }
 0x68c   : > { %v11326_v19 = vadd.f32 %v11325_v15, %v11324_v56  ;;  %v6286_v41 = vadd.f32 %v6240_v51, %v18246_v14  ;;  %v6415_v51 = vadd.f32 %v6414_v13, %v6384_v47 }
 0x68d   : > { %v11327_v36 = vpop.f32.mrf.mxu0 }
 0x68e   : > { %v6245_v55 = vadd.f32 %v11326_v19, %v6244_v12  ;;  %v6354_v12 = vadd.f32 %v6353_v18, %v16307_v45  ;;  %v16330_v43 = vadd.f32 %v16094_v20, %v6286_v41  ;;  %v6386_v19 = vmul.f32 %v16260_v2, %v16260_v2 }
 0x68f   : > { %v11328_v26 = vpop.f32.mrf.mxu0  ;;  %v6416_v23 = vadd.f32 %v6415_v51, %v6385_v61  ;;  %v6393_v51 = vmul.f32 %v16314_v6, %v16314_v6 }
 0x690   : > { %v11329_v33 = vadd.f32 %v11328_v26, %v11327_v36  ;;  %v6287_v21 = vadd.f32 %v6245_v55, %v18249_v49  ;;  %v6355_v53 = vadd.f32 %v6354_v12, %v16314_v6  ;;  %v18250_v26 = vld [vmem:[#allocation55_spill] sm:$0xff]  ;;  %v6390_v49 = vmul.f32 %v16293_v57, %v16293_v57 }
 0x691   : > { %v11330_v56 = vpop.f32.mrf.mxu0  ;;  %v6417_v41 = vadd.f32 %v6416_v23, %v6386_v19  ;;  %v6395_v23 = vmul.f32 %v16330_v43, %v16330_v43 }
 0x692   : > { %v6248_v5 = vadd.f32 %v11329_v33, %v6247_v31  ;;  %v6356_v34 = vadd.f32 %v6355_v53, %v16323_v29  ;;  %v16336_v36 = vadd.f32 %v16094_v20, %v6287_v21  ;;  %v6388_v33 = vmul.f32 %v16275_v17, %v16275_v17  ;;  %v18251_v31 = vld [vmem:[#allocation39_spill] sm:$0xff] }
 0x693   : > { %v11331_v39 = vpop.f32.mrf.mxu0  ;;  %v6392_v53 = vmul.f32 %v16307_v45, %v16307_v45 }
 0x694   : > { %v6288_v15 = vadd.f32 %v6248_v5, %v5733_v48  ;;  %v11332_v32 = vadd.f32 %v11331_v39, %v11330_v56  ;;  %v6357_v25 = vadd.f32 %v6356_v34, %v16330_v43  ;;  %v6418_v48 = vadd.f32 %v6417_v41, %v6387_v30 }
 0x695   : > { %v11333_v16 = vpop.f32.mrf.mxu0 }
 0x696   : > { %v6253_v8 = vadd.f32 %v16277_v3, %v11332_v32  ;;  %v16343_v1 = vadd.f32 %v16094_v20, %v6288_v15  ;;  %v6358_v60 = vadd.f32 %v6357_v25, %v16336_v36  ;;  %v6419_v12 = vadd.f32 %v6418_v48, %v6388_v33 }
 0x697   : > { %v11334_v55 = vpop.f32.mrf.mxu0  ;;  %v6396_v25 = vmul.f32 %v16336_v36, %v16336_v36  ;;  %v18253_v48 = vmov 0.0  }
 0x698   : > { %v6289_v18 = vadd.f32 %v6253_v8, %v18250_v26  ;;  %v11335_v14 = vadd.f32 %v11334_v55, %v11333_v16  ;;  %v6359_v47 = vadd.f32 %v6358_v60, %v16343_v1  ;;  %v6420_v13 = vadd.f32 %v6419_v12, %v6389_v24  ;;  %v18255_v12 = vld [vmem:[#allocation20_spill] sm:$0xff] }
 0x69a   : > { %v16350_v3 = vadd.f32 %v16094_v20, %v6289_v18  ;;  %v6256_v35 = vadd.f32 %v12179_v10, %v11335_v14  ;;  %v6391_v10 = vmul.f32 %v16301_v58, %v16301_v58  ;;  %v6421_v39 = vadd.f32 %v6420_v13, %v6390_v49  ;;  %v18257_v13 = vld [vmem:[#allocation18_spill] sm:$0xff] }
 0x69b   : > { %v6397_v14 = vmul.f32 %v16343_v1, %v16343_v1 }
 0x69c   : > { %v6290_v56 = vadd.f32 %v6256_v35, %v18251_v31  ;;  %v6360_v21 = vadd.f32 %v6359_v47, %v16350_v3  ;;  %v6422_v32 = vadd.f32 %v6421_v39, %v6391_v10  ;;  %v6398_v60 = vmul.f32 %v16350_v3, %v16350_v3  ;;  %v18252_v35 = vld [vmem:[#allocation22_spill] sm:$0xff]  ;;  %v18254_v31 = vld [vmem:[#allocation21_spill] sm:$0xff]  ;;  %v18259_v39 = vld [vmem:[#allocation16_spill] sm:$0xff] }
 0x69e   : > { %v16360_v5 = vadd.f32 %v16094_v20, %v6290_v56  ;;  %v6423_v16 = vadd.f32 %v6422_v32, %v6392_v53  ;;  %v6394_v20 = vmul.f32 %v16323_v29, %v16323_v29  ;;  %v18261_v32 = vld [vmem:[#allocation14_spill] sm:$0xff] }
 0x6a0   : > { %v6361_v61 = vadd.f32 %v6360_v21, %v16360_v5  ;;  %v6424_v8 = vadd.f32 %v6423_v16, %v6393_v51  ;;  %v6399_v47 = vmul.f32 %v16360_v5, %v16360_v5  ;;  %v18256_v21 = vld [vmem:[#allocation19_spill] sm:$0xff]  ;;  %v18263_v16 = vld [vmem:[#allocation12_spill] sm:$0xff] }
 0x6a2   : > { %v6362_v15 = vrot.slane %v6361_v61, 4  ;;  %v6425_v55 = vadd.f32 %v6424_v8, %v6394_v20  ;;  %v18265_v8 = vld [vmem:[#allocation10_spill] sm:$0xff] }
 0x6a4   : > { %v6363_v19 = vadd.f32 %v6362_v15, %v6361_v61  ;;  %v6426_v18 = vadd.f32 %v6425_v55, %v6395_v23  ;;  %v18258_v61 = vld [vmem:[#allocation17_spill] sm:$0xff]  ;;  %v18260_v15 = vld [vmem:[#allocation15_spill] sm:$0xff]  ;;  %v18267_v55 = vld [vmem:[#allocation8_spill] sm:$0xff] }
 0x6a6   : > { %v6364_v34 = vrot.slane %v6363_v19, 2  ;;  %v6427_v33 = vadd.f32 %v6426_v18, %v6396_v25  ;;  %v18269_v18 = vld [vmem:[#allocation24_spill] sm:$0xff] }
 0x6a8   : > { %v6365_v30 = vadd.f32 %v6364_v34, %v6363_v19  ;;  %v6428_v24 = vadd.f32 %v6427_v33, %v6397_v14  ;;  %v18262_v19 = vld [vmem:[#allocation13_spill] sm:$0xff]  ;;  %v18264_v34 = vld [vmem:[#allocation11_spill] sm:$0xff] }
 0x6a9   : > { %v18270_v14 = vld [vmem:[#allocation23_spill] sm:$0xff] }
 0x6aa   : > { %v6366_v26 = vrot.slane %v6365_v30, 1  ;;  %v6429_v56 = vadd.f32 %v6428_v24, %v6398_v60  ;;  %v12669_v33 = vld [vmem:[%s17974_s7 + $0xf8] sm:$0xff]   ;;  %v12670_v60 = vld [vmem:[%s17974_s7 + $0x130] sm:$0xff]   ;;  %v12672_v24 = vld [vmem:[%s17974_s7 + $0x128] sm:$0xff]  }
 0x6ac   : > { %v6367_v41 = vadd.f32 %v6366_v26, %v6365_v30  ;;  %v6430_v49 = vadd.f32 %v6429_v56, %v6399_v47  ;;  %v18266_v30 = vld [vmem:[#allocation9_spill] sm:$0xff]  ;;  %v18268_v26 = vld [vmem:[#allocation7_spill] sm:$0xff] }
 0x6ad   : > { %v12673_v47 = vld [vmem:[%s17974_s7 + $0xe8] sm:$0xff]  }
 0x6ae   : > { %12213 = vmatmul.mubr.f32.vlgmr.msra.gmra.mxu1 %v6367_v41  ;;  %v6431_v10 = vrot.slane %v6430_v49, 4  ;;  %v12668_v41 = vld [vmem:[%s17974_s7 + $0x138] sm:$0xff]  }
 0x6af   : > { %12216 = vmatpush3.msra.mxu1 %v18252_v35  ;;  %12247 = vmatprep.mubr.msk.f32.mxu1 %vm12810_vm11, %v18253_v48  ;;  %v12671_v35 = vld [vmem:[%s17974_s7 + $0xf0] sm:$0xff]  }
 0x6b0   : > { %12217 = vmatprep.subr.mxu1 %v18253_v48  ;;  %v6432_v53 = vadd.f32 %v6431_v10, %v6430_v49  ;;  %11400 = vmatprep.subr.bf16.mxu0 %v12668_v41  ;;  %v12683_v41 = vld [vmem:[%s17974_s7 + $0xc8] sm:$0xff]  }
 0x6b1   : > { %12218 = vmatpush3.msra.mxu1 %v18254_v31  ;;  %11401 = vmatpush3.bf16.msra.mxu0 %v12669_v33  ;;  %v12687_v33 = vld [vmem:[%s17974_s7 + $0x100] sm:$0xff]  }
 0x6b2   : > { %12219 = vmatprep.subr.mxu1 %v18253_v48  ;;  %v6433_v51 = vrot.slane %v6432_v53, 2  ;;  %11402 = vmatprep.subr.bf16.mxu0 %v12670_v60  ;;  %v12690_v60 = vld [vmem:[%s17974_s7 + $0x148] sm:$0xff]  }
 0x6b3   : > { %12220 = vmatpush3.msra.mxu1 %v18255_v12 }
 0x6b4   : > { %12221 = vmatprep.subr.mxu1 %v18253_v48  ;;  %v6434_v20 = vadd.f32 %v6433_v51, %v6432_v53  ;;  %v12676_v51 = vld [vmem:[%s17974_s7 + $0x118] sm:$0xff]  }
 0x6b5   : > { %12222 = vmatpush3.msra.mxu1 %v18256_v21  ;;  %11403 = vmatpush3.bf16.msra.mxu0 %v12671_v35  ;;  %v12689_v35 = vld [vmem:[%s17974_s7 + $0xc0] sm:$0xff]  }
 0x6b6   : > { %12223 = vmatprep.subr.mxu1 %v18253_v48  ;;  %v6435_v23 = vrot.slane %v6434_v20, 1  ;;  %11404 = vmatprep.subr.bf16.mxu0 %v12672_v24  ;;  %v12691_v24 = vld [vmem:[%s17974_s7 + $0x140] sm:$0xff]  }
 0x6b7   : > { %12224 = vmatpush3.msra.mxu1 %v18257_v13 }
 0x6b8   : > { %12225 = vmatprep.subr.mxu1 %v18253_v48  ;;  %v6436_v25 = vadd.f32 %v6435_v23, %v6434_v20  ;;  %v12679_v20 = vld [vmem:[%s17974_s7 + $0xd0] sm:$0xff]  }
 0x6b9   : > { %12226 = vmatpush3.msra.mxu1 %v18258_v61  ;;  %11405 = vmatpush3.bf16.msra.mxu0 %v12673_v47  ;;  %v16503_v47 = vld [vmem:[%s17974_s7 + $0xb8] sm:$0xff]  }
 0x6ba   : > { %12227 = vmatprep.subr.mxu1 %v18253_v48 }
 0x6bb   : > { %12228 = vmatpush3.msra.mxu1 %v18259_v39 }
 0x6bc   : > { %12229 = vmatprep.subr.mxu1 %v18253_v48 }
 0x6bd   : > { %12230 = vmatpush3.msra.mxu1 %v18260_v15 }
 0x6be   : > { %12231 = vmatprep.subr.mxu1 %v18253_v48 }
 0x6bf   : > { %12232 = vmatpush3.msra.mxu1 %v18261_v32  ;;  %v12674_v32 = vld [vmem:[%s17974_s7 + $0x120] sm:$0xff]  }
 0x6c0   : > { %12233 = vmatprep.subr.mxu1 %v18253_v48  ;;  %11406 = vmatprep.subr.bf16.mxu0 %v12674_v32 }
 0x6c1   : > { %12234 = vmatpush3.msra.mxu1 %v18262_v19  ;;  %v12677_v19 = vld [vmem:[%s17974_s7 + $0xd8] sm:$0xff]  }
 0x6c2   : > { %12235 = vmatprep.subr.mxu1 %v18253_v48 }
 0x6c3   : > { %12236 = vmatpush3.msra.mxu1 %v18263_v16  ;;  %v12678_v16 = vld [vmem:[%s17974_s7 + $0x110] sm:$0xff]  }
 0x6c4   : > { %12237 = vmatprep.subr.mxu1 %v18253_v48 }
 0x6c5   : > { %12238 = vmatpush3.msra.mxu1 %v18264_v34  ;;  %v12680_v34 = vld [vmem:[%s17974_s7 + $0x178] sm:$0xff]  }
 0x6c6   : > { %12239 = vmatprep.subr.mxu1 %v18253_v48 }
 0x6c7   : > { %12240 = vmatpush3.msra.mxu1 %v18265_v8  ;;  %v12682_v8 = vld [vmem:[%s17974_s7 + $0x170] sm:$0xff]  }
 0x6c8   : > { %12241 = vmatprep.subr.mxu1 %v18253_v48 }
 0x6c9   : > { %12242 = vmatpush3.msra.mxu1 %v18266_v30  ;;  %v12684_v30 = vld [vmem:[%s17974_s7 + $0x168] sm:$0xff]  }
 0x6ca   : > { %12243 = vmatprep.subr.mxu1 %v18253_v48 }
 0x6cb   : > { %12244 = vmatpush3.msra.mxu1 %v18267_v55 }
 0x6cc   : > { %12245 = vmatprep.subr.mxu1 %v18253_v48 }
 0x6cd   : > { %12246 = vmatpush3.msra.mxu1 %v18268_v26  ;;  %v12686_v26 = vld [vmem:[%s17974_s7 + $0x158] sm:$0xff]  }
 0x6ce   : > { %12248 = vmatmul.mubr.f32.vlgmr.msra.gmra.mxu1 %v6436_v25  ;;  %12250 = vmatprep.subr.mxu1 %v18253_v48  ;;  %v12685_v25 = vld [vmem:[%s17974_s7 + $0x160] sm:$0xff]  }
 0x6cf   : > { %12251 = vmatpush3.msra.mxu1 %v18269_v18  ;;  %12254 = vmatprep.mubr.msk.f32.mxu1 %vm12810_vm11, %v18253_v48 }
 0x6d0   : > { %12252 = vmatprep.subr.mxu1 %v18253_v48 }
 0x6d1   : > { %12253 = vmatpush3.msra.mxu1 %v18270_v14 }
 0x6d2   : > { %12257 = vmatprep.subr.mxu1 %v18253_v48 }
 0x76e   : > { %v6503_v31 = vpop.f32.mrf.mxu1 }
 0x76f   : > { %v6577_v56 = vmul.f32 0.00048828125, %v6503_v31  ;;  %v10196_v31 = vld [vmem:[%s17970_s3 + $0x1] sm:$0x1] }
 0x770   : > { %v12214_v12 = vpop.f32.mrf.mxu1 }
 0x771   : > { %12255 = vmatmul.mubr.msk.f32.vlgmr.msra.gmra.mxu1 %vm3404_vm12, %v6577_v56  ;;  %v6579_v21 = vmul.f32 %v6577_v56, %v6577_v56  ;;  %v12714_v56 = vld [vmem:[%s17974_s7 + $0x78] sm:$0xff]  }
 0x772   : > { %12258 = vmatpush3.msra.mxu1 %v18269_v18  ;;  %12261 = vmatprep.mubr.msk.f32.mxu1 %vm12810_vm11, %v18253_v48  ;;  %v12688_v18 = vld [vmem:[%s17974_s7 + $0x150] sm:$0xff]  }
 0x773   : > { %12259 = vmatprep.subr.mxu1 %v18253_v48  ;;  %v12675_v48 = vld [vmem:[%s17974_s7 + $0xe0] sm:$0xff]  }
 0x774   : > { %12260 = vmatpush3.msra.mxu1 %v18270_v14  ;;  %11407 = vmatpush3.bf16.msra.mxu0 %v12675_v48  ;;  %v12681_v14 = vld [vmem:[%s17974_s7 + $0x108] sm:$0xff]  }
 0x775   : > { %11408 = vmatprep.subr.bf16.mxu0 %v12676_v51  ;;  %12264 = vmatprep.subr.bf16.mxu1 %v12680_v34 }
 0x778   : > { %11409 = vmatpush3.bf16.msra.mxu0 %v12677_v19 }
 0x779   : > { %11410 = vmatprep.subr.bf16.mxu0 %v12678_v16 }
 0x77c   : > { %11411 = vmatpush3.bf16.msra.mxu0 %v12679_v20 }
 0x77d   : > { %11412 = vmatprep.subr.bf16.mxu0 %v12681_v14 }
 0x780   : > { %11413 = vmatpush3.bf16.msra.mxu0 %v12683_v41 }
 0x781   : > { %11414 = vmatprep.subr.bf16.mxu0 %v12687_v33 }
 0x784   : > { %11415 = vmatpush3.bf16.msra.mxu0 %v12689_v35 }
 0x785   : > { %12312 = vmatprep.subr.bf16.mxu0 %v16503_v47 }
 0x78e   : > { %v6573_v49 = vpop.f32.mrf.mxu1 }
 0x78f   : > { %v6578_v13 = vmul.f32 0.00048828125, %v6573_v49 }
 0x790   : > { %v12249_v10 = vpop.f32.mrf.mxu1 }
 0x791   : > { %v6580_v61 = vsub.f32 %v6578_v13, %v6579_v21  ;;  %v10197_v21 = vld [vmem:[%s17971_s4 + $0x1] sm:$0x1] }
 0x793   : > { %v6581_v39 = vmax.f32 %v6580_v61, 0.0  ;;  %v18271_v61 = vld [vmem:[#allocation28_spill] sm:$0xff] }
 0x795   : > { %v6655_v53 = vadd.f32 1e-05, %v6581_v39 }
 0x797   : > { %12778 = vrsqrt.f32 %v6655_v53 }
 0x7a4   : > { %v12779_v15 = vpop.eup %12778 }
 0x7a5   : > { %12262 = vmatmul.mubr.msk.f32.vlgmr.msra.gmra.mxu1 %vm3404_vm12, %v12779_v15 }
 0x7a6   : > { %12265 = vmatpush3.bf16.msra.mxu1 %v12680_v34 }
 0x7a7   : > { %12266 = vmatprep.subr.bf16.mxu1 %v12682_v8 }
 0x7aa   : > { %12267 = vmatpush3.bf16.msra.mxu1 %v12682_v8 }
 0x7ab   : > { %12268 = vmatprep.subr.bf16.mxu1 %v12684_v30 }
 0x7ae   : > { %12269 = vmatpush3.bf16.msra.mxu1 %v12684_v30 }
 0x7af   : > { %12270 = vmatprep.subr.bf16.mxu1 %v12685_v25 }
 0x7b2   : > { %12271 = vmatpush3.bf16.msra.mxu1 %v12685_v25 }
 0x7b3   : > { %12272 = vmatprep.subr.bf16.mxu1 %v12686_v26 }
 0x7b6   : > { %12273 = vmatpush3.bf16.msra.mxu1 %v12686_v26 }
 0x7b7   : > { %12274 = vmatprep.subr.bf16.mxu1 %v12688_v18 }
 0x7ba   : > { %12275 = vmatpush3.bf16.msra.mxu1 %v12688_v18 }
 0x7bb   : > { %12276 = vmatprep.subr.bf16.mxu1 %v12690_v60 }
 0x7be   : > { %12277 = vmatpush3.bf16.msra.mxu1 %v12690_v60 }
 0x7bf   : > { %12278 = vmatprep.subr.bf16.mxu1 %v12691_v24 }
 0x7c2   : > { %12279 = vmatpush3.bf16.msra.mxu1 %v12691_v24 }
 0x7c3   : > { %11536 = vmatprep.subr.bf16.mxu1 %v12714_v56 }
 0x831   : > { %v6651_v23 = vpop.f32.mrf.mxu1 }
 0x833   : > { %v12256_v55 = vpop.f32.mrf.mxu1 }
 0x865   : > { %v6726_v12 = vpop.f32.mrf.mxu1 }
 0x866   : > { %v6732_v49 = vmul.f32 %v10196_v31, %v6726_v12 }
 0x867   : > { %v12263_v13 = vpop.f32.mrf.mxu1 }
 0x868   : > { %v6735_v10 = vmul.f32 %v6732_v49, %v6651_v23  ;;  %v6740_v39 = vrot.slane %v6732_v49, %v18271_v61 }
 0x86a   : > { %v6736_v53 = vsub.f32 %v10197_v21, %v6735_v10  ;;  %v6741_v15 = vmul.f32 %v6740_v39, %v16106_v50  ;;  %v6742_v32 = vmul.f32 %v6740_v39, %v16097_v9  ;;  %v6743_v48 = vmul.f32 %v6740_v39, %v16109_v7 }
 0x86b   : > { %v6744_v51 = vmul.f32 %v6740_v39, %v16120_v0  ;;  %v6745_v19 = vmul.f32 %v6740_v39, %v16127_v27  ;;  %v6746_v16 = vmul.f32 %v6740_v39, %v16135_v52  ;;  %v6747_v20 = vmul.f32 %v6740_v39, %v16148_v38 }
 0x86c   : > { %v6777_v34 = vrot.slane %v6736_v53, %v18271_v61  ;;  %v6748_v8 = vmul.f32 %v6740_v39, %v16156_v42  ;;  %v6749_v23 = vmul.f32 %v6740_v39, %v16165_v44  ;;  %v6750_v50 = vmul.f32 %v6740_v39, %v16173_v54 }
 0x86d   : > { %v6751_v9 = vmul.f32 %v6740_v39, %v16185_v63  ;;  %v6752_v7 = vmul.f32 %v6740_v39, %v16195_v59  ;;  %v6753_v0 = vmul.f32 %v6740_v39, %v16206_v37  ;;  %v6754_v27 = vmul.f32 %v6740_v39, %v16215_v11 }
 0x86e   : > { %v6755_v52 = vmul.f32 %v6740_v39, %v16228_v4  ;;  %v6756_v38 = vmul.f32 %v6740_v39, %v16236_v46  ;;  %v6757_v30 = vmul.f32 %v6740_v39, %v16243_v40  ;;  %v6758_v42 = vmul.f32 %v6740_v39, %v16251_v22 }
 0x86f   : > { %v6759_v44 = vmul.f32 %v6740_v39, %v16260_v2  ;;  %v6760_v54 = vmul.f32 %v6740_v39, %v16268_v62  ;;  %v6761_v63 = vmul.f32 %v6740_v39, %v16275_v17  ;;  %v6762_v59 = vmul.f32 %v6740_v39, %v16284_v28 }
 0x870   : > { %v6763_v37 = vmul.f32 %v6740_v39, %v16293_v57  ;;  %v6764_v11 = vmul.f32 %v6740_v39, %v16301_v58  ;;  %v6765_v4 = vmul.f32 %v6740_v39, %v16307_v45  ;;  %v6766_v46 = vmul.f32 %v6740_v39, %v16314_v6 }
 0x871   : > { %v6767_v40 = vmul.f32 %v6740_v39, %v16323_v29  ;;  %v6768_v22 = vmul.f32 %v6740_v39, %v16330_v43  ;;  %v6769_v2 = vmul.f32 %v6740_v39, %v16336_v36  ;;  %v6770_v62 = vmul.f32 %v6740_v39, %v16343_v1 }
 0x872   : > { %v6771_v17 = vmul.f32 %v6740_v39, %v16350_v3  ;;  %v6772_v28 = vmul.f32 %v6740_v39, %v16360_v5  ;;  %v16549_v55 = vadd.f32 %v6777_v34, %v6741_v15  ;;  %v16551_v57 = vadd.f32 %v6777_v34, %v6742_v32 }
 0x873   : > { %v16553_v58 = vadd.f32 %v6777_v34, %v6743_v48  ;;  %v16555_v45 = vadd.f32 %v6777_v34, %v6744_v51  ;;  %v16557_v6 = vadd.f32 %v6777_v34, %v6745_v19  ;;  %v16559_v29 = vadd.f32 %v6777_v34, %v6746_v16 }
 0x874   : > { %v16561_v43 = vadd.f32 %v6777_v34, %v6747_v20  ;;  %v16563_v36 = vadd.f32 %v6777_v34, %v6748_v8  ;;  %v16565_v1 = vadd.f32 %v6777_v34, %v6749_v23  ;;  %v16567_v3 = vadd.f32 %v6777_v34, %v6750_v50 }
 0x875   : > { %v16569_v5 = vadd.f32 %v6777_v34, %v6751_v9  ;;  %v16571_v25 = vadd.f32 %v6777_v34, %v6752_v7  ;;  %v16573_v26 = vadd.f32 %v6777_v34, %v6753_v0  ;;  %v16575_v18 = vadd.f32 %v6777_v34, %v6754_v27 }
 0x876   : > { %v16577_v14 = vadd.f32 %v6777_v34, %v6755_v52  ;;  %v16579_v41 = vadd.f32 %v6777_v34, %v6756_v38  ;;  %v16581_v33 = vadd.f32 %v6777_v34, %v6757_v30  ;;  %v16583_v60 = vadd.f32 %v6777_v34, %v6758_v42 }
 0x877   : > { %v16585_v35 = vadd.f32 %v6777_v34, %v6759_v44  ;;  %v16587_v24 = vadd.f32 %v6777_v34, %v6760_v54  ;;  %v16589_v31 = vadd.f32 %v6777_v34, %v6761_v63  ;;  %v16591_v56 = vadd.f32 %v6777_v34, %v6762_v59 }
 0x878   : > { %v16593_v12 = vadd.f32 %v6777_v34, %v6763_v37  ;;  %v16595_v49 = vadd.f32 %v6777_v34, %v6764_v11  ;;  %v16597_v21 = vadd.f32 %v6777_v34, %v6765_v4  ;;  %v16599_v13 = vadd.f32 %v6777_v34, %v6766_v46 }
 0x879   : > { %v16601_v10 = vadd.f32 %v6777_v34, %v6767_v40  ;;  %v16603_v61 = vadd.f32 %v6777_v34, %v6768_v22  ;;  %v16605_v39 = vadd.f32 %v6777_v34, %v6769_v2  ;;  %v16607_v53 = vadd.f32 %v6777_v34, %v6770_v62 }
 0x87a   : > { %v16609_v15 = vadd.f32 %v6777_v34, %v6771_v17  ;;  %v16611_v32 = vadd.f32 %v6777_v34, %v6772_v28  ;;  %v6811_v48 = vmax.f32 %v16549_v55, 0.0  ;;  %v6812_v51 = vmax.f32 %v16551_v57, 0.0 }
 0x87b   : > { %v6813_v19 = vmax.f32 %v16553_v58, 0.0  ;;  %v6814_v16 = vmax.f32 %v16555_v45, 0.0  ;;  %v6815_v20 = vmax.f32 %v16557_v6, 0.0  ;;  %v6816_v8 = vmax.f32 %v16559_v29, 0.0 }
 0x87c   : > { %v6817_v23 = vmax.f32 %v16561_v43, 0.0  ;;  %v6818_v50 = vmax.f32 %v16563_v36, 0.0  ;;  %v6819_v9 = vmax.f32 %v16565_v1, 0.0  ;;  %v6820_v34 = vmax.f32 %v16567_v3, 0.0 }
 0x87d   : > { %v6821_v7 = vmax.f32 %v16569_v5, 0.0  ;;  %v6822_v0 = vmax.f32 %v16571_v25, 0.0  ;;  %v6823_v27 = vmax.f32 %v16573_v26, 0.0  ;;  %v6824_v52 = vmax.f32 %v16575_v18, 0.0 }
 0x87e   : > { %v6825_v38 = vmax.f32 %v16577_v14, 0.0  ;;  %v6826_v30 = vmax.f32 %v16579_v41, 0.0  ;;  %v6827_v42 = vmax.f32 %v16581_v33, 0.0  ;;  %v6828_v44 = vmax.f32 %v16583_v60, 0.0 }
 0x87f   : > { %v6829_v54 = vmax.f32 %v16585_v35, 0.0  ;;  %v6830_v63 = vmax.f32 %v16587_v24, 0.0  ;;  %v6831_v59 = vmax.f32 %v16589_v31, 0.0  ;;  %v6832_v37 = vmax.f32 %v16591_v56, 0.0 }
 0x880   : > { %v6833_v11 = vmax.f32 %v16593_v12, 0.0  ;;  %v6834_v4 = vmax.f32 %v16595_v49, 0.0  ;;  %v6835_v46 = vmax.f32 %v16597_v21, 0.0  ;;  %v6836_v40 = vmax.f32 %v16599_v13, 0.0 }
 0x881   : > { %v6837_v22 = vmax.f32 %v16601_v10, 0.0  ;;  %v6838_v2 = vmax.f32 %v16603_v61, 0.0  ;;  %v6839_v62 = vmax.f32 %v16605_v39, 0.0  ;;  %v6840_v17 = vmax.f32 %v16607_v53, 0.0 }
 0x882   : > { %v6841_v28 = vmax.f32 %v16609_v15, 0.0  ;;  %v6842_v55 = vmax.f32 %v16611_v32, 0.0  ;;  %v10472_v57 = vpack.c.bf16 %v6811_v48, %v6811_v48  ;;  %v10473_v58 = vpack.c.bf16 %v6812_v51, %v6812_v51 }
 0x883   : > { %v10474_v45 = vpack.c.bf16 %v6813_v19, %v6813_v19  ;;  %v10475_v6 = vpack.c.bf16 %v6814_v16, %v6814_v16  ;;  %v10476_v29 = vpack.c.bf16 %v6815_v20, %v6815_v20  ;;  %v16645_v43 = vpack.c.bf16 %v6816_v8, %v6816_v8 }
 0x884   : > { %v16647_v36 = vpack.c.bf16 %v6817_v23, %v6817_v23  ;;  %v16649_v1 = vpack.c.bf16 %v6818_v50, %v6818_v50  ;;  %v16651_v3 = vpack.c.bf16 %v6819_v9, %v6819_v9  ;;  %v16653_v5 = vpack.c.bf16 %v6820_v34, %v6820_v34 }
 0x885   : > { %v16655_v25 = vpack.c.bf16 %v6821_v7, %v6821_v7  ;;  %v16657_v26 = vpack.c.bf16 %v6822_v0, %v6822_v0  ;;  %v16659_v18 = vpack.c.bf16 %v6823_v27, %v6823_v27  ;;  %v16661_v14 = vpack.c.bf16 %v6824_v52, %v6824_v52 }
 0x886   : > { %v16663_v41 = vpack.c.bf16 %v6825_v38, %v6825_v38  ;;  %v16665_v33 = vpack.c.bf16 %v6826_v30, %v6826_v30  ;;  %v16667_v60 = vpack.c.bf16 %v6827_v42, %v6827_v42  ;;  %v16669_v35 = vpack.c.bf16 %v6828_v44, %v6828_v44 }
 0x887   : > { %v16671_v24 = vpack.c.bf16 %v6829_v54, %v6829_v54  ;;  %v16673_v31 = vpack.c.bf16 %v6830_v63, %v6830_v63  ;;  %v16675_v56 = vpack.c.bf16 %v6831_v59, %v6831_v59  ;;  %v16677_v12 = vpack.c.bf16 %v6832_v37, %v6832_v37 }
 0x888   : > { %v16679_v49 = vpack.c.bf16 %v6833_v11, %v6833_v11  ;;  %v16681_v21 = vpack.c.bf16 %v6834_v4, %v6834_v4  ;;  %v16683_v13 = vpack.c.bf16 %v6835_v46, %v6835_v46  ;;  %v16685_v10 = vpack.c.bf16 %v6836_v40, %v6836_v40 }
 0x889   : > { %v16687_v61 = vpack.c.bf16 %v6837_v22, %v6837_v22  ;;  %v16689_v39 = vpack.c.bf16 %v6838_v2, %v6838_v2  ;;  %v16691_v53 = vpack.c.bf16 %v6839_v62, %v6839_v62  ;;  %v16693_v15 = vpack.c.bf16 %v6840_v17, %v6840_v17  ;;  %v7350_v2 = vld [vmem:[#allocation2 + $0xa8] sm:$0xf] }
 0x88a   : > { %v16695_v32 = vpack.c.bf16 %v6841_v28, %v6841_v28  ;;  %v16697_v48 = vpack.c.bf16 %v6842_v55, %v6842_v55  ;;  %v6940_v51 = vshrl.u32 %v10472_v57, 16  ;;  %v6943_v19 = vshll.u32 %v10472_v57, 16 }
 0x88b   : > { %v6948_v16 = vshrl.u32 %v10473_v58, 16  ;;  %v6951_v20 = vshll.u32 %v10473_v58, 16  ;;  %v6957_v8 = vshrl.u32 %v10474_v45, 16  ;;  %v6960_v23 = vshll.u32 %v10474_v45, 16 }
 0x88c   : > { %v6942_v50 = vrot.slane %v6940_v51, 7  ;;  %v6965_v9 = vshrl.u32 %v10475_v6, 16  ;;  %v6968_v34 = vshll.u32 %v10475_v6, 16  ;;  %v6974_v7 = vshrl.u32 %v10476_v29, 16 }
 0x88d   : > { %v16699_v0 = vrot.slane %v6948_v16, 7  ;;  %v6959_v27 = vrot.slane %v6957_v8, 7  ;;  %v6977_v52 = vshll.u32 %v10476_v29, 16  ;;  %v6982_v38 = vshrl.u32 %v16645_v43, 16 }
 0x88e   : > { %v16702_v30 = vor.u32 %v6943_v19, %v6942_v50  ;;  %v6946_v42 = vrot.slane %v6942_v50, 4  ;;  %v16704_v44 = vrot.slane %v6965_v9, 7  ;;  %v6976_v54 = vrot.slane %v6974_v7, 7 }
 0x88f   : > { %v6953_v63 = vor.u32 %v6951_v20, %v16699_v0  ;;  %v6955_v59 = vrot.slane %v16699_v0, 4  ;;  %v16708_v37 = vor.u32 %v6960_v23, %v6959_v27  ;;  %v6963_v11 = vrot.slane %v6959_v27, 4 }
 0x890   : > { %v6970_v4 = vor.u32 %v6968_v34, %v16704_v44  ;;  %v6972_v46 = vrot.slane %v16704_v44, 4  ;;  %v16712_v40 = vor.u32 %v6977_v52, %v6976_v54  ;;  %v6980_v22 = vrot.slane %v6976_v54, 4  ;;  %v7308_v44 = vld [vmem:[#allocation2 + $0x60] sm:$0xf] }
 0x891   : > { %v6954_v62 = vsel %vm13154_vm7, %v6946_v42, %v6953_v63  ;;  %v16716_v17 = vrot.slane %v6982_v38, 7  ;;  %v6985_v28 = vshll.u32 %v16645_v43, 16  ;;  %v6991_v55 = vshrl.u32 %v16647_v36, 16 }
 0x892   : > { %v6971_v57 = vsel %vm13154_vm7, %v6963_v11, %v6970_v4  ;;  %v6994_v58 = vshll.u32 %v16647_v36, 16  ;;  %v6999_v45 = vshrl.u32 %v16649_v1, 16  ;;  %v7002_v6 = vshll.u32 %v16649_v1, 16  ;;  %7262 = vst [vmem:[#allocation2 + $0x10] sm:$0xf] %v6954_v62 }
 0x893   : > { %v6987_v29 = vor.u32 %v6985_v28, %v16716_v17  ;;  %v6989_v51 = vrot.slane %v16716_v17, 4  ;;  %v6993_v19 = vrot.slane %v6991_v55, 7  ;;  %v7008_v16 = vshrl.u32 %v16651_v3, 16  ;;  %7269 = vst [vmem:[#allocation2 + $0x1c] sm:$0xf] %v6971_v57 }
 0x894   : > { %v16728_v43 = vrot.slane %v6999_v45, 7  ;;  %v7011_v20 = vshll.u32 %v16651_v3, 16  ;;  %v7016_v8 = vshrl.u32 %v16653_v5, 16  ;;  %v7019_v36 = vshll.u32 %v16653_v5, 16 }
 0x895   : > { %v6988_v1 = vsel %vm13154_vm7, %v6980_v22, %v6987_v29  ;;  %v16735_v23 = vor.u32 %v6994_v58, %v6993_v19  ;;  %v6997_v50 = vrot.slane %v6993_v19, 4  ;;  %v7010_v9 = vrot.slane %v7008_v16, 7 }
 0x896   : > { %v7004_v34 = vor.u32 %v7002_v6, %v16728_v43  ;;  %v7006_v7 = vrot.slane %v16728_v43, 4  ;;  %v16739_v27 = vrot.slane %v7016_v8, 7  ;;  %v7025_v52 = vshrl.u32 %v16655_v25, 16  ;;  %7276 = vst [vmem:[#allocation2 + $0x28] sm:$0xf] %v6988_v1 }
 0x897   : > { %v16742_v3 = vor.u32 %v7011_v20, %v7010_v9  ;;  %v7014_v38 = vrot.slane %v7010_v9, 4  ;;  %v7028_v5 = vshll.u32 %v16655_v25, 16  ;;  %v7033_v42 = vshrl.u32 %v16657_v26, 16  ;;  %v7347_v43 = vld [vmem:[#allocation2 + $0xa4] sm:$0x1] }
 0x898   : > { %v7005_v54 = vsel %vm13154_vm7, %v6997_v50, %v7004_v34  ;;  %v7021_v63 = vor.u32 %v7019_v36, %v16739_v27  ;;  %v7023_v11 = vrot.slane %v16739_v27, 4  ;;  %v7027_v4 = vrot.slane %v7025_v52, 7 }
 0x899   : > { %v16750_v22 = vrot.slane %v7033_v42, 7  ;;  %v7036_v62 = vshll.u32 %v16657_v26, 16  ;;  %v7042_v28 = vshrl.u32 %v16659_v18, 16  ;;  %v7045_v55 = vshll.u32 %v16659_v18, 16  ;;  %7283 = vst [vmem:[#allocation2 + $0x34] sm:$0xf] %v7005_v54 }
 0x89a   : > { %v7022_v25 = vsel %vm13154_vm7, %v7014_v38, %v7021_v63  ;;  %v16757_v57 = vor.u32 %v7028_v5, %v7027_v4  ;;  %v7031_v58 = vrot.slane %v7027_v4, 4  ;;  %v7050_v45 = vshrl.u32 %v16661_v14, 16 }
 0x89b   : > { %v7038_v6 = vor.u32 %v7036_v62, %v16750_v22  ;;  %v7040_v29 = vrot.slane %v16750_v22, 4  ;;  %v7044_v19 = vrot.slane %v7042_v28, 7  ;;  %v7053_v26 = vshll.u32 %v16661_v14, 16  ;;  %7290 = vst [vmem:[#allocation2 + $0x40] sm:$0xf] %v7022_v25 }
 0x89c   : > { %v16763_v16 = vrot.slane %v7050_v45, 7  ;;  %v7059_v18 = vshrl.u32 %v16663_v41, 16  ;;  %v7062_v20 = vshll.u32 %v16663_v41, 16  ;;  %v7067_v8 = vshrl.u32 %v16665_v33, 16 }
 0x89d   : > { %v7039_v36 = vsel %vm13154_vm7, %v7031_v58, %v7038_v6  ;;  %v16770_v1 = vor.u32 %v7045_v55, %v7044_v19  ;;  %v7048_v50 = vrot.slane %v7044_v19, 4  ;;  %v7070_v9 = vshll.u32 %v16665_v33, 16 }
 0x89e   : > { %v7055_v34 = vor.u32 %v7053_v26, %v16763_v16  ;;  %v7057_v14 = vrot.slane %v16763_v16, 4  ;;  %v7061_v52 = vrot.slane %v7059_v18, 7  ;;  %v16775_v38 = vrot.slane %v7067_v8, 7  ;;  %7297 = vst [vmem:[#allocation2 + $0x4c] sm:$0xf] %v7039_v36 }
 0x89f   : > { %v7076_v41 = vshrl.u32 %v16667_v60, 16  ;;  %v7079_v5 = vshll.u32 %v16667_v60, 16  ;;  %v7084_v42 = vshrl.u32 %v16669_v35, 16  ;;  %v7087_v54 = vshll.u32 %v16669_v35, 16 }
 0x8a0   : > { %v7056_v63 = vsel %vm13154_vm7, %v7048_v50, %v7055_v34  ;;  %v16783_v33 = vor.u32 %v7062_v20, %v7061_v52  ;;  %v7065_v4 = vrot.slane %v7061_v52, 4  ;;  %v7072_v62 = vor.u32 %v7070_v9, %v16775_v38  ;;  %v7284_v20 = vld [vmem:[#allocation2 + $0x38] sm:$0x1] }
 0x8a1   : > { %v7078_v55 = vrot.slane %v7076_v41, 7  ;;  %v16787_v25 = vrot.slane %v7084_v42, 7  ;;  %v7093_v58 = vshrl.u32 %v16671_v24, 16  ;;  %7304 = vst [vmem:[#allocation2 + $0x58] sm:$0xf] %v7056_v63  ;;  %v7096_v35 = vshll.u32 %v16671_v24, 16 }
 0x8a2   : > { %v7073_v60 = vsel %vm13154_vm7, %v7065_v4, %v7072_v62  ;;  %v7101_v45 = vshrl.u32 %v16673_v31, 16  ;;  %v7104_v6 = vshll.u32 %v16673_v31, 16  ;;  %v7110_v50 = vshrl.u32 %v16675_v56, 16 }
 0x8a3   : > { %v16795_v19 = vor.u32 %v7079_v5, %v7078_v55  ;;  %v7082_v26 = vrot.slane %v7078_v55, 4  ;;  %v7089_v18 = vor.u32 %v7087_v54, %v16787_v25  ;;  %7311 = vst [vmem:[#allocation2 + $0x64] sm:$0xf] %v7073_v60  ;;  %v7095_v8 = vrot.slane %v7093_v58, 7  ;;  %v12717_v54 = vld [vmem:[%s17974_s7 + $0x38] sm:$0xff]  }
 0x8a4   : > { %v16799_v36 = vrot.slane %v7101_v45, 7  ;;  %v7113_v9 = vshll.u32 %v16675_v56, 16  ;;  %v7118_v31 = vshrl.u32 %v16677_v12, 16  ;;  %v7121_v34 = vshll.u32 %v16677_v12, 16 }
 0x8a5   : > { %v7090_v24 = vsel %vm13154_vm7, %v7082_v26, %v7089_v18  ;;  %v7127_v52 = vshrl.u32 %v16679_v49, 16  ;;  %v16808_v41 = vor.u32 %v7096_v35, %v7095_v8  ;;  %v7099_v5 = vrot.slane %v7095_v8, 4  ;;  %v7280_v26 = vld [vmem:[#allocation2 + $0x30] sm:$0xf] }
 0x8a6   : > { %v7106_v42 = vor.u32 %v7104_v6, %v16799_v36  ;;  %7318 = vst [vmem:[#allocation2 + $0x70] sm:$0xf] %v7090_v24  ;;  %v7112_v63 = vrot.slane %v7110_v50, 7  ;;  %v16812_v4 = vrot.slane %v7118_v31, 7  ;;  %v7130_v62 = vshll.u32 %v16679_v49, 16 }
 0x8a7   : > { %v7129_v56 = vrot.slane %v7127_v52, 7  ;;  %v7135_v12 = vshrl.u32 %v16681_v21, 16  ;;  %v7138_v58 = vshll.u32 %v16681_v21, 16  ;;  %v7144_v60 = vshrl.u32 %v16683_v13, 16  ;;  %v7273_v52 = vld [vmem:[#allocation2 + $0x24] sm:$0xf] }
 0x8a8   : > { %v7107_v55 = vsel %vm13154_vm7, %v7099_v5, %v7106_v42  ;;  %v16820_v35 = vor.u32 %v7113_v9, %v7112_v63  ;;  %v7116_v45 = vrot.slane %v7112_v63, 4  ;;  %v7123_v6 = vor.u32 %v7121_v34, %v16812_v4 }
 0x8a9   : > { %7325 = vst [vmem:[#allocation2 + $0x7c] sm:$0xf] %v7107_v55  ;;  %v16824_v18 = vor.u32 %v7130_v62, %v7129_v56  ;;  %v7133_v49 = vrot.slane %v7129_v56, 4  ;;  %v16826_v8 = vrot.slane %v7135_v12, 7  ;;  %v7146_v50 = vrot.slane %v7144_v60, 7 }
 0x8aa   : > { %v7124_v24 = vsel %vm13154_vm7, %v7116_v45, %v7123_v6  ;;  %v7147_v21 = vshll.u32 %v16683_v13, 16  ;;  %v7152_v9 = vshrl.u32 %v16685_v10, 16  ;;  %v7155_v31 = vshll.u32 %v16685_v10, 16  ;;  %v7266_v45 = vld [vmem:[#allocation2 + $0x18] sm:$0xf] }
 0x8ab   : > { %v7140_v34 = vor.u32 %v7138_v58, %v16826_v8  ;;  %v7150_v5 = vrot.slane %v7146_v50, 4  ;;  %v7161_v42 = vshrl.u32 %v16687_v61, 16  ;;  %7332 = vst [vmem:[#allocation2 + $0x88] sm:$0xf] %v7124_v24  ;;  %v7164_v62 = vshll.u32 %v16687_v61, 16 }
 0x8ac   : > { %v16836_v63 = vor.u32 %v7147_v21, %v7146_v50  ;;  %v16838_v56 = vrot.slane %v7152_v9, 7  ;;  %v7169_v13 = vshrl.u32 %v16689_v39, 16  ;;  %v7172_v12 = vshll.u32 %v16689_v39, 16  ;;  %v7259_v9 = vld [vmem:[#allocation2 + $0xc] sm:$0xf] }
 0x8ad   : > { %v7141_v55 = vsel %vm13154_vm7, %v7133_v49, %v7140_v34  ;;  %v7163_v10 = vrot.slane %v7161_v42, 7  ;;  %v7178_v58 = vshrl.u32 %v16691_v53, 16  ;;  %v7181_v50 = vshll.u32 %v16691_v53, 16  ;;  %v7270_v53 = vld [vmem:[#allocation2 + $0x20] sm:$0x1] }
 0x8ae   : > { %v7157_v60 = vor.u32 %v7155_v31, %v16838_v56  ;;  %v16848_v6 = vrot.slane %v7169_v13, 7  ;;  %7339 = vst [vmem:[#allocation2 + $0x94] sm:$0xf] %v7141_v55  ;;  %v7186_v49 = vshrl.u32 %v16693_v15, 16  ;;  %v7189_v42 = vshll.u32 %v16693_v15, 16 }
 0x8af   : > { %v16851_v61 = vor.u32 %v7164_v62, %v7163_v10  ;;  %v7167_v24 = vrot.slane %v7163_v10, 4  ;;  %v7180_v21 = vrot.slane %v7178_v58, 7  ;;  %v7263_v13 = vld [vmem:[#allocation2 + $0x14] sm:$0x1]  ;;  %v7195_v58 = vshrl.u32 %v16695_v32, 16 }
 0x8b0   : > { %v7158_v39 = vsel %vm13154_vm7, %v7150_v5, %v7157_v60  ;;  %v7174_v34 = vor.u32 %v7172_v12, %v16848_v6  ;;  %v16861_v10 = vrot.slane %v7186_v49, 7  ;;  %v7198_v12 = vshll.u32 %v16695_v32, 16  ;;  %v7277_v31 = vld [vmem:[#allocation2 + $0x2c] sm:$0x1]  ;;  %v7294_v32 = vld [vmem:[#allocation2 + $0x48] sm:$0xf] }
 0x8b1   : > { %v16859_v55 = vor.u32 %v7181_v50, %v7180_v21  ;;  %v7184_v62 = vrot.slane %v7180_v21, 4  ;;  %7346 = vst [vmem:[#allocation2 + $0xa0] sm:$0xf] %v7158_v39  ;;  %v7203_v60 = vshrl.u32 %v16697_v48, 16  ;;  %v7206_v15 = vshll.u32 %v16697_v48, 16 }
 0x8b2   : > { %v7175_v5 = vsel %vm13154_vm7, %v7167_v24, %v7174_v34  ;;  %v7191_v50 = vor.u32 %v7189_v42, %v16861_v10  ;;  %v7197_v49 = vrot.slane %v7195_v58, 7  ;;  %v7260_v39 = vsel %vm13160_vm8, %v16702_v30, %v7259_v9  ;;  %v7287_v24 = vld [vmem:[#allocation2 + $0x3c] sm:$0xf]  ;;  %v7291_v34 = vld [vmem:[#allocation2 + $0x44] sm:$0x1] }
 0x8b3   : > { %7353 = vst [vmem:[#allocation2 + $0xac] sm:$0xf] %v7175_v5  ;;  %v16874_v28 = vrot.slane %v7203_v60, 7  ;;  %7261 = vst [vmem:[#allocation2 + $0xc] sm:$0xf] %v7260_v39  ;;  %v7264_v42 = vsel %vm12998_vm2, %v6955_v59, %v7263_v13  ;;  %v7267_v58 = vsel %vm13160_vm8, %v16708_v37, %v7266_v45  ;;  %v7271_v30 = vsel %vm12998_vm2, %v6972_v46, %v7270_v53 }
 0x8b4   : > { %v7298_v9 = vld [vmem:[#allocation2 + $0x50] sm:$0x1]  ;;  %v7301_v5 = vld [vmem:[#allocation2 + $0x54] sm:$0xf]  ;;  %v7305_v21 = vld [vmem:[#allocation2 + $0x5c] sm:$0x1]  ;;  %v7192_v60 = vsel %vm13154_vm7, %v7184_v62, %v7191_v50  ;;  %v16889_v39 = vor.u32 %v7198_v12, %v7197_v49  ;;  %v7274_v59 = vsel %vm13160_vm8, %v16712_v40, %v7273_v52  ;;  %v7278_v62 = vsel %vm12998_vm2, %v6989_v51, %v7277_v31 }
 0x8b5   : > { %v7201_v0 = vrot.slane %v7197_v49, 4  ;;  %7265 = vst [vmem:[#allocation2 + $0x14] sm:$0x1] %v7264_v42  ;;  %7268 = vst [vmem:[#allocation2 + $0x18] sm:$0xf] %v7267_v58  ;;  %v7208_v13 = vor.u32 %v7206_v15, %v16874_v28  ;;  %v7210_v53 = vrot.slane %v16874_v28, 4  ;;  %v7281_v12 = vsel %vm13160_vm8, %v16735_v23, %v7280_v26 }
 0x8b6   : > { %7272 = vst [vmem:[#allocation2 + $0x20] sm:$0x1] %v7271_v30  ;;  %v7312_v37 = vld [vmem:[#allocation2 + $0x68] sm:$0x1]  ;;  %v7315_v45 = vld [vmem:[#allocation2 + $0x6c] sm:$0xf]  ;;  %v7285_v15 = vsel %vm12998_vm2, %v7006_v7, %v7284_v20  ;;  %v7288_v17 = vsel %vm13160_vm8, %v16742_v3, %v7287_v24  ;;  %v7292_v51 = vsel %vm12998_vm2, %v7023_v11, %v7291_v34  ;;  %v7295_v23 = vsel %vm13160_vm8, %v16757_v57, %v7294_v32 }
 0x8b7   : > { %v7319_v46 = vld [vmem:[#allocation2 + $0x74] sm:$0x1]  ;;  %7275 = vst [vmem:[#allocation2 + $0x24] sm:$0xf] %v7274_v59  ;;  %7360 = vst [vmem:[#allocation2 + $0xb8] sm:$0xf] %v7192_v60  ;;  %v7209_v7 = vsel %vm13154_vm7, %v7201_v0, %v7208_v13  ;;  %v7299_v27 = vsel %vm12998_vm2, %v7040_v29, %v7298_v9  ;;  %v7302_v3 = vsel %vm13160_vm8, %v16770_v1, %v7301_v5 }
 0x8b8   : > { %v7322_v40 = vld [vmem:[#allocation2 + $0x78] sm:$0xf]  ;;  %v7326_v52 = vld [vmem:[#allocation2 + $0x80] sm:$0x1]  ;;  %v7329_v50 = vld [vmem:[#allocation2 + $0x84] sm:$0xf]  ;;  %v7306_v11 = vsel %vm12998_vm2, %v7057_v14, %v7305_v21  ;;  %v7309_v22 = vsel %vm13160_vm8, %v16783_v33, %v7308_v44  ;;  %v7316_v16 = vsel %vm13160_vm8, %v16795_v19, %v7315_v45 }
 0x8b9   : > { %v7333_v49 = vld [vmem:[#allocation2 + $0x8c] sm:$0x1]  ;;  %7279 = vst [vmem:[#allocation2 + $0x2c] sm:$0x1] %v7278_v62  ;;  %7282 = vst [vmem:[#allocation2 + $0x30] sm:$0xf] %v7281_v12 }
 0x8ba   : > { %v7336_v26 = vld [vmem:[#allocation2 + $0x90] sm:$0xf]  ;;  %v7340_v31 = vld [vmem:[#allocation2 + $0x98] sm:$0x1]  ;;  %v7343_v42 = vld [vmem:[#allocation2 + $0x9c] sm:$0xf] }
 0x8bb   : > { %7286 = vst [vmem:[#allocation2 + $0x38] sm:$0x1] %v7285_v15  ;;  %7289 = vst [vmem:[#allocation2 + $0x3c] sm:$0xf] %v7288_v17  ;;  %v7354_v57 = vld [vmem:[#allocation2 + $0xb0] sm:$0x1] }
 0x8bc   : > { %7293 = vst [vmem:[#allocation2 + $0x44] sm:$0x1] %v7292_v51  ;;  %7296 = vst [vmem:[#allocation2 + $0x48] sm:$0xf] %v7295_v23  ;;  %v7357_v20 = vld [vmem:[#allocation2 + $0xb4] sm:$0xf] }
 0x8bd   : > { %7300 = vst [vmem:[#allocation2 + $0x50] sm:$0x1] %v7299_v27  ;;  %7303 = vst [vmem:[#allocation2 + $0x54] sm:$0xf] %v7302_v3  ;;  %v18275_v29 = vrot.slane %v16775_v38, 4  ;;  %v18276_v14 = vrot.slane %v16787_v25, 4  ;;  %v7323_v38 = vsel %vm13160_vm8, %v16808_v41, %v7322_v40  ;;  %v7330_v25 = vsel %vm13160_vm8, %v16820_v35, %v7329_v50 }
 0x8be   : > { %7307 = vst [vmem:[#allocation2 + $0x5c] sm:$0x1] %v7306_v11  ;;  %7367 = vst [vmem:[#allocation2 + $0xc4] sm:$0xf] %v7209_v7  ;;  %v7361_v24 = vld [vmem:[#allocation2 + $0xbc] sm:$0x1] }
 0x8bf   : > { %v7313_v1 = vsel %vm12998_vm2, %v18275_v29, %v7312_v37  ;;  %v7320_v21 = vsel %vm12998_vm2, %v18276_v14, %v7319_v46  ;;  %v7364_v34 = vld [vmem:[#allocation2 + $0xc0] sm:$0xf]  ;;  %7310 = vst [vmem:[#allocation2 + $0x60] sm:$0xf] %v7309_v22  ;;  %7317 = vst [vmem:[#allocation2 + $0x6c] sm:$0xf] %v7316_v16 }
 0x8c0   : > { %7314 = vst [vmem:[#allocation2 + $0x68] sm:$0x1] %v7313_v1  ;;  %7321 = vst [vmem:[#allocation2 + $0x74] sm:$0x1] %v7320_v21  ;;  %v18277_v33 = vrot.slane %v16799_v36, 4  ;;  %v18278_v32 = vrot.slane %v16812_v4, 4  ;;  %v7337_v36 = vsel %vm13160_vm8, %v16824_v18, %v7336_v26  ;;  %v7344_v4 = vsel %vm13160_vm8, %v16836_v63, %v7343_v42 }
 0x8c1   : > { %v7368_v30 = vld [vmem:[#allocation2 + $0xc8] sm:$0x1]  ;;  %7324 = vst [vmem:[#allocation2 + $0x78] sm:$0xf] %v7323_v38  ;;  %7331 = vst [vmem:[#allocation2 + $0x84] sm:$0xf] %v7330_v25  ;;  %v7351_v18 = vsel %vm13160_vm8, %v16851_v61, %v7350_v2 }
 0x8c2   : > { %v7327_v19 = vsel %vm12998_vm2, %v18277_v33, %v7326_v52  ;;  %v7334_v58 = vsel %vm12998_vm2, %v18278_v32, %v7333_v49  ;;  %v18279_v41 = vrot.slane %v16826_v8, 4  ;;  %v18280_v35 = vrot.slane %v16838_v56, 4  ;;  %v16972_v60 = vld [vmem:[#allocation2 + $0xc] sm:$0xff]   ;;  %7338 = vst [vmem:[#allocation2 + $0x90] sm:$0xf] %v7337_v36  ;;  %v16988_v37 = vld [vmem:[#allocation2 + $0x18] sm:$0xff]  }
 0x8c3   : > { %7328 = vst [vmem:[#allocation2 + $0x80] sm:$0x1] %v7327_v19  ;;  %7335 = vst [vmem:[#allocation2 + $0x8c] sm:$0x1] %v7334_v58  ;;  %v18281_v8 = vrot.slane %v16848_v6, 4  ;;  %v7358_v56 = vsel %vm13160_vm8, %v16859_v55, %v7357_v20  ;;  %v18282_v0 = vrot.slane %v16861_v10, 4  ;;  %v7365_v6 = vsel %vm13160_vm8, %v16889_v39, %v7364_v34 }
 0x8c4   : > { %v7341_v9 = vsel %vm12998_vm2, %v18279_v41, %v7340_v31  ;;  %v7348_v5 = vsel %vm12998_vm2, %v18280_v35, %v7347_v43  ;;  %7345 = vst [vmem:[#allocation2 + $0x9c] sm:$0xf] %v7344_v4  ;;  %v12693_v44 = vld [vmem:[#allocation2 + $0x14] ss:$0 sps:$4 sm:$0x11]   ;;  %v7369_v61 = vsel %vm12998_vm2, %v7210_v53, %v7368_v30  ;;  %v7824_v55 = vrot.slane %v16972_v60, 1 }
 0x8c5   : > { %7342 = vst [vmem:[#allocation2 + $0x98] sm:$0x1] %v7341_v9  ;;  %7349 = vst [vmem:[#allocation2 + $0xa4] sm:$0x1] %v7348_v5  ;;  %v7355_v63 = vsel %vm12998_vm2, %v18281_v8, %v7354_v57  ;;  %v7362_v59 = vsel %vm12998_vm2, %v18282_v0, %v7361_v24  ;;  %v16998_v10 = vld [vmem:[#allocation2 + $0x24] sm:$0xff]   ;;  %v7825_v45 = vrot.slane %v12693_v44, 1 }
 0x8c6   : > { %7352 = vst [vmem:[#allocation2 + $0xa8] sm:$0xf] %v7351_v18  ;;  %7356 = vst [vmem:[#allocation2 + $0xb0] sm:$0x1] %v7355_v63  ;;  %v7827_v13 = vrot.slane %v16988_v37, 1  ;;  %v7602_v39 = vshll.u32 %v16972_v60, 16 }
 0x8c7   : > { %7359 = vst [vmem:[#allocation2 + $0xb4] sm:$0xf] %v7358_v56  ;;  %7363 = vst [vmem:[#allocation2 + $0xbc] sm:$0x1] %v7362_v59  ;;  %v12718_v28 = vld [vmem:[%s17974_s7 + $0x70] sm:$0xff]   ;;  %v17009_v48 = vsel %vm1465_vm10, %v7824_v55, %v7825_v45  ;;  %v7830_v12 = vrot.slane %v16998_v10, 1 }
 0x8c8   : > { %7366 = vst [vmem:[#allocation2 + $0xc0] sm:$0xf] %v7365_v6  ;;  %7370 = vst [vmem:[#allocation2 + $0xc8] sm:$0x1] %v7369_v61  ;;  %v7607_v40 = vshll.u32 %v12693_v44, 16  ;;  %12280 = vmatprep.mubr.bf16.mxu1 %v17009_v48  ;;  %v7600_v52 = vshrl.u32 %v16972_v60, 16 }
 0x8c9   : > { %v12695_v46 = vld [vmem:[#allocation2 + $0x20] ss:$0 sps:$4 sm:$0x11]   ;;  %v12697_v62 = vld [vmem:[#allocation2 + $0x2c] ss:$0 sps:$4 sm:$0x11]  }
 0x8ca   : > { %v7828_v53 = vrot.slane %v12695_v46, 1  ;;  %v7604_v50 = vrot.slane %v7602_v39, 1  ;;  %v7614_v49 = vshll.u32 %v16988_v37, 16  ;;  %v7619_v15 = vshll.u32 %v12695_v46, 16  ;;  %v17018_v23 = vld [vmem:[#allocation2 + $0x30] sm:$0xff]   ;;  %v17030_v11 = vld [vmem:[#allocation2 + $0x3c] sm:$0xff]  }
 0x8cb   : > { %v7831_v51 = vrot.slane %v12697_v62, 1  ;;  %v7609_v31 = vrot.slane %v7607_v40, 1  ;;  %v7612_v42 = vshrl.u32 %v16988_v37, 16  ;;  %v17022_v7 = vld [vmem:[#allocation2 + $0x38] ss:$0 sps:$4 sm:$0x11]  }
 0x8cc   : > { %v17016_v17 = vsel %vm1465_vm10, %v7827_v13, %v7828_v53  ;;  %v7605_v26 = vor.u32 %v7604_v50, %v7600_v52  ;;  %v7616_v43 = vrot.slane %v7614_v49, 1  ;;  %v12707_v27 = vld [vmem:[%s17974_s7 + $0xb0] sm:$0xff]   ;;  %v17032_v2 = vld [vmem:[#allocation2 + $0x44] ss:$0 sps:$4 sm:$0x11]   ;;  %v7621_v22 = vrot.slane %v7619_v15, 1 }
 0x8cd   : > { %12281 = vmatmul.mubr.bf16.vlgmr.msra.gmra.mxu1 %v17016_v17  ;;  %v17028_v3 = vsel %vm1465_vm10, %v7830_v12, %v7831_v51  ;;  %v12720_v29 = vld [vmem:[%s17974_s7 + $0x30] sm:$0xff]   ;;  %v7833_v1 = vrot.slane %v17018_v23, 1  ;;  %v7834_v16 = vrot.slane %v17022_v7, 1  ;;  %v7626_v14 = vshll.u32 %v16998_v10, 16  ;;  %v12723_v21 = vld [vmem:[%s17974_s7 + $0x68] sm:$0xff]   ;;  %v12728_v63 = vld [vmem:[%s17974_s7 + $0x20] sm:$0xff]  }
 0x8ce   : > { %11537 = vmatpush3.bf16.msra.mxu1 %v12717_v54  ;;  %12284 = vmatprep.mubr.bf16.mxu1 %v17028_v3  ;;  %v17036_v57 = vsel %vm1230_vm9, %v7605_v26, %v7609_v31  ;;  %v7617_v20 = vor.u32 %v7616_v43, %v7612_v42  ;;  %v7836_v34 = vrot.slane %v17030_v11, 1  ;;  %v7837_v38 = vrot.slane %v17032_v2, 1  ;;  %v12719_v19 = vld [vmem:[%s17974_s7 + $0xa8] sm:$0xff]   ;;  %v17063_v30 = vld [vmem:[#allocation2 + $0x50] ss:$0 sps:$4 sm:$0x11]  }
 0x8cf   : > { %11538 = vmatprep.subr.bf16.mxu1 %v12718_v28  ;;  %8166 = vmatprep.mubr.bf16.mxu0 %v17036_v57  ;;  %v7628_v33 = vrot.slane %v7626_v14, 1  ;;  %v12726_v25 = vld [vmem:[%s17974_s7 + $0x28] sm:$0xff]   ;;  %v7624_v32 = vshrl.u32 %v16998_v10, 16  ;;  %v7631_v58 = vshll.u32 %v12697_v62, 16  ;;  %v17069_v36 = vsel %vm1465_vm10, %v7833_v1, %v7834_v16  ;;  %v17077_v35 = vld [vmem:[#allocation2 + $0x54] sm:$0xff]   ;;  %v12736_v0 = vld [vmem:[%s17974_s7 + $0xa0] sm:$0xff]  }
 0x8d0   : > { %8167 = vmatmul.mubr.bf16.vlgmr.msra.gmra.mxu0 %v16972_v60  ;;  %v17050_v24 = vsel %vm1230_vm9, %v7617_v20, %v7621_v22  ;;  %v17071_v41 = vld [vmem:[#allocation2 + $0x48] sm:$0xff]   ;;  %v17075_v9 = vsel %vm1465_vm10, %v7836_v34, %v7837_v38  ;;  %v17079_v5 = vld [vmem:[#allocation2 + $0x5c] ss:$0 sps:$4 sm:$0x11]   ;;  %v7638_v18 = vshll.u32 %v17018_v23, 16  ;;  %v7840_v44 = vrot.slane %v17063_v30, 1 }
 0x8d1   : > { %8174 = vmatprep.mubr.bf16.mxu0 %v17050_v24  ;;  %12313 = vmatpush3.bf16.msra.mxu0 %v16503_v47  ;;  %v12727_v47 = vld [vmem:[%s17974_s7 + $0x60] sm:$0xff]   ;;  %v7629_v4 = vor.u32 %v7628_v33, %v7624_v32  ;;  %v7633_v8 = vrot.slane %v7631_v58, 1  ;;  %v12731_v56 = vld [vmem:[%s17974_s7 + $0x58] sm:$0xff]   ;;  %v7839_v59 = vrot.slane %v17071_v41, 1  ;;  %v7842_v61 = vrot.slane %v17077_v35, 1  ;;  %v12735_v13 = vld [vmem:[%s17974_s7 + $0x50] sm:$0xff]  }
 0x8d2   : > { %12314 = vmatprep.subr.bf16.mxu0 %v12707_v27  ;;  %11539 = vmatpush3.bf16.msra.mxu1 %v12720_v29  ;;  %v7843_v55 = vrot.slane %v17079_v5, 1  ;;  %v7640_v45 = vrot.slane %v7638_v18, 1  ;;  %v12734_v46 = vld [vmem:[%s17974_s7 + $0x18] sm:$0xff]   ;;  %v7636_v54 = vshrl.u32 %v17018_v23, 16  ;;  %v7643_v39 = vshll.u32 %v17022_v7, 16  ;;  %v17117_v12 = vld [vmem:[#allocation2 + $0x60] sm:$0xff]  }
 0x8d3   : > { %11540 = vmatprep.subr.bf16.mxu1 %v12723_v21  ;;  %v17096_v6 = vsel %vm1230_vm9, %v7629_v4, %v7633_v8  ;;  %v17109_v28 = vld [vmem:[#allocation2 + $0x68] ss:$0 sps:$4 sm:$0x11]   ;;  %v12746_v53 = vld [vmem:[%s17974_s7 + $0x98] sm:$0xff]   ;;  %v17115_v62 = vsel %vm1465_vm10, %v7839_v59, %v7840_v44  ;;  %v17123_v50 = vld [vmem:[#allocation2 + $0x6c] sm:$0xff]   ;;  %v7650_v15 = vshll.u32 %v17030_v11, 16 }
 0x8d4   : > { %v17121_v40 = vsel %vm1465_vm10, %v7842_v61, %v7843_v55  ;;  %v7641_v52 = vor.u32 %v7640_v45, %v7636_v54  ;;  %v17125_v49 = vld [vmem:[#allocation2 + $0x74] ss:$0 sps:$4 sm:$0x11]   ;;  %v7645_v51 = vrot.slane %v7643_v39, 1  ;;  %v7845_v42 = vrot.slane %v17117_v12, 1  ;;  %v12740_v7 = vld [vmem:[%s17974_s7 + $0x48] sm:$0xff]  }
 0x8d5   : > { %12285 = vmatmul.mubr.bf16.gmra.mxu1 %v17069_v36  ;;  %12315 = vmatpush3.bf16.msra.mxu0 %v12707_v27  ;;  %v12737_v26 = vld [vmem:[%s17974_s7 + $0x10] sm:$0xff]   ;;  %v7846_v43 = vrot.slane %v17109_v28, 1  ;;  %v7848_v20 = vrot.slane %v17123_v50, 1  ;;  %v7849_v22 = vrot.slane %v17125_v49, 1  ;;  %v7652_v29 = vrot.slane %v7650_v15, 1  ;;  %v12741_v1 = vld [vmem:[%s17974_s7 + $0x8] sm:$0xff]  }
 0x8d6   : > { %12288 = vmatprep.mubr.bf16.mxu1 %v17075_v9  ;;  %12316 = vmatprep.subr.bf16.mxu0 %v12719_v19  ;;  %v12747_v31 = vld [vmem:[%s17974_s7 + $0x90] sm:$0xff]   ;;  %v17142_v27 = vsel %vm1230_vm9, %v7641_v52, %v7645_v51  ;;  %v17150_v16 = vld [vmem:[#allocation2 + $0x80] ss:$0 sps:$4 sm:$0x11]   ;;  %v12748_v21 = vld [vmem:[%s17974_s7 + $0x88] sm:$0xff]   ;;  %v7648_v34 = vshrl.u32 %v17030_v11, 16 }
 0x8d7   : > { %11541 = vmatpush3.bf16.msra.mxu1 %v12726_v25  ;;  %v12742_v14 = vld [vmem:[%s17974_s7 + $0x40] sm:$0xff]   ;;  %v7655_v38 = vshll.u32 %v17032_v2, 16  ;;  %v17161_v33 = vsel %vm1465_vm10, %v7845_v42, %v7846_v43  ;;  %v17167_v32 = vld [vmem:[#allocation2 + $0x8c] ss:$0 sps:$4 sm:$0x11]   ;;  %v7662_v58 = vshll.u32 %v17071_v41, 16 }
 0x8d8   : > { %11542 = vmatprep.subr.bf16.mxu1 %v12727_v47  ;;  %8175 = vmatmul.mubr.bf16.gmra.mxu0 %v16988_v37  ;;  %v17165_v25 = vld [vmem:[#allocation2 + $0x84] sm:$0xff]   ;;  %v17172_v47 = vsel %vm1465_vm10, %v7848_v20, %v7849_v22  ;;  %v7653_v2 = vor.u32 %v7652_v29, %v7648_v34  ;;  %v7855_v44 = vrot.slane %v17167_v32, 1  ;;  %v7660_v55 = vshrl.u32 %v17071_v41, 16  ;;  %v17198_v54 = vld [vmem:[#allocation2 + $0x90] sm:$0xff]  }
 0x8d9   : > { %8182 = vmatprep.mubr.bf16.mxu0 %v17096_v6  ;;  %12317 = vmatpush3.bf16.msra.mxu0 %v12719_v19  ;;  %v17163_v19 = vld [vmem:[#allocation2 + $0x78] sm:$0xff]   ;;  %v7657_v4 = vrot.slane %v7655_v38, 1  ;;  %v12743_v18 = vld [vmem:[%s17974_s7] sm:$0xff]   ;;  %v7854_v59 = vrot.slane %v17165_v25, 1  ;;  %v7664_v61 = vrot.slane %v7662_v58, 1  ;;  %v7667_v45 = vshll.u32 %v17063_v30, 16 }
 0x8da   : > { %12318 = vmatprep.subr.bf16.mxu0 %v12736_v0  ;;  %v12749_v8 = vld [vmem:[%s17974_s7 + $0x80] sm:$0xff]   ;;  %v17200_v39 = vld [vmem:[#allocation2 + $0x98] ss:$0 sps:$4 sm:$0x11]   ;;  %v7674_v51 = vshll.u32 %v17077_v35, 16  ;;  %v7857_v42 = vrot.slane %v17198_v54, 1 }
 0x8db   : > { %11543 = vmatpush3.bf16.msra.mxu1 %v12728_v63  ;;  %v7851_v63 = vrot.slane %v17163_v19, 1  ;;  %v7665_v52 = vor.u32 %v7664_v61, %v7660_v55  ;;  %v17206_v30 = vld [vmem:[#allocation2 + $0x9c] sm:$0xff]   ;;  %v17208_v15 = vld [vmem:[#allocation2 + $0xa4] ss:$0 sps:$4 sm:$0x11]   ;;  %v7858_v43 = vrot.slane %v17200_v39, 1 }
 0x8dc   : > { %11544 = vmatprep.subr.bf16.mxu1 %v12731_v56  ;;  %v7852_v56 = vrot.slane %v17150_v16, 1  ;;  %v7860_v20 = vrot.slane %v17206_v30, 1  ;;  %v7861_v22 = vrot.slane %v17208_v15, 1  ;;  %v7676_v29 = vrot.slane %v7674_v51, 1  ;;  %v17232_v58 = vld [vmem:[#allocation2 + $0xa8] sm:$0xff]  }
 0x8dd   : > { %12289 = vmatmul.mubr.bf16.gmra.mxu1 %v17115_v62  ;;  %12319 = vmatpush3.bf16.msra.mxu0 %v12736_v0  ;;  %v17185_v0 = vsel %vm1230_vm9, %v7653_v2, %v7657_v4  ;;  %v12745_v34 = vld [vmem:[#allocation2 + $0x8] ss:$0 sps:$4 sm:$0x11]   ;;  %v17230_v38 = vsel %vm1465_vm10, %v7857_v42, %v7858_v43  ;;  %v17234_v2 = vld [vmem:[#allocation2 + $0xb0] ss:$0 sps:$4 sm:$0x11]  }
 0x8de   : > { %12292 = vmatprep.mubr.bf16.mxu1 %v17121_v40  ;;  %12320 = vmatprep.subr.bf16.mxu0 %v12746_v53  ;;  %v17236_v4 = vld [vmem:[#allocation2 + $0xb4] sm:$0xff]   ;;  %v7822_v61 = vrot.slane %v12745_v34, 1  ;;  %v7863_v55 = vrot.slane %v17232_v58, 1  ;;  %v7684_v43 = vshrl.u32 %v17117_v12, 16 }
 0x8df   : > { %11545 = vmatpush3.bf16.msra.mxu1 %v12734_v46  ;;  %v12750_v46 = vld [vmem:[%s17974_s7 + $0x1f8] sm:$0xff]  }
 0x8e0   : > { %11546 = vmatprep.subr.bf16.mxu1 %v12735_v13  ;;  %8183 = vmatmul.mubr.bf16.gmra.mxu0 %v16998_v10  ;;  %v17196_v13 = vsel %vm1465_vm10, %v7851_v63, %v7852_v56  ;;  %v17242_v63 = vld [vmem:[#allocation2 + $0xbc] ss:$0 sps:$4 sm:$0x11]  }
 0x8e1   : > { %8190 = vmatprep.mubr.bf16.mxu0 %v17142_v27  ;;  %12321 = vmatpush3.bf16.msra.mxu0 %v12746_v53  ;;  %v17204_v53 = vsel %vm1465_vm10, %v7854_v59, %v7855_v44  ;;  %v7867_v51 = vrot.slane %v17242_v63, 1 }
 0x8e2   : > { %12322 = vmatprep.subr.bf16.mxu0 %v12747_v31 }
 0x8e3   : > { %11547 = vmatpush3.bf16.msra.mxu1 %v12737_v26  ;;  %v17214_v26 = vld [vmem:[%s17974_s7 + $0x238] sm:$0xff]  }
 0x8e4   : > { %11548 = vmatprep.subr.bf16.mxu1 %v12740_v7 }
 0x8e5   : > { %12293 = vmatmul.mubr.bf16.gmra.mxu1 %v17161_v33  ;;  %12323 = vmatpush3.bf16.msra.mxu0 %v12747_v31  ;;  %v7669_v31 = vrot.slane %v7667_v45, 1  ;;  %v7864_v45 = vrot.slane %v17234_v2, 1 }
 0x8e6   : > { %12296 = vmatprep.mubr.bf16.mxu1 %v17172_v47  ;;  %12324 = vmatprep.subr.bf16.mxu0 %v12748_v21 }
 0x8e7   : > { %11549 = vmatpush3.bf16.msra.mxu1 %v12741_v1  ;;  %v17222_v7 = vsel %vm1230_vm9, %v7665_v52, %v7669_v31  ;;  %v7672_v1 = vshrl.u32 %v17077_v35, 16 }
 0x8e8   : > { %11550 = vmatprep.subr.bf16.mxu1 %v12742_v14  ;;  %8191 = vmatmul.mubr.bf16.gmra.mxu0 %v17018_v23  ;;  %v7679_v14 = vshll.u32 %v17079_v5, 16  ;;  %v7686_v5 = vshll.u32 %v17117_v12, 16 }
 0x8e9   : > { %8198 = vmatprep.mubr.bf16.mxu0 %v17185_v0  ;;  %12325 = vmatpush3.bf16.msra.mxu0 %v12748_v21  ;;  %v12744_v21 = vld [vmem:[#allocation2] sm:$0xff]  }
 0x8ea   : > { %12326 = vmatprep.subr.bf16.mxu0 %v12749_v8  ;;  %v7821_v56 = vrot.slane %v12744_v21, 1  ;;  %v7681_v59 = vrot.slane %v7679_v14, 1  ;;  %v7590_v44 = vshll.u32 %v12744_v21, 16  ;;  %v7688_v31 = vrot.slane %v7686_v5, 1 }
 0x8eb   : > { %11551 = vmatpush3.bf16.msra.mxu1 %v12743_v18  ;;  %v17240_v18 = vsel %vm1465_vm10, %v7860_v20, %v7861_v22  ;;  %v7691_v20 = vshll.u32 %v17109_v28, 16  ;;  %v7588_v22 = vshrl.u32 %v12744_v21, 16  ;;  %v17261_v14 = vsel %vm1465_vm10, %v7863_v55, %v7864_v45 }
 0x8ec   : > { %12424 = vmatprep.subr.bf16.mxu1 %v17214_v26  ;;  %18283 = vst [vmem:[#allocation29_spill] sm:$0xff] %v17240_v18  ;;  %v17255_v42 = vsel %vm1465_vm10, %v7821_v56, %v7822_v61  ;;  %18284 = vst [vmem:[#allocation48_spill] sm:$0xff] %v17261_v14  ;;  %v7689_v56 = vor.u32 %v7688_v31, %v7684_v43  ;;  %v7698_v61 = vshll.u32 %v17123_v50, 16 }
 0x8ed   : > { %12297 = vmatmul.mubr.bf16.gmra.mxu1 %v17196_v13  ;;  %12327 = vmatpush3.bf16.msra.mxu0 %v12749_v8  ;;  %v7677_v8 = vor.u32 %v7676_v29, %v7672_v1  ;;  %v7592_v29 = vrot.slane %v7590_v44, 1  ;;  %v7595_v1 = vshll.u32 %v12745_v34, 16  ;;  %v7693_v28 = vrot.slane %v7691_v20, 1 }
 0x8ee   : > { %12300 = vmatprep.mubr.bf16.mxu1 %v17204_v53  ;;  %11672 = vmatprep.subr.bf16.mxu0 %v12750_v46  ;;  %v7866_v46 = vrot.slane %v17236_v4, 1 }
 0x8ef   : > { %v17251_v52 = vsel %vm1230_vm9, %v7677_v8, %v7681_v59  ;;  %v17263_v8 = vld [vmem:[#allocation2 + $0xc0] sm:$0xff]   ;;  %v17265_v59 = vld [vmem:[#allocation2 + $0xc8] ss:$0 sps:$4 sm:$0x11]   ;;  %v7593_v44 = vor.u32 %v7592_v29, %v7588_v22  ;;  %v7597_v34 = vrot.slane %v7595_v1, 1  ;;  %v7710_v22 = vshll.u32 %v17163_v19, 16 }
 0x8f0   : > { %8199 = vmatmul.mubr.bf16.gmra.mxu0 %v17030_v11  ;;  %v17269_v5 = vsel %vm1465_vm10, %v7866_v46, %v7867_v51  ;;  %v7869_v55 = vrot.slane %v17263_v8, 1  ;;  %v7870_v45 = vrot.slane %v17265_v59, 1  ;;  %v7696_v46 = vshrl.u32 %v17123_v50, 16 }
 0x8f1   : > { %8206 = vmatprep.mubr.bf16.mxu0 %v17222_v7  ;;  %v7703_v51 = vshll.u32 %v17125_v49, 16  ;;  %v7598_v31 = vsel %vm1230_vm9, %v7593_v44, %v7597_v34  ;;  %v7708_v49 = vshrl.u32 %v17163_v19, 16  ;;  %v7722_v44 = vshll.u32 %v17165_v25, 16 }
 0x8f2   : > { %v17284_v43 = vsel %vm1465_vm10, %v7869_v55, %v7870_v45  ;;  %v7727_v45 = vshll.u32 %v17167_v32, 16  ;;  %v17331_v32 = vld [vmem:[%s17974_s7 + $0x218] sm:$0xff]  }
 0x8f3   : > { %v7705_v29 = vrot.slane %v7703_v51, 1 }
 0x8f5   : > { %12301 = vmatmul.mubr.bf16.gmra.mxu1 %v17230_v38 }
 0x8f6   : > { %12304 = vmatprep.mubr.bf16.mxu1 %v17240_v18  ;;  %v17277_v18 = vsel %vm1230_vm9, %v7689_v56, %v7693_v28  ;;  %v7712_v56 = vrot.slane %v7710_v22, 1 }
 0x8f8   : > { %8207 = vmatmul.mubr.bf16.gmra.mxu0 %v17071_v41  ;;  %v7713_v28 = vor.u32 %v7712_v56, %v7708_v49  ;;  %v7739_v56 = vshll.u32 %v17200_v39, 16  ;;  %v17345_v49 = vld [vmem:[%s17974_s7 + $0x210] sm:$0xff]   ;;  %v17355_v39 = vld [vmem:[%s17974_s7 + $0x208] sm:$0xff]  }
 0x8f9   : > { %8214 = vmatprep.mubr.bf16.mxu0 %v17251_v52 }
 0x8fd   : > { %12305 = vmatmul.mubr.bf16.gmra.mxu1 %v17261_v14  ;;  %v7700_v14 = vrot.slane %v7698_v61, 1  ;;  %v7715_v61 = vshll.u32 %v17150_v16, 16  ;;  %v17307_v16 = vld [vmem:[%s17974_s7 + $0x228] sm:$0xff]  }
 0x8fe   : > { %12308 = vmatprep.mubr.bf16.mxu1 %v17269_v5 }
 0x8ff   : > { %v7701_v20 = vor.u32 %v7700_v14, %v7696_v46  ;;  %v17298_v14 = vld [vmem:[%s17974_s7 + $0x230] sm:$0xff]   ;;  %v7717_v34 = vrot.slane %v7715_v61, 1  ;;  %v17321_v46 = vld [vmem:[%s17974_s7 + $0x220] sm:$0xff]  }
 0x900   : > { %8215 = vmatmul.mubr.bf16.gmra.mxu0 %v17077_v35 }
 0x901   : > { %8222 = vmatprep.mubr.bf16.mxu0 %v17277_v18  ;;  %v17290_v1 = vsel %vm1230_vm9, %v7701_v20, %v7705_v29  ;;  %v17311_v55 = vsel %vm1230_vm9, %v7713_v28, %v7717_v34  ;;  %v7729_v20 = vrot.slane %v7727_v45, 1  ;;  %v7732_v29 = vshrl.u32 %v17198_v54, 16 }
 0x902   : > { %v7746_v28 = vshll.u32 %v17206_v30, 16  ;;  %v7751_v45 = vshll.u32 %v17208_v15, 16 }
 0x905   : > { %12309 = vmatmul.mubr.bf16.gmra.mxu1 %v17284_v43 }
 0x906   : > { %8632 = vmatprep.mubr.bf16.mxu1 %v7598_v31  ;;  %v7734_v31 = vshll.u32 %v17198_v54, 16 }
 0x908   : > { %8223 = vmatmul.mubr.bf16.gmra.mxu0 %v17117_v12 }
 0x909   : > { %8230 = vmatprep.mubr.bf16.mxu0 %v17290_v1 }
 0x90d   : > { %8633 = vmatmul.mubr.bf16.vlgmr.msra.gmra.mxu1 %v12744_v21  ;;  %v7724_v21 = vrot.slane %v7722_v44, 1  ;;  %v7741_v44 = vrot.slane %v7739_v56, 1  ;;  %v7756_v56 = vshrl.u32 %v17232_v58, 16 }
 0x90e   : > { %8640 = vmatprep.mubr.bf16.mxu1 %v17036_v57  ;;  %12432 = vmatpush3.bf16.msra.mxu1 %v17214_v26  ;;  %v7720_v57 = vshrl.u32 %v17165_v25, 16 }
 0x90f   : > { %12425 = vmatprep.subr.bf16.mxu1 %v17298_v14 }
 0x910   : > { %8231 = vmatmul.mubr.bf16.gmra.mxu0 %v17123_v50  ;;  %v7725_v51 = vor.u32 %v7724_v21, %v7720_v57  ;;  %v7748_v21 = vrot.slane %v7746_v28, 1  ;;  %v7744_v57 = vshrl.u32 %v17206_v30, 16 }
 0x911   : > { %8238 = vmatprep.mubr.bf16.mxu0 %v17311_v55 }
 0x912   : > { %12433 = vmatpush3.bf16.msra.mxu1 %v17298_v14  ;;  %v17335_v22 = vsel %vm1230_vm9, %v7725_v51, %v7729_v20  ;;  %v17369_v51 = vld [vmem:[%s17974_s7 + $0x200] sm:$0xff]   ;;  %v7758_v20 = vshll.u32 %v17232_v58, 16 }
 0x913   : > { %12426 = vmatprep.subr.bf16.mxu1 %v17307_v16 }
 0x915   : > { %8641 = vmatmul.mubr.bf16.gmra.mxu1 %v16972_v60  ;;  %v7736_v60 = vrot.slane %v7734_v31, 1  ;;  %v7749_v31 = vor.u32 %v7748_v21, %v7744_v57 }
 0x916   : > { %8648 = vmatprep.mubr.bf16.mxu1 %v17050_v24  ;;  %12434 = vmatpush3.bf16.msra.mxu1 %v17307_v16 }
 0x917   : > { %12427 = vmatprep.subr.bf16.mxu1 %v17321_v46  ;;  %v7737_v61 = vor.u32 %v7736_v60, %v7732_v29  ;;  %v7753_v60 = vrot.slane %v7751_v45, 1  ;;  %v7760_v29 = vrot.slane %v7758_v20, 1 }
 0x918   : > { %8239 = vmatmul.mubr.bf16.gmra.mxu0 %v17163_v19 }
 0x919   : > { %8246 = vmatprep.mubr.bf16.mxu0 %v17335_v22  ;;  %v17359_v34 = vsel %vm1230_vm9, %v7737_v61, %v7741_v44  ;;  %v17378_v15 = vsel %vm1230_vm9, %v7749_v31, %v7753_v60  ;;  %v7763_v61 = vshll.u32 %v17234_v2, 16  ;;  %v7761_v28 = vor.u32 %v7760_v29, %v7756_v56 }
 0x91a   : > { %12435 = vmatpush3.bf16.msra.mxu1 %v17321_v46  ;;  %v7770_v44 = vshll.u32 %v17236_v4, 16  ;;  %v7768_v31 = vshrl.u32 %v17236_v4, 16  ;;  %v7775_v2 = vshll.u32 %v17242_v63, 16  ;;  %v7782_v60 = vshll.u32 %v17263_v8, 16 }
 0x91b   : > { %12428 = vmatprep.subr.bf16.mxu1 %v17331_v32  ;;  %v7765_v21 = vrot.slane %v7763_v61, 1  ;;  %v7787_v63 = vshll.u32 %v17265_v59, 16  ;;  %v12751_v59 = vld [vmem:[%s17974_s7 + $0x1b8] sm:$0xff]  }
 0x91c   : > { %v7772_v45 = vrot.slane %v7770_v44, 1  ;;  %v7777_v29 = vrot.slane %v7775_v2, 1  ;;  %v7784_v61 = vrot.slane %v7782_v60, 1  ;;  %v12754_v2 = vld [vmem:[%s17974_s7 + $0x1e8] sm:$0xff]   ;;  %v12757_v60 = vld [vmem:[%s17974_s7 + $0x1a0] sm:$0xff]  }
 0x91d   : > { %8649 = vmatmul.mubr.bf16.gmra.mxu1 %v16988_v37  ;;  %v17389_v57 = vsel %vm1230_vm9, %v7761_v28, %v7765_v21  ;;  %v7780_v28 = vshrl.u32 %v17263_v8, 16  ;;  %v7789_v21 = vrot.slane %v7787_v63, 1  ;;  %v12765_v63 = vld [vmem:[%s17974_s7 + $0x190] sm:$0xff]  }
 0x91e   : > { %8656 = vmatprep.mubr.bf16.mxu1 %v17096_v6  ;;  %12436 = vmatpush3.bf16.msra.mxu1 %v17331_v32  ;;  %v7773_v20 = vor.u32 %v7772_v45, %v7768_v31  ;;  %v12752_v31 = vld [vmem:[%s17974_s7 + $0x1f0] sm:$0xff]  }
 0x91f   : > { %12429 = vmatprep.subr.bf16.mxu1 %v17345_v49  ;;  %v7785_v44 = vor.u32 %v7784_v61, %v7780_v28  ;;  %v12761_v61 = vld [vmem:[%s17974_s7 + $0x198] sm:$0xff]   ;;  %v12763_v28 = vld [vmem:[%s17974_s7 + $0x1d0] sm:$0xff]  }
 0x920   : > { %8247 = vmatmul.mubr.bf16.gmra.mxu0 %v17165_v25  ;;  %v17399_v56 = vsel %vm1230_vm9, %v7773_v20, %v7777_v29  ;;  %v12756_v20 = vld [vmem:[%s17974_s7 + $0x1e0] sm:$0xff]   ;;  %v12759_v29 = vld [vmem:[%s17974_s7 + $0x1d8] sm:$0xff]  }
 0x921   : > { %8254 = vmatprep.mubr.bf16.mxu0 %v17359_v34  ;;  %v17408_v45 = vsel %vm1230_vm9, %v7785_v44, %v7789_v21  ;;  %v12767_v44 = vld [vmem:[%s17974_s7 + $0x1c8] sm:$0xff]  }
 0x922   : > { %12437 = vmatpush3.bf16.msra.mxu1 %v17345_v49  ;;  %v12769_v21 = vld [vmem:[%s17974_s7 + $0x188] sm:$0xff]  }
 0x923   : > { %12430 = vmatprep.subr.bf16.mxu1 %v17355_v39 }
 0x925   : > { %8657 = vmatmul.mubr.bf16.gmra.mxu1 %v16998_v10 }
 0x926   : > { %8664 = vmatprep.mubr.bf16.mxu1 %v17142_v27  ;;  %12438 = vmatpush3.bf16.msra.mxu1 %v17355_v39 }
 0x927   : > { %12431 = vmatprep.subr.bf16.mxu1 %v17369_v51 }
 0x928   : > { %8255 = vmatmul.mubr.bf16.gmra.mxu0 %v17198_v54 }
 0x929   : > { %8262 = vmatprep.mubr.bf16.mxu0 %v17378_v15 }
 0x92a   : > { %12439 = vmatpush3.bf16.msra.mxu1 %v17369_v51 }
 0x92d   : > { %8665 = vmatmul.mubr.bf16.gmra.mxu1 %v17018_v23 }
 0x92e   : > { %8672 = vmatprep.mubr.bf16.mxu1 %v17185_v0 }
 0x930   : > { %8263 = vmatmul.mubr.bf16.gmra.mxu0 %v17206_v30 }
 0x931   : > { %8270 = vmatprep.mubr.bf16.mxu0 %v17389_v57 }
 0x935   : > { %8673 = vmatmul.mubr.bf16.gmra.mxu1 %v17030_v11 }
 0x936   : > { %8680 = vmatprep.mubr.bf16.mxu1 %v17222_v7 }
 0x938   : > { %8271 = vmatmul.mubr.bf16.gmra.mxu0 %v17232_v58 }
 0x939   : > { %8278 = vmatprep.mubr.bf16.mxu0 %v17399_v56 }
 0x93d   : > { %8681 = vmatmul.mubr.bf16.gmra.mxu1 %v17071_v41 }
 0x93e   : > { %8688 = vmatprep.mubr.bf16.mxu1 %v17251_v52 }
 0x940   : > { %8279 = vmatmul.mubr.bf16.gmra.mxu0 %v17236_v4 }
 0x941   : > { %8286 = vmatprep.mubr.bf16.mxu0 %v17408_v45 }
 0x945   : > { %8689 = vmatmul.mubr.bf16.gmra.mxu1 %v17077_v35 }
 0x946   : > { %8696 = vmatprep.mubr.bf16.mxu1 %v17277_v18 }
 0x948   : > { %8287 = vmatmul.mubr.bf16.gmra.mxu0 %v17263_v8 }
 0x949   : > { %12328 = vmatprep.mubr.bf16.mxu0 %v17255_v42  ;;  %v12753_v42 = vld [vmem:[%s17974_s7 + $0x1b0] sm:$0xff]  }
 0x94d   : > { %8697 = vmatmul.mubr.bf16.gmra.mxu1 %v17117_v12 }
 0x94e   : > { %8704 = vmatprep.mubr.bf16.mxu1 %v17290_v1 }
 0x950   : > { %12329 = vmatmul.mubr.bf16.vlgmr.msra.gmra.mxu0 %v17009_v48  ;;  %v12755_v48 = vld [vmem:[%s17974_s7 + $0x1a8] sm:$0xff]  }
 0x951   : > { %12332 = vmatprep.mubr.bf16.mxu0 %v17016_v17  ;;  %11673 = vmatpush3.bf16.msra.mxu0 %v12751_v59  ;;  %v12771_v59 = vld [vmem:[%s17974_s7 + $0x1c0] sm:$0xff]  }
 0x952   : > { %11674 = vmatprep.subr.bf16.mxu0 %v12752_v31  ;;  %v12773_v31 = vld [vmem:[%s17974_s7 + $0x180] sm:$0xff]  }
 0x955   : > { %8705 = vmatmul.mubr.bf16.gmra.mxu1 %v17123_v50  ;;  %11675 = vmatpush3.bf16.msra.mxu0 %v12753_v42  ;;  %v18285_v42 = vld [vmem:[#allocation29_spill] sm:$0xff] }
 0x956   : > { %8712 = vmatprep.mubr.bf16.mxu1 %v17311_v55  ;;  %11676 = vmatprep.subr.bf16.mxu0 %v12754_v2  ;;  %v18286_v2 = vld [vmem:[#allocation48_spill] sm:$0xff] }
 0x958   : > { %12333 = vmatmul.mubr.bf16.gmra.mxu0 %v17028_v3 }
 0x959   : > { %12336 = vmatprep.mubr.bf16.mxu0 %v17069_v36  ;;  %11677 = vmatpush3.bf16.msra.mxu0 %v12755_v48 }
 0x95a   : > { %11678 = vmatprep.subr.bf16.mxu0 %v12756_v20 }
 0x95d   : > { %8713 = vmatmul.mubr.bf16.gmra.mxu1 %v17163_v19  ;;  %11679 = vmatpush3.bf16.msra.mxu0 %v12757_v60 }
 0x95e   : > { %8720 = vmatprep.mubr.bf16.mxu1 %v17335_v22  ;;  %11680 = vmatprep.subr.bf16.mxu0 %v12759_v29 }
 0x960   : > { %12337 = vmatmul.mubr.bf16.gmra.mxu0 %v17075_v9 }
 0x961   : > { %12340 = vmatprep.mubr.bf16.mxu0 %v17115_v62  ;;  %11681 = vmatpush3.bf16.msra.mxu0 %v12761_v61 }
 0x962   : > { %11682 = vmatprep.subr.bf16.mxu0 %v12763_v28 }
 0x965   : > { %8721 = vmatmul.mubr.bf16.gmra.mxu1 %v17165_v25  ;;  %11683 = vmatpush3.bf16.msra.mxu0 %v12765_v63 }
 0x966   : > { %8728 = vmatprep.mubr.bf16.mxu1 %v17359_v34  ;;  %11684 = vmatprep.subr.bf16.mxu0 %v12767_v44 }
 0x968   : > { %12341 = vmatmul.mubr.bf16.gmra.mxu0 %v17121_v40 }
 0x969   : > { %12344 = vmatprep.mubr.bf16.mxu0 %v17161_v33  ;;  %11685 = vmatpush3.bf16.msra.mxu0 %v12769_v21 }
 0x96a   : > { %11686 = vmatprep.subr.bf16.mxu0 %v12771_v59 }
 0x96d   : > { %8729 = vmatmul.mubr.bf16.gmra.mxu1 %v17198_v54  ;;  %11687 = vmatpush3.bf16.msra.mxu0 %v12773_v31 }
 0x96e   : > { %8736 = vmatprep.mubr.bf16.mxu1 %v17378_v15  ;;  %12360 = vmatprep.subr.bf16.mxu0 %v17214_v26 }
 0x970   : > { %12345 = vmatmul.mubr.bf16.gmra.mxu0 %v17172_v47 }
 0x971   : > { %12348 = vmatprep.mubr.bf16.mxu0 %v17196_v13 }
 0x975   : > { %8737 = vmatmul.mubr.bf16.gmra.mxu1 %v17206_v30 }
 0x976   : > { %8744 = vmatprep.mubr.bf16.mxu1 %v17389_v57 }
 0x978   : > { %12349 = vmatmul.mubr.bf16.gmra.mxu0 %v17204_v53 }
 0x979   : > { %12352 = vmatprep.mubr.bf16.mxu0 %v17230_v38 }
 0x97d   : > { %8745 = vmatmul.mubr.bf16.gmra.mxu1 %v17232_v58 }
 0x97e   : > { %8752 = vmatprep.mubr.bf16.mxu1 %v17399_v56 }
 0x980   : > { %12353 = vmatmul.mubr.bf16.gmra.mxu0 %v18285_v42 }
 0x981   : > { %12356 = vmatprep.mubr.bf16.mxu0 %v18286_v2 }
 0x985   : > { %8753 = vmatmul.mubr.bf16.gmra.mxu1 %v17236_v4 }
 0x986   : > { %12380 = vmatprep.mubr.bf16.mxu1 %v17069_v36 }
 0x988   : > { %12357 = vmatmul.mubr.bf16.gmra.mxu0 %v17269_v5 }
 0x989   : > { %9147 = vmatprep.mubr.bf16.mxu0 %v17050_v24 }
 0x98d   : > { %v12282_v48 = vpop.f32.mrf.mxu1  ;;  %12381 = vmatmul.mubr.bf16.vlgmr.msra.gmra.mxu1 %v17075_v9 }
 0x98e   : > { %12384 = vmatprep.mubr.bf16.mxu1 %v17115_v62 }
 0x98f   : > { %v8329_v20 = vpop.f32.mrf.mxu1 }
 0x990   : > { %v11416_v60 = vpop.f32.mrf.mxu0  ;;  %9148 = vmatmul.mubr.bf16.vlgmr.msra.gmra.mxu0 %v16988_v37 }
 0x991   : > { %v12283_v29 = vpop.f32.mrf.mxu1  ;;  %9155 = vmatprep.mubr.bf16.mxu0 %v17096_v6  ;;  %12361 = vmatpush3.bf16.msra.mxu0 %v17214_v26 }
 0x992   : > { %v11417_v61 = vpop.f32.mrf.mxu0  ;;  %12362 = vmatprep.subr.bf16.mxu0 %v17298_v14 }
 0x993   : > { %v8332_v36 = vpop.f32.mrf.mxu1  ;;  %v11418_v28 = vadd.f32 %v11417_v61, %v11416_v60 }
 0x994   : > { %v11419_v24 = vpop.f32.mrf.mxu0 }
 0x995   : > { %v12286_v63 = vpop.f32.mrf.mxu1  ;;  %12385 = vmatmul.mubr.bf16.gmra.mxu1 %v17121_v40  ;;  %v17500_v9 = vadd.f32 %v11418_v28, %v8329_v20  ;;  %12363 = vmatpush3.bf16.msra.mxu0 %v17298_v14 }
 0x996   : > { %12388 = vmatprep.mubr.bf16.mxu1 %v17161_v33  ;;  %v11420_v37 = vpop.f32.mrf.mxu0  ;;  %12364 = vmatprep.subr.bf16.mxu0 %v17307_v16 }
 0x997   : > { %v8345_v62 = vpop.f32.mrf.mxu1  ;;  %v11421_v6 = vadd.f32 %v11420_v37, %v11419_v24 }
 0x998   : > { %v11422_v26 = vpop.f32.mrf.mxu0  ;;  %9156 = vmatmul.mubr.bf16.gmra.mxu0 %v16998_v10 }
 0x999   : > { %v12287_v44 = vpop.f32.mrf.mxu1  ;;  %v17506_v21 = vadd.f32 %v11421_v6, %v8332_v36  ;;  %9163 = vmatprep.mubr.bf16.mxu0 %v17142_v27  ;;  %12365 = vmatpush3.bf16.msra.mxu0 %v17307_v16 }
 0x99a   : > { %v11423_v40 = vpop.f32.mrf.mxu0  ;;  %12366 = vmatprep.subr.bf16.mxu0 %v17321_v46 }
 0x99b   : > { %v8348_v59 = vpop.f32.mrf.mxu1  ;;  %v11424_v33 = vadd.f32 %v11423_v40, %v11422_v26 }
 0x99c   : > { %v11425_v14 = vpop.f32.mrf.mxu0 }
 0x99d   : > { %v17511_v31 = vpop.f32.mrf.mxu1  ;;  %12389 = vmatmul.mubr.bf16.gmra.mxu1 %v17172_v47  ;;  %v17514_v20 = vadd.f32 %v12282_v48, %v11424_v33  ;;  %12367 = vmatpush3.bf16.msra.mxu0 %v17321_v46 }
 0x99e   : > { %12392 = vmatprep.mubr.bf16.mxu1 %v17196_v13  ;;  %v11426_v10 = vpop.f32.mrf.mxu0  ;;  %12368 = vmatprep.subr.bf16.mxu0 %v17331_v32 }
 0x99f   : > { %v8361_v27 = vpop.f32.mrf.mxu1  ;;  %v11427_v16 = vadd.f32 %v11426_v10, %v11425_v14 }
 0x9a0   : > { %v11428_v60 = vpop.f32.mrf.mxu0  ;;  %9164 = vmatmul.mubr.bf16.gmra.mxu0 %v17018_v23 }
 0x9a1   : > { %v17519_v61 = vpop.f32.mrf.mxu1  ;;  %v17522_v36 = vadd.f32 %v12283_v29, %v11427_v16  ;;  %9171 = vmatprep.mubr.bf16.mxu0 %v17185_v0  ;;  %12369 = vmatpush3.bf16.msra.mxu0 %v17331_v32 }
 0x9a2   : > { %v11429_v47 = vpop.f32.mrf.mxu0  ;;  %12370 = vmatprep.subr.bf16.mxu0 %v17345_v49 }
 0x9a3   : > { %v8364_v13 = vpop.f32.mrf.mxu1  ;;  %v11430_v46 = vadd.f32 %v11429_v47, %v11428_v60 }
 0x9a4   : > { %v11431_v48 = vpop.f32.mrf.mxu0 }
 0x9a5   : > { %v17527_v28 = vpop.f32.mrf.mxu1  ;;  %12393 = vmatmul.mubr.bf16.gmra.mxu1 %v17204_v53  ;;  %v17530_v24 = vadd.f32 %v11430_v46, %v8345_v62  ;;  %12371 = vmatpush3.bf16.msra.mxu0 %v17345_v49 }
 0x9a6   : > { %12396 = vmatprep.mubr.bf16.mxu1 %v17230_v38  ;;  %v11432_v23 = vpop.f32.mrf.mxu0  ;;  %12372 = vmatprep.subr.bf16.mxu0 %v17355_v39 }
 0x9a7   : > { %v17534_v0 = vpop.f32.mrf.mxu1  ;;  %v11433_v32 = vadd.f32 %v11432_v23, %v11431_v48 }
 0x9a8   : > { %v11434_v29 = vpop.f32.mrf.mxu0  ;;  %9172 = vmatmul.mubr.bf16.gmra.mxu0 %v17030_v11 }
 0x9a9   : > { %v17537_v37 = vpop.f32.mrf.mxu1  ;;  %v17540_v6 = vadd.f32 %v11433_v32, %v8348_v59  ;;  %9179 = vmatprep.mubr.bf16.mxu0 %v17222_v7  ;;  %12373 = vmatpush3.bf16.msra.mxu0 %v17355_v39 }
 0x9aa   : > { %v11435_v53 = vpop.f32.mrf.mxu0  ;;  %12374 = vmatprep.subr.bf16.mxu0 %v17369_v51 }
 0x9ab   : > { %v17544_v38 = vpop.f32.mrf.mxu1  ;;  %v11436_v49 = vadd.f32 %v11435_v53, %v11434_v29 }
 0x9ac   : > { %v11437_v62 = vpop.f32.mrf.mxu0 }
 0x9ad   : > { %v17547_v26 = vpop.f32.mrf.mxu1  ;;  %12397 = vmatmul.mubr.bf16.gmra.mxu1 %v18285_v42  ;;  %v17550_v40 = vadd.f32 %v12286_v63, %v11436_v49  ;;  %12375 = vmatpush3.bf16.msra.mxu0 %v17369_v51  ;;  %v17562_v42 = vld [vmem:[#allocation2 + $0xcc] sm:$0xff]   ;;  %v17564_v63 = vld [vmem:[#allocation2 + $0xd4] ss:$0 sps:$4 sm:$0x11]  }
 0x9ae   : > { %12400 = vmatprep.mubr.bf16.mxu1 %v18286_v2  ;;  %v11438_v11 = vpop.f32.mrf.mxu0 }
 0x9af   : > { %v17554_v7 = vpop.f32.mrf.mxu1  ;;  %v11439_v39 = vadd.f32 %v11438_v11, %v11437_v62 }
 0x9b0   : > { %v11440_v59 = vpop.f32.mrf.mxu0  ;;  %9180 = vmatmul.mubr.bf16.gmra.mxu0 %v17071_v41  ;;  %v7872_v41 = vrot.slane %v17562_v42, 1 }
 0x9b1   : > { %v17556_v33 = vpop.f32.mrf.mxu1  ;;  %v17559_v14 = vadd.f32 %v12287_v44, %v11439_v39  ;;  %9187 = vmatprep.mubr.bf16.mxu0 %v17251_v52  ;;  %v7873_v52 = vrot.slane %v17564_v63, 1 }
 0x9b2   : > { %v11441_v2 = vpop.f32.mrf.mxu0 }
 0x9b3   : > { %v17566_v10 = vpop.f32.mrf.mxu1  ;;  %v11442_v51 = vadd.f32 %v11441_v2, %v11440_v59 }
 0x9b4   : > { %v11443_v16 = vpop.f32.mrf.mxu0 }
 0x9b5   : > { %v17568_v60 = vpop.f32.mrf.mxu1  ;;  %12401 = vmatmul.mubr.bf16.gmra.mxu1 %v17269_v5  ;;  %v17571_v47 = vadd.f32 %v11442_v51, %v8361_v27  ;;  %v7874_v5 = vsel %vm1465_vm10, %v7872_v41, %v7873_v52 }
 0x9b6   : > { %12404 = vmatprep.mubr.bf16.mxu1 %v17284_v43  ;;  %v11444_v44 = vpop.f32.mrf.mxu0 }
 0x9b7   : > { %v17576_v46 = vpop.f32.mrf.mxu1  ;;  %v11445_v48 = vadd.f32 %v11444_v44, %v11443_v16 }
 0x9b8   : > { %v11446_v23 = vpop.f32.mrf.mxu0  ;;  %9188 = vmatmul.mubr.bf16.gmra.mxu0 %v17077_v35 }
 0x9b9   : > { %v17578_v32 = vpop.f32.mrf.mxu1  ;;  %v17581_v29 = vadd.f32 %v11445_v48, %v8364_v13  ;;  %9195 = vmatprep.mubr.bf16.mxu0 %v17277_v18 }
 0x9ba   : > { %v11447_v43 = vpop.f32.mrf.mxu0 }
 0x9bb   : > { %v17585_v27 = vpop.f32.mrf.mxu1  ;;  %v11448_v53 = vadd.f32 %v11447_v43, %v11446_v23 }
 0x9bc   : > { %v11449_v49 = vpop.f32.mrf.mxu0 }
 0x9bd   : > { %v17587_v62 = vpop.f32.mrf.mxu1  ;;  %12405 = vmatmul.mubr.bf16.gmra.mxu1 %v7874_v5  ;;  %v17590_v11 = vadd.f32 %v17511_v31, %v11448_v53 }
 0x9be   : > { %v11450_v39 = vpop.f32.mrf.mxu0 }
 0x9bf   : > { %v17592_v59 = vpop.f32.mrf.mxu1  ;;  %v11451_v35 = vadd.f32 %v11450_v39, %v11449_v49 }
 0x9c0   : > { %v11452_v13 = vpop.f32.mrf.mxu0  ;;  %9196 = vmatmul.mubr.bf16.gmra.mxu0 %v17117_v12 }
 0x9c1   : > { %v17594_v2 = vpop.f32.mrf.mxu1  ;;  %v17598_v18 = vadd.f32 %v17519_v61, %v11451_v35  ;;  %9203 = vmatprep.mubr.bf16.mxu0 %v17290_v1 }
 0x9c2   : > { %v11453_v51 = vpop.f32.mrf.mxu0 }
 0x9c3   : > { %v17601_v16 = vpop.f32.mrf.mxu1  ;;  %v11454_v41 = vadd.f32 %v11453_v51, %v11452_v13 }
 0x9c4   : > { %v11455_v31 = vpop.f32.mrf.mxu0 }
 0x9c5   : > { %v17603_v52 = vpop.f32.mrf.mxu1  ;;  %v17606_v44 = vadd.f32 %v11454_v41, %v17534_v0 }
 0x9c6   : > { %v11456_v48 = vpop.f32.mrf.mxu0 }
 0x9c7   : > { %v17608_v23 = vpop.f32.mrf.mxu1  ;;  %v11457_v5 = vadd.f32 %v11456_v48, %v11455_v31 }
 0x9c8   : > { %v11458_v12 = vpop.f32.mrf.mxu0  ;;  %9204 = vmatmul.mubr.bf16.gmra.mxu0 %v17123_v50 }
 0x9c9   : > { %v17610_v43 = vpop.f32.mrf.mxu1  ;;  %v17614_v1 = vadd.f32 %v11457_v5, %v17544_v38  ;;  %9211 = vmatprep.mubr.bf16.mxu0 %v17311_v55 }
 0x9ca   : > { %18287 = vst [vmem:[#allocation59_spill] sm:$0xff] %v17610_v43  ;;  %v11459_v61 = vpop.f32.mrf.mxu0 }
 0x9cb   : > { %v17617_v53 = vpop.f32.mrf.mxu1  ;;  %v11460_v49 = vadd.f32 %v11459_v61, %v11458_v12 }
 0x9cc   : > { %v11461_v0 = vpop.f32.mrf.mxu0 }
 0x9cd   : > { %v11552_v39 = vpop.f32.mrf.mxu1  ;;  %v17620_v35 = vadd.f32 %v17527_v28, %v11460_v49 }
 0x9ce   : > { %v11462_v13 = vpop.f32.mrf.mxu0 }
 0x9cf   : > { %v11553_v51 = vpop.f32.mrf.mxu1  ;;  %v11463_v41 = vadd.f32 %v11462_v13, %v11461_v0 }
 0x9d0   : > { %v11554_v31 = vadd.f32 %v11553_v51, %v11552_v39  ;;  %v11464_v48 = vpop.f32.mrf.mxu0  ;;  %9212 = vmatmul.mubr.bf16.gmra.mxu0 %v17163_v19 }
 0x9d1   : > { %v11555_v50 = vpop.f32.mrf.mxu1  ;;  %v17624_v38 = vadd.f32 %v17537_v37, %v11463_v41  ;;  %9219 = vmatprep.mubr.bf16.mxu0 %v17335_v22 }
 0x9d2   : > { %v17628_v55 = vadd.f32 %v11554_v31, %v17500_v9  ;;  %v11465_v5 = vpop.f32.mrf.mxu0 }
 0x9d3   : > { %v11556_v12 = vpop.f32.mrf.mxu1  ;;  %v11466_v28 = vadd.f32 %v11465_v5, %v11464_v48 }
 0x9d4   : > { %v11557_v61 = vadd.f32 %v11556_v12, %v11555_v50  ;;  %v11467_v49 = vpop.f32.mrf.mxu0 }
 0x9d5   : > { %v11558_v43 = vpop.f32.mrf.mxu1  ;;  %v17631_v0 = vadd.f32 %v11466_v28, %v17554_v7 }
 0x9d6   : > { %v17634_v39 = vadd.f32 %v11557_v61, %v17506_v21  ;;  %v11468_v19 = vpop.f32.mrf.mxu0 }
 0x9d7   : > { %v11559_v37 = vpop.f32.mrf.mxu1  ;;  %v11469_v13 = vadd.f32 %v11468_v19, %v11467_v49 }
 0x9d8   : > { %v11560_v51 = vadd.f32 %v11559_v37, %v11558_v43  ;;  %v11470_v22 = vpop.f32.mrf.mxu0  ;;  %9220 = vmatmul.mubr.bf16.gmra.mxu0 %v17165_v25 }
 0x9d9   : > { %v11561_v41 = vpop.f32.mrf.mxu1  ;;  %v17638_v9 = vadd.f32 %v11469_v13, %v17566_v10  ;;  %9227 = vmatprep.mubr.bf16.mxu0 %v17359_v34 }
 0x9da   : > { %v17642_v31 = vadd.f32 %v11560_v51, %v17514_v20  ;;  %v11471_v7 = vpop.f32.mrf.mxu0 }
 0x9db   : > { %v11562_v48 = vpop.f32.mrf.mxu1  ;;  %v11472_v21 = vadd.f32 %v11471_v7, %v11470_v22 }
 0x9dc   : > { %v11563_v50 = vadd.f32 %v11562_v48, %v11561_v41  ;;  %v11473_v5 = vpop.f32.mrf.mxu0 }
 0x9dd   : > { %v11564_v12 = vpop.f32.mrf.mxu1  ;;  %v17645_v43 = vadd.f32 %v17547_v26, %v11472_v21 }
 0x9de   : > { %v17648_v28 = vadd.f32 %v11563_v50, %v17522_v36  ;;  %v11474_v25 = vpop.f32.mrf.mxu0 }
 0x9df   : > { %v11565_v10 = vpop.f32.mrf.mxu1  ;;  %v11475_v61 = vadd.f32 %v11474_v25, %v11473_v5 }
 0x9e0   : > { %v11566_v49 = vadd.f32 %v11565_v10, %v11564_v12  ;;  %v11476_v34 = vpop.f32.mrf.mxu0  ;;  %9228 = vmatmul.mubr.bf16.gmra.mxu0 %v17198_v54 }
 0x9e1   : > { %v11567_v19 = vpop.f32.mrf.mxu1  ;;  %v17652_v20 = vadd.f32 %v17556_v33, %v11475_v61  ;;  %9235 = vmatprep.mubr.bf16.mxu0 %v17378_v15 }
 0x9e2   : > { %v17656_v37 = vadd.f32 %v11566_v49, %v17530_v24  ;;  %v11477_v26 = vpop.f32.mrf.mxu0 }
 0x9e3   : > { %v11568_v13 = vpop.f32.mrf.mxu1  ;;  %v11478_v36 = vadd.f32 %v11477_v26, %v11476_v34 }
 0x9e4   : > { %v11569_v51 = vadd.f32 %v11568_v13, %v11567_v19  ;;  %v11479_v22 = vpop.f32.mrf.mxu0 }
 0x9e5   : > { %v11570_v41 = vpop.f32.mrf.mxu1  ;;  %v17659_v7 = vadd.f32 %v11478_v36, %v17576_v46 }
 0x9e6   : > { %v17662_v48 = vadd.f32 %v11569_v51, %v17540_v6  ;;  %v11480_v54 = vpop.f32.mrf.mxu0 }
 0x9e7   : > { %v11571_v33 = vpop.f32.mrf.mxu1  ;;  %v11481_v21 = vadd.f32 %v11480_v54, %v11479_v22 }
 0x9e8   : > { %v11572_v50 = vadd.f32 %v11571_v33, %v11570_v41  ;;  %v11482_v15 = vpop.f32.mrf.mxu0  ;;  %9236 = vmatmul.mubr.bf16.gmra.mxu0 %v17206_v30 }
 0x9e9   : > { %v11573_v5 = vpop.f32.mrf.mxu1  ;;  %v17666_v24 = vadd.f32 %v11481_v21, %v17585_v27  ;;  %9243 = vmatprep.mubr.bf16.mxu0 %v17389_v57 }
 0x9ea   : > { %v17670_v12 = vadd.f32 %v11572_v50, %v17550_v40  ;;  %v11483_v46 = vpop.f32.mrf.mxu0 }
 0x9eb   : > { %v11574_v25 = vpop.f32.mrf.mxu1  ;;  %v11484_v6 = vadd.f32 %v11483_v46, %v11482_v15 }
 0x9ec   : > { %v11575_v10 = vadd.f32 %v11574_v25, %v11573_v5  ;;  %v11485_v61 = vpop.f32.mrf.mxu0  ;;  %v7799_v5 = vshll.u32 %v17564_v63, 16 }
 0x9ed   : > { %v11576_v49 = vpop.f32.mrf.mxu1  ;;  %v17673_v34 = vadd.f32 %v17568_v60, %v11484_v6 }
 0x9ee   : > { %v17676_v19 = vadd.f32 %v11575_v10, %v17559_v14  ;;  %v11486_v30 = vpop.f32.mrf.mxu0  ;;  %v7794_v14 = vshll.u32 %v17562_v42, 16 }
 0x9ef   : > { %v11577_v27 = vpop.f32.mrf.mxu1  ;;  %v11487_v26 = vadd.f32 %v11486_v30, %v11485_v61 }
 0x9f0   : > { %v11578_v13 = vadd.f32 %v11577_v27, %v11576_v49  ;;  %v11488_v57 = vpop.f32.mrf.mxu0  ;;  %9244 = vmatmul.mubr.bf16.gmra.mxu0 %v17232_v58  ;;  %v7801_v27 = vrot.slane %v7799_v5, 1 }
 0x9f1   : > { %v11579_v36 = vpop.f32.mrf.mxu1  ;;  %v17680_v40 = vadd.f32 %v17578_v32, %v11487_v26  ;;  %9251 = vmatprep.mubr.bf16.mxu0 %v17399_v56  ;;  %v7792_v56 = vshrl.u32 %v17562_v42, 16 }
 0x9f2   : > { %v17684_v51 = vadd.f32 %v11578_v13, %v17571_v47  ;;  %v11489_v60 = vpop.f32.mrf.mxu0  ;;  %v7796_v47 = vrot.slane %v7794_v14, 1 }
 0x9f3   : > { %v11580_v22 = vpop.f32.mrf.mxu1  ;;  %v11490_v41 = vadd.f32 %v11489_v60, %v11488_v57 }
 0x9f4   : > { %v11581_v54 = vadd.f32 %v11580_v22, %v11579_v36  ;;  %v11491_v33 = vpop.f32.mrf.mxu0  ;;  %v7797_v30 = vor.u32 %v7796_v47, %v7792_v56 }
 0x9f5   : > { %v11582_v21 = vpop.f32.mrf.mxu1  ;;  %v17688_v50 = vadd.f32 %v11490_v41, %v17592_v59 }
 0x9f6   : > { %v17691_v58 = vadd.f32 %v11581_v54, %v17581_v29  ;;  %v11492_v32 = vpop.f32.mrf.mxu0 }
 0x9f7   : > { %v11583_v15 = vpop.f32.mrf.mxu1  ;;  %v11493_v46 = vadd.f32 %v11492_v32, %v11491_v33 }
 0x9f8   : > { %v11584_v25 = vadd.f32 %v11583_v15, %v11582_v21  ;;  %v11494_v6 = vpop.f32.mrf.mxu0  ;;  %9252 = vmatmul.mubr.bf16.gmra.mxu0 %v17236_v4 }
 0x9f9   : > { %v11585_v10 = vpop.f32.mrf.mxu1  ;;  %v17697_v61 = vadd.f32 %v11493_v46, %v17601_v16  ;;  %9259 = vmatprep.mubr.bf16.mxu0 %v17408_v45  ;;  %v7802_v45 = vsel %vm1230_vm9, %v7797_v30, %v7801_v27 }
 0x9fa   : > { %v17701_v29 = vadd.f32 %v11584_v25, %v17590_v11  ;;  %v11495_v59 = vpop.f32.mrf.mxu0 }
 0x9fb   : > { %v11586_v49 = vpop.f32.mrf.mxu1  ;;  %v11496_v26 = vadd.f32 %v11495_v59, %v11494_v6 }
 0x9fc   : > { %v11587_v63 = vadd.f32 %v11586_v49, %v11585_v10  ;;  %v11497_v13 = vpop.f32.mrf.mxu0 }
 0x9fd   : > { %v11588_v57 = vpop.f32.mrf.mxu1  ;;  %v17704_v36 = vadd.f32 %v17587_v62, %v11496_v26 }
 0x9fe   : > { %v17707_v4 = vadd.f32 %v11587_v63, %v17598_v18  ;;  %v11498_v16 = vpop.f32.mrf.mxu0 }
 0x9ff   : > { %v11589_v60 = vpop.f32.mrf.mxu1  ;;  %v11499_v11 = vadd.f32 %v11498_v16, %v11497_v13 }
 0xa00   : > { %v11590_v22 = vadd.f32 %v11589_v60, %v11588_v57  ;;  %v11500_v14 = vpop.f32.mrf.mxu0  ;;  %9260 = vmatmul.mubr.bf16.gmra.mxu0 %v17263_v8 }
 0xa01   : > { %v11591_v41 = vpop.f32.mrf.mxu1  ;;  %v17712_v54 = vadd.f32 %v17594_v2, %v11499_v11  ;;  %9267 = vmatprep.mubr.bf16.mxu0 %v7802_v45 }
 0xa02   : > { %v17715_v62 = vadd.f32 %v11590_v22, %v17606_v44  ;;  %v11501_v33 = vpop.f32.mrf.mxu0 }
 0xa03   : > { %v11592_v18 = vpop.f32.mrf.mxu1  ;;  %v11502_v21 = vadd.f32 %v11501_v33, %v11500_v14 }
 0xa04   : > { %v11593_v32 = vadd.f32 %v11592_v18, %v11591_v41  ;;  %v11503_v15 = vpop.f32.mrf.mxu0 }
 0xa05   : > { %v11594_v56 = vpop.f32.mrf.mxu1  ;;  %v17718_v47 = vadd.f32 %v11502_v21, %v17608_v23 }
 0xa06   : > { %v17721_v5 = vadd.f32 %v11593_v32, %v17614_v1  ;;  %v11504_v8 = vpop.f32.mrf.mxu0 }
 0xa07   : > { %v11595_v46 = vpop.f32.mrf.mxu1  ;;  %v11505_v2 = vadd.f32 %v11504_v8, %v11503_v15 }
 0xa08   : > { %v11596_v25 = vadd.f32 %v11595_v46, %v11594_v56  ;;  %v11506_v6 = vpop.f32.mrf.mxu0  ;;  %9268 = vmatmul.mubr.bf16.gmra.mxu0 %v17562_v42 }
 0xa09   : > { %v11597_v10 = vpop.f32.mrf.mxu1  ;;  %v17725_v44 = vadd.f32 %v11505_v2, %v17617_v53  ;;  %12376 = vmatprep.mubr.bf16.mxu0 %v17016_v17 }
 0xa0a   : > { %v17729_v59 = vadd.f32 %v11596_v25, %v17620_v35  ;;  %v11507_v23 = vpop.f32.mrf.mxu0 }
 0xa0b   : > { %v11598_v49 = vpop.f32.mrf.mxu1  ;;  %v17731_v1 = vadd.f32 %v11507_v23, %v11506_v6 }
 0xa0c   : > { %v11599_v30 = vadd.f32 %v11598_v49, %v11597_v10  ;;  %v11509_v27 = vpop.f32.mrf.mxu0 }
 0xa0d   : > { %v11600_v26 = vpop.f32.mrf.mxu1 }
 0xa0e   : > { %v17734_v63 = vadd.f32 %v11599_v30, %v17624_v38  ;;  %v11510_v13 = vpop.f32.mrf.mxu0 }
 0xa0f   : > { %v11601_v42 = vpop.f32.mrf.mxu1  ;;  %v17736_v57 = vadd.f32 %v11510_v13, %v11509_v27 }
 0xa10   : > { %v11602_v53 = vadd.f32 %v11601_v42, %v11600_v26  ;;  %v12330_v17 = vpop.f32.mrf.mxu0  ;;  %12377 = vmatmul.mubr.bf16.vlgmr.msra.gmra.mxu0 %v17028_v3 }
 0xa11   : > { %v11603_v16 = vpop.f32.mrf.mxu1  ;;  %v17740_v35 = vadd.f32 %v12330_v17, %v17642_v31 }
 0xa12   : > { %v17743_v60 = vadd.f32 %v11602_v53, %v17631_v0  ;;  %v8795_v11 = vpop.f32.mrf.mxu0 }
 0xa13   : > { %v11604_v45 = vpop.f32.mrf.mxu1  ;;  %v17746_v38 = vadd.f32 %v8795_v11, %v17628_v55 }
 0xa14   : > { %v11605_v22 = vadd.f32 %v11604_v45, %v11603_v16  ;;  %v12331_v41 = vpop.f32.mrf.mxu0 }
 0xa15   : > { %v11606_v14 = vpop.f32.mrf.mxu1  ;;  %v17749_v33 = vadd.f32 %v12331_v41, %v17648_v28 }
 0xa16   : > { %v17752_v18 = vadd.f32 %v11605_v22, %v17638_v9  ;;  %v8798_v31 = vpop.f32.mrf.mxu0 }
 0xa17   : > { %v11607_v3 = vpop.f32.mrf.mxu1  ;;  %v17755_v0 = vadd.f32 %v8798_v31, %v17634_v39 }
 0xa18   : > { %v11608_v21 = vadd.f32 %v11607_v3, %v11606_v14  ;;  %v12334_v15 = vpop.f32.mrf.mxu0 }
 0xa19   : > { %v11609_v32 = vpop.f32.mrf.mxu1  ;;  %v17758_v56 = vadd.f32 %v12334_v15, %v17670_v12 }
 0xa1a   : > { %v8707_v55 = vadd.f32 %v11608_v21, %v17645_v43  ;;  %v8811_v46 = vpop.f32.mrf.mxu0 }
 0xa1b   : > { %v11610_v8 = vpop.f32.mrf.mxu1  ;;  %v17762_v2 = vadd.f32 %v8811_v46, %v17656_v37 }
 0xa1c   : > { %v11611_v28 = vadd.f32 %v11610_v8, %v11609_v32  ;;  %v12335_v25 = vpop.f32.mrf.mxu0 }
 0xa1d   : > { %v11612_v9 = vpop.f32.mrf.mxu1  ;;  %v17765_v6 = vadd.f32 %v12335_v25, %v17676_v19 }
 0xa1e   : > { %v8710_v39 = vadd.f32 %v11611_v28, %v17652_v20  ;;  %v8814_v23 = vpop.f32.mrf.mxu0 }
 0xa1f   : > { %v11613_v10 = vpop.f32.mrf.mxu1  ;;  %v17769_v12 = vadd.f32 %v8814_v23, %v17662_v48 }
 0xa20   : > { %v11614_v49 = vadd.f32 %v11613_v10, %v11612_v9  ;;  %v12338_v30 = vpop.f32.mrf.mxu0 }
 0xa21   : > { %v11615_v43 = vpop.f32.mrf.mxu1  ;;  %v17772_v27 = vadd.f32 %v12338_v30, %v17701_v29 }
 0xa22   : > { %v8715_v37 = vadd.f32 %v11614_v49, %v17659_v7  ;;  %v8827_v13 = vpop.f32.mrf.mxu0 }
 0xa23   : > { %v11616_v26 = vpop.f32.mrf.mxu1  ;;  %v17776_v19 = vadd.f32 %v8827_v13, %v17684_v51 }
 0xa24   : > { %v11617_v42 = vadd.f32 %v11616_v26, %v11615_v43  ;;  %v12339_v53 = vpop.f32.mrf.mxu0 }
 0xa25   : > { %v11618_v20 = vpop.f32.mrf.mxu1  ;;  %v17779_v16 = vadd.f32 %v12339_v53, %v17707_v4 }
 0xa26   : > { %v8718_v48 = vadd.f32 %v11617_v42, %v17666_v24  ;;  %v8830_v45 = vpop.f32.mrf.mxu0 }
 0xa27   : > { %v11619_v17 = vpop.f32.mrf.mxu1  ;;  %v17783_v29 = vadd.f32 %v8830_v45, %v17691_v58 }
 0xa28   : > { %v11620_v11 = vadd.f32 %v11619_v17, %v11618_v20  ;;  %v12342_v22 = vpop.f32.mrf.mxu0 }
 0xa29   : > { %v11621_v7 = vpop.f32.mrf.mxu1  ;;  %v17786_v14 = vadd.f32 %v12342_v22, %v17729_v59 }
 0xa2a   : > { %v8723_v51 = vadd.f32 %v11620_v11, %v17673_v34  ;;  %v8843_v3 = vpop.f32.mrf.mxu0 }
 0xa2b   : > { %v11622_v41 = vpop.f32.mrf.mxu1  ;;  %v17790_v4 = vadd.f32 %v8843_v3, %v17715_v62 }
 0xa2c   : > { %v11623_v31 = vadd.f32 %v11622_v41, %v11621_v7  ;;  %v12343_v21 = vpop.f32.mrf.mxu0 }
 0xa2d   : > { %v11624_v24 = vpop.f32.mrf.mxu1  ;;  %v17793_v32 = vadd.f32 %v12343_v21, %v17734_v63 }
 0xa2e   : > { %v8726_v58 = vadd.f32 %v11623_v31, %v17680_v40  ;;  %v8846_v8 = vpop.f32.mrf.mxu0 }
 0xa2f   : > { %v11625_v15 = vpop.f32.mrf.mxu1  ;;  %v17797_v59 = vadd.f32 %v8846_v8, %v17721_v5 }
 0xa30   : > { %v11626_v46 = vadd.f32 %v11625_v15, %v11624_v24  ;;  %v12346_v28 = vpop.f32.mrf.mxu0 }
 0xa31   : > { %v11627_v34 = vpop.f32.mrf.mxu1  ;;  %v17799_v9 = vadd.f32 %v12346_v28, %v8707_v55 }
 0xa32   : > { %v8731_v62 = vadd.f32 %v11626_v46, %v17688_v50  ;;  %v8859_v10 = vpop.f32.mrf.mxu0 }
 0xa33   : > { %v11628_v25 = vpop.f32.mrf.mxu1  ;;  %v17803_v63 = vadd.f32 %v8859_v10, %v17743_v60  ;;  %v8450_v10 = vadd.f32 %v17603_v52, %v17731_v1 }
 0xa34   : > { %v11629_v23 = vadd.f32 %v11628_v25, %v11627_v34  ;;  %v12347_v40 = vpop.f32.mrf.mxu0 }
 0xa35   : > { %v11630_v49 = vpop.f32.mrf.mxu1  ;;  %v17805_v43 = vadd.f32 %v12347_v40, %v8710_v39 }
 0xa36   : > { %v8734_v30 = vadd.f32 %v11629_v23, %v17697_v61  ;;  %v8862_v26 = vpop.f32.mrf.mxu0 }
 0xa37   : > { %v11631_v5 = vpop.f32.mrf.mxu1  ;;  %v17809_v55 = vadd.f32 %v8862_v26, %v17752_v18 }
 0xa38   : > { %v11632_v13 = vadd.f32 %v11631_v5, %v11630_v49  ;;  %v12350_v50 = vpop.f32.mrf.mxu0 }
 0xa39   : > { %v11633_v42 = vpop.f32.mrf.mxu1  ;;  %v17811_v20 = vadd.f32 %v12350_v50, %v8723_v51 }
 0xa3a   : > { %v8739_v53 = vadd.f32 %v11632_v13, %v17704_v36  ;;  %v8875_v17 = vpop.f32.mrf.mxu0  ;;  %v18288_v13 = vld [vmem:[#allocation59_spill] sm:$0xff] }
 0xa3b   : > { %v11634_v60 = vpop.f32.mrf.mxu1  ;;  %v17814_v11 = vadd.f32 %v8875_v17, %v8715_v37 }
 0xa3c   : > { %v11635_v45 = vadd.f32 %v11634_v60, %v11633_v42  ;;  %v12351_v7 = vpop.f32.mrf.mxu0  ;;  %v8453_v42 = vadd.f32 %v18288_v13, %v17736_v57 }
 0xa3d   : > { %v11636_v39 = vpop.f32.mrf.mxu1  ;;  %v17816_v61 = vadd.f32 %v12351_v7, %v8726_v58 }
 0xa3e   : > { %v8742_v22 = vadd.f32 %v11635_v45, %v17712_v54  ;;  %v8878_v18 = vpop.f32.mrf.mxu0 }
 0xa3f   : > { %v11637_v41 = vpop.f32.mrf.mxu1  ;;  %v17819_v31 = vadd.f32 %v8878_v18, %v8718_v48 }
 0xa40   : > { %v11638_v3 = vadd.f32 %v11637_v41, %v11636_v39  ;;  %v12354_v24 = vpop.f32.mrf.mxu0 }
 0xa41   : > { %v11639_v51 = vpop.f32.mrf.mxu1  ;;  %v17821_v21 = vadd.f32 %v12354_v24, %v8739_v53 }
 0xa42   : > { %v8747_v36 = vadd.f32 %v11638_v3, %v17718_v47  ;;  %v8891_v37 = vpop.f32.mrf.mxu0 }
 0xa43   : > { %v11640_v15 = vpop.f32.mrf.mxu1  ;;  %v17824_v46 = vadd.f32 %v8891_v37, %v8731_v62 }
 0xa44   : > { %v11641_v8 = vadd.f32 %v11640_v15, %v11639_v51  ;;  %v12355_v34 = vpop.f32.mrf.mxu0 }
 0xa45   : > { %v11642_v58 = vpop.f32.mrf.mxu1  ;;  %v17826_v28 = vadd.f32 %v12355_v34, %v8742_v22 }
 0xa46   : > { %v8750_v54 = vadd.f32 %v11641_v8, %v17725_v44  ;;  %v8894_v48 = vpop.f32.mrf.mxu0 }
 0xa47   : > { %v11643_v25 = vpop.f32.mrf.mxu1  ;;  %v17831_v49 = vadd.f32 %v8894_v48, %v8734_v30 }
 0xa48   : > { %v11644_v23 = vadd.f32 %v11643_v25, %v11642_v58  ;;  %v12358_v40 = vpop.f32.mrf.mxu0 }
 0xa49   : > { %v11645_v47 = vpop.f32.mrf.mxu1 }
 0xa4a   : > { %v8755_v5 = vadd.f32 %v11644_v23, %v8450_v10  ;;  %v8907_v62 = vpop.f32.mrf.mxu0 }
 0xa4b   : > { %v11646_v26 = vpop.f32.mrf.mxu1  ;;  %v17837_v44 = vadd.f32 %v8907_v62, %v8747_v36 }
 0xa4c   : > { %v17835_v50 = vadd.f32 %v12358_v40, %v8755_v5  ;;  %v11647_v53 = vadd.f32 %v11646_v26, %v11645_v47  ;;  %v12359_v60 = vpop.f32.mrf.mxu0 }
 0xa4d   : > { %v12382_v24 = vpop.f32.mrf.mxu1 }
 0xa4e   : > { %v8758_v17 = vadd.f32 %v11647_v53, %v8453_v42  ;;  %v8910_v45 = vpop.f32.mrf.mxu0 }
 0xa4f   : > { %v17841_v1 = vadd.f32 %v8910_v45, %v8750_v54  ;;  %v9326_v8 = vpop.f32.mrf.mxu1 }
 0xa50   : > { %v17839_v52 = vadd.f32 %v12359_v60, %v8758_v17  ;;  %v11688_v30 = vpop.f32.mrf.mxu0 }
 0xa51   : > { %v12383_v25 = vpop.f32.mrf.mxu1 }
 0xa52   : > { %v11689_v39 = vpop.f32.mrf.mxu0 }
 0xa53   : > { %v17843_v7 = vadd.f32 %v11689_v39, %v11688_v30  ;;  %v9329_v5 = vpop.f32.mrf.mxu1 }
 0xa54   : > { %v11691_v22 = vpop.f32.mrf.mxu0 }
 0xa55   : > { %v12386_v60 = vpop.f32.mrf.mxu1 }
 0xa56   : > { %v11692_v41 = vpop.f32.mrf.mxu0 }
 0xa57   : > { %v17845_v18 = vadd.f32 %v11692_v41, %v11691_v22  ;;  %v9342_v41 = vpop.f32.mrf.mxu1 }
 0xa58   : > { %v11694_v57 = vpop.f32.mrf.mxu0 }
 0xa5a   : > { %v11695_v3 = vpop.f32.mrf.mxu0 }
 0xa5b   : > { %v17847_v51 = vadd.f32 %v11695_v3, %v11694_v57 }
 0xa5c   : > { %v11697_v36 = vpop.f32.mrf.mxu0 }
 0xa5e   : > { %v11698_v15 = vpop.f32.mrf.mxu0 }
 0xa5f   : > { %v17849_v37 = vadd.f32 %v11698_v15, %v11697_v36 }
 0xa60   : > { %v11700_v58 = vpop.f32.mrf.mxu0 }
 0xa62   : > { %v11701_v34 = vpop.f32.mrf.mxu0 }
 0xa63   : > { %v11702_v54 = vadd.f32 %v11701_v34, %v11700_v58 }
 0xa64   : > { %v11703_v48 = vpop.f32.mrf.mxu0 }
 0xa65   : > { %v9327_v10 = vadd.f32 %v11702_v54, %v9326_v8  ;;  %v12387_v8 = vpop.f32.mrf.mxu1 }
 0xa66   : > { %v11704_v23 = vpop.f32.mrf.mxu0 }
 0xa67   : > { %v11705_v47 = vadd.f32 %v11704_v23, %v11703_v48  ;;  %v17852_v40 = vadd.f32 %v9327_v10, %v17762_v2  ;;  %v9345_v48 = vpop.f32.mrf.mxu1 }
 0xa68   : > { %v11706_v26 = vpop.f32.mrf.mxu0 }
 0xa69   : > { %v9330_v62 = vadd.f32 %v11705_v47, %v9329_v5  ;;  %v12390_v5 = vpop.f32.mrf.mxu1 }
 0xa6a   : > { %v11707_v13 = vpop.f32.mrf.mxu0 }
 0xa6b   : > { %v11708_v42 = vadd.f32 %v11707_v13, %v11706_v26  ;;  %v17855_v53 = vadd.f32 %v9330_v62, %v17769_v12 }
 0xa6c   : > { %v11709_v17 = vpop.f32.mrf.mxu0 }
 0xa6d   : > { %v9335_v45 = vadd.f32 %v12382_v24, %v11708_v42 }
 0xa6e   : > { %v11710_v30 = vpop.f32.mrf.mxu0 }
 0xa6f   : > { %v11711_v39 = vadd.f32 %v11710_v30, %v11709_v17  ;;  %v17858_v22 = vadd.f32 %v9335_v45, %v17758_v56  ;;  %v9358_v17 = vpop.f32.mrf.mxu1 }
 0xa70   : > { %v11712_v57 = vpop.f32.mrf.mxu0 }
 0xa71   : > { %v9338_v2 = vadd.f32 %v12383_v25, %v11711_v39 }
 0xa72   : > { %v11713_v3 = vpop.f32.mrf.mxu0 }
 0xa73   : > { %v11714_v36 = vadd.f32 %v11713_v3, %v11712_v57  ;;  %v17861_v15 = vadd.f32 %v9338_v2, %v17765_v6  ;;  %v12391_v57 = vpop.f32.mrf.mxu1 }
 0xa74   : > { %v11715_v58 = vpop.f32.mrf.mxu0 }
 0xa75   : > { %v9343_v12 = vadd.f32 %v11714_v36, %v9342_v41 }
 0xa76   : > { %v11716_v34 = vpop.f32.mrf.mxu0 }
 0xa77   : > { %v11717_v54 = vadd.f32 %v11716_v34, %v11715_v58  ;;  %v17864_v24 = vadd.f32 %v9343_v12, %v17776_v19  ;;  %v9361_v58 = vpop.f32.mrf.mxu1 }
 0xa78   : > { %v11718_v10 = vpop.f32.mrf.mxu0 }
 0xa79   : > { %v9346_v56 = vadd.f32 %v11717_v54, %v9345_v48  ;;  %v12394_v48 = vpop.f32.mrf.mxu1 }
 0xa7a   : > { %v11719_v23 = vpop.f32.mrf.mxu0 }
 0xa7b   : > { %v11720_v47 = vadd.f32 %v11719_v23, %v11718_v10  ;;  %v17867_v25 = vadd.f32 %v9346_v56, %v17783_v29 }
 0xa7c   : > { %v11721_v26 = vpop.f32.mrf.mxu0 }
 0xa7d   : > { %v9351_v6 = vadd.f32 %v12386_v60, %v11720_v47 }
 0xa7e   : > { %v11722_v62 = vpop.f32.mrf.mxu0 }
 0xa7f   : > { %v11723_v13 = vadd.f32 %v11722_v62, %v11721_v26  ;;  %v17870_v42 = vadd.f32 %v9351_v6, %v17772_v27  ;;  %v9374_v26 = vpop.f32.mrf.mxu1 }
 0xa80   : > { %v11724_v45 = vpop.f32.mrf.mxu0 }
 0xa81   : > { %v9354_v19 = vadd.f32 %v12387_v8, %v11723_v13 }
 0xa82   : > { %v11725_v30 = vpop.f32.mrf.mxu0 }
 0xa83   : > { %v11726_v39 = vadd.f32 %v11725_v30, %v11724_v45  ;;  %v17873_v41 = vadd.f32 %v9354_v19, %v17779_v16  ;;  %v12395_v45 = vpop.f32.mrf.mxu1 }
 0xa84   : > { %v11727_v2 = vpop.f32.mrf.mxu0 }
 0xa85   : > { %v9359_v29 = vadd.f32 %v11726_v39, %v9358_v17 }
 0xa86   : > { %v11728_v3 = vpop.f32.mrf.mxu0 }
 0xa87   : > { %v11729_v36 = vadd.f32 %v11728_v3, %v11727_v2  ;;  %v17876_v60 = vadd.f32 %v9359_v29, %v17790_v4  ;;  %v9377_v2 = vpop.f32.mrf.mxu1 }
 0xa88   : > { %v11730_v12 = vpop.f32.mrf.mxu0 }
 0xa89   : > { %v9362_v27 = vadd.f32 %v11729_v36, %v9361_v58 }
 0xa8a   : > { %v11731_v34 = vpop.f32.mrf.mxu0 }
 0xa8b   : > { %v11732_v54 = vadd.f32 %v11731_v34, %v11730_v12  ;;  %v17879_v8 = vadd.f32 %v9362_v27, %v17797_v59  ;;  %v12398_v12 = vpop.f32.mrf.mxu1 }
 0xa8c   : > { %v11733_v10 = vpop.f32.mrf.mxu0 }
 0xa8d   : > { %v9367_v16 = vadd.f32 %v12390_v5, %v11732_v54 }
 0xa8e   : > { %v11734_v56 = vpop.f32.mrf.mxu0 }
 0xa8f   : > { %v11735_v23 = vadd.f32 %v11734_v56, %v11733_v10  ;;  %v17882_v47 = vadd.f32 %v9367_v16, %v17786_v14  ;;  %v17891_v14 = vld [vmem:[%s17975_s8] ss:$0 sm:$0xff]  ;;  %v9390_v56 = vpop.f32.mrf.mxu1 }
 0xa90   : > { %v11736_v6 = vpop.f32.mrf.mxu0 }
 0xa91   : > { %v9370_v4 = vadd.f32 %v12391_v57, %v11735_v23 }
 0xa92   : > { %v11737_v62 = vpop.f32.mrf.mxu0 }
 0xa93   : > { %v11738_v13 = vadd.f32 %v11737_v62, %v11736_v6  ;;  %v17885_v17 = vadd.f32 %v9370_v4, %v17793_v32 }
 0xa94   : > { %v11739_v19 = vpop.f32.mrf.mxu0 }
 0xa95   : > { %v9375_v59 = vadd.f32 %v11738_v13, %v9374_v26  ;;  %v12399_v13 = vpop.f32.mrf.mxu1 }
 0xa96   : > { %v11740_v30 = vpop.f32.mrf.mxu0 }
 0xa97   : > { %v11741_v39 = vadd.f32 %v11740_v30, %v11739_v19  ;;  %v9453_v5 = vadd.f32 %v9375_v59, %v17803_v63 }
 0xa98   : > { %v11742_v29 = vpop.f32.mrf.mxu0 }
 0xa99   : > { %v9378_v57 = vadd.f32 %v11741_v39, %v9377_v2  ;;  %v9492_v3 = vadd.f32 %v17891_v14, %v9453_v5  ;;  %v9393_v5 = vpop.f32.mrf.mxu1 }
 0xa9a   : > { %v11743_v36 = vpop.f32.mrf.mxu0 }
 0xa9b   : > { %v11744_v32 = vadd.f32 %v11743_v36, %v11742_v29  ;;  %9540 = vxpose.xlu1.b32.start [1/16] (narrow) %v9492_v3, 8  ;;  %v9454_v58 = vadd.f32 %v9378_v57, %v17809_v55  ;;  %v12402_v36 = vpop.f32.mrf.mxu1 }
 0xa9c   : > { %v11745_v27 = vpop.f32.mrf.mxu0 }
 0xa9d   : > { %v9383_v34 = vadd.f32 %v12394_v48, %v11744_v32  ;;  %v9493_v63 = vadd.f32 %v17891_v14, %v9454_v58 }
 0xa9e   : > { %v11746_v54 = vpop.f32.mrf.mxu0 }
 0xa9f   : > { %v11747_v10 = vadd.f32 %v11746_v54, %v11745_v27  ;;  %9541 = vxpose.xlu1.b32.cont [2/16] (narrow) %v9493_v63, 8  ;;  %v9455_v16 = vadd.f32 %v9383_v34, %v17799_v9  ;;  %v9406_v54 = vpop.f32.mrf.mxu1 }
 0xaa0   : > { %v11748_v23 = vpop.f32.mrf.mxu0 }
 0xaa1   : > { %v9386_v26 = vadd.f32 %v12395_v45, %v11747_v10  ;;  %v9494_v6 = vadd.f32 %v17891_v14, %v9455_v16 }
 0xaa2   : > { %v11749_v4 = vpop.f32.mrf.mxu0 }
 0xaa3   : > { %v11750_v62 = vadd.f32 %v11749_v4, %v11748_v23  ;;  %9542 = vxpose.xlu1.b32.cont [3/16] (narrow) %v9494_v6, 8  ;;  %v9456_v55 = vadd.f32 %v9386_v26, %v17805_v43  ;;  %v12403_v6 = vpop.f32.mrf.mxu1 }
 0xaa4   : > { %v11751_v19 = vpop.f32.mrf.mxu0 }
 0xaa5   : > { %v9391_v48 = vadd.f32 %v11750_v62, %v9390_v56  ;;  %v9495_v59 = vadd.f32 %v17891_v14, %v9456_v55 }
 0xaa6   : > { %v11752_v30 = vpop.f32.mrf.mxu0 }
 0xaa7   : > { %v11753_v39 = vadd.f32 %v11752_v30, %v11751_v19  ;;  %9543 = vxpose.xlu1.b32.cont [4/16] (narrow) %v9495_v59, 8  ;;  %v9457_v9 = vadd.f32 %v9391_v48, %v17814_v11  ;;  %v9409_v48 = vpop.f32.mrf.mxu1 }
 0xaa8   : > { %v11754_v2 = vpop.f32.mrf.mxu0 }
 0xaa9   : > { %v9394_v45 = vadd.f32 %v11753_v39, %v9393_v5  ;;  %v9496_v29 = vadd.f32 %v17891_v14, %v9457_v9  ;;  %v12406_v9 = vpop.f32.mrf.mxu1 }
 0xaaa   : > { %v11755_v57 = vpop.f32.mrf.mxu0 }
 0xaab   : > { %v11756_v3 = vadd.f32 %v11755_v57, %v11754_v2  ;;  %9544 = vxpose.xlu1.b32.cont [5/16] (narrow) %v9496_v29, 8  ;;  %v9458_v43 = vadd.f32 %v9394_v45, %v17819_v31 }
 0xaac   : > { %v11757_v32 = vpop.f32.mrf.mxu0 }
 0xaad   : > { %v9399_v58 = vadd.f32 %v12398_v12, %v11756_v3  ;;  %v9497_v27 = vadd.f32 %v17891_v14, %v9458_v43  ;;  %v9422_v3 = vpop.f32.mrf.mxu1 }
 0xaae   : > { %v11758_v34 = vpop.f32.mrf.mxu0 }
 0xaaf   : > { %v11759_v63 = vadd.f32 %v11758_v34, %v11757_v32  ;;  %9545 = vxpose.xlu1.b32.cont [6/16] (narrow) %v9497_v27, 8  ;;  %v9459_v11 = vadd.f32 %v9399_v58, %v17811_v20 }
 0xab0   : > { %v11760_v10 = vpop.f32.mrf.mxu0 }
 0xab1   : > { %v9402_v16 = vadd.f32 %v12399_v13, %v11759_v63  ;;  %v9498_v56 = vadd.f32 %v17891_v14, %v9459_v11  ;;  %v12407_v63 = vpop.f32.mrf.mxu1 }
 0xab2   : > { %v11761_v23 = vpop.f32.mrf.mxu0 }
 0xab3   : > { %v11762_v26 = vadd.f32 %v11761_v23, %v11760_v10  ;;  %9546 = vxpose.xlu1.b32.cont [7/16] (narrow) %v9498_v56, 8  ;;  %v9460_v31 = vadd.f32 %v9402_v16, %v17816_v61  ;;  %v9425_v56 = vpop.f32.mrf.mxu1 }
 0xab4   : > { %v11763_v4 = vpop.f32.mrf.mxu0 }
 0xab5   : > { %v9407_v12 = vadd.f32 %v11762_v26, %v9406_v54  ;;  %v9499_v62 = vadd.f32 %v17891_v14, %v9460_v31 }
 0xab6   : > { %v11764_v55 = vpop.f32.mrf.mxu0 }
 0xab7   : > { %v11765_v19 = vadd.f32 %v11764_v55, %v11763_v4  ;;  %9547 = vxpose.xlu1.b32.cont [8/16] (narrow) %v9499_v62, 8  ;;  %v9461_v20 = vadd.f32 %v9407_v12, %v17824_v46 }
 0xab8   : > { %v11766_v59 = vpop.f32.mrf.mxu0 }
 0xab9   : > { %v9410_v13 = vadd.f32 %v11765_v19, %v9409_v48  ;;  %v9500_v30 = vadd.f32 %v17891_v14, %v9461_v20 }
 0xaba   : > { %v11767_v39 = vpop.f32.mrf.mxu0 }
 0xabb   : > { %v11768_v5 = vadd.f32 %v11767_v39, %v11766_v59  ;;  %9548 = vxpose.xlu1.b32.cont [9/16] (narrow) %v9500_v30, 8  ;;  %v9462_v61 = vadd.f32 %v9410_v13, %v17831_v49 }
 0xabc   : > { %v11769_v2 = vpop.f32.mrf.mxu0 }
 0xabd   : > { %v9415_v45 = vadd.f32 %v12402_v36, %v11768_v5  ;;  %v9501_v29 = vadd.f32 %v17891_v14, %v9462_v61 }
 0xabe   : > { %v11770_v57 = vpop.f32.mrf.mxu0 }
 0xabf   : > { %v11771_v43 = vadd.f32 %v11770_v57, %v11769_v2  ;;  %9549 = vxpose.xlu1.b32.cont [10/16] (narrow) %v9501_v29, 8  ;;  %v9463_v46 = vadd.f32 %v9415_v45, %v17821_v21 }
 0xac0   : > { %v11772_v32 = vpop.f32.mrf.mxu0 }
 0xac1   : > { %v9418_v58 = vadd.f32 %v12403_v6, %v11771_v43  ;;  %v9502_v27 = vadd.f32 %v17891_v14, %v9463_v46  ;;  %v9484_v46 = vadd.f32 %v17891_v14, %v17864_v24  ;;  %v9489_v24 = vadd.f32 %v17891_v14, %v17879_v8 }
 0xac2   : > { %v11773_v34 = vpop.f32.mrf.mxu0 }
 0xac3   : > { %v11774_v11 = vadd.f32 %v11773_v34, %v11772_v32  ;;  %9550 = vxpose.xlu1.b32.cont [11/16] (narrow) %v9502_v27, 8  ;;  %v9464_v49 = vadd.f32 %v9418_v58, %v17826_v28  ;;  %v18289_v34 = vld [vmem:[#allocation30_spill] sm:$0xff] }
 0xac4   : > { %v11775_v54 = vpop.f32.mrf.mxu0 }
 0xac5   : > { %v9423_v36 = vadd.f32 %v11774_v11, %v9422_v3  ;;  %v9503_v10 = vadd.f32 %v17891_v14, %v9464_v49 }
 0xac6   : > { %v11776_v16 = vpop.f32.mrf.mxu0 }
 0xac7   : > { %v9465_v23 = vadd.f32 %v9423_v36, %v17837_v44  ;;  %v11777_v26 = vadd.f32 %v11776_v16, %v11775_v54  ;;  %9551 = vxpose.xlu1.b32.cont [12/16] (narrow) %v9503_v10, 8 }
 0xac8   : > { %v11778_v21 = vpop.f32.mrf.mxu0 }
 0xac9   : > { %v9426_v31 = vadd.f32 %v11777_v26, %v9425_v56  ;;  %v9504_v6 = vadd.f32 %v17891_v14, %v9465_v23 }
 0xaca   : > { %v11779_v4 = vpop.f32.mrf.mxu0 }
 0xacb   : > { %v9466_v12 = vadd.f32 %v9426_v31, %v17841_v1  ;;  %v11780_v62 = vadd.f32 %v11779_v4, %v11778_v21  ;;  %9552 = vxpose.xlu1.b32.cont [13/16] (narrow) %v9504_v6, 8 }
 0xacc   : > { %v11781_v28 = vpop.f32.mrf.mxu0 }
 0xacd   : > { %v9431_v55 = vadd.f32 %v12406_v9, %v11780_v62  ;;  %v9505_v19 = vadd.f32 %v17891_v14, %v9466_v12 }
 0xace   : > { %v11782_v20 = vpop.f32.mrf.mxu0 }
 0xacf   : > { %v11783_v48 = vadd.f32 %v11782_v20, %v11781_v28  ;;  %9553 = vxpose.xlu1.b32.cont [14/16] (narrow) %v9505_v19, 8  ;;  %v9467_v44 = vadd.f32 %v9431_v55, %v17835_v50 }
 0xad0   : > { %v12378_v59 = vpop.f32.mrf.mxu0 }
 0xad1   : > { %v9434_v13 = vadd.f32 %v12407_v63, %v11783_v48  ;;  %v9319_v30 = vadd.f32 %v12378_v59, %v17847_v51  ;;  %v9506_v39 = vadd.f32 %v17891_v14, %v9467_v44 }
 0xad2   : > { %v9310_v5 = vpop.f32.mrf.mxu0 }
 0xad3   : > { %v9439_v1 = vadd.f32 %v9319_v30, %v17740_v35  ;;  %v9311_v61 = vadd.f32 %v17843_v7, %v9310_v5  ;;  %9554 = vxpose.xlu1.b32.cont [15/16] (narrow) %v9506_v39, 8  ;;  %v9468_v9 = vadd.f32 %v9434_v13, %v17839_v52 }
 0xad4   : > { %v12379_v2 = vpop.f32.mrf.mxu0 }
 0xad5   : > { %v9322_v45 = vadd.f32 %v12379_v2, %v17849_v37  ;;  %v9507_v29 = vadd.f32 %v17891_v14, %v9468_v9  ;;  %v9437_v50 = vadd.f32 %v9311_v61, %v17746_v38  ;;  %v9478_v37 = vadd.f32 %v17891_v14, %v9439_v1 }
 0xad6   : > { %v9313_v57 = vpop.f32.mrf.mxu0  ;;  %v9480_v38 = vadd.f32 %v17891_v14, %v17852_v40  ;;  %v9485_v40 = vadd.f32 %v17891_v14, %v17867_v25  ;;  %v9490_v25 = vadd.f32 %v17891_v14, %v17882_v47  ;;  %v18290_v47 = vlaneseq }
 0xad7   : > { %v9440_v51 = vadd.f32 %v9322_v45, %v17749_v33  ;;  %v9314_v3 = vadd.f32 %v17845_v18, %v9313_v57  ;;  %9555 = vxpose.xlu1.b32.end [16/16] (narrow) %v9507_v29, 8  ;;  %v9476_v35 = vadd.f32 %v17891_v14, %v9437_v50  ;;  %v9481_v33 = vadd.f32 %v17891_v14, %v17855_v53 }
 0xad8   : > { %v9483_v18 = vadd.f32 %v17891_v14, %v17861_v15  ;;  %v9486_v53 = vadd.f32 %v17891_v14, %v17870_v42  ;;  %v9488_v15 = vadd.f32 %v17891_v14, %v17876_v60  ;;  %v9491_v42 = vadd.f32 %v17891_v14, %v17885_v17 }
 0xad9   : > { %v9438_v7 = vadd.f32 %v9314_v3, %v17755_v0  ;;  %9508 = vxpose.xlu0.b32.start [1/16] (narrow) %v9476_v35, 8  ;;  %v9479_v43 = vadd.f32 %v17891_v14, %v9440_v51  ;;  %v9482_v0 = vadd.f32 %v17891_v14, %v17858_v22  ;;  %v9487_v22 = vadd.f32 %v17891_v14, %v17873_v41 }
 0xada   : > { %v12811_v41 = vmov 1966171168   ;;  %vm9599_vm13 = vcmp.lt.s32.totalorder %v18290_v47, 256 }
 0xadb   : > { %v9477_v52 = vadd.f32 %v17891_v14, %v9438_v7  ;;  %v9583_v32 = vunpack.c.l.s4 %v12811_v41 }
 0xadd   : > { %9509 = vxpose.xlu0.b32.cont [2/16] (narrow) %v9477_v52, 8  ;;  %v9584_v58 = vunpack.c.0.s8 %v9583_v32 }
 0xadf   : > { %v9587_v63 = vsub.s32 %v9584_v58, %v18289_v34 }
 0xae1   : > { %9510 = vxpose.xlu0.b32.cont [3/16] (narrow) %v9478_v37, 8 }
 0xae5   : > { %9511 = vxpose.xlu0.b32.cont [4/16] (narrow) %v9479_v43, 8 }
 0xae9   : > { %9512 = vxpose.xlu0.b32.cont [5/16] (narrow) %v9480_v38, 8 }
 0xaed   : > { %9513 = vxpose.xlu0.b32.cont [6/16] (narrow) %v9481_v33, 8 }
 0xaf1   : > { %9514 = vxpose.xlu0.b32.cont [7/16] (narrow) %v9482_v0, 8 }
 0xaf5   : > { %9515 = vxpose.xlu0.b32.cont [8/16] (narrow) %v9483_v18, 8 }
 0xaf9   : > { %9516 = vxpose.xlu0.b32.cont [9/16] (narrow) %v9484_v46, 8 }
 0xafd   : > { %9517 = vxpose.xlu0.b32.cont [10/16] (narrow) %v9485_v40, 8 }
 0xb01   : > { %9518 = vxpose.xlu0.b32.cont [11/16] (narrow) %v9486_v53, 8 }
 0xb05   : > { %9519 = vxpose.xlu0.b32.cont [12/16] (narrow) %v9487_v22, 8 }
 0xb09   : > { %9520 = vxpose.xlu0.b32.cont [13/16] (narrow) %v9488_v15, 8 }
 0xb0d   : > { %9521 = vxpose.xlu0.b32.cont [14/16] (narrow) %v9489_v24, 8 }
 0xb11   : > { %9522 = vxpose.xlu0.b32.cont [15/16] (narrow) %v9490_v25, 8 }
 0xb15   : > { %9523 = vxpose.xlu0.b32.end [16/16] (narrow) %v9491_v42, 8 }
 0xb17   : > { %v9556_v27 = vpop.trf.xlu1 }
 0xb18   : > { %v9573_v60 = vmax.f32 %v9556_v27, 0.0 }
 0xb55   : > { %v9524_v11 = vpop.trf.xlu0 }
 0xb56   : > { %v9572_v8 = vmax.f32 %v9524_v11, 0.0  ;;  %v9581_v49 = vcombine.high %v9524_v11, %v9556_v27 }
 0xb58   : > { %v9576_v54 = vcombine.low %v9572_v8, %v9573_v60  ;;  %v9588_v36 = vrot.slane %v9581_v49, %v9587_v63 }
 0xb5a   : > { %9578 = vst [vmem:[%s12892_s23] sm:$0xff] %v9576_v54  ;;  %v9595_v10 = vrot.slane %v9588_v36, %v9587_v63 }
 0xb5c   : > { %9601 = vst.msk [vmem:[%s12897_s26] sm:$0x3] %vm9599_vm13, %v9595_v10 }
 0xb5d PF: > { %s21_s13 = sadd.s32 1, %s12806_s13  }
 0xb5e   : > { %p18_p4 = scmp.ge.s32.totalorder %s21_s13, 4  }
 0xb60   :  { %20 = sbr.rel (!%p18_p4) target bundleno = 1 (0x1), region = 146 }
 0xb65   :  { %9637 = vsyncmov [#allocation4] }
 0xb68   :  { %s9638_s18 = vpop.sfrf %9637 }
 0xb69   :  { %p10437_p5 = scmp.ne.s32.totalorder %s9638_s18, 0 }
 0xb6b   :  { %9642 = shalt.err (%p10437_p5)  }

</bundles_post_ra>
